<compile_context>
chip_gen: v5e
topology: v5e:2x2
jax: 0.10.0
libtpu: 0.0.40
codegen_flags: <defaults>
</compile_context>

<pallas_src>
import math
import numpy as np
import jax
import jax.numpy as jnp
from jax.experimental import pallas as pl
from jax.experimental.pallas import tpu as pltpu

KSIZE = 5
PAD = KSIZE // 2
NGROUPS = 8
EPS = 1e-5


def _mish_ref(v):
    # Reference-accuracy Mish for host-side (XLA) code and the pure-JAX reference.
    return v * jnp.tanh(jax.nn.softplus(v))


def _mish(v):
    # In-kernel Mish with a single transcendental:
    #   tanh(softplus(x)) = ((1+e^x)^2 - 1) / ((1+e^x)^2 + 1)
    # exp clamped at 20 (mish(x) == x to f32 precision beyond that); approx
    # reciprocal + one Newton step keeps (q-1)/(q+1) ~f32-exact, so the old
    # compare/select guard for large x is unnecessary (perf review).
    s = jnp.exp(jnp.minimum(v, 20.0))
    q = (1.0 + s) * (1.0 + s)
    den = q + 1.0
    r = pl.reciprocal(den, approx=True)
    r = r * (2.0 - den * r)          # one Newton step -> ~f32-exact 1/den
    return v * ((q - 1.0) * r)


def _pick_tiling(B, hs0, cin_pad, E, cout, block_b, in_item, vmem_budget):
    """Pick (block_b, hs): samples per grid step and the per-sample lane slot."""
    def hs_for(bb):
        if bb == B:                           # single tile: block == full array, any width legal
            return hs0
        step = 128 // math.gcd(128, bb)       # bb*hs must be a multiple of 128 lanes
        return ((hs0 + step - 1) // step) * step

    def vmem_est(bb, hs):
        lb = bb * hs
        streamed = 2 * ((cin_pad + E) * in_item + cout * 4) * lb             # double-buffered blocks
        live = 4 * (KSIZE * (cin_pad + cout) + 6 * cout + 2 * E + 8) * lb    # rough f32 intermediates
        return streamed + live

    if block_b is not None:
        return block_b, hs_for(block_b)

    cands = []
    for bb in (d for d in range(1, B + 1) if B % d == 0):
        hs = hs_for(bb)
        if bb != B and hs > 2 * hs0:          # >50% padding waste
            continue
        cands.append((bb, hs))
    fits = [c for c in cands if vmem_est(*c) <= vmem_budget]
    pool = fits if fits else [min(cands, key=lambda c: vmem_est(*c))]

    def score(c):
        bb, hs = c
        lanes, gridn = bb * hs, B // bb
        # wider lanes (up to 512) > low pad waste > even parallel grid (v7x 2 TCs) > fewer steps
        return (min(lanes, 512), -(hs - hs0), int(gridn >= 2 and gridn % 2 == 0), -gridn)

    return max(pool, key=score)


def residual_temporal_block(x, t, pos, params, *, block_b=None, use_bf16=False,
                            vmem_budget=24 * 2 ** 20):
    """x:[B,Cin,H], t:[B,E], pos:[B,E,H] -> [B,Cout,H] (PyTorch forward semantics)."""
    B, cin, H = x.shape
    cout = params["conv1_w"].shape[0]
    E = t.shape[1]
    assert cout % NGROUPS == 0
    gs = cout // NGROUPS
    has_res = "res_w" in params               # residual 1x1 conv only when cin != cout
    if not has_res:
        assert cin == cout
    out_dtype = x.dtype                       # preserve caller dtype on the output
    f32 = jnp.float32
    store_dt = jnp.bfloat16 if use_bf16 else f32

    # channel padding so the im2col tap concat is always sublane-aligned
    cin_pad = -(-cin // 8) * 8

    # ---- batch tiling: block_b samples per grid step, hs lanes per sample ----
    hs0 = H + 2 * PAD
    block_b, hs = _pick_tiling(B, hs0, cin_pad, E, cout, block_b,
                               2 if use_bf16 else 4, vmem_budget)
    assert B % block_b == 0 and hs >= hs0     # roll wrap-safety invariant
    L = block_b * hs                          # lane width of one grid step
    grid_n = B // block_b
    rpad = hs - H - PAD

    # ---- wrapper-side layout transforms (tiny tensors, fused XLA ops) --------
    # TODO(synk): for production shapes, replace the pad+transpose HBM round trips
    # of x/pos with per-sample manual DMA into a padded VMEM scratch in the kernel.
    x_flat = (jnp.pad(x.astype(f32), ((0, 0), (0, cin_pad - cin), (PAD, rpad)))
              .transpose(1, 0, 2).reshape(cin_pad, B * hs).astype(store_dt))
    pos_flat = (jnp.pad(pos.astype(f32), ((0, 0), (0, 0), (PAD, rpad)))
                .transpose(1, 0, 2).reshape(E, B * hs).astype(store_dt))

    # time MLP hoisted to one batched XLA GEMM:  Mish(t) @ W^T + b  -> [B, Cout]
    temb = (_mish_ref(t.astype(f32)) @ params["time_w"].astype(f32).T
            + params["time_b"].astype(f32)[:, 0][None, :])
    temb_blk = temb.T.reshape(cout, grid_n, block_b).transpose(1, 0, 2)   # [nG, Cout, Bt]

    # conv kernels as im2col matrices [*, K*C + 1]; last column = folded bias
    def im2col(w, c, c_pad):
        wpad = jnp.pad(w.astype(f32), ((0, 0), (0, c_pad - c), (0, 0)))
        return wpad.transpose(0, 2, 1).reshape(w.shape[0], KSIZE * c_pad)

    w1 = jnp.concatenate([im2col(params["conv1_w"], cin, cin_pad),
                          params["conv1_b"].astype(f32)], axis=1)
    if has_res:
        # fuse the residual 1x1 conv into the conv1 matmul: extra Cout rows that
        # only see the centre (k = PAD) tap plus the bias column.
        rrow = jnp.zeros((cout, KSIZE * cin_pad + 1), f32)
        rw = jnp.pad(params["res_w"].astype(f32), ((0, 0), (0, cin_pad - cin)))
        rrow = rrow.at[:, PAD * cin_pad:(PAD + 1) * cin_pad].set(rw)
        rrow = rrow.at[:, -1].set(params["res_b"].astype(f32)[:, 0])
        w1 = jnp.concatenate([w1, rrow], axis=0)                          # [2*Cout, K*Cin_p+1]
    w1 = w1.astype(store_dt)
    w2 = jnp.concatenate([im2col(params["conv2_w"], cout, cout),
                          params["conv2_b"].astype(f32)], axis=1).astype(store_dt)
    pw1 = jnp.concatenate([params["pos_w1"].astype(f32),
                           params["pos_b1"].astype(f32)], axis=1).astype(store_dt)
    pw2 = jnp.concatenate([params["pos_w2"].astype(f32),
                           params["pos_b2"].astype(f32)], axis=1).astype(store_dt)
    gn_pack = jnp.concatenate([params["gn1_g"], params["gn1_b"],
                               params["gn2_g"], params["gn2_b"]], axis=1).astype(f32)

    gavg_np = np.zeros((cout, cout), np.float32)       # block-diagonal group averager
    for g in range(NGROUPS):
        gavg_np[g * gs:(g + 1) * gs, g * gs:(g + 1) * gs] = 1.0 / (gs * H)
    gavg = jnp.asarray(gavg_np)

    # ---- kernel ---------------------------------------------------------------
    def kernel(x_ref, pos_ref, temb_ref, gavg_ref, w1_ref, w2_ref, pw1_ref,
               pw2_ref, gn_ref, o_ref):

        def dotf(a, b):                      # exact f32 matmul (GN stats / broadcasts)
            return jnp.dot(a, b, preferred_element_type=jnp.float32)

        def mxu(w, v):                       # weight-dtype matmul, f32 accumulation
            return jnp.dot(w, v.astype(w.dtype), preferred_element_type=jnp.float32)

        # -- in-kernel constants (no DMA): per-sample valid-column selectors ----
        # sel[m, b] / selT[b, m] = 1 iff lane m is a valid (non-pad) column of sample b.
        mc = jax.lax.broadcasted_iota(jnp.int32, (L, block_b), 0)
        bc = jax.lax.broadcasted_iota(jnp.int32, (L, block_b), 1)
        dc = mc - bc * hs
        sel = jnp.where((dc >= PAD) & (dc < PAD + H), 1.0, 0.0).astype(jnp.float32)
        mr = jax.lax.broadcasted_iota(jnp.int32, (block_b, L), 1)
        br = jax.lax.broadcasted_iota(jnp.int32, (block_b, L), 0)
        dr = mr - br * hs
        selT = jnp.where((dr >= PAD) & (dr < PAD + H), 1.0, 0.0).astype(jnp.float32)
        mask_row = jnp.sum(selT, axis=0, keepdims=True)      # [1, L] 0/1 valid mask
        gavg_v = gavg_ref[...]
        gn = gn_ref[...]

        def conv5(v, w_aug):
            # tap k: column m sees v[:, m + k - PAD]; roll wraps only ever land in
            # discarded pad columns because hs >= H + 2*PAD.  mask_row is the folded
            # bias row (bias applied to valid columns only).
            taps = [v if k == PAD else pltpu.roll(v, (PAD - k) % L, axis=1)
                    for k in range(KSIZE)]
            taps.append(mask_row)
            return mxu(w_aug, jnp.concatenate(taps, axis=0))

        def group_norm(y, gamma, beta):
            # per-(sample, group) stats over valid columns via 0/1 selector matmuls;
            # gamma/beta folded into narrow [Cout, Bt] scale/shift before the lane
            # broadcast, so pad columns come out exactly 0 (what conv2 needs).
            ysum = dotf(y, sel)                               # [Cout, Bt]
            y2sum = dotf(y * y, sel)
            mean_c = dotf(gavg_v, ysum)
            var_c = dotf(gavg_v, y2sum) - mean_c * mean_c
            scale_c = jax.lax.rsqrt(var_c + EPS) * gamma
            shift_c = beta - mean_c * scale_c
            return y * dotf(scale_c, selT) + dotf(shift_c, selT)

        xv = x_ref[...].astype(jnp.float32)                   # [Cin_p, L]

        # ---- blocks[0]: Conv1d(k=5) [+ fused residual 1x1] -> GroupNorm -> Mish
        hr = conv5(xv, w1_ref[...])
        if has_res:
            h, res = hr[0:cout], hr[cout:2 * cout]
        else:
            h, res = hr, xv
        h = _mish(group_norm(h, gn[:, 0:1], gn[:, 1:2]))

        # ---- time embedding (per-sample scalar, valid columns only)
        h = h + dotf(temb_ref[0], selT)

        # ---- pos_mlp: Mish -> 1x1 conv -> Mish -> 1x1 conv (biases folded via
        # mask_row, so pad columns stay exactly 0 -> no explicit mask before conv2)
        p = mxu(pw1_ref[...],
                jnp.concatenate([_mish(pos_ref[...].astype(jnp.float32)), mask_row], axis=0))
        p = mxu(pw2_ref[...], jnp.concatenate([_mish(p), mask_row], axis=0))
        out1 = h + p

        # ---- blocks[1]: Conv1d(k=5) -> GroupNorm -> Mish
        # TODO(synk): on v5e (single vst slot) with large Cout the 5-dot accumulate
        # form of conv5 may beat the im2col concat; im2col kept as the default.
        h2 = _mish(group_norm(conv5(out1, w2_ref[...]), gn[:, 2:3], gn[:, 3:4]))

        o_ref[...] = (h2 + res).astype(o_ref.dtype)

    # ---- specs ----------------------------------------------------------------
    def full_spec(a):
        return pl.BlockSpec(a.shape, lambda i, _nd=a.ndim: (0,) * _nd)

    operands = [x_flat, pos_flat, temb_blk, gavg, w1, w2, pw1, pw2, gn_pack]
    in_specs = [
        pl.BlockSpec((cin_pad, L), lambda i: (0, i)),
        pl.BlockSpec((E, L), lambda i: (0, i)),
        pl.BlockSpec((1, cout, block_b), lambda i: (i, 0, 0)),
        full_spec(gavg), full_spec(w1), full_spec(w2),
        full_spec(pw1), full_spec(pw2), full_spec(gn_pack),
    ]

    y_flat = pl.pallas_call(
        kernel,
        out_shape=jax.ShapeDtypeStruct((cout, B * hs), out_dtype),
        grid_spec=pltpu.PrefetchScalarGridSpec(
            num_scalar_prefetch=0,
            grid=(grid_n,),
            in_specs=in_specs,
            out_specs=pl.BlockSpec((cout, L), lambda i: (0, i)),
        ),
        compiler_params=pltpu.CompilerParams(
            dimension_semantics=("parallel",),
            vmem_limit_bytes=32 * 1024 * 1024,
        ),
    )(*operands)

    # drop per-sample pad columns and return the PyTorch layout [B, Cout, H]
    return y_flat.reshape(cout, B, hs)[:, :, PAD:PAD + H].transpose(1, 0, 2)


def init_params(key, cin, cout, embed_dim):
    ks = jax.random.split(key, 16)

    def n(k, shape, s=0.2):
        return (s * jax.random.normal(k, shape)).astype(jnp.float32)

    params = dict(
        conv1_w=n(ks[0], (cout, cin, KSIZE)),
        conv1_b=n(ks[1], (cout, 1), 0.1),
        gn1_g=(1.0 + n(ks[2], (cout, 1), 0.1)),
        gn1_b=n(ks[3], (cout, 1), 0.1),
        conv2_w=n(ks[4], (cout, cout, KSIZE)),
        conv2_b=n(ks[5], (cout, 1), 0.1),
        gn2_g=(1.0 + n(ks[6], (cout, 1), 0.1)),
        gn2_b=n(ks[7], (cout, 1), 0.1),
        time_w=n(ks[8], (cout, embed_dim)),
        time_b=n(ks[9], (cout, 1), 0.1),
        pos_w1=n(ks[10], (2 * cout, embed_dim)),
        pos_b1=n(ks[11], (2 * cout, 1), 0.1),
        pos_w2=n(ks[12], (cout, 2 * cout)),
        pos_b2=n(ks[13], (cout, 1), 0.1),
    )
    if cin != cout:   # nn.Identity() residual -> no extra weights (static branch in-kernel)
        params["res_w"] = n(ks[14], (cout, cin))
        params["res_b"] = n(ks[15], (cout, 1), 0.1)
    return params


def reference_forward(x, t, pos, params):
    # Pure-JAX reference mirroring the PyTorch module semantics.
    def conv1d(v, w, b):
        y = jax.lax.conv_general_dilated(
            v, w, window_strides=(1,), padding=[(PAD, PAD)],
            dimension_numbers=("NCH", "OIH", "NCH"))
        return y + b[None]

    def gn(y, gamma, beta):
        B, c, h = y.shape
        y3 = y.reshape(B, NGROUPS, -1)
        mean = y3.mean(-1, keepdims=True)
        var = ((y3 - mean) ** 2).mean(-1, keepdims=True)
        y3 = (y3 - mean) / jnp.sqrt(var + EPS)
        return y3.reshape(B, c, h) * gamma[None] + beta[None]

    def block(v, w, b, g, be):
        return _mish_ref(gn(conv1d(v, w, b), g, be))

    h = block(x, params["conv1_w"], params["conv1_b"], params["gn1_g"], params["gn1_b"])
    tc = (_mish_ref(t) @ params["time_w"].T)[:, :, None] + params["time_b"][None]
    p = jnp.einsum("oe,beh->boh", params["pos_w1"], _mish_ref(pos)) + params["pos_b1"][None]
    p = jnp.einsum("oc,bch->boh", params["pos_w2"], _mish_ref(p)) + params["pos_b2"][None]
    out = block(h + tc + p, params["conv2_w"], params["conv2_b"],
                params["gn2_g"], params["gn2_b"])
    if "res_w" in params:
        res = jnp.einsum("oc,bch->boh", params["res_w"], x) + params["res_b"][None]
    else:
        res = x
    return out + res


if __name__ == "__main__":
    def check(B, cin, cout, embed_dim, horizon, *, block_b=None, use_bf16=False, tol=2e-4):
        key = jax.random.PRNGKey(0)
        kx, kt, kp, kw = jax.random.split(key, 4)
        x = jax.random.normal(kx, (B, cin, horizon), dtype=jnp.float32)
        t = jax.random.normal(kt, (B, embed_dim), dtype=jnp.float32)
        pos = jax.random.normal(kp, (B, embed_dim, horizon), dtype=jnp.float32)
        params = init_params(kw, cin, cout, embed_dim)
        out = jax.block_until_ready(
            residual_temporal_block(x, t, pos, params, block_b=block_b, use_bf16=use_bf16))
        ref = reference_forward(x, t, pos, params)
        assert out.shape == (B, cout, horizon)
        np.testing.assert_allclose(np.asarray(out, np.float32), np.asarray(ref),
                                   atol=tol, rtol=tol)

    # residual 1x1 path (cin != cout): auto tiling (L=512, grid_n=1)
    check(16, 4, 32, 32, 28)
    # multi-step grid path (explicit block_b -> grid_n = 2, "parallel" axis)
    check(16, 4, 32, 32, 28, block_b=8)
    # bf16 HBM/MXU operand mode (v6e/v7x optimization); elementwise math stays f32
    check(16, 4, 32, 32, 28, use_bf16=True, tol=6e-2)
    # identity-residual path (cin == cout)
    check(8, 16, 16, 16, 12)
    print("KERNEL_OK")
</pallas_src>

<mosaic_0001>
module attributes {stable_mosaic.version = 11 : i64} {
  func.func @kernel(%arg0: i32, %arg1: memref<8x512xf32, #tpu.memory_space<vmem>>, %arg2: memref<32x512xf32, #tpu.memory_space<vmem>>, %arg3: memref<1x32x16xf32, #tpu.memory_space<vmem>>, %arg4: memref<32x32xf32, #tpu.memory_space<vmem>>, %arg5: memref<64x41xf32, #tpu.memory_space<vmem>>, %arg6: memref<32x161xf32, #tpu.memory_space<vmem>>, %arg7: memref<64x33xf32, #tpu.memory_space<vmem>>, %arg8: memref<32x65xf32, #tpu.memory_space<vmem>>, %arg9: memref<32x4xf32, #tpu.memory_space<vmem>>, %arg10: memref<32x512xf32, #tpu.memory_space<vmem>>) attributes {dimension_semantics = [#tpu.dimension_semantics<parallel>], iteration_bounds = array<i64: 1>, scalar_prefetch = 0 : i64, scratch_operands = 0 : i64, tpu.core_type = #tpu.core_type<tc>, window_params = [{transform_indices = @transform_0, window_bounds = array<i64: 8, 512>}, {transform_indices = @transform_1, window_bounds = array<i64: 32, 512>}, {transform_indices = @transform_2, window_bounds = array<i64: 1, 32, 16>}, {pipeline_mode = #tpu.pipeline_mode<synchronous>, transform_indices = @transform_3, window_bounds = array<i64: 32, 32>}, {pipeline_mode = #tpu.pipeline_mode<synchronous>, transform_indices = @transform_4, window_bounds = array<i64: 64, 41>}, {pipeline_mode = #tpu.pipeline_mode<synchronous>, transform_indices = @transform_5, window_bounds = array<i64: 32, 161>}, {pipeline_mode = #tpu.pipeline_mode<synchronous>, transform_indices = @transform_6, window_bounds = array<i64: 64, 33>}, {pipeline_mode = #tpu.pipeline_mode<synchronous>, transform_indices = @transform_7, window_bounds = array<i64: 32, 65>}, {pipeline_mode = #tpu.pipeline_mode<synchronous>, transform_indices = @transform_8, window_bounds = array<i64: 32, 4>}, {transform_indices = @transform_9, window_bounds = array<i64: 32, 512>}]} {
    %0 = tpu.iota {dimensions = array<i32: 0>} : vector<512x16xi32>
    %1 = tpu.iota {dimensions = array<i32: 1>} : vector<512x16xi32>
    %c32_i32 = arith.constant 32 : i32
    %2 = vector.broadcast %c32_i32 : i32 to vector<512x16xi32>
    %3 = arith.muli %1, %2 : vector<512x16xi32>
    %4 = arith.subi %0, %3 : vector<512x16xi32>
    %c2_i32 = arith.constant 2 : i32
    %5 = vector.broadcast %c2_i32 : i32 to vector<512x16xi32>
    %6 = arith.cmpi sge, %4, %5 : vector<512x16xi32>
    %c30_i32 = arith.constant 30 : i32
    %7 = vector.broadcast %c30_i32 : i32 to vector<512x16xi32>
    %8 = arith.cmpi slt, %4, %7 : vector<512x16xi32>
    %9 = arith.andi %6, %8 : vector<512x16xi1>
    %cst = arith.constant 1.000000e+00 : f32
    %cst_0 = arith.constant 0.000000e+00 : f32
    %10 = vector.broadcast %cst : f32 to vector<512x16xf32>
    %11 = vector.broadcast %cst_0 : f32 to vector<512x16xf32>
    %12 = arith.select %9, %10, %11 : vector<512x16xi1>, vector<512x16xf32>
    %13 = tpu.iota {dimensions = array<i32: 1>} : vector<16x512xi32>
    %14 = tpu.iota {dimensions = array<i32: 0>} : vector<16x512xi32>
    %c32_i32_1 = arith.constant 32 : i32
    %15 = vector.broadcast %c32_i32_1 : i32 to vector<16x512xi32>
    %16 = arith.muli %14, %15 : vector<16x512xi32>
    %17 = arith.subi %13, %16 : vector<16x512xi32>
    %c2_i32_2 = arith.constant 2 : i32
    %18 = vector.broadcast %c2_i32_2 : i32 to vector<16x512xi32>
    %19 = arith.cmpi sge, %17, %18 : vector<16x512xi32>
    %c30_i32_3 = arith.constant 30 : i32
    %20 = vector.broadcast %c30_i32_3 : i32 to vector<16x512xi32>
    %21 = arith.cmpi slt, %17, %20 : vector<16x512xi32>
    %22 = arith.andi %19, %21 : vector<16x512xi1>
    %cst_4 = arith.constant 1.000000e+00 : f32
    %cst_5 = arith.constant 0.000000e+00 : f32
    %23 = vector.broadcast %cst_4 : f32 to vector<16x512xf32>
    %24 = vector.broadcast %cst_5 : f32 to vector<16x512xf32>
    %25 = arith.select %22, %23, %24 : vector<16x512xi1>, vector<16x512xf32>
    %cst_6 = arith.constant dense<0.000000e+00> : vector<512xf32>
    %26 = vector.multi_reduction <add>, %25, %cst_6 [0] : vector<16x512xf32> to vector<512xf32>
    %27 = vector.shape_cast %26 : vector<512xf32> to vector<1x512xf32>
    %c0 = arith.constant 0 : index
    %c0_7 = arith.constant 0 : index
    %28 = vector.load %arg4[%c0, %c0_7] : memref<32x32xf32, #tpu.memory_space<vmem>>, vector<32x32xf32>
    %c0_8 = arith.constant 0 : index
    %c0_9 = arith.constant 0 : index
    %29 = vector.load %arg9[%c0_8, %c0_9] : memref<32x4xf32, #tpu.memory_space<vmem>>, vector<32x4xf32>
    %c0_10 = arith.constant 0 : index
    %c0_11 = arith.constant 0 : index
    %30 = vector.load %arg1[%c0_10, %c0_11] : memref<8x512xf32, #tpu.memory_space<vmem>>, vector<8x512xf32>
    %c0_12 = arith.constant 0 : index
    %c0_13 = arith.constant 0 : index
    %31 = vector.load %arg5[%c0_12, %c0_13] : memref<64x41xf32, #tpu.memory_space<vmem>>, vector<64x41xf32>
    %c2_i32_14 = arith.constant 2 : i32
    %32 = tpu.dynamic_rotate %30 by %c2_i32_14 dim 1 : vector<8x512xf32>, i32 -> vector<8x512xf32>
    %c1_i32 = arith.constant 1 : i32
    %33 = tpu.dynamic_rotate %30 by %c1_i32 dim 1 : vector<8x512xf32>, i32 -> vector<8x512xf32>
    %c511_i32 = arith.constant 511 : i32
    %34 = tpu.dynamic_rotate %30 by %c511_i32 dim 1 : vector<8x512xf32>, i32 -> vector<8x512xf32>
    %c510_i32 = arith.constant 510 : i32
    %35 = tpu.dynamic_rotate %30 by %c510_i32 dim 1 : vector<8x512xf32>, i32 -> vector<8x512xf32>
    %36 = tpu.concatenate %32, %33, %30, %34, %35, %27 in 0 : vector<8x512xf32>, vector<8x512xf32>, vector<8x512xf32>, vector<8x512xf32>, vector<8x512xf32>, vector<1x512xf32> -> vector<41x512xf32>
    %cst_15 = arith.constant dense<0.000000e+00> : vector<64x512xf32>
    %37 = tpu.matmul %31, %36, %cst_15 {dimension_numbers = #tpu.dot_dimension_numbers<[1], [0], [0], [1], [0, 0, 1, 1], [], []>} : vector<64x41xf32>, vector<41x512xf32>, vector<64x512xf32> -> vector<64x512xf32>
    %38 = vector.extract_strided_slice %37 {offsets = [0, 0], sizes = [32, 512], strides = [1, 1]} : vector<64x512xf32> to vector<32x512xf32>
    %39 = vector.extract_strided_slice %37 {offsets = [32, 0], sizes = [32, 512], strides = [1, 1]} : vector<64x512xf32> to vector<32x512xf32>
    %40 = vector.extract_strided_slice %29 {offsets = [0, 0], sizes = [32, 1], strides = [1, 1]} : vector<32x4xf32> to vector<32x1xf32>
    %41 = vector.extract_strided_slice %29 {offsets = [0, 1], sizes = [32, 1], strides = [1, 1]} : vector<32x4xf32> to vector<32x1xf32>
    %cst_16 = arith.constant dense<0.000000e+00> : vector<32x16xf32>
    %42 = tpu.matmul %38, %12, %cst_16 {dimension_numbers = #tpu.dot_dimension_numbers<[1], [0], [0], [1], [0, 0, 1, 1], [], []>} : vector<32x512xf32>, vector<512x16xf32>, vector<32x16xf32> -> vector<32x16xf32>
    %43 = arith.mulf %38, %38 : vector<32x512xf32>
    %cst_17 = arith.constant dense<0.000000e+00> : vector<32x16xf32>
    %44 = tpu.matmul %43, %12, %cst_17 {dimension_numbers = #tpu.dot_dimension_numbers<[1], [0], [0], [1], [0, 0, 1, 1], [], []>} : vector<32x512xf32>, vector<512x16xf32>, vector<32x16xf32> -> vector<32x16xf32>
    %cst_18 = arith.constant dense<0.000000e+00> : vector<32x16xf32>
    %45 = tpu.matmul %28, %42, %cst_18 {dimension_numbers = #tpu.dot_dimension_numbers<[1], [0], [0], [1], [0, 0, 1, 1], [], []>} : vector<32x32xf32>, vector<32x16xf32>, vector<32x16xf32> -> vector<32x16xf32>
    %cst_19 = arith.constant dense<0.000000e+00> : vector<32x16xf32>
    %46 = tpu.matmul %28, %44, %cst_19 {dimension_numbers = #tpu.dot_dimension_numbers<[1], [0], [0], [1], [0, 0, 1, 1], [], []>} : vector<32x32xf32>, vector<32x16xf32>, vector<32x16xf32> -> vector<32x16xf32>
    %47 = arith.mulf %45, %45 : vector<32x16xf32>
    %48 = arith.subf %46, %47 : vector<32x16xf32>
    %cst_20 = arith.constant 9.99999974E-6 : f32
    %49 = vector.broadcast %cst_20 : f32 to vector<32x16xf32>
    %50 = arith.addf %48, %49 : vector<32x16xf32>
    %51 = math.rsqrt %50 : vector<32x16xf32>
    %52 = vector.broadcast %40 : vector<32x1xf32> to vector<32x16xf32>
    %53 = arith.mulf %51, %52 : vector<32x16xf32>
    %54 = arith.mulf %45, %53 : vector<32x16xf32>
    %55 = vector.broadcast %41 : vector<32x1xf32> to vector<32x16xf32>
    %56 = arith.subf %55, %54 : vector<32x16xf32>
    %cst_21 = arith.constant dense<0.000000e+00> : vector<32x512xf32>
    %57 = tpu.matmul %53, %25, %cst_21 {dimension_numbers = #tpu.dot_dimension_numbers<[1], [0], [0], [1], [0, 0, 1, 1], [], []>} : vector<32x16xf32>, vector<16x512xf32>, vector<32x512xf32> -> vector<32x512xf32>
    %58 = arith.mulf %38, %57 : vector<32x512xf32>
    %cst_22 = arith.constant dense<0.000000e+00> : vector<32x512xf32>
    %59 = tpu.matmul %56, %25, %cst_22 {dimension_numbers = #tpu.dot_dimension_numbers<[1], [0], [0], [1], [0, 0, 1, 1], [], []>} : vector<32x16xf32>, vector<16x512xf32>, vector<32x512xf32> -> vector<32x512xf32>
    %60 = arith.addf %58, %59 : vector<32x512xf32>
    %cst_23 = arith.constant 2.000000e+01 : f32
    %61 = vector.broadcast %cst_23 : f32 to vector<32x512xf32>
    %62 = arith.minimumf %60, %61 : vector<32x512xf32>
    %63 = math.exp %62 : vector<32x512xf32>
    %cst_24 = arith.constant 1.000000e+00 : f32
    %64 = vector.broadcast %cst_24 : f32 to vector<32x512xf32>
    %65 = arith.addf %64, %63 : vector<32x512xf32>
    %cst_25 = arith.constant 1.000000e+00 : f32
    %66 = vector.broadcast %cst_25 : f32 to vector<32x512xf32>
    %67 = arith.addf %66, %63 : vector<32x512xf32>
    %68 = arith.mulf %65, %67 : vector<32x512xf32>
    %cst_26 = arith.constant 1.000000e+00 : f32
    %69 = vector.broadcast %cst_26 : f32 to vector<32x512xf32>
    %70 = arith.addf %68, %69 : vector<32x512xf32>
    %71 = tpu.reciprocal %70 {approx = true} : vector<32x512xf32> -> vector<32x512xf32>
    %72 = arith.mulf %70, %71 : vector<32x512xf32>
    %cst_27 = arith.constant 2.000000e+00 : f32
    %73 = vector.broadcast %cst_27 : f32 to vector<32x512xf32>
    %74 = arith.subf %73, %72 : vector<32x512xf32>
    %75 = arith.mulf %71, %74 : vector<32x512xf32>
    %cst_28 = arith.constant 1.000000e+00 : f32
    %76 = vector.broadcast %cst_28 : f32 to vector<32x512xf32>
    %77 = arith.subf %68, %76 : vector<32x512xf32>
    %78 = arith.mulf %77, %75 : vector<32x512xf32>
    %79 = arith.mulf %60, %78 : vector<32x512xf32>
    %c0_29 = arith.constant 0 : index
    %c0_30 = arith.constant 0 : index
    %c0_31 = arith.constant 0 : index
    %80 = vector.load %arg3[%c0_29, %c0_30, %c0_31] : memref<1x32x16xf32, #tpu.memory_space<vmem>>, vector<1x32x16xf32>
    %81 = vector.shape_cast %80 : vector<1x32x16xf32> to vector<32x16xf32>
    %cst_32 = arith.constant dense<0.000000e+00> : vector<32x512xf32>
    %82 = tpu.matmul %81, %25, %cst_32 {dimension_numbers = #tpu.dot_dimension_numbers<[1], [0], [0], [1], [0, 0, 1, 1], [], []>} : vector<32x16xf32>, vector<16x512xf32>, vector<32x512xf32> -> vector<32x512xf32>
    %83 = arith.addf %79, %82 : vector<32x512xf32>
    %c0_33 = arith.constant 0 : index
    %c0_34 = arith.constant 0 : index
    %84 = vector.load %arg7[%c0_33, %c0_34] : memref<64x33xf32, #tpu.memory_space<vmem>>, vector<64x33xf32>
    %c0_35 = arith.constant 0 : index
    %c0_36 = arith.constant 0 : index
    %85 = vector.load %arg2[%c0_35, %c0_36] : memref<32x512xf32, #tpu.memory_space<vmem>>, vector<32x512xf32>
    %cst_37 = arith.constant 2.000000e+01 : f32
    %86 = vector.broadcast %cst_37 : f32 to vector<32x512xf32>
    %87 = arith.minimumf %85, %86 : vector<32x512xf32>
    %88 = math.exp %87 : vector<32x512xf32>
    %cst_38 = arith.constant 1.000000e+00 : f32
    %89 = vector.broadcast %cst_38 : f32 to vector<32x512xf32>
    %90 = arith.addf %89, %88 : vector<32x512xf32>
    %cst_39 = arith.constant 1.000000e+00 : f32
    %91 = vector.broadcast %cst_39 : f32 to vector<32x512xf32>
    %92 = arith.addf %91, %88 : vector<32x512xf32>
    %93 = arith.mulf %90, %92 : vector<32x512xf32>
    %cst_40 = arith.constant 1.000000e+00 : f32
    %94 = vector.broadcast %cst_40 : f32 to vector<32x512xf32>
    %95 = arith.addf %93, %94 : vector<32x512xf32>
    %96 = tpu.reciprocal %95 {approx = true} : vector<32x512xf32> -> vector<32x512xf32>
    %97 = arith.mulf %95, %96 : vector<32x512xf32>
    %cst_41 = arith.constant 2.000000e+00 : f32
    %98 = vector.broadcast %cst_41 : f32 to vector<32x512xf32>
    %99 = arith.subf %98, %97 : vector<32x512xf32>
    %100 = arith.mulf %96, %99 : vector<32x512xf32>
    %cst_42 = arith.constant 1.000000e+00 : f32
    %101 = vector.broadcast %cst_42 : f32 to vector<32x512xf32>
    %102 = arith.subf %93, %101 : vector<32x512xf32>
    %103 = arith.mulf %102, %100 : vector<32x512xf32>
    %104 = arith.mulf %85, %103 : vector<32x512xf32>
    %105 = tpu.concatenate %104, %27 in 0 : vector<32x512xf32>, vector<1x512xf32> -> vector<33x512xf32>
    %cst_43 = arith.constant dense<0.000000e+00> : vector<64x512xf32>
    %106 = tpu.matmul %84, %105, %cst_43 {dimension_numbers = #tpu.dot_dimension_numbers<[1], [0], [0], [1], [0, 0, 1, 1], [], []>} : vector<64x33xf32>, vector<33x512xf32>, vector<64x512xf32> -> vector<64x512xf32>
    %c0_44 = arith.constant 0 : index
    %c0_45 = arith.constant 0 : index
    %107 = vector.load %arg8[%c0_44, %c0_45] : memref<32x65xf32, #tpu.memory_space<vmem>>, vector<32x65xf32>
    %cst_46 = arith.constant 2.000000e+01 : f32
    %108 = vector.broadcast %cst_46 : f32 to vector<64x512xf32>
    %109 = arith.minimumf %106, %108 : vector<64x512xf32>
    %110 = math.exp %109 : vector<64x512xf32>
    %cst_47 = arith.constant 1.000000e+00 : f32
    %111 = vector.broadcast %cst_47 : f32 to vector<64x512xf32>
    %112 = arith.addf %111, %110 : vector<64x512xf32>
    %cst_48 = arith.constant 1.000000e+00 : f32
    %113 = vector.broadcast %cst_48 : f32 to vector<64x512xf32>
    %114 = arith.addf %113, %110 : vector<64x512xf32>
    %115 = arith.mulf %112, %114 : vector<64x512xf32>
    %cst_49 = arith.constant 1.000000e+00 : f32
    %116 = vector.broadcast %cst_49 : f32 to vector<64x512xf32>
    %117 = arith.addf %115, %116 : vector<64x512xf32>
    %118 = tpu.reciprocal %117 {approx = true} : vector<64x512xf32> -> vector<64x512xf32>
    %119 = arith.mulf %117, %118 : vector<64x512xf32>
    %cst_50 = arith.constant 2.000000e+00 : f32
    %120 = vector.broadcast %cst_50 : f32 to vector<64x512xf32>
    %121 = arith.subf %120, %119 : vector<64x512xf32>
    %122 = arith.mulf %118, %121 : vector<64x512xf32>
    %cst_51 = arith.constant 1.000000e+00 : f32
    %123 = vector.broadcast %cst_51 : f32 to vector<64x512xf32>
    %124 = arith.subf %115, %123 : vector<64x512xf32>
    %125 = arith.mulf %124, %122 : vector<64x512xf32>
    %126 = arith.mulf %106, %125 : vector<64x512xf32>
    %127 = tpu.concatenate %126, %27 in 0 : vector<64x512xf32>, vector<1x512xf32> -> vector<65x512xf32>
    %cst_52 = arith.constant dense<0.000000e+00> : vector<32x512xf32>
    %128 = tpu.matmul %107, %127, %cst_52 {dimension_numbers = #tpu.dot_dimension_numbers<[1], [0], [0], [1], [0, 0, 1, 1], [], []>} : vector<32x65xf32>, vector<65x512xf32>, vector<32x512xf32> -> vector<32x512xf32>
    %129 = arith.addf %83, %128 : vector<32x512xf32>
    %c0_53 = arith.constant 0 : index
    %c0_54 = arith.constant 0 : index
    %130 = vector.load %arg6[%c0_53, %c0_54] : memref<32x161xf32, #tpu.memory_space<vmem>>, vector<32x161xf32>
    %c2_i32_55 = arith.constant 2 : i32
    %131 = tpu.dynamic_rotate %129 by %c2_i32_55 dim 1 : vector<32x512xf32>, i32 -> vector<32x512xf32>
    %c1_i32_56 = arith.constant 1 : i32
    %132 = tpu.dynamic_rotate %129 by %c1_i32_56 dim 1 : vector<32x512xf32>, i32 -> vector<32x512xf32>
    %c511_i32_57 = arith.constant 511 : i32
    %133 = tpu.dynamic_rotate %129 by %c511_i32_57 dim 1 : vector<32x512xf32>, i32 -> vector<32x512xf32>
    %c510_i32_58 = arith.constant 510 : i32
    %134 = tpu.dynamic_rotate %129 by %c510_i32_58 dim 1 : vector<32x512xf32>, i32 -> vector<32x512xf32>
    %135 = tpu.concatenate %131, %132, %129, %133, %134, %27 in 0 : vector<32x512xf32>, vector<32x512xf32>, vector<32x512xf32>, vector<32x512xf32>, vector<32x512xf32>, vector<1x512xf32> -> vector<161x512xf32>
    %cst_59 = arith.constant dense<0.000000e+00> : vector<32x512xf32>
    %136 = tpu.matmul %130, %135, %cst_59 {dimension_numbers = #tpu.dot_dimension_numbers<[1], [0], [0], [1], [0, 0, 1, 1], [], []>} : vector<32x161xf32>, vector<161x512xf32>, vector<32x512xf32> -> vector<32x512xf32>
    %137 = vector.extract_strided_slice %29 {offsets = [0, 2], sizes = [32, 1], strides = [1, 1]} : vector<32x4xf32> to vector<32x1xf32>
    %138 = vector.extract_strided_slice %29 {offsets = [0, 3], sizes = [32, 1], strides = [1, 1]} : vector<32x4xf32> to vector<32x1xf32>
    %cst_60 = arith.constant dense<0.000000e+00> : vector<32x16xf32>
    %139 = tpu.matmul %136, %12, %cst_60 {dimension_numbers = #tpu.dot_dimension_numbers<[1], [0], [0], [1], [0, 0, 1, 1], [], []>} : vector<32x512xf32>, vector<512x16xf32>, vector<32x16xf32> -> vector<32x16xf32>
    %140 = arith.mulf %136, %136 : vector<32x512xf32>
    %cst_61 = arith.constant dense<0.000000e+00> : vector<32x16xf32>
    %141 = tpu.matmul %140, %12, %cst_61 {dimension_numbers = #tpu.dot_dimension_numbers<[1], [0], [0], [1], [0, 0, 1, 1], [], []>} : vector<32x512xf32>, vector<512x16xf32>, vector<32x16xf32> -> vector<32x16xf32>
    %cst_62 = arith.constant dense<0.000000e+00> : vector<32x16xf32>
    %142 = tpu.matmul %28, %139, %cst_62 {dimension_numbers = #tpu.dot_dimension_numbers<[1], [0], [0], [1], [0, 0, 1, 1], [], []>} : vector<32x32xf32>, vector<32x16xf32>, vector<32x16xf32> -> vector<32x16xf32>
    %cst_63 = arith.constant dense<0.000000e+00> : vector<32x16xf32>
    %143 = tpu.matmul %28, %141, %cst_63 {dimension_numbers = #tpu.dot_dimension_numbers<[1], [0], [0], [1], [0, 0, 1, 1], [], []>} : vector<32x32xf32>, vector<32x16xf32>, vector<32x16xf32> -> vector<32x16xf32>
    %144 = arith.mulf %142, %142 : vector<32x16xf32>
    %145 = arith.subf %143, %144 : vector<32x16xf32>
    %cst_64 = arith.constant 9.99999974E-6 : f32
    %146 = vector.broadcast %cst_64 : f32 to vector<32x16xf32>
    %147 = arith.addf %145, %146 : vector<32x16xf32>
    %148 = math.rsqrt %147 : vector<32x16xf32>
    %149 = vector.broadcast %137 : vector<32x1xf32> to vector<32x16xf32>
    %150 = arith.mulf %148, %149 : vector<32x16xf32>
    %151 = arith.mulf %142, %150 : vector<32x16xf32>
    %152 = vector.broadcast %138 : vector<32x1xf32> to vector<32x16xf32>
    %153 = arith.subf %152, %151 : vector<32x16xf32>
    %cst_65 = arith.constant dense<0.000000e+00> : vector<32x512xf32>
    %154 = tpu.matmul %150, %25, %cst_65 {dimension_numbers = #tpu.dot_dimension_numbers<[1], [0], [0], [1], [0, 0, 1, 1], [], []>} : vector<32x16xf32>, vector<16x512xf32>, vector<32x512xf32> -> vector<32x512xf32>
    %155 = arith.mulf %136, %154 : vector<32x512xf32>
    %cst_66 = arith.constant dense<0.000000e+00> : vector<32x512xf32>
    %156 = tpu.matmul %153, %25, %cst_66 {dimension_numbers = #tpu.dot_dimension_numbers<[1], [0], [0], [1], [0, 0, 1, 1], [], []>} : vector<32x16xf32>, vector<16x512xf32>, vector<32x512xf32> -> vector<32x512xf32>
    %157 = arith.addf %155, %156 : vector<32x512xf32>
    %cst_67 = arith.constant 2.000000e+01 : f32
    %158 = vector.broadcast %cst_67 : f32 to vector<32x512xf32>
    %159 = arith.minimumf %157, %158 : vector<32x512xf32>
    %160 = math.exp %159 : vector<32x512xf32>
    %cst_68 = arith.constant 1.000000e+00 : f32
    %161 = vector.broadcast %cst_68 : f32 to vector<32x512xf32>
    %162 = arith.addf %161, %160 : vector<32x512xf32>
    %cst_69 = arith.constant 1.000000e+00 : f32
    %163 = vector.broadcast %cst_69 : f32 to vector<32x512xf32>
    %164 = arith.addf %163, %160 : vector<32x512xf32>
    %165 = arith.mulf %162, %164 : vector<32x512xf32>
    %cst_70 = arith.constant 1.000000e+00 : f32
    %166 = vector.broadcast %cst_70 : f32 to vector<32x512xf32>
    %167 = arith.addf %165, %166 : vector<32x512xf32>
    %168 = tpu.reciprocal %167 {approx = true} : vector<32x512xf32> -> vector<32x512xf32>
    %169 = arith.mulf %167, %168 : vector<32x512xf32>
    %cst_71 = arith.constant 2.000000e+00 : f32
    %170 = vector.broadcast %cst_71 : f32 to vector<32x512xf32>
    %171 = arith.subf %170, %169 : vector<32x512xf32>
    %172 = arith.mulf %168, %171 : vector<32x512xf32>
    %cst_72 = arith.constant 1.000000e+00 : f32
    %173 = vector.broadcast %cst_72 : f32 to vector<32x512xf32>
    %174 = arith.subf %165, %173 : vector<32x512xf32>
    %175 = arith.mulf %174, %172 : vector<32x512xf32>
    %176 = arith.mulf %157, %175 : vector<32x512xf32>
    %177 = arith.addf %176, %39 : vector<32x512xf32>
    %c0_73 = arith.constant 0 : index
    %c0_74 = arith.constant 0 : index
    %178 = vector.load %arg10[%c0_73, %c0_74] : memref<32x512xf32, #tpu.memory_space<vmem>>, vector<32x512xf32>
    tpu.vector_store %arg10[%c0_73, %c0_74], %177 {strides = array<i32>} : memref<32x512xf32, #tpu.memory_space<vmem>>, vector<32x512xf32>,
    return
  }
  func.func @transform_0(%arg0: i32) -> (i32, i32) {
    %c0_i32 = arith.constant 0 : i32
    %c0_i32_0 = arith.constant 0 : i32
    return %c0_i32, %arg0 : i32, i32
  }
  func.func @transform_1(%arg0: i32) -> (i32, i32) {
    %c0_i32 = arith.constant 0 : i32
    %c0_i32_0 = arith.constant 0 : i32
    return %c0_i32, %arg0 : i32, i32
  }
  func.func @transform_2(%arg0: i32) -> (i32, i32, i32) {
    %c0_i32 = arith.constant 0 : i32
    %c0_i32_0 = arith.constant 0 : i32
    %c0_i32_1 = arith.constant 0 : i32
    return %arg0, %c0_i32, %c0_i32_0 : i32, i32, i32
  }
  func.func @transform_3(%arg0: i32) -> (i32, i32) {
    %c0_i32 = arith.constant 0 : i32
    %c0_i32_0 = arith.constant 0 : i32
    %c0_i32_1 = arith.constant 0 : i32
    return %c0_i32, %c0_i32_0 : i32, i32
  }
  func.func @transform_4(%arg0: i32) -> (i32, i32) {
    %c0_i32 = arith.constant 0 : i32
    %c0_i32_0 = arith.constant 0 : i32
    %c0_i32_1 = arith.constant 0 : i32
    return %c0_i32, %c0_i32_0 : i32, i32
  }
  func.func @transform_5(%arg0: i32) -> (i32, i32) {
    %c0_i32 = arith.constant 0 : i32
    %c0_i32_0 = arith.constant 0 : i32
    %c0_i32_1 = arith.constant 0 : i32
    return %c0_i32, %c0_i32_0 : i32, i32
  }
  func.func @transform_6(%arg0: i32) -> (i32, i32) {
    %c0_i32 = arith.constant 0 : i32
    %c0_i32_0 = arith.constant 0 : i32
    %c0_i32_1 = arith.constant 0 : i32
    return %c0_i32, %c0_i32_0 : i32, i32
  }
  func.func @transform_7(%arg0: i32) -> (i32, i32) {
    %c0_i32 = arith.constant 0 : i32
    %c0_i32_0 = arith.constant 0 : i32
    %c0_i32_1 = arith.constant 0 : i32
    return %c0_i32, %c0_i32_0 : i32, i32
  }
  func.func @transform_8(%arg0: i32) -> (i32, i32) {
    %c0_i32 = arith.constant 0 : i32
    %c0_i32_0 = arith.constant 0 : i32
    %c0_i32_1 = arith.constant 0 : i32
    return %c0_i32, %c0_i32_0 : i32, i32
  }
  func.func @transform_9(%arg0: i32) -> (i32, i32) {
    %c0_i32 = arith.constant 0 : i32
    %c0_i32_0 = arith.constant 0 : i32
    return %c0_i32, %arg0 : i32, i32
  }
}

</mosaic_0001>

<bundles_post_ra>
// kernel: tpu_custom_call.1
= control target key start
LH: loop header
LB: loop body
LE: loop exit
PB: predicated region body
PF: predicated region fallthrough
CT: control target
= control target key end

     0   :  { %14 = vsyncpa [#allocation3], 0  ;;  %s9346_s0 = inlined_call_operand.hbm [shape: f32[8,512], index: 0, kind: input, shape index: {}]   ;;  %s9347_s1 = inlined_call_operand.vmem [shape: f32[32,512], index: 1, kind: input, shape index: {}]   ;;  %s9348_s2 = inlined_call_operand.vmem [shape: f32[1,32,16], index: 2, kind: input, shape index: {}]   ;;  %s9349_s3 = inlined_call_operand.hbm [shape: f32[32,32], index: 3, kind: input, shape index: {}]   ;;  %s9350_s4 = inlined_call_operand.vmem [shape: f32[64,41], index: 4, kind: input, shape index: {}]   ;;  %s9351_s5 = inlined_call_operand.vmem [shape: f32[32,161], index: 5, kind: input, shape index: {}]   ;;  %s9352_s6 = inlined_call_operand.vmem [shape: f32[64,33], index: 6, kind: input, shape index: {}]   ;;  %s9353_s7 = inlined_call_operand.hbm [shape: f32[32,65], index: 7, kind: input, shape index: {}]   ;;  %s9354_s8 = inlined_call_operand.vmem [shape: f32[32,4], index: 8, kind: input, shape index: {}]   ;;  %s9355_s9 = inlined_call_operand.hbm [shape: f32[32,512], index: 9, kind: output, shape index: {}]  }
   0x1   :  { %15 = vsyncpa [#allocation6], 0  ;;  %s36_s11 = sshll.u32 %s9349_s3, 4  ;;  %s37_s11 = int_to_ptr.hbm [resolvable:$true] %s36_s11 }
   0x2   :  { %16 = vsyncpa [#allocation4], 0  ;;  %s5497_s12 = smov [#allocation5]   ;;  %s22_s16 = sshll.u32 %s9346_s0, 4  ;;  %s23_s16 = int_to_ptr.hbm [resolvable:$true] %s22_s16 }
   0x3   :  { %s38_s13 = sshll.u32 %s5497_s12, 4  ;;  %s5498_s17 = smov 128   ;;  %s39_s13 = int_to_ptr.vmem [resolvable:$true] %s38_s13 }
   0x4   :  { %s5499_s18 = smov 8   ;;  %s5500_s19 = smov [#allocation2]  }
   0x5   :  { %44 = dma.hbm_to_vmem [thread:$0]  %s37_s11, 512, %s39_s13, [#allocation6], %s5498_s17, %s5498_s17, %s5499_s18  }
   0x6   :  { %s24_s20 = sshll.u32 %s5500_s19, 4  ;;  %s55_s23 = sshll.u32 %s9353_s7, 4  ;;  %s25_s20 = int_to_ptr.vmem [resolvable:$true] %s24_s20  ;;  %s56_s23 = int_to_ptr.hbm [resolvable:$true] %s55_s23 }
   0x7   :  { %27 = dma.hbm_to_vmem [thread:$0]  %s23_s16, 512, %s25_s20, [#allocation3]  }
   0x8   :  { %s5501_s3 = smov [#allocation7]  }
   0x9   :  { %s57_s24 = sshll.u32 %s5501_s3, 4  ;;  %s58_s24 = int_to_ptr.vmem [resolvable:$true] %s57_s24 }
   0xa   :  { %63 = dma.hbm_to_vmem [thread:$0]  %s56_s23, 512, %s58_s24, [#allocation6], %s5498_s17, %s5498_s17, %s5499_s18  }
   0xb   :  { %5491 = dma.done.wait [#allocation3], 512  }
   0xc   :  { %5492 = vsyncadd [#allocation3], 4294966784 }
   0xd   :  { %5493 = dma.done.wait [#allocation6], 1024  }
   0xe   :  { %5494 = vsyncadd [#allocation6], 4294966272  ;;  %v5574_v0 = vld [vmem:[#allocation2] sm:$0xff]  ;;  %v5576_v1 = vld [vmem:[#allocation2 + $0x10] sm:$0xff]  ;;  %s5502_s0 = smov 126   ;;  %s5503_s7 = smov 1   ;;  %v78_v6 = vlaneseq }
   0xf   :  { %v5578_v2 = vld [vmem:[#allocation2 + $0x18] sm:$0xff]  ;;  %598 = vrot.lane.b32.xlu1 %v5574_v0, %s5502_s0  ;;  %v5584_v4 = vld [vmem:[#allocation2 + $0x8] sm:$0xff]  ;;  %s5504_s25 = smov 127   ;;  %s5505_s26 = smov 2   ;;  %v9746_v21 = vmov 0  ;;  %v9749_v22 = vmov 0 }
  0x10   :  { %v4859_v3 = vpack.i.bf16 %v5578_v2, %v5576_v1  ;;  %v4869_v5 = vpack.i.bf16 %v5576_v1, %v5584_v4  ;;  %v5606_v7 = vshrl.u32 %v78_v6, 7  ;;  %v5611_v9 = vand.u32 127, %v78_v6  ;;  %s4243_s19 = sshll.u32 %s9355_s9, 4  ;;  %s4244_s19 = int_to_ptr.hbm [resolvable:$true] %s4243_s19 }
  0x11   :  { %v5506_v23 = vmov 0.0   ;;  %v9752_v26 = vmov 0  ;;  %v9755_v29 = vmov 0  ;;  %v9758_v33 = vmov 0 }
  0x12   :  { %4860 = vrot.lane.b32.xlu0 %v4859_v3, %s5502_s0  ;;  %4870 = vrot.lane.b32.xlu2 %v4869_v5, %s5503_s7  ;;  %v5609_v8 = vadd.s32 8, %v5606_v7  ;;  %9745 = vst [vmem:[#allocation12_spill] sm:$0xff] %v5611_v9  ;;  %v466_v10 = vadd.s32 128, %v5611_v9  ;;  %v469_v11 = vmul.u32 32, %v5606_v7  ;;  %v467_v13 = vadd.s32 256, %v5611_v9 }
  0x13   :  { %v468_v14 = vadd.s32 384, %v5611_v9  ;;  %v9761_v36 = vmov 0  ;;  %v9764_v39 = vmov 0  ;;  %v9767_v43 = vmov 0 }
  0x14   :  { %v470_v12 = vmul.u32 32, %v5609_v8  ;;  %v472_v15 = vsub.s32 %v466_v10, %v469_v11  ;;  %v473_v17 = vsub.s32 %v467_v13, %v469_v11  ;;  %v471_v27 = vsub.s32 %v5611_v9, %v469_v11 }
  0x15   :  { %v474_v19 = vsub.s32 %v468_v14, %v469_v11 }
  0x16   :  { %v476_v16 = vsub.s32 %v466_v10, %v470_v12  ;;  %v477_v18 = vsub.s32 %v467_v13, %v470_v12  ;;  %v478_v20 = vsub.s32 %v468_v14, %v470_v12  ;;  %vm480_vm0 = vcmp.ge.s32.totalorder %v472_v15, 2 }
  0x17   :  { %585 = vrot.lane.b32.xlu1 %v5574_v0, %s5504_s25  ;;  %vm488_vm2 = vcmp.lt.s32.totalorder %v472_v15, 30  ;;  %vm481_vm5 = vcmp.ge.s32.totalorder %v473_v17, 2  ;;  %vm489_vm7 = vcmp.lt.s32.totalorder %v473_v17, 30  ;;  %vm482_vm10 = vcmp.ge.s32.totalorder %v474_v19, 2 }
  0x18   :  { %vm484_vm1 = vcmp.ge.s32.totalorder %v476_v16, 2  ;;  %vm492_vm3 = vcmp.lt.s32.totalorder %v476_v16, 30  ;;  %vm5618_vm4 = vmand %vm480_vm0, %vm488_vm2  ;;  %vm485_vm6 = vcmp.ge.s32.totalorder %v477_v18, 2  ;;  %vm493_vm9 = vcmp.lt.s32.totalorder %v477_v18, 30 }
  0x19   :  { %v9747_v21 = vsel %vm5618_vm4, 4294967295, %v9746_v21  ;;  %vm5622_vm8 = vmand %vm484_vm1, %vm492_vm3  ;;  %v504_v24 = vsel %vm5618_vm4, 1.0, %v5506_v23  ;;  %vm486_vm11 = vcmp.ge.s32.totalorder %v478_v20, 2  ;;  %vm490_vm13 = vcmp.lt.s32.totalorder %v474_v19, 30 }
  0x1a   :  { %4865 = vrot.lane.b32.xlu0 %v4859_v3, %s5504_s25  ;;  %4875 = vrot.lane.b32.xlu2 %v4869_v5, %s5505_s26  ;;  %9748 = vst [vmem:[#allocation13_spill] sm:$0xff] %v9747_v21  ;;  %v9750_v22 = vsel %vm5622_vm8, 4294967295, %v9749_v22  ;;  %v508_v25 = vsel %vm5622_vm8, 1.0, %v5506_v23  ;;  %vm5630_vm12 = vmand %vm481_vm5, %vm489_vm7  ;;  %vm494_vm14 = vcmp.lt.s32.totalorder %v478_v20, 30  ;;  %v475_v31 = vsub.s32 %v5611_v9, %v470_v12 }
  0x1b   :  { %9751 = vst [vmem:[#allocation14_spill] sm:$0xff] %v9750_v22  ;;  %v9753_v26 = vsel %vm5630_vm12, 4294967295, %v9752_v26  ;;  %v518_v28 = vadd.f32 %v508_v25, %v504_v24  ;;  %vm5635_vm15 = vmand %vm485_vm6, %vm493_vm9  ;;  %v505_v30 = vsel %vm5630_vm12, 1.0, %v5506_v23  ;;  %vm479_vm1 = vcmp.ge.s32.totalorder %v471_v27, 2 }
  0x1c   :  { %9754 = vst [vmem:[#allocation15_spill] sm:$0xff] %v9753_v26  ;;  %v9756_v29 = vsel %vm5635_vm15, 4294967295, %v9755_v29  ;;  %v509_v32 = vsel %vm5635_vm15, 1.0, %v5506_v23  ;;  %vm5644_vm0 = vmand %vm482_vm10, %vm490_vm13  ;;  %vm487_vm2 = vcmp.lt.s32.totalorder %v471_v27, 30  ;;  %vm483_vm5 = vcmp.ge.s32.totalorder %v475_v31, 2 }
  0x1d   :  { %9757 = vst [vmem:[#allocation16_spill] sm:$0xff] %v9756_v29  ;;  %v9759_v33 = vsel %vm5644_vm0, 4294967295, %v9758_v33  ;;  %v519_v34 = vrot.slane %v518_v28, 4  ;;  %v525_v35 = vadd.f32 %v509_v32, %v505_v30  ;;  %vm5649_vm3 = vmand %vm486_vm11, %vm494_vm14  ;;  %v506_v37 = vsel %vm5644_vm0, 1.0, %v5506_v23 }
  0x1e   :  { %9760 = vst [vmem:[#allocation17_spill] sm:$0xff] %v9759_v33  ;;  %v9762_v36 = vsel %vm5649_vm3, 4294967295, %v9761_v36  ;;  %v510_v38 = vsel %vm5649_vm3, 1.0, %v5506_v23  ;;  %vm491_vm6 = vcmp.lt.s32.totalorder %v475_v31, 30  ;;  %vm5657_vm7 = vmand %vm479_vm1, %vm487_vm2  ;;  %vm9360_vm10 = vcmask 1040384  }
  0x1f   :  { %565 = vrot.lane.b32.xlu1 %v5578_v2, %s5505_s26  ;;  %9763 = vst [vmem:[#allocation18_spill] sm:$0xff] %v9762_v36  ;;  %v9765_v39 = vsel %vm5657_vm7, 4294967295, %v9764_v39  ;;  %v520_v40 = vadd.f32 %v519_v34, %v518_v28  ;;  %v526_v41 = vrot.slane %v525_v35, 4  ;;  %v532_v42 = vadd.f32 %v510_v38, %v506_v37  ;;  %vm5661_vm9 = vmand %vm483_vm5, %vm491_vm6 }
  0x20   :  { %9766 = vst [vmem:[#allocation19_spill] sm:$0xff] %v9765_v39  ;;  %v9768_v43 = vsel %vm5661_vm9, 4294967295, %v9767_v43  ;;  %v503_v44 = vsel %vm5657_vm7, 1.0, %v5506_v23  ;;  %v507_v45 = vsel %vm5661_vm9, 1.0, %v5506_v23  ;;  %vm9356_vm11 = vcmp.lt.s32.totalorder %v5611_v9, 126 }
  0x21   :  { %9769 = vst [vmem:[#allocation20_spill] sm:$0xff] %v9768_v43  ;;  %v521_v46 = vrot.slane %v520_v40, 2  ;;  %v527_v47 = vadd.f32 %v526_v41, %v525_v35  ;;  %v533_v48 = vrot.slane %v532_v42, 4  ;;  %v511_v49 = vadd.f32 %v507_v45, %v503_v44  ;;  %v5714_v44 = vld [vmem:[%s9350_s4] sm:$0xff] }
  0x22   :  { %578 = vrot.lane.b32.xlu0 %v5578_v2, %s5503_s7  ;;  %600 = vrot.lane.b32.xlu2 %v5584_v4, %s5502_s0  ;;  %vm9359_vm13 = vcmp.lt.s32.totalorder %v5611_v9, 127  ;;  %vm9358_vm14 = vcmp.lt.s32.totalorder %v5611_v9, 1  ;;  %vm9357_vm1 = vcmp.lt.s32.totalorder %v5611_v9, 2  ;;  %vm9361_vm2 = vcmask 334848  }
  0x23   :  { %v522_v50 = vadd.f32 %v521_v46, %v520_v40  ;;  %v528_v51 = vrot.slane %v527_v47, 2  ;;  %v534_v52 = vadd.f32 %v533_v48, %v532_v42  ;;  %v512_v53 = vrot.slane %v511_v49, 4 }
  0x24   :  { %v100_v36 = vadd.s32 168, %v5606_v7  ;;  %v9920_v26 = vmov 0 }
  0x25   :  { %v523_v54 = vrot.slane %v522_v50, 1  ;;  %v529_v55 = vadd.f32 %v528_v51, %v527_v47  ;;  %v535_v56 = vrot.slane %v534_v52, 2  ;;  %v513_v57 = vadd.f32 %v512_v53, %v511_v49  ;;  %v5730_v49 = vld [vmem:[%s9350_s4 + $0x8] sm:$0xff] }
  0x26   :  { %v5725_v47 = vmul.u32 32, %v5611_v9  ;;  %v101_v9 = vadd.s32 176, %v5606_v7 }
  0x27   :  { %572 = vrot.lane.b32.xlu1 %v5574_v0, %s5503_s7  ;;  %v5669_v58 = vadd.f32 %v523_v54, %v522_v50  ;;  %v530_v59 = vrot.slane %v529_v55, 1  ;;  %v536_v60 = vadd.f32 %v535_v56, %v534_v52  ;;  %v514_v61 = vrot.slane %v513_v57, 2 }
  0x28   :  { %v125_v56 = vadd.s32 368, %v5606_v7  ;;  %v167_v29 = vsub.s32 %v100_v36, %v5725_v47  ;;  %v9933_v36 = vmov 0 }
  0x29   :  { %9770 = vst [vmem:[#allocation21_spill] sm:$0xff] %v5669_v58  ;;  %4266 = vmatpush.msk.msra.mxu1 %vm9360_vm10, %v5669_v58  ;;  %v5673_v62 = vadd.f32 %v530_v59, %v529_v55  ;;  %v537_v63 = vrot.slane %v536_v60, 1  ;;  %v515_v3 = vadd.f32 %v514_v61, %v513_v57  ;;  %v126_v55 = vadd.s32 376, %v5606_v7 }
  0x2a   :  { %587 = vrot.lane.b32.xlu0 %v5584_v4, %s5504_s25  ;;  %559 = vrot.lane.b32.xlu2 %v5574_v0, %s5505_s26  ;;  %v142_v57 = vadd.s32 504, %v5606_v7  ;;  %v124_v59 = vadd.s32 360, %v5606_v7  ;;  %v113_v58 = vadd.s32 272, %v5606_v7 }
  0x2b   :  { %9771 = vst [vmem:[#allocation22_spill] sm:$0xff] %v5673_v62  ;;  %4275 = vmatpush.msk.msra.mxu2 %vm9360_vm10, %v5673_v62  ;;  %v5677_v5 = vadd.f32 %v537_v63, %v536_v60  ;;  %v516_v6 = vrot.slane %v515_v3, 1  ;;  %v141_v60 = vadd.s32 496, %v5606_v7  ;;  %v193_v63 = vsub.s32 %v126_v55, %v5725_v47 }
  0x2c   :  { %v120_v55 = vadd.s32 328, %v5606_v7 }
  0x2d   :  { %9772 = vst [vmem:[#allocation23_spill] sm:$0xff] %v5677_v5  ;;  %4284 = vmatpush.msk.msra.mxu3 %vm9360_vm10, %v5677_v5  ;;  %v5681_v10 = vadd.f32 %v516_v6, %v515_v3  ;;  %v123_v3 = vadd.s32 352, %v5606_v7  ;;  %v192_v6 = vsub.s32 %v125_v56, %v5725_v47  ;;  %vm257_vm5 = vcmp.ge.s32.totalorder %v193_v63, 2 }
  0x2e   :  { %vm321_vm6 = vcmp.lt.s32.totalorder %v193_v63, 30  ;;  %v137_v56 = vadd.s32 464, %v5606_v7  ;;  %v9895_v5 = vmov 1.0  }
  0x2f   :  { %9773 = vst [vmem:[#allocation24_spill] sm:$0xff] %v5681_v10  ;;  %4257 = vmatpush.msk.msra.mxu0 %vm9360_vm10, %v5681_v10  ;;  %v9902_v10 = vmov 0 }
  0x6c   :  { %v5683_v11 = vpop.permute.xlu2 %4870 }
  0x6d   :  { %v4873_v30 = vunpack.i.h.bf16 %v5683_v11  ;;  %v4872_v31 = vunpack.i.l.bf16 %v5683_v11  ;;  %v209_v11 = vsub.s32 %v142_v57, %v5725_v47  ;;  %v91_v57 = vadd.s32 96, %v5606_v7 }
  0x6f   :  { %v582_v40 = vsel %vm9358_vm14, %v4872_v31, %v4873_v30  ;;  %vm337_vm10 = vcmp.lt.s32.totalorder %v209_v11, 30 }
  0x74   :  { %v4876_v12 = vpop.permute.xlu2 %4875 }
  0x75   :  { %v4878_v32 = vunpack.i.h.bf16 %v4876_v12  ;;  %v4877_v34 = vunpack.i.l.bf16 %v4876_v12  ;;  %v191_v12 = vsub.s32 %v124_v59, %v5725_v47  ;;  %v107_v59 = vadd.s32 224, %v5606_v7 }
  0x77   :  { %v569_v41 = vsel %vm9357_vm1, %v4877_v34, %v4878_v32  ;;  %vm255_vm0 = vcmp.ge.s32.totalorder %v191_v12, 2  ;;  %vm319_vm3 = vcmp.lt.s32.totalorder %v191_v12, 30  ;;  %v204_v12 = vsub.s32 %v137_v56, %v5725_v47 }
  0x7c   :  { %v601_v14 = vpop.permute.xlu2 %600 }
  0x81   :  { %v599_v13 = vpop.permute.xlu1 %598 }
  0x82   :  { %v609_v15 = vsel %vm9356_vm11, %v599_v13, %v601_v14 }
  0x83   :  { %660 = vmatpush.msra.mxu0 %v609_v15  ;;  %v190_v15 = vsub.s32 %v123_v3, %v5725_v47  ;;  %v187_v3 = vsub.s32 %v120_v55, %v5725_v47  ;;  %v9847_v55 = vmov 0 }
  0x84   :  { %v4861_v16 = vpop.permute.xlu0 %4860  ;;  %v560_v45 = vpop.permute.xlu2 %559 }
  0x85   :  { %v4863_v17 = vunpack.i.h.bf16 %v4861_v16  ;;  %v4862_v18 = vunpack.i.l.bf16 %v4861_v16  ;;  %v570_v51 = vsel %vm9357_vm1, %v560_v45, %v4877_v34  ;;  %v9777_v16 = vmov 0 }
  0x86   :  { %vm254_vm15 = vcmp.ge.s32.totalorder %v190_v15, 2 }
  0x87   :  { %v608_v19 = vsel %vm9356_vm11, %v601_v14, %v4862_v18  ;;  %v607_v20 = vsel %vm9356_vm11, %v4862_v18, %v4863_v17  ;;  %v610_v23 = vsel %vm9356_vm11, %v4863_v17, %v599_v13  ;;  %v140_v13 = vadd.s32 488, %v5606_v7  ;;  %vm5763_vm11 = vmand %vm257_vm5, %vm321_vm6  ;;  %v5777_v17 = vld [vmem:[%s9350_s4 + $0x10] sm:$0xff] }
  0x88   :  { %701 = vmatpush.msra.mxu1 %v608_v19  ;;  %742 = vmatpush.msra.mxu2 %v607_v20  ;;  %v208_v14 = vsub.s32 %v141_v60, %v5725_v47  ;;  %v9780_v18 = vmov 0  ;;  %vm5788_vm5 = vmand %vm255_vm0, %vm319_vm3  ;;  %v9785_v20 = vmov 0  ;;  %v9817_v60 = vmov 0 }
  0x89   :  { %783 = vmatpush.msra.mxu3 %v610_v23  ;;  %v586_v24 = vpop.permute.xlu1 %585  ;;  %v207_v19 = vsub.s32 %v140_v13, %v5725_v47  ;;  %v9786_v20 = vsel %vm5788_vm5, 4294967295, %v9785_v20  ;;  %v94_v23 = vadd.s32 120, %v5606_v7  ;;  %v158_v13 = vsub.s32 %v91_v57, %v5725_v47 }
  0x8a   :  { %9787 = vst [vmem:[#allocation28_spill] sm:$0xff] %v9786_v20  ;;  %vm9789_vm0 = vcmp.ge.s32.totalorder %v208_v14, 2 }
  0x8b   :  { %v161_v34 = vsub.s32 %v94_v23, %v5725_v47  ;;  %v9827_v23 = vmov 0 }
  0x8c   :  { %v4866_v25 = vpop.permute.xlu0 %4865 }
  0x8d   :  { %v4868_v27 = vunpack.i.h.bf16 %v4866_v25  ;;  %v4867_v28 = vunpack.i.l.bf16 %v4866_v25  ;;  %v122_v25 = vadd.s32 344, %v5606_v7 }
  0x8f   :  { %v594_v35 = vsel %vm9359_vm13, %v4867_v28, %v4868_v27  ;;  %v597_v37 = vsel %vm9359_vm13, %v4868_v27, %v586_v24  ;;  %v139_v27 = vadd.s32 480, %v5606_v7 }
  0x90   :  { %743 = vmatpush.msra.mxu2 %v594_v35  ;;  %784 = vmatpush.msra.mxu3 %v597_v37  ;;  %v189_v37 = vsub.s32 %v122_v25, %v5725_v47  ;;  %v5951_v25 = vld [vmem:[%s9350_s4 + $0x20] sm:$0xff] }
  0x91   :  { %v566_v38 = vpop.permute.xlu1 %565 }
  0x92   :  { %744 = vmatpush.msra.mxu2 %v5576_v1  ;;  %785 = vmatpush.msra.mxu3 %v5578_v2  ;;  %v568_v2 = vsel %vm9357_vm1, %v4878_v32, %v566_v38  ;;  %v571_v50 = vsel %vm9357_vm1, %v566_v38, %v560_v45  ;;  %vm256_vm1 = vcmp.ge.s32.totalorder %v192_v6, 2  ;;  %v9793_v32 = vmov 0 }
  0x93   :  { %v206_v38 = vsub.s32 %v139_v27, %v5725_v47  ;;  %vm317_vm8 = vcmp.lt.s32.totalorder %v189_v37, 30  ;;  %v9803_v45 = vmov 0  ;;  %v9833_v27 = vmov 0 }
  0x94   :  { %v579_v42 = vpop.permute.xlu0 %578  ;;  %745 = vmatpush.msra.mxu2 %v582_v40  ;;  %v9796_v40 = vmov 0 }
  0x95   :  { %v581_v1 = vsel %vm9358_vm14, %v4873_v30, %v579_v42  ;;  %v93_v30 = vadd.s32 112, %v5606_v7  ;;  %vm270_vm9 = vcmp.ge.s32.totalorder %v206_v38, 2 }
  0x96   :  { %746 = vmatpush.msra.mxu2 %v569_v41  ;;  %786 = vmatpush.msra.mxu3 %v581_v1  ;;  %v138_v1 = vadd.s32 472, %v5606_v7 }
  0x97   :  { %4276 = vmatmul.msk.f32.vlgmr.msra.gmra.mxu2 %vm9361_vm2, %v5714_v44  ;;  %v160_v41 = vsub.s32 %v93_v30, %v5725_v47 }
  0x98   :  { %787 = vmatpush.msra.mxu3 %v568_v2  ;;  %v9800_v2 = vmov 0 }
  0x99   :  { %4285 = vmatmul.msk.f32.vlgmr.msra.gmra.mxu3 %vm9361_vm2, %v5714_v44  ;;  %v573_v46 = vpop.permute.xlu1 %572 }
  0x9a   :  { %v584_v54 = vsel %vm9358_vm14, %v579_v42, %v573_v46  ;;  %v583_v61 = vsel %vm9358_vm14, %v573_v46, %v4872_v31  ;;  %vm320_vm14 = vcmp.lt.s32.totalorder %v192_v6, 30  ;;  %v109_v31 = vadd.s32 240, %v5606_v7  ;;  %v5858_v46 = vld [vmem:[%s9350_s4 + $0x18] sm:$0xff] }
  0x9b   :  { %v119_v6 = vadd.s32 320, %v5606_v7 }
  0x9c   :  { %v588_v48 = vpop.permute.xlu0 %587  ;;  %v176_v42 = vsub.s32 %v109_v31, %v5725_v47 }
  0x9d   :  { %v596_v52 = vsel %vm9359_vm13, %v586_v24, %v588_v48  ;;  %v595_v53 = vsel %vm9359_vm13, %v588_v48, %v4867_v28  ;;  %vm273_vm13 = vcmp.ge.s32.totalorder %v209_v11, 2  ;;  %v110_v24 = vadd.s32 248, %v5606_v7 }
  0x9e   :  { %661 = vmatpush.msra.mxu0 %v596_v52  ;;  %702 = vmatpush.msra.mxu1 %v595_v53  ;;  %vm5779_vm6 = vmand %vm273_vm13, %vm337_vm10  ;;  %v9790_v28 = vmov 0  ;;  %vm271_vm10 = vcmp.ge.s32.totalorder %v207_v19, 2  ;;  %vm335_vm13 = vcmp.lt.s32.totalorder %v207_v19, 30  ;;  %v9806_v48 = vmov 0 }
  0x9f   :  { %4277 = vmatmul.msk.f32.gmra.mxu2 %vm9361_vm2, %v5730_v49  ;;  %v9781_v18 = vsel %vm5779_vm6, 4294967295, %v9780_v18  ;;  %v177_v35 = vsub.s32 %v110_v24, %v5725_v47  ;;  %v92_v52 = vadd.s32 104, %v5606_v7  ;;  %v108_v53 = vadd.s32 232, %v5606_v7 }
  0xa0   :  { %662 = vmatpush.msra.mxu0 %v5574_v0  ;;  %703 = vmatpush.msra.mxu1 %v5584_v4  ;;  %v9774_v0 = vmov 0  ;;  %v9436_v4 = vmov 1.0   ;;  %9782 = vst [vmem:[#allocation27_spill] sm:$0xff] %v9781_v18  ;;  %v9820_v11 = vmov 0  ;;  %v9824_v19 = vmov 0 }
  0xa1   :  { %4286 = vmatmul.msk.f32.gmra.mxu3 %vm9361_vm2, %v5730_v49  ;;  %v9775_v0 = vsel %vm5763_vm11, 4294967295, %v9774_v0  ;;  %4325 = vmatpush.msk.msrb.mxu2 %vm5763_vm11, %v9436_v4  ;;  %vm5770_vm2 = vmand %vm256_vm1, %vm320_vm14  ;;  %vm318_vm14 = vcmp.lt.s32.totalorder %v190_v15, 30  ;;  %vm9783_vm1 = vcmask 334848   ;;  %vm305_vm7 = vcmp.lt.s32.totalorder %v177_v35, 30 }
  0xa2   :  { %663 = vmatpush.msra.mxu0 %v584_v54  ;;  %704 = vmatpush.msra.mxu1 %v583_v61  ;;  %9776 = vst [vmem:[#allocation25_spill] sm:$0xff] %v9775_v0  ;;  %v9778_v16 = vsel %vm5770_vm2, 4294967295, %v9777_v16  ;;  %vm9784_vm12 = vmmov %vm9783_vm1  ;;  %v9811_v54 = vmov 0  ;;  %v159_v61 = vsub.s32 %v92_v52, %v5725_v47  ;;  %v175_v63 = vsub.s32 %v108_v53, %v5725_v47 }
  0xa3   :  { %9779 = vst [vmem:[#allocation26_spill] sm:$0xff] %v9778_v16  ;;  %4326 = vmatpush.msk.msrb.mxu2 %vm5770_vm2, %v9436_v4  ;;  %4341 = vmatpush.msk.msrb.mxu3 %vm5779_vm6, %v9436_v4  ;;  %vm5814_vm4 = vmand %vm254_vm15, %vm318_vm14  ;;  %vm240_vm6 = vcmp.ge.s32.totalorder %v176_v42, 2  ;;  %v136_v15 = vadd.s32 456, %v5606_v7  ;;  %v9830_v24 = vmov 0  ;;  %v186_v30 = vsub.s32 %v119_v6, %v5725_v47 }
  0xa4   :  { %664 = vmatpush.msra.mxu0 %v571_v50  ;;  %705 = vmatpush.msra.mxu1 %v570_v51  ;;  %v9794_v32 = vsel %vm5814_vm4, 4294967295, %v9793_v32  ;;  %vm5828_vm15 = vmand %vm271_vm10, %vm335_vm13  ;;  %vm253_vm13 = vcmp.ge.s32.totalorder %v189_v37, 2  ;;  %v205_v51 = vsub.s32 %v138_v1, %v5725_v47  ;;  %v9838_v37 = vmov 0 }
  0xa5   :  { %4258 = vmatmul.msk.f32.vlgmr.msra.gmra.mxu0 %vm9783_vm1, %v5714_v44  ;;  %4267 = vmatmul.msk.f32.vlgmr.msra.gmra.mxu1 %vm9784_vm12, %v5714_v44  ;;  %vm9788_vm12 = vcmp.lt.s32.totalorder %v208_v14, 30  ;;  %9795 = vst [vmem:[#allocation30_spill] sm:$0xff] %v9794_v32  ;;  %v9797_v40 = vsel %vm5828_vm15, 4294967295, %v9796_v40  ;;  %v121_v44 = vadd.s32 336, %v5606_v7  ;;  %vm9799_vm14 = vmmov %vm9783_vm1  ;;  %v174_v14 = vsub.s32 %v107_v59, %v5725_v47 }
  0xa6   :  { %vm5804_vm3 = vmand %vm9789_vm0, %vm9788_vm12  ;;  %4327 = vmatpush.msk.msrb.mxu2 %vm5788_vm5, %v9436_v4  ;;  %9798 = vst [vmem:[#allocation31_spill] sm:$0xff] %v9797_v40  ;;  %vm225_vm12 = vcmp.ge.s32.totalorder %v161_v34, 2  ;;  %vm289_vm0 = vcmp.lt.s32.totalorder %v161_v34, 30  ;;  %vm288_vm5 = vcmp.lt.s32.totalorder %v160_v41, 30  ;;  %v203_v31 = vsub.s32 %v136_v15, %v5725_v47 }
  0xa7   :  { %v9791_v28 = vsel %vm5804_vm3, 4294967295, %v9790_v28  ;;  %4278 = vmatmul.msk.f32.gmra.mxu2 %vm9783_vm1, %v5777_v17  ;;  %4342 = vmatpush.msk.msrb.mxu3 %vm5804_vm3, %v9436_v4  ;;  %vm241_vm1 = vcmp.ge.s32.totalorder %v177_v35, 2  ;;  %vm5844_vm10 = vmand %vm225_vm12, %vm289_vm0  ;;  %v188_v50 = vsub.s32 %v121_v44, %v5725_v47  ;;  %v90_v34 = vadd.s32 88, %v5606_v7 }
  0xa8   :  { %9792 = vst [vmem:[#allocation29_spill] sm:$0xff] %v9791_v28  ;;  %4328 = vmatpush.msk.msrb.mxu2 %vm5814_vm4, %v9436_v4  ;;  %v9801_v2 = vsel %vm5844_vm10, 4294967295, %v9800_v2  ;;  %4293 = vmatpush.msk.msrb.mxu0 %vm5844_vm10, %v9436_v4  ;;  %vm5851_vm3 = vmand %vm241_vm1, %vm305_vm7  ;;  %vm224_vm4 = vcmp.ge.s32.totalorder %v160_v41, 2  ;;  %vm9809_vm7 = vcmask 334848   ;;  %vm238_vm10 = vcmp.ge.s32.totalorder %v174_v14, 2 }
  0xa9   :  { %4287 = vmatmul.msk.f32.gmra.mxu3 %vm9799_vm14, %v5777_v17  ;;  %9802 = vst [vmem:[#allocation32_spill] sm:$0xff] %v9801_v2  ;;  %vm334_vm14 = vcmp.lt.s32.totalorder %v206_v38, 30  ;;  %v9804_v45 = vsel %vm5851_vm3, 4294967295, %v9803_v45  ;;  %4309 = vmatpush.msk.msrb.mxu1 %vm5851_vm3, %v9436_v4  ;;  %vm5863_vm12 = vmand %vm253_vm13, %vm317_vm8  ;;  %vm252_vm1 = vcmp.ge.s32.totalorder %v188_v50, 2  ;;  %vm316_vm13 = vcmp.lt.s32.totalorder %v188_v50, 30 }
  0xaa   :  { %4343 = vmatpush.msk.msrb.mxu3 %vm5828_vm15, %v9436_v4  ;;  %9805 = vst [vmem:[#allocation33_spill] sm:$0xff] %v9804_v45  ;;  %vm304_vm15 = vcmp.lt.s32.totalorder %v176_v42, 30  ;;  %v9807_v48 = vsel %vm5863_vm12, 4294967295, %v9806_v48  ;;  %vm9810_vm0 = vmmov %vm9809_vm7  ;;  %4329 = vmatpush.msk.msrb.mxu2 %vm5863_vm12, %v9436_v4  ;;  %vm332_vm12 = vcmp.lt.s32.totalorder %v204_v12, 30  ;;  %vm286_vm3 = vcmp.lt.s32.totalorder %v158_v13, 30 }
  0xab   :  { %9808 = vst [vmem:[#allocation34_spill] sm:$0xff] %v9807_v48  ;;  %vm5877_vm8 = vmand %vm270_vm9, %vm334_vm14  ;;  %vm269_vm14 = vcmp.ge.s32.totalorder %v205_v51, 2  ;;  %v106_v35 = vadd.s32 216, %v5606_v7  ;;  %v118_v38 = vadd.s32 312, %v5606_v7  ;;  %v135_v41 = vadd.s32 448, %v5606_v7 }
  0xac   :  { %v9812_v54 = vsel %vm5877_vm8, 4294967295, %v9811_v54  ;;  %4344 = vmatpush.msk.msrb.mxu3 %vm5877_vm8, %v9436_v4  ;;  %vm5893_vm9 = vmand %vm224_vm4, %vm288_vm5  ;;  %v89_v42 = vadd.s32 80, %v5606_v7  ;;  %v105_v44 = vadd.s32 208, %v5606_v7  ;;  %v9844_v1 = vmov 0 }
  0xad   :  { %4259 = vmatmul.msk.f32.gmra.mxu0 %vm9809_vm7, %v5730_v49  ;;  %4268 = vmatmul.msk.f32.gmra.mxu1 %vm9810_vm0, %v5730_v49  ;;  %9813 = vst [vmem:[#allocation35_spill] sm:$0xff] %v9812_v54  ;;  %v9814_v49 = vmov 0  ;;  %vm333_vm7 = vcmp.lt.s32.totalorder %v205_v51, 30  ;;  %vm5904_vm8 = vmand %vm240_vm6, %vm304_vm15  ;;  %vm223_vm15 = vcmp.ge.s32.totalorder %v159_v61, 2  ;;  %v157_v50 = vsub.s32 %v90_v34, %v5725_v47 }
  0xae   :  { %v9815_v49 = vsel %vm5893_vm9, 4294967295, %v9814_v49  ;;  %4294 = vmatpush.msk.msrb.mxu0 %vm5893_vm9, %v9436_v4  ;;  %v9818_v60 = vsel %vm5904_vm8, 4294967295, %v9817_v60  ;;  %4310 = vmatpush.msk.msrb.mxu1 %vm5904_vm8, %v9436_v4  ;;  %vm5915_vm4 = vmand %vm252_vm1, %vm316_vm13  ;;  %vm287_vm1 = vcmp.lt.s32.totalorder %v159_v61, 30  ;;  %vm239_vm13 = vcmp.ge.s32.totalorder %v175_v63, 2 }
  0xaf   :  { %9816 = vst [vmem:[#allocation36_spill] sm:$0xff] %v9815_v49  ;;  %4279 = vmatmul.msk.f32.gmra.mxu2 %vm9810_vm0, %v5858_v46  ;;  %v9821_v11 = vsel %vm5915_vm4, 4294967295, %v9820_v11  ;;  %vm9823_vm5 = vmmov %vm9810_vm0  ;;  %vm303_vm0 = vcmp.lt.s32.totalorder %v175_v63, 30  ;;  %vm268_vm9 = vcmp.ge.s32.totalorder %v204_v12, 2  ;;  %v173_v51 = vsub.s32 %v106_v35, %v5725_v47  ;;  %v6044_v12 = vld [vmem:[%s9350_s4 + $0x28] sm:$0xff] }
  0xb0   :  { %9819 = vst [vmem:[#allocation37_spill] sm:$0xff] %v9818_v60  ;;  %4330 = vmatpush.msk.msrb.mxu2 %vm5915_vm4, %v9436_v4  ;;  %vm5930_vm6 = vmand %vm269_vm14, %vm333_vm7  ;;  %vm315_vm4 = vcmp.lt.s32.totalorder %v187_v3, 30  ;;  %vm222_vm7 = vcmp.ge.s32.totalorder %v158_v13, 2  ;;  %v185_v52 = vsub.s32 %v118_v38, %v5725_v47  ;;  %v117_v53 = vadd.s32 304, %v5606_v7 }
  0xb1   :  { %9822 = vst [vmem:[#allocation38_spill] sm:$0xff] %v9821_v11  ;;  %4288 = vmatmul.msk.f32.gmra.mxu3 %vm9823_vm5, %v5858_v46  ;;  %v9825_v19 = vsel %vm5930_vm6, 4294967295, %v9824_v19  ;;  %vm5937_vm8 = vmand %vm223_vm15, %vm287_vm1  ;;  %vm251_vm5 = vcmp.ge.s32.totalorder %v187_v3, 2  ;;  %vm9836_vm1 = vcmask 334848   ;;  %v202_v56 = vsub.s32 %v135_v41, %v5725_v47 }
  0xb2   :  { %9826 = vst [vmem:[#allocation39_spill] sm:$0xff] %v9825_v19  ;;  %4345 = vmatpush.msk.msrb.mxu3 %vm5930_vm6, %v9436_v4  ;;  %v9828_v23 = vsel %vm5937_vm8, 4294967295, %v9827_v23  ;;  %4295 = vmatpush.msk.msrb.mxu0 %vm5937_vm8, %v9436_v4  ;;  %vm5944_vm14 = vmand %vm239_vm13, %vm303_vm0  ;;  %vm302_vm6 = vcmp.lt.s32.totalorder %v174_v14, 30  ;;  %vm314_vm0 = vcmp.lt.s32.totalorder %v186_v30, 30  ;;  %v156_v57 = vsub.s32 %v89_v42, %v5725_v47 }
  0xb3   :  { %9829 = vst [vmem:[#allocation40_spill] sm:$0xff] %v9828_v23  ;;  %v9831_v24 = vsel %vm5944_vm14, 4294967295, %v9830_v24  ;;  %4311 = vmatpush.msk.msrb.mxu1 %vm5944_vm14, %v9436_v4  ;;  %vm5956_vm15 = vmand %vm251_vm5, %vm315_vm4  ;;  %vm267_vm5 = vcmp.ge.s32.totalorder %v203_v31, 2  ;;  %v172_v59 = vsub.s32 %v105_v44, %v5725_v47  ;;  %v134_v61 = vadd.s32 440, %v5606_v7 }
  0xb4   :  { %9832 = vst [vmem:[#allocation41_spill] sm:$0xff] %v9831_v24  ;;  %v9834_v27 = vsel %vm5956_vm15, 4294967295, %v9833_v27  ;;  %vm9837_vm13 = vmmov %vm9836_vm1  ;;  %4331 = vmatpush.msk.msrb.mxu2 %vm5956_vm15, %v9436_v4  ;;  %v9851_v63 = vmov 0  ;;  %v9854_v3 = vmov 0  ;;  %vm330_vm15 = vcmp.lt.s32.totalorder %v202_v56, 30 }
  0xb5   :  { %9835 = vst [vmem:[#allocation42_spill] sm:$0xff] %v9834_v27  ;;  %4260 = vmatmul.msk.f32.gmra.mxu0 %vm9836_vm1, %v5777_v17  ;;  %4269 = vmatmul.msk.f32.gmra.mxu1 %vm9837_vm13, %v5777_v17  ;;  %vm5970_vm4 = vmand %vm268_vm9, %vm332_vm12  ;;  %v9841_v17 = vmov 0  ;;  %vm250_vm9 = vcmp.ge.s32.totalorder %v186_v30, 2  ;;  %vm331_vm1 = vcmp.lt.s32.totalorder %v203_v31, 30  ;;  %v9857_v6 = vmov 0 }
  0xb6   :  { %v9839_v37 = vsel %vm5970_vm4, 4294967295, %v9838_v37  ;;  %4346 = vmatpush.msk.msrb.mxu3 %vm5970_vm4, %v9436_v4  ;;  %vm5986_vm12 = vmand %vm222_vm7, %vm286_vm3  ;;  %vm221_vm7 = vcmp.ge.s32.totalorder %v157_v50, 2  ;;  %vm284_vm14 = vcmp.lt.s32.totalorder %v156_v57, 30  ;;  %vm236_vm8 = vcmp.ge.s32.totalorder %v172_v59, 2 }
  0xb7   :  { %9840 = vst [vmem:[#allocation43_spill] sm:$0xff] %v9839_v37  ;;  %v9842_v17 = vsel %vm5986_vm12, 4294967295, %v9841_v17  ;;  %4280 = vmatmul.msk.f32.gmra.mxu2 %vm9837_vm13, %v5951_v25  ;;  %4296 = vmatpush.msk.msrb.mxu0 %vm5986_vm12, %v9436_v4  ;;  %vm5997_vm4 = vmand %vm238_vm10, %vm302_vm6  ;;  %vm266_vm12 = vcmp.ge.s32.totalorder %v202_v56, 2  ;;  %v9860_v13 = vmov 0  ;;  %v184_v14 = vsub.s32 %v117_v53, %v5725_v47 }
  0xb8   :  { %9843 = vst [vmem:[#allocation44_spill] sm:$0xff] %v9842_v17  ;;  %v9845_v1 = vsel %vm5997_vm4, 4294967295, %v9844_v1  ;;  %4312 = vmatpush.msk.msrb.mxu1 %vm5997_vm4, %v9436_v4  ;;  %vm6008_vm3 = vmand %vm250_vm9, %vm314_vm0  ;;  %vm285_vm9 = vcmp.lt.s32.totalorder %v157_v50, 30  ;;  %vm237_vm0 = vcmp.ge.s32.totalorder %v173_v51, 2  ;;  %v201_v15 = vsub.s32 %v134_v61, %v5725_v47 }
  0xb9   :  { %9846 = vst [vmem:[#allocation45_spill] sm:$0xff] %v9845_v1  ;;  %v9848_v55 = vsel %vm6008_vm3, 4294967295, %v9847_v55  ;;  %vm9850_vm10 = vmmov %vm9837_vm13  ;;  %4332 = vmatpush.msk.msrb.mxu2 %vm6008_vm3, %v9436_v4  ;;  %vm301_vm13 = vcmp.lt.s32.totalorder %v173_v51, 30  ;;  %vm313_vm3 = vcmp.lt.s32.totalorder %v185_v52, 30  ;;  %v88_v30 = vadd.s32 72, %v5606_v7 }
  0xba   :  { %9849 = vst [vmem:[#allocation46_spill] sm:$0xff] %v9848_v55  ;;  %4289 = vmatmul.msk.f32.gmra.mxu3 %vm9850_vm10, %v5951_v25  ;;  %vm6023_vm6 = vmand %vm267_vm5, %vm331_vm1  ;;  %vm249_vm10 = vcmp.ge.s32.totalorder %v185_v52, 2  ;;  %vm220_vm1 = vcmp.ge.s32.totalorder %v156_v57, 2  ;;  %v104_v31 = vadd.s32 200, %v5606_v7  ;;  %v9865_v34 = vmov 0 }
  0xbb   :  { %v9852_v63 = vsel %vm6023_vm6, 4294967295, %v9851_v63  ;;  %4347 = vmatpush.msk.msrb.mxu3 %vm6023_vm6, %v9436_v4  ;;  %vm6030_vm4 = vmand %vm221_vm7, %vm285_vm9  ;;  %vm300_vm6 = vcmp.lt.s32.totalorder %v172_v59, 30  ;;  %vm9863_vm9 = vcmask 334848   ;;  %v116_v35 = vadd.s32 296, %v5606_v7 }
  0xbc   :  { %9853 = vst [vmem:[#allocation47_spill] sm:$0xff] %v9852_v63  ;;  %v9855_v3 = vsel %vm6030_vm4, 4294967295, %v9854_v3  ;;  %4297 = vmatpush.msk.msrb.mxu0 %vm6030_vm4, %v9436_v4  ;;  %vm6037_vm5 = vmand %vm237_vm0, %vm301_vm13  ;;  %v133_v38 = vadd.s32 432, %v5606_v7  ;;  %v87_v41 = vadd.s32 64, %v5606_v7  ;;  %v103_v42 = vadd.s32 192, %v5606_v7 }
  0xbd   :  { %9856 = vst [vmem:[#allocation48_spill] sm:$0xff] %v9855_v3  ;;  %v9858_v6 = vsel %vm6037_vm5, 4294967295, %v9857_v6  ;;  %4313 = vmatpush.msk.msrb.mxu1 %vm6037_vm5, %v9436_v4  ;;  %vm6049_vm7 = vmand %vm249_vm10, %vm313_vm3  ;;  %4261 = vmatmul.msk.f32.gmra.mxu0 %vm9863_vm9, %v5858_v46  ;;  %vm312_vm13 = vcmp.lt.s32.totalorder %v184_v14, 30  ;;  %vm265_vm10 = vcmp.ge.s32.totalorder %v201_v15, 2  ;;  %v9871_v44 = vmov 0 }
  0xbe   :  { %9859 = vst [vmem:[#allocation49_spill] sm:$0xff] %v9858_v6  ;;  %v9861_v13 = vsel %vm6049_vm7, 4294967295, %v9860_v13  ;;  %vm9864_vm0 = vmmov %vm9863_vm9  ;;  %4333 = vmatpush.msk.msrb.mxu2 %vm6049_vm7, %v9436_v4  ;;  %vm329_vm9 = vcmp.lt.s32.totalorder %v201_v15, 30  ;;  %v155_v50 = vsub.s32 %v88_v30, %v5725_v47  ;;  %v171_v51 = vsub.s32 %v104_v31, %v5725_v47 }
  0xbf   :  { %9862 = vst [vmem:[#allocation50_spill] sm:$0xff] %v9861_v13  ;;  %4270 = vmatmul.msk.f32.gmra.mxu1 %vm9864_vm0, %v5858_v46  ;;  %vm6063_vm3 = vmand %vm266_vm12, %vm330_vm15  ;;  %v9868_v46 = vmov 0  ;;  %vm248_vm12 = vcmp.ge.s32.totalorder %v184_v14, 2  ;;  %4281 = vmatmul.msk.f32.gmra.mxu2 %vm9864_vm0, %v6044_v12  ;;  %v183_v52 = vsub.s32 %v116_v35, %v5725_v47  ;;  %v115_v53 = vadd.s32 288, %v5606_v7  ;;  %v6137_v35 = vld [vmem:[%s9350_s4 + $0x30] sm:$0xff] }
  0xc0   :  { %v9866_v34 = vsel %vm6063_vm3, 4294967295, %v9865_v34  ;;  %4348 = vmatpush.msk.msrb.mxu3 %vm6063_vm3, %v9436_v4  ;;  %vm6079_vm15 = vmand %vm220_vm1, %vm284_vm14  ;;  %v9874_v56 = vmov 0  ;;  %v200_v57 = vsub.s32 %v133_v38, %v5725_v47  ;;  %v154_v59 = vsub.s32 %v87_v41, %v5725_v47 }
  0xc1   :  { %9867 = vst [vmem:[#allocation51_spill] sm:$0xff] %v9866_v34  ;;  %v9869_v46 = vsel %vm6079_vm15, 4294967295, %v9868_v46  ;;  %4298 = vmatpush.msk.msrb.mxu0 %vm6079_vm15, %v9436_v4  ;;  %vm6090_vm3 = vmand %vm236_vm8, %vm300_vm6  ;;  %v170_v61 = vsub.s32 %v103_v42, %v5725_v47  ;;  %v132_v14 = vadd.s32 424, %v5606_v7  ;;  %v9878_v30 = vmov 0 }
  0xc2   :  { %9870 = vst [vmem:[#allocation52_spill] sm:$0xff] %v9869_v46  ;;  %v9872_v44 = vsel %vm6090_vm3, 4294967295, %v9871_v44  ;;  %4314 = vmatpush.msk.msrb.mxu1 %vm6090_vm3, %v9436_v4  ;;  %vm6101_vm14 = vmand %vm248_vm12, %vm312_vm13  ;;  %vm219_vm1 = vcmp.ge.s32.totalorder %v155_v50, 2  ;;  %vm283_vm12 = vcmp.lt.s32.totalorder %v155_v50, 30  ;;  %vm235_vm13 = vcmp.ge.s32.totalorder %v171_v51, 2 }
  0xc3   :  { %9873 = vst [vmem:[#allocation53_spill] sm:$0xff] %v9872_v44  ;;  %v9875_v56 = vsel %vm6101_vm14, 4294967295, %v9874_v56  ;;  %vm9877_vm8 = vmmov %vm9864_vm0  ;;  %4334 = vmatpush.msk.msrb.mxu2 %vm6101_vm14, %v9436_v4  ;;  %vm299_vm0 = vcmp.lt.s32.totalorder %v171_v51, 30  ;;  %v9881_v31 = vmov 0  ;;  %vm311_vm14 = vcmp.lt.s32.totalorder %v183_v52, 30 }
  0xc4   :  { %9876 = vst [vmem:[#allocation54_spill] sm:$0xff] %v9875_v56  ;;  %4290 = vmatmul.msk.f32.gmra.mxu3 %vm9877_vm8, %v6044_v12  ;;  %vm6116_vm6 = vmand %vm265_vm10, %vm329_vm9  ;;  %vm247_vm8 = vcmp.ge.s32.totalorder %v183_v52, 2  ;;  %vm264_vm15 = vcmp.ge.s32.totalorder %v200_v57, 2  ;;  %vm328_vm7 = vcmp.lt.s32.totalorder %v200_v57, 30  ;;  %v9884_v15 = vmov 0 }
  0xc5   :  { %v9879_v30 = vsel %vm6116_vm6, 4294967295, %v9878_v30  ;;  %4349 = vmatpush.msk.msrb.mxu3 %vm6116_vm6, %v9436_v4  ;;  %vm6123_vm3 = vmand %vm219_vm1, %vm283_vm12  ;;  %vm218_vm9 = vcmp.ge.s32.totalorder %v154_v59, 2  ;;  %vm282_vm5 = vcmp.lt.s32.totalorder %v154_v59, 30  ;;  %vm234_vm4 = vcmp.ge.s32.totalorder %v170_v61, 2 }
  0xc6   :  { %9880 = vst [vmem:[#allocation55_spill] sm:$0xff] %v9879_v30  ;;  %v9882_v31 = vsel %vm6123_vm3, 4294967295, %v9881_v31  ;;  %4299 = vmatpush.msk.msrb.mxu0 %vm6123_vm3, %v9436_v4  ;;  %vm6130_vm10 = vmand %vm235_vm13, %vm299_vm0  ;;  %vm298_vm6 = vcmp.lt.s32.totalorder %v170_v61, 30  ;;  %v9887_v38 = vmov 0  ;;  %v182_v41 = vsub.s32 %v115_v53, %v5725_v47 }
  0xc7   :  { %9883 = vst [vmem:[#allocation56_spill] sm:$0xff] %v9882_v31  ;;  %v9885_v15 = vsel %vm6130_vm10, 4294967295, %v9884_v15  ;;  %4315 = vmatpush.msk.msrb.mxu1 %vm6130_vm10, %v9436_v4  ;;  %vm6142_vm1 = vmand %vm247_vm8, %vm311_vm14  ;;  %v199_v42 = vsub.s32 %v132_v14, %v5725_v47  ;;  %v86_v50 = vadd.s32 56, %v5606_v7  ;;  %v102_v51 = vadd.s32 184, %v5606_v7 }
  0xc8   :  { %9886 = vst [vmem:[#allocation57_spill] sm:$0xff] %v9885_v15  ;;  %v9888_v38 = vsel %vm6142_vm1, 4294967295, %v9887_v38  ;;  %vm9890_vm12 = vcmask 334848   ;;  %vm6156_vm14 = vmand %vm264_vm15, %vm328_vm7  ;;  %v9892_v52 = vmov 0  ;;  %v114_v53 = vadd.s32 280, %v5606_v7  ;;  %4335 = vmatpush.msk.msrb.mxu2 %vm6142_vm1, %v9895_v5 }
  0xc9   :  { %9889 = vst [vmem:[#allocation58_spill] sm:$0xff] %v9888_v38  ;;  %4262 = vmatmul.msk.f32.gmra.mxu0 %vm9890_vm12, %v5951_v25  ;;  %vm9891_vm13 = vmmov %vm9890_vm12  ;;  %v9893_v52 = vsel %vm6156_vm14, 4294967295, %v9892_v52  ;;  %v131_v14 = vadd.s32 416, %v5606_v7  ;;  %v85_v4 = vadd.s32 48, %v5606_v7  ;;  %4350 = vmatpush.msk.msrb.mxu3 %vm6156_vm14, %v9895_v5  ;;  %vm246_vm15 = vcmp.ge.s32.totalorder %v182_v41, 2 }
  0xca   :  { %4271 = vmatmul.msk.f32.gmra.mxu1 %vm9891_vm13, %v5951_v25  ;;  %9894 = vst [vmem:[#allocation59_spill] sm:$0xff] %v9893_v52  ;;  %vm6172_vm7 = vmand %vm218_vm9, %vm282_vm5  ;;  %v9896_v25 = vmov 0  ;;  %vm310_vm0 = vcmp.lt.s32.totalorder %v182_v41, 30  ;;  %vm263_vm8 = vcmp.ge.s32.totalorder %v199_v42, 2  ;;  %vm327_vm12 = vcmp.lt.s32.totalorder %v199_v42, 30  ;;  %4282 = vmatmul.msk.f32.gmra.mxu2 %vm9891_vm13, %v6137_v35 }
  0xcb   :  { %v9897_v25 = vsel %vm6172_vm7, 4294967295, %v9896_v25  ;;  %4300 = vmatpush.msk.msrb.mxu0 %vm6172_vm7, %v9895_v5  ;;  %vm6183_vm14 = vmand %vm234_vm4, %vm298_vm6  ;;  %v9899_v57 = vmov 0  ;;  %v153_v59 = vsub.s32 %v86_v50, %v5725_v47  ;;  %v169_v62 = vsub.s32 %v102_v51, %v5725_v47 }
  0xcc   :  { %9898 = vst [vmem:[#allocation60_spill] sm:$0xff] %v9897_v25  ;;  %v9900_v57 = vsel %vm6183_vm14, 4294967295, %v9899_v57  ;;  %v181_v41 = vsub.s32 %v114_v53, %v5725_v47  ;;  %4316 = vmatpush.msk.msrb.mxu1 %vm6183_vm14, %v9895_v5  ;;  %vm6194_vm5 = vmand %vm246_vm15, %vm310_vm0  ;;  %v198_v61 = vsub.s32 %v131_v14, %v5725_v47  ;;  %v152_v33 = vsub.s32 %v85_v4, %v5725_v47 }
  0xcd   :  { %9901 = vst [vmem:[#allocation61_spill] sm:$0xff] %v9900_v57  ;;  %v9903_v10 = vsel %vm6194_vm5, 4294967295, %v9902_v10  ;;  %v168_v50 = vsub.s32 %v101_v9, %v5725_v47  ;;  %v130_v51 = vadd.s32 408, %v5606_v7  ;;  %vm9905_vm4 = vmmov %vm9891_vm13  ;;  %4336 = vmatpush.msk.msrb.mxu2 %vm6194_vm5, %v9895_v5  ;;  %v9906_v53 = vmov 0 }
  0xce   :  { %9904 = vst [vmem:[#allocation62_spill] sm:$0xff] %v9903_v10  ;;  %4291 = vmatmul.msk.f32.gmra.mxu3 %vm9905_vm4, %v6137_v35  ;;  %vm6209_vm6 = vmand %vm263_vm8, %vm327_vm12  ;;  %vm217_vm9 = vcmp.ge.s32.totalorder %v153_v59, 2  ;;  %vm281_vm15 = vcmp.lt.s32.totalorder %v153_v59, 30  ;;  %vm233_vm0 = vcmp.ge.s32.totalorder %v169_v62, 2  ;;  %vm297_vm13 = vcmp.lt.s32.totalorder %v169_v62, 30  ;;  %v558_v62 = vld [vmem:[%s9350_s4 + $0x38] sm:$0xff] }
  0xcf   :  { %v9907_v53 = vsel %vm6209_vm6, 4294967295, %v9906_v53  ;;  %4351 = vmatpush.msk.msrb.mxu3 %vm6209_vm6, %v9895_v5  ;;  %vm6216_vm14 = vmand %vm217_vm9, %vm281_vm15  ;;  %v9909_v9 = vmov 0  ;;  %vm245_vm4 = vcmp.ge.s32.totalorder %v181_v41, 2  ;;  %vm309_vm5 = vcmp.lt.s32.totalorder %v181_v41, 30 }
  0xd0   :  { %9908 = vst [vmem:[#allocation63_spill] sm:$0xff] %v9907_v53  ;;  %v9910_v9 = vsel %vm6216_vm14, 4294967295, %v9909_v9  ;;  %vm262_vm7 = vcmp.ge.s32.totalorder %v198_v61, 2  ;;  %vm326_vm1 = vcmp.lt.s32.totalorder %v198_v61, 30  ;;  %4301 = vmatpush.msk.msrb.mxu0 %vm6216_vm14, %v9895_v5  ;;  %vm6223_vm8 = vmand %vm233_vm0, %vm297_vm13  ;;  %v9912_v4 = vmov 0 }
  0xd1   :  { %9911 = vst [vmem:[#allocation64_spill] sm:$0xff] %v9910_v9  ;;  %v9913_v4 = vsel %vm6223_vm8, 4294967295, %v9912_v4  ;;  %vm216_vm12 = vcmp.ge.s32.totalorder %v152_v33, 2  ;;  %vm280_vm10 = vcmp.lt.s32.totalorder %v152_v33, 30  ;;  %vm232_vm3 = vcmp.ge.s32.totalorder %v168_v50, 2  ;;  %4317 = vmatpush.msk.msrb.mxu1 %vm6223_vm8, %v9895_v5  ;;  %vm6233_vm9 = vmand %vm245_vm4, %vm309_vm5 }
  0xd2   :  { %9914 = vst [vmem:[#allocation65_spill] sm:$0xff] %v9913_v4  ;;  %vm296_vm6 = vcmp.lt.s32.totalorder %v168_v50, 30  ;;  %v9915_v42 = vmov 0  ;;  %v180_v14 = vsub.s32 %v113_v58, %v5725_v47  ;;  %v197_v59 = vsub.s32 %v130_v51, %v5725_v47  ;;  %vm6247_vm5 = vmand %vm262_vm7, %vm326_vm1  ;;  %4337 = vmatpush.msk.msrb.mxu2 %vm6233_vm9, %v9895_v5 }
  0xd3   :  { %v9916_v42 = vsel %vm6233_vm9, 4294967295, %v9915_v42  ;;  %v84_v41 = vadd.s32 40, %v5606_v7  ;;  %vm9918_vm15 = vcmask 334848   ;;  %v9921_v26 = vsel %vm6247_vm5, 4294967295, %v9920_v26  ;;  %4352 = vmatpush.msk.msrb.mxu3 %vm6247_vm5, %v9895_v5  ;;  %vm6261_vm13 = vmand %vm216_vm12, %vm280_vm10 }
  0xd4   :  { %9917 = vst [vmem:[#allocation66_spill] sm:$0xff] %v9916_v42  ;;  %4263 = vmatmul.msk.f32.gmra.mxu0 %vm9918_vm15, %v6044_v12  ;;  %vm9919_vm0 = vmmov %vm9918_vm15  ;;  %v112_v58 = vadd.s32 264, %v5606_v7  ;;  %v129_v51 = vadd.s32 400, %v5606_v7  ;;  %vm244_vm1 = vcmp.ge.s32.totalorder %v180_v14, 2  ;;  %vm308_vm7 = vcmp.lt.s32.totalorder %v180_v14, 30 }
  0xd5   :  { %4272 = vmatmul.msk.f32.gmra.mxu1 %vm9919_vm0, %v6044_v12  ;;  %9922 = vst [vmem:[#allocation67_spill] sm:$0xff] %v9921_v26  ;;  %v9923_v12 = vmov 0  ;;  %vm261_vm4 = vcmp.ge.s32.totalorder %v197_v59, 2  ;;  %vm325_vm15 = vcmp.lt.s32.totalorder %v197_v59, 30  ;;  %4283 = vmatmul.msk.f32.gmra.mxu2 %vm9919_vm0, %v558_v62  ;;  %vm6271_vm9 = vmand %vm232_vm3, %vm296_vm6  ;;  %v9926_v61 = vmov 0 }
  0xd6   :  { %v9924_v12 = vsel %vm6261_vm13, 4294967295, %v9923_v12  ;;  %4302 = vmatpush.msk.msrb.mxu0 %vm6261_vm13, %v9895_v5  ;;  %v9927_v61 = vsel %vm6271_vm9, 4294967295, %v9926_v61  ;;  %v151_v33 = vsub.s32 %v84_v41, %v5725_v47  ;;  %v179_v14 = vsub.s32 %v112_v58, %v5725_v47  ;;  %4318 = vmatpush.msk.msrb.mxu1 %vm6271_vm9, %v9895_v5  ;;  %vm6281_vm10 = vmand %vm244_vm1, %vm308_vm7 }
  0xd7   :  { %9925 = vst [vmem:[#allocation68_spill] sm:$0xff] %v9924_v12  ;;  %v9929_v59 = vmov 0  ;;  %v196_v50 = vsub.s32 %v129_v51, %v5725_v47  ;;  %vm9932_vm3 = vmmov %vm9919_vm0  ;;  %4338 = vmatpush.msk.msrb.mxu2 %vm6281_vm10, %v9895_v5  ;;  %vm231_vm13 = vcmp.ge.s32.totalorder %v167_v29, 2  ;;  %vm295_vm9 = vcmp.lt.s32.totalorder %v167_v29, 30 }
  0xd8   :  { %9928 = vst [vmem:[#allocation69_spill] sm:$0xff] %v9927_v61  ;;  %v9930_v59 = vsel %vm6281_vm10, 4294967295, %v9929_v59  ;;  %4292 = vmatmul.msk.f32.gmra.mxu3 %vm9932_vm3, %v558_v62  ;;  %vm6290_vm6 = vmand %vm261_vm4, %vm325_vm15  ;;  %vm215_vm12 = vcmp.ge.s32.totalorder %v151_v33, 2  ;;  %vm279_vm0 = vcmp.lt.s32.totalorder %v151_v33, 30  ;;  %v9936_v41 = vmov 0 }
  0xd9   :  { %9931 = vst [vmem:[#allocation70_spill] sm:$0xff] %v9930_v59  ;;  %v9934_v36 = vsel %vm6290_vm6, 4294967295, %v9933_v36  ;;  %4353 = vmatpush.msk.msrb.mxu3 %vm6290_vm6, %v9895_v5  ;;  %vm6297_vm1 = vmand %vm215_vm12, %vm279_vm0  ;;  %vm243_vm7 = vcmp.ge.s32.totalorder %v179_v14, 2  ;;  %vm307_vm3 = vcmp.lt.s32.totalorder %v179_v14, 30  ;;  %vm260_vm5 = vcmp.ge.s32.totalorder %v196_v50, 2 }
  0xda   :  { %9935 = vst [vmem:[#allocation71_spill] sm:$0xff] %v9934_v36  ;;  %v9937_v41 = vsel %vm6297_vm1, 4294967295, %v9936_v41  ;;  %vm324_vm10 = vcmp.lt.s32.totalorder %v196_v50, 30  ;;  %4303 = vmatpush.msk.msrb.mxu0 %vm6297_vm1, %v9895_v5  ;;  %vm6304_vm4 = vmand %vm231_vm13, %vm295_vm9  ;;  %v9939_v58 = vmov 0  ;;  %v9942_v29 = vmov 0 }
  0xdb   :  { %9938 = vst [vmem:[#allocation72_spill] sm:$0xff] %v9937_v41  ;;  %v9940_v58 = vsel %vm6304_vm4, 4294967295, %v9939_v58  ;;  %4319 = vmatpush.msk.msrb.mxu1 %vm6304_vm4, %v9895_v5  ;;  %vm6311_vm15 = vmand %vm243_vm7, %vm307_vm3  ;;  %vm9945_vm12 = vcmask 334848   ;;  %v9947_v51 = vmov 0  ;;  %v83_v33 = vadd.s32 32, %v5606_v7 }
  0xdc   :  { %9941 = vst [vmem:[#allocation73_spill] sm:$0xff] %v9940_v58  ;;  %v9943_v29 = vsel %vm6311_vm15, 4294967295, %v9942_v29  ;;  %4264 = vmatmul.msk.f32.gmra.mxu0 %vm9945_vm12, %v6137_v35  ;;  %vm9946_vm0 = vmmov %vm9945_vm12  ;;  %4339 = vmatpush.msk.msrb.mxu2 %vm6311_vm15, %v9895_v5  ;;  %v111_v14 = vadd.s32 256, %v5606_v7  ;;  %v128_v50 = vadd.s32 392, %v5606_v7  ;;  %v9952_v58 = vmov 0 }
  0xdd   :  { %9944 = vst [vmem:[#allocation74_spill] sm:$0xff] %v9943_v29  ;;  %4273 = vmatmul.msk.f32.gmra.mxu1 %vm9946_vm0, %v6137_v35  ;;  %vm6319_vm6 = vmand %vm260_vm5, %vm324_vm10  ;;  %v99_v35 = vadd.s32 160, %v5606_v7  ;;  %v150_v21 = vsub.s32 %v83_v33, %v5725_v47  ;;  %v127_v29 = vadd.s32 384, %v5606_v7  ;;  %v9955_v33 = vmov 0 }
  0xde   :  { %v9948_v51 = vsel %vm6319_vm6, 4294967295, %v9947_v51  ;;  %4354 = vmatpush.msk.msrb.mxu3 %vm6319_vm6, %v9895_v5  ;;  %vm9950_vm9 = vmmov %vm9946_vm0  ;;  %v178_v22 = vsub.s32 %v111_v14, %v5725_v47  ;;  %v195_v43 = vsub.s32 %v128_v50, %v5725_v47  ;;  %v81_v14 = vadd.s32 16, %v5606_v7 }
  0xdf   :  { %9949 = vst [vmem:[#allocation75_spill] sm:$0xff] %v9948_v51  ;;  %vm9951_vm13 = vmmov %vm9946_vm0  ;;  %v166_v39 = vsub.s32 %v99_v35, %v5725_v47  ;;  %v82_v51 = vadd.s32 24, %v5606_v7  ;;  %vm214_vm5 = vcmp.ge.s32.totalorder %v150_v21, 2  ;;  %vm278_vm10 = vcmp.lt.s32.totalorder %v150_v21, 30 }
  0xe0   :  { %vm6342_vm12 = vmand %vm214_vm5, %vm278_vm10  ;;  %vm242_vm0 = vcmp.ge.s32.totalorder %v178_v22, 2  ;;  %vm323_vm6 = vcmp.lt.s32.totalorder %v195_v43, 30  ;;  %v194_v35 = vsub.s32 %v127_v29, %v5725_v47  ;;  %v96_v50 = vadd.s32 136, %v5606_v7 }
  0xe1   :  { %vm230_vm7 = vcmp.ge.s32.totalorder %v166_v39, 2  ;;  %vm294_vm3 = vcmp.lt.s32.totalorder %v166_v39, 30  ;;  %v9953_v58 = vsel %vm6342_vm12, 4294967295, %v9952_v58  ;;  %4304 = vmatpush.msk.msrb.mxu0 %vm6342_vm12, %v9895_v5  ;;  %v149_v21 = vsub.s32 %v82_v51, %v5725_v47 }
  0xe2   :  { %9954 = vst [vmem:[#allocation76_spill] sm:$0xff] %v9953_v58  ;;  %vm6349_vm15 = vmand %vm230_vm7, %vm294_vm3  ;;  %v9961_v29 = vmov 0  ;;  %v9964_v51 = vmov 0  ;;  %vm322_vm4 = vcmp.lt.s32.totalorder %v194_v35, 30  ;;  %v146_v0 = vsub.s32 %v5606_v7, %v5725_v47 }
  0xe3   :  { %v9956_v33 = vsel %vm6349_vm15, 4294967295, %v9955_v33  ;;  %4320 = vmatpush.msk.msrb.mxu1 %vm6349_vm15, %v9895_v5  ;;  %vm213_vm7 = vcmp.ge.s32.totalorder %v149_v21, 2  ;;  %vm277_vm3 = vcmp.lt.s32.totalorder %v149_v21, 30 }
  0xe4   :  { %4265 = vmatmul.msk.f32.gmra.mxu0 %vm9950_vm9, %v558_v62  ;;  %vm306_vm9 = vcmp.lt.s32.totalorder %v178_v22, 30  ;;  %9957 = vst [vmem:[#allocation77_spill] sm:$0xff] %v9956_v33  ;;  %v9958_v22 = vmov 0 }
  0xe5   :  { %4274 = vmatmul.msk.f32.gmra.mxu1 %vm9951_vm13, %v558_v62  ;;  %v98_v62 = vadd.s32 152, %v5606_v7  ;;  %vm259_vm13 = vcmp.ge.s32.totalorder %v195_v43, 2  ;;  %vm6360_vm5 = vmand %vm242_vm0, %vm306_vm9  ;;  %v97_v43 = vadd.s32 144, %v5606_v7  ;;  %vm258_vm9 = vcmp.ge.s32.totalorder %v194_v35, 2 }
  0xe6   :  { %v9959_v22 = vsel %vm6360_vm5, 4294967295, %v9958_v22  ;;  %4340 = vmatpush.msk.msrb.mxu2 %vm6360_vm5, %v9895_v5  ;;  %vm6369_vm10 = vmand %vm259_vm13, %vm323_vm6  ;;  %v163_v35 = vsub.s32 %v96_v50, %v5725_v47 }
  0xe7   :  { %v165_v39 = vsub.s32 %v98_v62, %v5725_v47  ;;  %9960 = vst [vmem:[#allocation78_spill] sm:$0xff] %v9959_v22  ;;  %v9962_v29 = vsel %vm6369_vm10, 4294967295, %v9961_v29  ;;  %4355 = vmatpush.msk.msrb.mxu3 %vm6369_vm10, %v9895_v5  ;;  %vm6376_vm0 = vmand %vm213_vm7, %vm277_vm3  ;;  %v148_v62 = vsub.s32 %v81_v14, %v5725_v47  ;;  %v164_v21 = vsub.s32 %v97_v43, %v5725_v47 }
  0xe8   :  { %9963 = vst [vmem:[#allocation79_spill] sm:$0xff] %v9962_v29  ;;  %v9965_v51 = vsel %vm6376_vm0, 4294967295, %v9964_v51  ;;  %4389 = vmatpush.msk.msra.mxu2 %vm5763_vm11, %v9895_v5  ;;  %4305 = vmatpush.msk.msrb.mxu0 %vm6376_vm0, %v9895_v5  ;;  %v147_v29 = vsub.s32 %v5609_v8, %v5725_v47  ;;  %v95_v14 = vadd.s32 128, %v5606_v7  ;;  %vm6401_vm13 = vmand %vm258_vm9, %vm322_vm4  ;;  %v9970_v43 = vmov 0 }
  0xe9   :  { %vm229_vm12 = vcmp.ge.s32.totalorder %v165_v39, 2  ;;  %vm293_vm15 = vcmp.lt.s32.totalorder %v165_v39, 30  ;;  %9966 = vst [vmem:[#allocation80_spill] sm:$0xff] %v9965_v51  ;;  %v9967_v39 = vmov 0  ;;  %v9971_v43 = vsel %vm6401_vm13, 4294967295, %v9970_v43  ;;  %4356 = vmatpush.msk.msrb.mxu3 %vm6401_vm13, %v9895_v5 }
  0xea   :  { %vm6388_vm6 = vmand %vm229_vm12, %vm293_vm15  ;;  %9972 = vst [vmem:[#allocation82_spill] sm:$0xff] %v9971_v43  ;;  %vm212_vm15 = vcmp.ge.s32.totalorder %v148_v62, 2  ;;  %vm276_vm12 = vcmp.lt.s32.totalorder %v148_v62, 30  ;;  %vm228_vm7 = vcmp.ge.s32.totalorder %v164_v21, 2  ;;  %vm292_vm3 = vcmp.lt.s32.totalorder %v164_v21, 30  ;;  %4390 = vmatpush.msk.msra.mxu2 %vm5770_vm2, %v9895_v5 }
  0xeb   :  { %v9968_v39 = vsel %vm6388_vm6, 4294967295, %v9967_v39  ;;  %4321 = vmatpush.msk.msrb.mxu1 %vm6388_vm6, %v9895_v5  ;;  %vm6411_vm11 = vmand %vm212_vm15, %vm276_vm12  ;;  %v9973_v7 = vmov 0  ;;  %vm211_vm4 = vcmp.ge.s32.totalorder %v147_v29, 2  ;;  %vm275_vm9 = vcmp.lt.s32.totalorder %v147_v29, 30 }
  0xec   :  { %9969 = vst [vmem:[#allocation81_spill] sm:$0xff] %v9968_v39  ;;  %v9974_v7 = vsel %vm6411_vm11, 4294967295, %v9973_v7  ;;  %vm227_vm6 = vcmp.ge.s32.totalorder %v163_v35, 2  ;;  %vm291_vm0 = vcmp.lt.s32.totalorder %v163_v35, 30  ;;  %4306 = vmatpush.msk.msrb.mxu0 %vm6411_vm11, %v9895_v5  ;;  %vm6418_vm10 = vmand %vm228_vm7, %vm292_vm3  ;;  %v9976_v8 = vmov 0 }
  0xed   :  { %9975 = vst [vmem:[#allocation83_spill] sm:$0xff] %v9974_v7  ;;  %v9977_v8 = vsel %vm6418_vm10, 4294967295, %v9976_v8  ;;  %vm9979_vm2 = vnez %v9781_v18  ;;  %vm210_vm15 = vcmp.ge.s32.totalorder %v146_v0, 2  ;;  %vm274_vm12 = vcmp.lt.s32.totalorder %v146_v0, 30  ;;  %4322 = vmatpush.msk.msrb.mxu1 %vm6418_vm10, %v9895_v5  ;;  %vm6429_vm13 = vmand %vm211_vm4, %vm275_vm9  ;;  %v10058_v7 = vld [vmem:[#allocation19_spill] sm:$0xff] }
  0xee   :  { %9978 = vst [vmem:[#allocation84_spill] sm:$0xff] %v9977_v8  ;;  %4405 = vmatpush.msk.msra.mxu3 %vm9979_vm2, %v9895_v5  ;;  %v162_v50 = vsub.s32 %v95_v14, %v5725_v47  ;;  %v9980_v29 = vmov 0  ;;  %vm9983_vm7 = vnez %v9786_v20  ;;  %4307 = vmatpush.msk.msrb.mxu0 %vm6429_vm13, %v9895_v5  ;;  %vm6439_vm3 = vmand %vm227_vm6, %vm291_vm0  ;;  %v9984_v0 = vmov 0  ;;  %v10036_v14 = vld [vmem:[#allocation73_spill] sm:$0xff] }
  0xef   :  { %v9981_v29 = vsel %vm6429_vm13, 4294967295, %v9980_v29  ;;  %4391 = vmatpush.msk.msra.mxu2 %vm9983_vm7, %v9895_v5  ;;  %v9985_v0 = vsel %vm6439_vm3, 4294967295, %v9984_v0  ;;  %vm9987_vm2 = vnez %v9791_v28  ;;  %4323 = vmatpush.msk.msrb.mxu1 %vm6439_vm3, %v9895_v5  ;;  %vm6449_vm10 = vmand %vm210_vm15, %vm274_vm12  ;;  %v9988_v47 = vmov 0 }
  0xf0   :  { %9982 = vst [vmem:[#allocation85_spill] sm:$0xff] %v9981_v29  ;;  %4406 = vmatpush.msk.msra.mxu3 %vm9987_vm2, %v9895_v5  ;;  %vm226_vm4 = vcmp.ge.s32.totalorder %v162_v50, 2  ;;  %vm290_vm9 = vcmp.lt.s32.totalorder %v162_v50, 30  ;;  %v9989_v47 = vsel %vm6449_vm10, 4294967295, %v9988_v47  ;;  %vm9991_vm0 = vnez %v9794_v32  ;;  %4308 = vmatpush.msk.msrb.mxu0 %vm6449_vm10, %v9895_v5  ;;  %v10038_v50 = vld [vmem:[#allocation74_spill] sm:$0xff]  ;;  %v10060_v29 = vld [vmem:[#allocation13_spill] sm:$0xff] }
  0xf1   :  { %9986 = vst [vmem:[#allocation86_spill] sm:$0xff] %v9985_v0  ;;  %4392 = vmatpush.msk.msra.mxu2 %vm9991_vm0, %v9895_v5  ;;  %vm6459_vm6 = vmand %vm226_vm4, %vm290_vm9  ;;  %v9992_v62 = vmov 0  ;;  %vm9995_vm7 = vnez %v9797_v40  ;;  %vm9996_vm15 = vnez %v9801_v2  ;;  %vm9997_vm12 = vnez %v9804_v45 }
  0xf2   :  { %9990 = vst [vmem:[#allocation87_spill] sm:$0xff] %v9989_v47  ;;  %v9993_v62 = vsel %vm6459_vm6, 4294967295, %v9992_v62  ;;  %4407 = vmatpush.msk.msra.mxu3 %vm9995_vm7, %v9895_v5  ;;  %4324 = vmatpush.msk.msrb.mxu1 %vm6459_vm6, %v9895_v5  ;;  %vm9998_vm4 = vnez %v9807_v48  ;;  %vm9999_vm9 = vnez %v9812_v54  ;;  %vm10000_vm0 = vnez %v9815_v49  ;;  %v10099_v54 = vld [vmem:[#allocation24_spill] sm:$0xff] }
  0xf3   :  { %9994 = vst [vmem:[#allocation88_spill] sm:$0xff] %v9993_v62  ;;  %4357 = vmatpush.msk.msra.mxu0 %vm9996_vm15, %v9895_v5  ;;  %4393 = vmatpush.msk.msra.mxu2 %vm9998_vm4, %v9895_v5  ;;  %vm10001_vm7 = vnez %v9818_v60  ;;  %vm10002_vm15 = vnez %v9821_v11  ;;  %vm10003_vm2 = vnez %v9825_v19  ;;  %vm10004_vm4 = vnez %v9828_v23 }
  0xf4   :  { %4373 = vmatpush.msk.msra.mxu1 %vm9997_vm12, %v9895_v5  ;;  %4408 = vmatpush.msk.msra.mxu3 %vm9999_vm9, %v9895_v5  ;;  %vm10005_vm9 = vnez %v9831_v24 }
  0xf5   :  { %4358 = vmatpush.msk.msra.mxu0 %vm10000_vm0, %v9895_v5  ;;  %4394 = vmatpush.msk.msra.mxu2 %vm10002_vm15, %v9895_v5  ;;  %vm10006_vm0 = vnez %v9834_v27  ;;  %vm10008_vm15 = vnez %v9842_v17 }
  0xf6   :  { %4374 = vmatpush.msk.msra.mxu1 %vm10001_vm7, %v9895_v5  ;;  %4409 = vmatpush.msk.msra.mxu3 %vm10003_vm2, %v9895_v5  ;;  %vm10007_vm7 = vnez %v9839_v37  ;;  %vm10009_vm2 = vnez %v9845_v1 }
  0xf7   :  { %4359 = vmatpush.msk.msra.mxu0 %vm10004_vm4, %v9895_v5  ;;  %4395 = vmatpush.msk.msra.mxu2 %vm10006_vm0, %v9895_v5  ;;  %vm10010_vm4 = vnez %v9848_v55  ;;  %vm10012_vm0 = vnez %v9855_v3 }
  0xf8   :  { %4375 = vmatpush.msk.msra.mxu1 %vm10005_vm9, %v9895_v5  ;;  %4410 = vmatpush.msk.msra.mxu3 %vm10007_vm7, %v9895_v5  ;;  %vm10011_vm9 = vnez %v9852_v63  ;;  %vm10013_vm7 = vnez %v9858_v6  ;;  %v10101_v6 = vld [vmem:[#allocation21_spill] sm:$0xff] }
  0xf9   :  { %4360 = vmatpush.msk.msra.mxu0 %vm10008_vm15, %v9895_v5  ;;  %4396 = vmatpush.msk.msra.mxu2 %vm10010_vm4, %v9895_v5  ;;  %vm10014_vm15 = vnez %v9861_v13  ;;  %vm10016_vm4 = vnez %v9869_v46 }
  0xfa   :  { %4376 = vmatpush.msk.msra.mxu1 %vm10009_vm2, %v9895_v5  ;;  %4411 = vmatpush.msk.msra.mxu3 %vm10011_vm9, %v9895_v5  ;;  %vm10015_vm2 = vnez %v9866_v34  ;;  %vm10017_vm9 = vnez %v9872_v44 }
  0xfb   :  { %4361 = vmatpush.msk.msra.mxu0 %vm10012_vm0, %v9895_v5  ;;  %4397 = vmatpush.msk.msra.mxu2 %vm10014_vm15, %v9895_v5  ;;  %vm10018_vm0 = vnez %v9875_v56  ;;  %vm10020_vm15 = vnez %v9882_v31 }
  0xfc   :  { %4377 = vmatpush.msk.msra.mxu1 %vm10013_vm7, %v9895_v5  ;;  %4412 = vmatpush.msk.msra.mxu3 %vm10015_vm2, %v9895_v5  ;;  %vm10019_vm7 = vnez %v9879_v30  ;;  %vm10021_vm2 = vnez %v9885_v15 }
  0xfd   :  { %4362 = vmatpush.msk.msra.mxu0 %vm10016_vm4, %v9895_v5  ;;  %4398 = vmatpush.msk.msra.mxu2 %vm10018_vm0, %v9895_v5  ;;  %vm10022_vm4 = vnez %v9888_v38  ;;  %vm10024_vm0 = vnez %v9897_v25 }
  0xfe   :  { %4378 = vmatpush.msk.msra.mxu1 %vm10017_vm9, %v9895_v5  ;;  %4413 = vmatpush.msk.msra.mxu3 %vm10019_vm7, %v9895_v5  ;;  %vm10023_vm9 = vnez %v9893_v52  ;;  %vm10025_vm7 = vnez %v9900_v57 }
  0xff   :  { %4363 = vmatpush.msk.msra.mxu0 %vm10020_vm15, %v9895_v5  ;;  %4399 = vmatpush.msk.msra.mxu2 %vm10022_vm4, %v9895_v5  ;;  %vm10026_vm15 = vnez %v9903_v10  ;;  %vm10028_vm4 = vnez %v9916_v42  ;;  %v10044_v42 = vld [vmem:[#allocation79_spill] sm:$0xff] }
 0x100   :  { %4379 = vmatpush.msk.msra.mxu1 %vm10021_vm2, %v9895_v5  ;;  %4414 = vmatpush.msk.msra.mxu3 %vm10023_vm9, %v9895_v5  ;;  %vm10027_vm2 = vnez %v9907_v53  ;;  %vm10029_vm9 = vnez %v9921_v26 }
 0x101   :  { %4364 = vmatpush.msk.msra.mxu0 %vm10024_vm0, %v9895_v5  ;;  %4400 = vmatpush.msk.msra.mxu2 %vm10026_vm15, %v9895_v5  ;;  %vm10030_vm15 = vnez %v9924_v12  ;;  %vm10045_vm0 = vnez %v10044_v42 }
 0x102   :  { %4380 = vmatpush.msk.msra.mxu1 %vm10025_vm7, %v9895_v5  ;;  %4415 = vmatpush.msk.msra.mxu3 %vm10027_vm2, %v9895_v5  ;;  %vm10032_vm2 = vnez %v9927_v61 }
 0x103   :  { %4365 = vmatpush.msk.msra.mxu0 %vm6216_vm14, %v9895_v5  ;;  %4401 = vmatpush.msk.msra.mxu2 %vm10028_vm4, %v9895_v5  ;;  %vm10033_vm14 = vnez %v9930_v59  ;;  %vm10034_vm4 = vnez %v9934_v36  ;;  %v10040_v59 = vld [vmem:[#allocation75_spill] sm:$0xff] }
 0x104   :  { %4381 = vmatpush.msk.msra.mxu1 %vm6223_vm8, %v9895_v5  ;;  %4416 = vmatpush.msk.msra.mxu3 %vm10029_vm9, %v9895_v5  ;;  %vm10037_vm9 = vnez %v10036_v14 }
 0x105   :  { %4366 = vmatpush.msk.msra.mxu0 %vm10030_vm15, %v9895_v5  ;;  %4402 = vmatpush.msk.msra.mxu2 %vm10033_vm14, %v9895_v5  ;;  %vm10039_vm14 = vnez %v10038_v50  ;;  %vm10041_vm15 = vnez %v10040_v59  ;;  %v10048_v50 = vld [vmem:[#allocation20_spill] sm:$0xff] }
 0x106   :  { %4382 = vmatpush.msk.msra.mxu1 %vm10032_vm2, %v9895_v5  ;;  %4417 = vmatpush.msk.msra.mxu3 %vm10034_vm4, %v9895_v5  ;;  %vm10042_vm4 = vnez %v9953_v58 }
 0x107   :  { %4367 = vmatpush.msk.msra.mxu0 %vm6297_vm1, %v9895_v5  ;;  %4403 = vmatpush.msk.msra.mxu2 %vm10039_vm14, %v9895_v5  ;;  %vm10043_vm1 = vnez %v9956_v33  ;;  %vm10046_vm14 = vnez %v9965_v51 }
 0x108   :  { %4383 = vmatpush.msk.msra.mxu1 %vm10037_vm9, %v9895_v5  ;;  %4418 = vmatpush.msk.msra.mxu3 %vm10041_vm15, %v9895_v5  ;;  %vm10047_vm15 = vnez %v9968_v39  ;;  %vm9736_vm9 = vcmask 130048  }
 0x109   :  { %4368 = vmatpush.msk.msra.mxu0 %vm10042_vm4, %v9895_v5  ;;  %4404 = vmatpush.msk.msra.mxu2 %vm6360_vm5, %v9895_v5  ;;  %vm10049_vm4 = vnez %v10048_v50  ;;  %vm10052_vm5 = vnez %v9971_v43  ;;  %v10056_v43 = vld [vmem:[#allocation14_spill] sm:$0xff] }
 0x10a   :  { %4384 = vmatpush.msk.msra.mxu1 %vm10043_vm1, %v9895_v5  ;;  %4419 = vmatpush.msk.msra.mxu3 %vm10045_vm0, %v9895_v5  ;;  %vm10055_vm0 = vnez %v9977_v8 }
 0x10b   :  { %4369 = vmatpush.msk.msra.mxu0 %vm10046_vm14, %v9895_v5 }
 0x10c   :  { %4385 = vmatpush.msk.msra.mxu1 %vm10047_vm15, %v9895_v5  ;;  %4420 = vmatpush.msk.msra.mxu3 %vm10052_vm5, %v9895_v5  ;;  %vm10057_vm5 = vnez %v10056_v43 }
 0x10d   :  { %4370 = vmatpush.msk.msra.mxu0 %vm6411_vm11, %v9895_v5  ;;  %vm10059_vm11 = vnez %v10058_v7 }
 0x10e   :  { %4386 = vmatpush.msk.msra.mxu1 %vm10055_vm0, %v9895_v5 }
 0x10f   :  { %4371 = vmatpush.msk.msra.mxu0 %vm6429_vm13, %v9895_v5  ;;  %vm10061_vm13 = vnez %v10060_v29  ;;  %v6974_v29 = vld [vmem:[%s9347_s1 + $0x18] sm:$0xff] }
 0x110   :  { %4387 = vmatpush.msk.msra.mxu1 %vm6439_vm3, %v9895_v5  ;;  %10098 = vst [vmem:[#allocation123_spill] sm:$0xff] %v6974_v29 }
 0x111   :  { %4372 = vmatpush.msk.msra.mxu0 %vm6449_vm10, %v9895_v5  ;;  %vm9636_vm10 = vcmask 261120  }
 0x112   :  { %4388 = vmatpush.msk.msra.mxu1 %vm6459_vm6, %v9895_v5 }
 0x11a   :  { %v6580_v21 = vpop.f32.mrf.mxu2 }
 0x11b   :  { %10031 = vst [vmem:[#allocation89_spill] sm:$0xff] %v6580_v21  ;;  %887 = vmatmul.f32.vlgmr.msrb.gmra.mxu2 %v6580_v21  ;;  %v931_v13 = vmul.f32 %v6580_v21, %v6580_v21 }
 0x11c   :  { %v6592_v35 = vpop.f32.mrf.mxu3  ;;  %4429 = vmatpush.msk.msrb.mxu2 %vm10049_vm4, %v9895_v5 }
 0x11d   :  { %10035 = vst [vmem:[#allocation90_spill] sm:$0xff] %v6592_v35  ;;  %916 = vmatmul.f32.vlgmr.msrb.gmra.mxu3 %v6592_v35  ;;  %v932_v62 = vmul.f32 %v6592_v35, %v6592_v35 }
 0x11e   :  { %4435 = vmatpush.msk.msrb.mxu3 %vm10057_vm5, %v9895_v5  ;;  %4430 = vmatpush.msk.msrb.mxu2 %vm10059_vm11, %v9895_v5 }
 0x120   :  { %4436 = vmatpush.msk.msrb.mxu3 %vm10061_vm13, %v9895_v5 }
 0x122   :  { %v6628_v10 = vpop.f32.mrf.mxu0  ;;  %v6630_v22 = vpop.f32.mrf.mxu1 }
 0x123   :  { %10050 = vst [vmem:[#allocation91_spill] sm:$0xff] %v6628_v10  ;;  %v6638_v42 = vpop.f32.mrf.mxu2  ;;  %829 = vmatmul.f32.vlgmr.msrb.gmra.mxu0 %v6628_v10  ;;  %858 = vmatmul.f32.vlgmr.msrb.gmra.mxu1 %v6630_v22 }
 0x124   :  { %10051 = vst [vmem:[#allocation92_spill] sm:$0xff] %v6630_v22  ;;  %890 = vmatmul.f32.gmra.mxu2 %v6638_v42  ;;  %v6643_v59 = vpop.f32.mrf.mxu3  ;;  %v935_v55 = vmul.f32 %v6638_v42, %v6638_v42 }
 0x125   :  { %10053 = vst [vmem:[#allocation93_spill] sm:$0xff] %v6638_v42  ;;  %919 = vmatmul.f32.gmra.mxu3 %v6643_v59  ;;  %v936_v52 = vmul.f32 %v6643_v59, %v6643_v59 }
 0x126   :  { %10054 = vst [vmem:[#allocation94_spill] sm:$0xff] %v6643_v59 }
 0x12a   :  { %v6670_v51 = vpop.f32.mrf.mxu0  ;;  %v6672_v38 = vpop.f32.mrf.mxu1 }
 0x12b   :  { %10062 = vst [vmem:[#allocation95_spill] sm:$0xff] %v6670_v51  ;;  %v6674_v36 = vpop.f32.mrf.mxu2  ;;  %832 = vmatmul.f32.gmra.mxu0 %v6670_v51  ;;  %861 = vmatmul.f32.gmra.mxu1 %v6672_v38  ;;  %v933_v0 = vmul.f32 %v6670_v51, %v6670_v51  ;;  %v934_v9 = vmul.f32 %v6672_v38, %v6672_v38 }
 0x12c   :  { %10063 = vst [vmem:[#allocation96_spill] sm:$0xff] %v6672_v38  ;;  %893 = vmatmul.f32.gmra.mxu2 %v6674_v36  ;;  %v6679_v47 = vpop.f32.mrf.mxu3  ;;  %v939_v27 = vmul.f32 %v6674_v36, %v6674_v36 }
 0x12d   :  { %10064 = vst [vmem:[#allocation97_spill] sm:$0xff] %v6674_v36  ;;  %922 = vmatmul.f32.gmra.mxu3 %v6679_v47 }
 0x12e   :  { %10065 = vst [vmem:[#allocation98_spill] sm:$0xff] %v6679_v47 }
 0x132   :  { %v6682_v58 = vpop.f32.mrf.mxu0  ;;  %v6684_v56 = vpop.f32.mrf.mxu1 }
 0x133   :  { %10066 = vst [vmem:[#allocation99_spill] sm:$0xff] %v6682_v58  ;;  %v6686_v26 = vpop.f32.mrf.mxu2  ;;  %835 = vmatmul.f32.gmra.mxu0 %v6682_v58  ;;  %864 = vmatmul.f32.gmra.mxu1 %v6684_v56 }
 0x134   :  { %10067 = vst [vmem:[#allocation100_spill] sm:$0xff] %v6684_v56  ;;  %896 = vmatmul.f32.gmra.mxu2 %v6686_v26  ;;  %v6691_v41 = vpop.f32.mrf.mxu3 }
 0x135   :  { %10068 = vst [vmem:[#allocation101_spill] sm:$0xff] %v6686_v26  ;;  %925 = vmatmul.f32.gmra.mxu3 %v6691_v41 }
 0x136   :  { %10069 = vst [vmem:[#allocation102_spill] sm:$0xff] %v6691_v41 }
 0x13a   :  { %v6696_v53 = vpop.f32.mrf.mxu0 }
 0x13b   :  { %10070 = vst [vmem:[#allocation103_spill] sm:$0xff] %v6696_v53  ;;  %838 = vmatmul.f32.gmra.mxu0 %v6696_v53 }
 0x13c   :  { %v6698_v12 = vpop.f32.mrf.mxu1  ;;  %1019 = vmatmul.f32.vlgmr.msra.gmra.mxu2 %v931_v13  ;;  %v929_v13 = vmul.f32 %v6628_v10, %v6628_v10 }
 0x13d   :  { %10071 = vst [vmem:[#allocation104_spill] sm:$0xff] %v6698_v12  ;;  %867 = vmatmul.f32.gmra.mxu1 %v6698_v12  ;;  %1048 = vmatmul.f32.vlgmr.msra.gmra.mxu3 %v932_v62  ;;  %v930_v62 = vmul.f32 %v6630_v22, %v6630_v22 }
 0x13e   :  { %4453 = vmatpush.msk.msra.mxu2 %vm10049_vm4, %v9895_v5  ;;  %4459 = vmatpush.msk.msra.mxu3 %vm10057_vm5, %v9895_v5 }
 0x140   :  { %4454 = vmatpush.msk.msra.mxu2 %vm10059_vm11, %v9895_v5  ;;  %4460 = vmatpush.msk.msra.mxu3 %vm10061_vm13, %v9895_v5 }
 0x143   :  { %961 = vmatmul.f32.vlgmr.msra.gmra.mxu0 %v929_v13  ;;  %v940_v13 = vmul.f32 %v6679_v47, %v6679_v47 }
 0x144   :  { %1022 = vmatmul.f32.gmra.mxu2 %v935_v55  ;;  %v937_v55 = vmul.f32 %v6682_v58, %v6682_v58 }
 0x145   :  { %990 = vmatmul.f32.vlgmr.msra.gmra.mxu1 %v930_v62  ;;  %1051 = vmatmul.f32.gmra.mxu3 %v936_v52  ;;  %v938_v52 = vmul.f32 %v6684_v56, %v6684_v56  ;;  %v943_v62 = vmul.f32 %v6686_v26, %v6686_v26 }
 0x146   :  { %v6746_v8 = vpop.f32.mrf.mxu0 }
 0x147   :  { %10073 = vst [vmem:[#allocation106_spill] sm:$0xff] %v6746_v8  ;;  %v6748_v25 = vpop.f32.mrf.mxu1 }
 0x148   :  { %10074 = vst [vmem:[#allocation107_spill] sm:$0xff] %v6748_v25 }
 0x14b   :  { %964 = vmatmul.f32.gmra.mxu0 %v933_v0  ;;  %v944_v0 = vmul.f32 %v6691_v41, %v6691_v41 }
 0x14c   :  { %1025 = vmatmul.f32.gmra.mxu2 %v939_v27  ;;  %v941_v27 = vmul.f32 %v6696_v53, %v6696_v53 }
 0x14d   :  { %993 = vmatmul.f32.gmra.mxu1 %v934_v9  ;;  %1054 = vmatmul.f32.gmra.mxu3 %v940_v13  ;;  %v942_v9 = vmul.f32 %v6698_v12, %v6698_v12  ;;  %v6744_v13 = vpop.f32.mrf.mxu2 }
 0x14e   :  { %10072 = vst [vmem:[#allocation105_spill] sm:$0xff] %v6744_v13 }
 0x153   :  { %967 = vmatmul.f32.gmra.mxu0 %v937_v55  ;;  %v6750_v55 = vpop.f32.mrf.mxu3 }
 0x154   :  { %1028 = vmatmul.f32.gmra.mxu2 %v943_v62  ;;  %10075 = vst [vmem:[#allocation108_spill] sm:$0xff] %v6750_v55  ;;  %v6754_v62 = vpop.f32.mrf.mxu0 }
 0x155   :  { %996 = vmatmul.f32.gmra.mxu1 %v938_v52  ;;  %1057 = vmatmul.f32.gmra.mxu3 %v944_v0  ;;  %v6752_v52 = vpop.f32.mrf.mxu2  ;;  %10077 = vst [vmem:[#allocation110_spill] sm:$0xff] %v6754_v62  ;;  %v6756_v0 = vpop.f32.mrf.mxu1 }
 0x156   :  { %10076 = vst [vmem:[#allocation109_spill] sm:$0xff] %v6752_v52 }
 0x157   :  { %10078 = vst [vmem:[#allocation111_spill] sm:$0xff] %v6756_v0 }
 0x15b   :  { %970 = vmatmul.f32.gmra.mxu0 %v941_v27  ;;  %v6758_v30 = vpop.f32.mrf.mxu3 }
 0x15c   :  { %10079 = vst [vmem:[#allocation112_spill] sm:$0xff] %v6758_v30  ;;  %v6762_v27 = vpop.f32.mrf.mxu0 }
 0x15d   :  { %999 = vmatmul.f32.gmra.mxu1 %v942_v9  ;;  %v6760_v11 = vpop.f32.mrf.mxu2  ;;  %10081 = vst [vmem:[#allocation114_spill] sm:$0xff] %v6762_v27  ;;  %v6764_v9 = vpop.f32.mrf.mxu1 }
 0x15e   :  { %10080 = vst [vmem:[#allocation113_spill] sm:$0xff] %v6760_v11 }
 0x15f   :  { %10082 = vst [vmem:[#allocation115_spill] sm:$0xff] %v6764_v9 }
 0x163   :  { %v6766_v13 = vpop.f32.mrf.mxu3 }
 0x164   :  { %10083 = vst [vmem:[#allocation116_spill] sm:$0xff] %v6766_v13  ;;  %v6770_v25 = vpop.f32.mrf.mxu0 }
 0x165   :  { %v6768_v8 = vpop.f32.mrf.mxu2  ;;  %10085 = vst [vmem:[#allocation118_spill] sm:$0xff] %v6770_v25  ;;  %v6772_v55 = vpop.f32.mrf.mxu1 }
 0x166   :  { %10084 = vst [vmem:[#allocation117_spill] sm:$0xff] %v6768_v8 }
 0x167   :  { %10086 = vst [vmem:[#allocation119_spill] sm:$0xff] %v6772_v55 }
 0x16b   :  { %v6774_v52 = vpop.f32.mrf.mxu3 }
 0x16c   :  { %10087 = vst [vmem:[#allocation120_spill] sm:$0xff] %v6774_v52 }
 0x19e   :  { %v888_v62 = vpop.f32.mrf.mxu2 }
 0x1a0   :  { %v830_v0 = vpop.f32.mrf.mxu0  ;;  %v859_v39 = vpop.f32.mrf.mxu1 }
 0x1a1   :  { %v917_v30 = vpop.f32.mrf.mxu3  ;;  %v860_v52 = vadd.f32 %v859_v39, %v830_v0 }
 0x1a3   :  { %v889_v17 = vadd.f32 %v888_v62, %v860_v52  ;;  %v542_v52 = vld [vmem:[#allocation5 + $0x18] sm:$0xff] }
 0x1a7   :  { %v891_v31 = vpop.f32.mrf.mxu2 }
 0x1a8   :  { %v833_v11 = vpop.f32.mrf.mxu0  ;;  %v862_v33 = vpop.f32.mrf.mxu1 }
 0x1a9   :  { %v920_v27 = vpop.f32.mrf.mxu3  ;;  %v863_v63 = vadd.f32 %v862_v33, %v833_v11 }
 0x1ab   :  { %v892_v37 = vadd.f32 %v891_v31, %v863_v63  ;;  %v10088_v63 = vld [vmem:[#allocation16_spill] sm:$0xff] }
 0x1ac   :  { %vm10089_vm14 = vnez %v10088_v63 }
 0x1ad   :  { %v921_v23 = vadd.f32 %v920_v27, %v892_v37 }
 0x1af   :  { %v894_v34 = vpop.f32.mrf.mxu2 }
 0x1b0   :  { %v836_v9 = vpop.f32.mrf.mxu0  ;;  %v865_v48 = vpop.f32.mrf.mxu1 }
 0x1b1   :  { %v923_v13 = vpop.f32.mrf.mxu3  ;;  %v866_v14 = vadd.f32 %v865_v48, %v836_v9  ;;  %v918_v48 = vadd.f32 %v917_v30, %v889_v17  ;;  %v539_v9 = vld [vmem:[#allocation5] sm:$0xff] }
 0x1b3   :  { %v895_v3 = vadd.f32 %v894_v34, %v866_v14 }
 0x1b5   :  { %v924_v57 = vadd.f32 %v923_v13, %v895_v3 }
 0x1b7   :  { %v897_v8 = vpop.f32.mrf.mxu2 }
 0x1b8   :  { %v839_v46 = vpop.f32.mrf.mxu0 }
 0x1b9   :  { %v926_v61 = vpop.f32.mrf.mxu3 }
 0x1ba   :  { %v868_v25 = vpop.f32.mrf.mxu1 }
 0x1bb   :  { %v869_v55 = vadd.f32 %v868_v25, %v839_v46  ;;  %v10090_v46 = vld [vmem:[#allocation15_spill] sm:$0xff]  ;;  %v541_v25 = vld [vmem:[#allocation5 + $0x10] sm:$0xff] }
 0x1bc   :  { %vm10091_vm6 = vnez %v10090_v46 }
 0x1bd   :  { %v898_v32 = vadd.f32 %v897_v8, %v869_v55 }
 0x1bf   :  { %v927_v4 = vadd.f32 %v926_v61, %v898_v32  ;;  %v1020_v20 = vpop.f32.mrf.mxu2 }
 0x1c0   :  { %v962_v19 = vpop.f32.mrf.mxu0 }
 0x1c1   :  { %1086 = vmatpush.msrb.mxu0 %v927_v4  ;;  %v1049_v16 = vpop.f32.mrf.mxu3 }
 0x1c2   :  { %v991_v15 = vpop.f32.mrf.mxu1 }
 0x1c3   :  { %1087 = vmatpush.msrb.mxu0 %v924_v57  ;;  %v992_v14 = vadd.f32 %v991_v15, %v962_v19  ;;  %v5508_v19 = vmov 0   ;;  %v545_v15 = vld [vmem:[%s9354_s8 + $0x10] sm:$0xff] }
 0x1c4   :  { %4880 = vset.pattern.permute.xlu1 %v5508_v19  ;;  %4879 = vset.pattern.permute.xlu0 %v5508_v19 }
 0x1c5   :  { %1088 = vmatpush.msrb.mxu0 %v921_v23  ;;  %v540_v23 = vld [vmem:[#allocation5 + $0x8] sm:$0xff]  ;;  %4881 = vset.pattern.permute.xlu2 %v5508_v19 }
 0x1c6   :  { %1196 = vperm.xlu2 %4881, %v545_v15  }
 0x1c7   :  { %1089 = vmatpush.msrb.mxu0 %v918_v48  ;;  %v1023_v11 = vpop.f32.mrf.mxu2  ;;  %v544_v48 = vld [vmem:[%s9354_s8 + $0x8] sm:$0xff] }
 0x1c8   :  { %4421 = vmatmul.msk.f32.vlgmr.msrb.gmra.mxu0 %vm9636_vm10, %v539_v9  ;;  %v965_v32 = vpop.f32.mrf.mxu0  ;;  %1191 = vperm.xlu1 %4880, %v544_v48  }
 0x1c9   :  { %4441 = vmatpush.msk.msra.mxu0 %vm10089_vm14, %v9895_v5  ;;  %v1052_v34 = vpop.f32.mrf.mxu3 }
 0x1ca   :  { %v994_v3 = vpop.f32.mrf.mxu1 }
 0x1cb   :  { %4442 = vmatpush.msk.msra.mxu0 %vm10091_vm6, %v9895_v5  ;;  %v995_v33 = vadd.f32 %v994_v3, %v965_v32  ;;  %v1021_v32 = vadd.f32 %v1020_v20, %v992_v14  ;;  %v546_v20 = vld [vmem:[%s9354_s8 + $0x18] sm:$0xff] }
 0x1cd   :  { %4465 = vmatpush.msk.msrb.mxu0 %vm10089_vm14, %v9895_v5  ;;  %v1024_v0 = vadd.f32 %v1023_v11, %v995_v33 }
 0x1cf   :  { %4466 = vmatpush.msk.msrb.mxu0 %vm10091_vm6, %v9895_v5  ;;  %v1026_v37 = vpop.f32.mrf.mxu2  ;;  %v1053_v11 = vadd.f32 %v1052_v34, %v1024_v0  ;;  %v10094_v34 = vld [vmem:[#allocation17_spill] sm:$0xff] }
 0x1d0   :  { %4422 = vmatmul.msk.f32.gmra.mxu0 %vm9636_vm10, %v540_v23  ;;  %v968_v17 = vpop.f32.mrf.mxu0  ;;  %1201 = vperm.xlu1 %4880, %v546_v20   ;;  %vm10095_vm0 = vnez %v10094_v34  ;;  %v6922_v34 = vld [vmem:[%s9347_s1 + $0x58] sm:$0xff] }
 0x1d1   :  { %v1055_v31 = vpop.f32.mrf.mxu3 }
 0x1d2   :  { %v997_v30 = vpop.f32.mrf.mxu1 }
 0x1d3   :  { %v998_v57 = vadd.f32 %v997_v30, %v968_v17  ;;  %v543_v17 = vld [vmem:[%s9354_s8] sm:$0xff]  ;;  %v10092_v30 = vld [vmem:[#allocation18_spill] sm:$0xff] }
 0x1d4   :  { %1186 = vperm.xlu0 %4879, %v543_v17   ;;  %vm10093_vm3 = vnez %v10092_v30 }
 0x1d5   :  { %v1027_v13 = vadd.f32 %v1026_v37, %v998_v57  ;;  %v1050_v37 = vadd.f32 %v1049_v16, %v1021_v32 }
 0x1d7   :  { %v1029_v8 = vpop.f32.mrf.mxu2  ;;  %v1056_v3 = vadd.f32 %v1055_v31, %v1027_v13  ;;  %v5509_v31 = vmov 1  }
 0x1d8   :  { %4423 = vmatmul.msk.f32.gmra.mxu0 %vm9636_vm10, %v541_v25  ;;  %v971_v4 = vpop.f32.mrf.mxu0  ;;  %4882 = vset.pattern.permute.xlu2 %v5509_v31 }
 0x1d9   :  { %v1058_v62 = vpop.f32.mrf.mxu3  ;;  %1213 = vperm.xlu2 %4882, %v543_v17   ;;  %4884 = vset.pattern.permute.xlu1 %v5509_v31 }
 0x1da   :  { %v1000_v61 = vpop.f32.mrf.mxu1  ;;  %1221 = vperm.xlu1 %4884, %v545_v15  }
 0x1db   :  { %v1001_v39 = vadd.f32 %v1000_v61, %v971_v4 }
 0x1dc   :  { %4883 = vset.pattern.permute.xlu0 %v5509_v31 }
 0x1dd   :  { %v1030_v55 = vadd.f32 %v1029_v8, %v1001_v39  ;;  %1217 = vperm.xlu0 %4883, %v544_v48  }
 0x1df   :  { %v1059_v27 = vadd.f32 %v1058_v62, %v1030_v55 }
 0x1e0   :  { %4424 = vmatmul.msk.f32.gmra.mxu0 %vm9636_vm10, %v542_v52 }
 0x1e1   :  { %1115 = vmatpush.msrb.mxu1 %v1059_v27  ;;  %1225 = vperm.xlu2 %4882, %v546_v20  }
 0x1e3   :  { %1116 = vmatpush.msrb.mxu1 %v1056_v3 }
 0x1e5   :  { %1117 = vmatpush.msrb.mxu1 %v1053_v11 }
 0x1e7   :  { %1118 = vmatpush.msrb.mxu1 %v1050_v37 }
 0x1e8   :  { %4425 = vmatmul.msk.f32.vlgmr.msrb.gmra.mxu1 %vm9636_vm10, %v539_v9 }
 0x1e9   :  { %4447 = vmatpush.msk.msra.mxu1 %vm10093_vm3, %v9895_v5 }
 0x1eb   :  { %4448 = vmatpush.msk.msra.mxu1 %vm10095_vm0, %v9895_v5 }
 0x1ed   :  { %4471 = vmatpush.msk.msrb.mxu1 %vm10093_vm3, %v9895_v5 }
 0x1ef   :  { %4472 = vmatpush.msk.msrb.mxu1 %vm10095_vm0, %v9895_v5 }
 0x1f0   :  { %4426 = vmatmul.msk.f32.gmra.mxu1 %vm9636_vm10, %v540_v23 }
 0x1f8   :  { %4427 = vmatmul.msk.f32.gmra.mxu1 %vm9636_vm10, %v541_v25 }
 0x200   :  { %4428 = vmatmul.msk.f32.gmra.mxu1 %vm9636_vm10, %v542_v52 }
 0x245   :  { %v6820_v16 = vpop.f32.mrf.mxu0 }
 0x246   :  { %v1132_v9 = vmul.f32 %v6820_v16, %v6820_v16  ;;  %v1187_v11 = vpop.permute.xlu0 %1186 }
 0x24d   :  { %v6824_v57 = vpop.f32.mrf.mxu0 }
 0x24e   :  { %v1133_v23 = vmul.f32 %v6824_v57, %v6824_v57 }
 0x255   :  { %v6828_v8 = vpop.f32.mrf.mxu0 }
 0x256   :  { %v1134_v52 = vmul.f32 %v6828_v8, %v6828_v8 }
 0x25d   :  { %v6832_v32 = vpop.f32.mrf.mxu0 }
 0x25e   :  { %v1135_v20 = vmul.f32 %v6832_v32, %v6832_v32 }
 0x265   :  { %v1120_v4 = vpop.f32.mrf.mxu1 }
 0x266   :  { %v1136_v61 = vsub.f32 %v1120_v4, %v1132_v9 }
 0x268   :  { %v1140_v33 = vadd.f32 1e-05, %v1136_v61 }
 0x26a   :  { %5051 = vrsqrt.f32 %v1140_v33  ;;  %vm1150_vm15 = vweird.f32 %v1140_v33 }
 0x26d   :  { %v1123_v39 = vpop.f32.mrf.mxu1 }
 0x26e   :  { %v1137_v25 = vsub.f32 %v1123_v39, %v1133_v23 }
 0x270   :  { %v5052_v14 = vpop.eup %5051  ;;  %v1141_v13 = vadd.f32 1e-05, %v1137_v25 }
 0x271   :  { %v1145_v55 = vmul.f32 %v5052_v14, %v1140_v33  ;;  %vm1151_vm10 = vweird.f32 %v5052_v14 }
 0x272   :  { %5053 = vrsqrt.f32 %v1141_v13  ;;  %vm1152_vm1 = vmor %vm1150_vm15, %vm1151_vm10 }
 0x273   :  { %v1146_v62 = vmul.f32 %v5052_v14, %v1145_v55 }
 0x275   :  { %v1126_v0 = vpop.f32.mrf.mxu1  ;;  %v1147_v27 = vmul.f32 0.5, %v1146_v62 }
 0x276   :  { %v1138_v48 = vsub.f32 %v1126_v0, %v1134_v52 }
 0x277   :  { %v1148_v17 = vsub.f32 1.5, %v1147_v27 }
 0x278   :  { %v5054_v3 = vpop.eup %5053  ;;  %v1142_v19 = vadd.f32 1e-05, %v1138_v48 }
 0x279   :  { %v1155_v15 = vmul.f32 %v5054_v3, %v1141_v13  ;;  %v1149_v37 = vmul.f32 %v5052_v14, %v1148_v17  ;;  %vm1161_vm2 = vweird.f32 %v5054_v3 }
 0x27a   :  { %5055 = vrsqrt.f32 %v1142_v19  ;;  %vm1170_vm15 = vweird.f32 %v1142_v19 }
 0x27b   :  { %v1156_v31 = vmul.f32 %v5054_v3, %v1155_v15  ;;  %v1153_v9 = vsel %vm1152_vm1, %v5052_v14, %v1149_v37  ;;  %vm1160_vm1 = vweird.f32 %v1141_v13  ;;  %v1192_v13 = vpop.permute.xlu1 %1191  ;;  %v1197_v37 = vpop.permute.xlu2 %1196 }
 0x27c   :  { %v1204_v4 = vmul.f32 %v1187_v11, %v1153_v9  ;;  %vm1162_vm10 = vmor %vm1160_vm1, %vm1161_vm2 }
 0x27d   :  { %v1157_v61 = vmul.f32 0.5, %v1156_v31  ;;  %v1129_v23 = vpop.f32.mrf.mxu1 }
 0x27e   :  { %v1139_v39 = vsub.f32 %v1129_v23, %v1135_v20  ;;  %4431 = vmatmul.msk.f32.vlgmr.msrb.gmra.mxu2 %vm9736_vm9, %v1204_v4  ;;  %4437 = vmatmul.msk.f32.vlgmr.msrb.gmra.mxu3 %vm9736_vm9, %v1204_v4 }
 0x27f   :  { %v1158_v25 = vsub.f32 1.5, %v1157_v61  ;;  %4443 = vmatmul.msk.f32.vlgmr.msra.gmra.mxu0 %vm9736_vm9, %v1204_v4  ;;  %4449 = vmatmul.msk.f32.vlgmr.msra.gmra.mxu1 %vm9736_vm9, %v1204_v4 }
 0x280   :  { %v5056_v33 = vpop.eup %5055  ;;  %v1143_v55 = vadd.f32 1e-05, %v1139_v39  ;;  %4493 = vmatpush.msk.msrb.mxu2 %vm10049_vm4, %v9895_v5  ;;  %4499 = vmatpush.msk.msrb.mxu3 %vm10057_vm5, %v9895_v5  ;;  %vm10441_vm5 = vcmask 269312  }
 0x281   :  { %v1165_v14 = vmul.f32 %v5056_v33, %v1142_v19  ;;  %v1159_v52 = vmul.f32 %v5054_v3, %v1158_v25  ;;  %4505 = vmatpush.msk.msra.mxu0 %vm10089_vm14, %v9895_v5  ;;  %4511 = vmatpush.msk.msra.mxu1 %vm10093_vm3, %v9895_v5  ;;  %vm1171_vm2 = vweird.f32 %v5056_v33 }
 0x282   :  { %5057 = vrsqrt.f32 %v1143_v55  ;;  %4494 = vmatpush.msk.msrb.mxu2 %vm10059_vm11, %v9895_v5  ;;  %4500 = vmatpush.msk.msrb.mxu3 %vm10061_vm13, %v9895_v5  ;;  %vm1172_vm1 = vmor %vm1170_vm15, %vm1171_vm2 }
 0x283   :  { %v1166_v62 = vmul.f32 %v5056_v33, %v1165_v14  ;;  %v1163_v0 = vsel %vm1162_vm10, %v5054_v3, %v1159_v52  ;;  %4506 = vmatpush.msk.msra.mxu0 %vm10091_vm6, %v9895_v5  ;;  %4512 = vmatpush.msk.msra.mxu1 %vm10095_vm0, %v9895_v5  ;;  %vm1180_vm0 = vweird.f32 %v1143_v55  ;;  %v1202_v19 = vpop.permute.xlu1 %1201  ;;  %v1214_v52 = vpop.permute.xlu2 %1213 }
 0x284   :  { %v1205_v27 = vmul.f32 %v1192_v13, %v1163_v0  ;;  %v6881_v13 = vld [vmem:[%s9347_s1 + $0x68] sm:$0xff] }
 0x285   :  { %v1167_v48 = vmul.f32 0.5, %v1166_v62  ;;  %v6876_v62 = vld [vmem:[%s9347_s1 + $0x60] sm:$0xff] }
 0x286   :  { %4432 = vmatmul.msk.f32.gmra.mxu2 %vm9736_vm9, %v1205_v27  ;;  %4438 = vmatmul.msk.f32.gmra.mxu3 %vm9736_vm9, %v1205_v27 }
 0x287   :  { %v1168_v17 = vsub.f32 1.5, %v1167_v48  ;;  %4444 = vmatmul.msk.f32.gmra.mxu0 %vm9736_vm9, %v1205_v27  ;;  %4450 = vmatmul.msk.f32.gmra.mxu1 %vm9736_vm9, %v1205_v27  ;;  %v6896_v48 = vld [vmem:[%s9347_s1 + $0x78] sm:$0xff] }
 0x288   :  { %v5058_v3 = vpop.eup %5057 }
 0x289   :  { %v1169_v15 = vmul.f32 %v5056_v33, %v1168_v17  ;;  %v1175_v11 = vmul.f32 %v5058_v3, %v1143_v55  ;;  %vm1181_vm10 = vweird.f32 %v5058_v3  ;;  %v6886_v55 = vld [vmem:[%s9347_s1 + $0x70] sm:$0xff]  ;;  %v1916_v17 = vmin.f32 %v6896_v48, 20.0 }
 0x28a   :  { %vm1182_vm3 = vmor %vm1180_vm0, %vm1181_vm10  ;;  %v1915_v0 = vmin.f32 %v6886_v55, 20.0  ;;  %vm9737_vm10 = vcmask 269312  }
 0x28b   :  { %v1173_v20 = vsel %vm1172_vm1, %v5056_v33, %v1169_v15  ;;  %v1176_v31 = vmul.f32 %v5058_v3, %v1175_v11  ;;  %v1208_v33 = vmul.f32 %v1204_v4, %v6820_v16  ;;  %v1913_v16 = vmin.f32 %v6876_v62, 20.0  ;;  %v6909_v15 = vld [vmem:[%s9347_s1 + $0x48] sm:$0xff] }
 0x28c   :  { %v1206_v9 = vmul.f32 %v1197_v37, %v1173_v20  ;;  %v1914_v4 = vmin.f32 %v6881_v13, 20.0 }
 0x28d   :  { %v1177_v61 = vmul.f32 0.5, %v1176_v31  ;;  %v1228_v11 = vsub.f32 %v1214_v52, %v1208_v33  ;;  %v1941_v37 = vmul.f32 1.442695, %v1913_v16  ;;  %v1945_v31 = vmul.f32 1.442695, %v1915_v0  ;;  %v6930_v52 = vld [vmem:[%s9347_s1 + $0x20] sm:$0xff] }
 0x28e   :  { %4433 = vmatmul.msk.f32.gmra.mxu2 %vm9736_vm9, %v1206_v9  ;;  %4439 = vmatmul.msk.f32.gmra.mxu3 %vm9736_vm9, %v1206_v9  ;;  %v1943_v20 = vmul.f32 1.442695, %v1914_v4  ;;  %v1210_v33 = vmul.f32 %v1206_v9, %v6828_v8  ;;  %v6935_v16 = vld [vmem:[%s9347_s1 + $0x28] sm:$0xff]  ;;  %v6940_v4 = vld [vmem:[%s9347_s1 + $0x30] sm:$0xff]  ;;  %v1905_v0 = vmin.f32 %v6930_v52, 20.0 }
 0x28f   :  { %v1178_v23 = vsub.f32 1.5, %v1177_v61  ;;  %4445 = vmatmul.msk.f32.gmra.mxu0 %vm9736_vm9, %v1206_v9  ;;  %4451 = vmatmul.msk.f32.gmra.mxu1 %vm9736_vm9, %v1206_v9  ;;  %v1209_v61 = vmul.f32 %v1205_v27, %v6824_v57  ;;  %5059 = vpow2.f32 %v1941_v37  ;;  %v1912_v27 = vmin.f32 %v6922_v34, 20.0  ;;  %v1218_v37 = vpop.permute.xlu0 %1217 }
 0x290   :  { %5061 = vpow2.f32 %v1943_v20  ;;  %v1906_v63 = vmin.f32 %v6935_v16, 20.0  ;;  %v6953_v20 = vld [vmem:[%s9347_s1] sm:$0xff]  ;;  %v1907_v7 = vmin.f32 %v6940_v4, 20.0 }
 0x291   :  { %v1179_v39 = vmul.f32 %v5058_v3, %v1178_v23  ;;  %v1947_v23 = vmul.f32 1.442695, %v1916_v17  ;;  %v6946_v17 = vld [vmem:[%s9347_s1 + $0x38] sm:$0xff]  ;;  %5063 = vpow2.f32 %v1945_v31  ;;  %v1226_v31 = vpop.permute.xlu2 %1225  ;;  %v1229_v43 = vsub.f32 %v1218_v37, %v1209_v61 }
 0x292   :  { %v1908_v50 = vmin.f32 %v6946_v17, 20.0  ;;  %v1927_v44 = vmul.f32 1.442695, %v1906_v63  ;;  %v1929_v2 = vmul.f32 1.442695, %v1907_v7  ;;  %v1904_v61 = vmin.f32 %v6974_v29, 20.0 }
 0x293   :  { %v1183_v25 = vsel %vm1182_vm3, %v5058_v3, %v1179_v39  ;;  %v6904_v3 = vld [vmem:[%s9347_s1 + $0x40] sm:$0xff]  ;;  %5065 = vpow2.f32 %v1947_v23  ;;  %v1925_v23 = vmul.f32 1.442695, %v1905_v0  ;;  %vm10100_vm3 = vcmask 1040384   ;;  %v10105_v63 = vld [vmem:[#allocation23_spill] sm:$0xff] }
 0x294   :  { %v1207_v14 = vmul.f32 %v1202_v19, %v1183_v25  ;;  %v1909_v39 = vmin.f32 %v6904_v3, 20.0  ;;  %v1910_v19 = vmin.f32 %v6909_v15, 20.0  ;;  %v6917_v25 = vld [vmem:[%s9347_s1 + $0x50] sm:$0xff]  ;;  %vm10102_vm0 = vmmov %vm10100_vm3 }
 0x295   :  { %v1911_v57 = vmin.f32 %v6917_v25, 20.0  ;;  %vm10104_vm2 = vmmov %vm10102_vm0 }
 0x296   :  { %4434 = vmatmul.msk.f32.gmra.mxu2 %vm9736_vm9, %v1207_v14  ;;  %4440 = vmatmul.msk.f32.gmra.mxu3 %vm9736_vm9, %v1207_v14  ;;  %v1933_v8 = vmul.f32 1.442695, %v1909_v39  ;;  %v1935_v9 = vmul.f32 1.442695, %v1910_v19  ;;  %v1211_v30 = vmul.f32 %v1207_v14, %v6832_v32  ;;  %v1222_v39 = vpop.permute.xlu1 %1221  ;;  %v1939_v19 = vmul.f32 1.442695, %v1912_v27  ;;  %vm10106_vm15 = vmmov %vm10102_vm0 }
 0x297   :  { %4446 = vmatmul.msk.f32.gmra.mxu0 %vm9736_vm9, %v1207_v14  ;;  %4452 = vmatmul.msk.f32.gmra.mxu1 %vm9736_vm9, %v1207_v14  ;;  %v1937_v46 = vmul.f32 1.442695, %v1911_v57  ;;  %v6960_v32 = vld [vmem:[%s9347_s1 + $0x8] sm:$0xff]  ;;  %v6965_v14 = vld [vmem:[%s9347_s1 + $0x10] sm:$0xff]  ;;  %v1901_v57 = vmin.f32 %v6953_v20, 20.0  ;;  %v6979_v0 = vsub.f32 %v1222_v39, %v1210_v33  ;;  %vm10108_vm1 = vmmov %vm10102_vm0  ;;  %s5513_s1 = smov 512  }
 0x298   :  { %10096 = vst [vmem:[#allocation121_spill] sm:$0xff] %v6960_v32  ;;  %5067 = vpow2.f32 %v1933_v8  ;;  %v1902_v27 = vmin.f32 %v6960_v32, 20.0  ;;  %v1903_v49 = vmin.f32 %v6965_v14, 20.0  ;;  %v5060_v8 = vpop.eup %5059  ;;  %v6986_v40 = vsub.f32 %v1226_v31, %v1211_v30 }
 0x299   :  { %10097 = vst [vmem:[#allocation122_spill] sm:$0xff] %v6965_v14  ;;  %5069 = vpow2.f32 %v1935_v9  ;;  %v5062_v37 = vpop.eup %5061  ;;  %v1961_v33 = vadd.f32 1.0, %v5060_v8  ;;  %v1931_v9 = vmul.f32 1.442695, %v1908_v50  ;;  %v1917_v28 = vmul.f32 1.442695, %v1901_v57 }
 0x29a   :  { %5071 = vpow2.f32 %v1937_v46  ;;  %v5064_v39 = vpop.eup %5063  ;;  %v1962_v1 = vadd.f32 1.0, %v5062_v37  ;;  %v6992_v46 = vmul.f32 1.442695, %v1902_v27  ;;  %v6996_v31 = vmul.f32 1.442695, %v1903_v49 }
 0x29b   :  { %5073 = vpow2.f32 %v1939_v19  ;;  %v5066_v7 = vpop.eup %5065  ;;  %v6994_v24 = vmul.f32 %v1961_v33, %v1961_v33  ;;  %v1963_v30 = vadd.f32 1.0, %v5064_v39  ;;  %v7000_v19 = vmul.f32 1.442695, %v1904_v61 }
 0x29c   :  { %5075 = vpow2.f32 %v1925_v23  ;;  %v6998_v60 = vmul.f32 %v1962_v1, %v1962_v1  ;;  %v1964_v45 = vadd.f32 1.0, %v5066_v7 }
 0x29d   :  { %5077 = vpow2.f32 %v1927_v44  ;;  %v1993_v23 = vadd.f32 1.0, %v6994_v24  ;;  %v7003_v57 = vmul.f32 %v1963_v30, %v1963_v30 }
 0x29e   :  { %4455 = vmatmul.msk.f32.vlgmr.msra.gmra.mxu2 %vm9736_vm9, %v1228_v11  ;;  %4461 = vmatmul.msk.f32.vlgmr.msra.gmra.mxu3 %vm9736_vm9, %v1228_v11  ;;  %v5068_v18 = vpop.eup %5067  ;;  %5079 = vpow2.f32 %v1929_v2  ;;  %v1994_v49 = vadd.f32 1.0, %v6998_v60  ;;  %v7008_v1 = vmul.f32 %v1964_v45, %v1964_v45 }
 0x29f   :  { %4467 = vmatmul.msk.f32.vlgmr.msrb.gmra.mxu0 %vm9736_vm9, %v1228_v11  ;;  %4473 = vmatmul.msk.f32.vlgmr.msrb.gmra.mxu1 %vm9736_vm9, %v1228_v11  ;;  %v10103_v11 = vld [vmem:[#allocation22_spill] sm:$0xff]  ;;  %v5070_v50 = vpop.eup %5069  ;;  %v1957_v27 = vadd.f32 1.0, %v5068_v18  ;;  %5081 = vpow2.f32 %v1931_v9  ;;  %v1995_v18 = vadd.f32 1.0, %v7003_v57 }
 0x2a0   :  { %4533 = vmatpush.msk.msra.mxu2 %vm10100_vm3, %v10099_v54  ;;  %4542 = vmatpush.msk.msra.mxu3 %vm10102_vm0, %v10101_v6  ;;  %v5072_v8 = vpop.eup %5071  ;;  %v1958_v44 = vadd.f32 1.0, %v5070_v50  ;;  %5083 = vpow2.f32 %v1917_v28  ;;  %v1996_v9 = vadd.f32 1.0, %v7008_v1  ;;  %vm10113_vm3 = vmmov %vm10102_vm0 }
 0x2a1   :  { %4551 = vmatpush.msk.msrb.mxu0 %vm10104_vm2, %v10103_v11  ;;  %4560 = vmatpush.msk.msrb.mxu1 %vm10106_vm15, %v10105_v63  ;;  %v5074_v2 = vpop.eup %5073  ;;  %5085 = vrcp.f32 %v1993_v23  ;;  %v7013_v61 = vmul.f32 %v1957_v27, %v1957_v27  ;;  %v1959_v37 = vadd.f32 1.0, %v5072_v8  ;;  %v4531_v63 = vadd.f32 -1.0, %v7003_v57  ;;  %vm10116_vm2 = vmmov %vm10102_vm0 }
 0x2a2   :  { %v5076_v33 = vpop.eup %5075  ;;  %5087 = vrcp.f32 %v1994_v49  ;;  %v7016_v39 = vmul.f32 %v1958_v44, %v1958_v44  ;;  %v1960_v45 = vadd.f32 1.0, %v5074_v2  ;;  %vm2718_vm15 = vcmask 531456  }
 0x2a3   :  { %v5078_v7 = vpop.eup %5077  ;;  %5089 = vrcp.f32 %v1995_v18  ;;  %v1989_v28 = vadd.f32 1.0, %v7013_v61  ;;  %v7019_v30 = vmul.f32 %v1959_v37, %v1959_v37  ;;  %v4525_v32 = vadd.f32 -1.0, %v7013_v61 }
 0x2a4   :  { %v5080_v50 = vpop.eup %5079  ;;  %5091 = vrcp.f32 %v1996_v9  ;;  %v1990_v27 = vadd.f32 1.0, %v7016_v39  ;;  %v7022_v5 = vmul.f32 %v1960_v45, %v1960_v45  ;;  %v1954_v8 = vadd.f32 1.0, %v5078_v7 }
 0x2a5   :  { %v5082_v41 = vpop.eup %5081  ;;  %5093 = vrcp.f32 %v1989_v28  ;;  %v7025_v44 = vadd.f32 1.0, %v7019_v30  ;;  %v1955_v12 = vadd.f32 1.0, %v5080_v50 }
 0x2a6   :  { %4456 = vmatmul.msk.f32.gmra.mxu2 %vm9736_vm9, %v1229_v43  ;;  %4462 = vmatmul.msk.f32.gmra.mxu3 %vm9736_vm9, %v1229_v43  ;;  %v5084_v53 = vpop.eup %5083  ;;  %5095 = vrcp.f32 %v1990_v27  ;;  %v7030_v37 = vadd.f32 1.0, %v7022_v5  ;;  %v1956_v56 = vadd.f32 1.0, %v5082_v41 }
 0x2a7   :  { %4468 = vmatmul.msk.f32.gmra.mxu0 %vm9736_vm9, %v1229_v43  ;;  %4474 = vmatmul.msk.f32.gmra.mxu1 %vm9736_vm9, %v1229_v43  ;;  %v1953_v43 = vadd.f32 1.0, %v5076_v33  ;;  %v7032_v33 = vmul.f32 %v1954_v8, %v1954_v8  ;;  %v5086_v58 = vpop.eup %5085  ;;  %5097 = vrcp.f32 %v7025_v44  ;;  %v7038_v7 = vmul.f32 %v1955_v12, %v1955_v12 }
 0x2a8   :  { %v1949_v47 = vadd.f32 1.0, %v5084_v53  ;;  %v2025_v50 = vmul.f32 %v5086_v58, %v1993_v23  ;;  %5099 = vrcp.f32 %v7030_v37  ;;  %v7048_v8 = vmul.f32 %v1956_v56, %v1956_v56 }
 0x2a9   :  { %v7027_v2 = vmul.f32 %v1953_v43, %v1953_v43  ;;  %v5088_v43 = vpop.eup %5087  ;;  %v7046_v41 = vadd.f32 1.0, %v7032_v33  ;;  %v7056_v12 = vadd.f32 1.0, %v7038_v7 }
 0x2aa   :  { %v5090_v36 = vpop.eup %5089  ;;  %v2026_v53 = vmul.f32 %v5088_v43, %v1994_v49  ;;  %v7058_v23 = vmul.f32 %v1949_v47, %v1949_v47  ;;  %v2041_v59 = vsub.f32 2.0, %v2025_v50  ;;  %v7062_v56 = vadd.f32 1.0, %v7048_v8 }
 0x2ab   :  { %v7036_v45 = vadd.f32 1.0, %v7027_v2  ;;  %v5092_v26 = vpop.eup %5091  ;;  %v2027_v38 = vmul.f32 %v5090_v36, %v1995_v18  ;;  %v4529_v47 = vadd.f32 -1.0, %v6994_v24  ;;  %v4530_v50 = vadd.f32 -1.0, %v6998_v60 }
 0x2ac   :  { %v5094_v51 = vpop.eup %5093  ;;  %v2042_v42 = vsub.f32 2.0, %v2026_v53  ;;  %v2028_v22 = vmul.f32 %v5092_v26, %v1996_v9  ;;  %v2057_v10 = vmul.f32 %v5086_v58, %v2041_v59  ;;  %v4532_v53 = vadd.f32 -1.0, %v7008_v1 }
 0x2ad   :  { %5101 = vrcp.f32 %v7036_v45  ;;  %v5096_v49 = vpop.eup %5095  ;;  %v2043_v18 = vsub.f32 2.0, %v2027_v38  ;;  %v2021_v14 = vmul.f32 %v5094_v51, %v1989_v28  ;;  %v4526_v60 = vadd.f32 -1.0, %v7016_v39 }
 0x2ae   :  { %4457 = vmatmul.msk.f32.gmra.mxu2 %vm9736_vm9, %v6979_v0  ;;  %4463 = vmatmul.msk.f32.gmra.mxu3 %vm9736_vm9, %v6979_v0  ;;  %5103 = vrcp.f32 %v7046_v41  ;;  %v5098_v35 = vpop.eup %5097  ;;  %v2058_v21 = vmul.f32 %v5088_v43, %v2042_v42  ;;  %v2044_v11 = vsub.f32 2.0, %v2028_v22  ;;  %v2089_v6 = vmul.f32 %v4529_v47, %v2057_v10 }
 0x2af   :  { %4469 = vmatmul.msk.f32.gmra.mxu0 %vm9736_vm9, %v6979_v0  ;;  %4475 = vmatmul.msk.f32.gmra.mxu1 %vm9736_vm9, %v6979_v0  ;;  %5105 = vrcp.f32 %v7056_v12  ;;  %v7066_v0 = vadd.f32 1.0, %v7058_v23  ;;  %v5100_v9 = vpop.eup %5099  ;;  %v2059_v29 = vmul.f32 %v5090_v36, %v2043_v18  ;;  %v2022_v24 = vmul.f32 %v5096_v49, %v1990_v27 }
 0x2b0   :  { %v2090_v59 = vmul.f32 %v4530_v50, %v2058_v21  ;;  %v2060_v58 = vmul.f32 %v5092_v26, %v2044_v11  ;;  %v2105_v42 = vmul.f32 %v2089_v6, %v6876_v62  ;;  %v2037_v36 = vsub.f32 2.0, %v2021_v14 }
 0x2b1   :  { %v2091_v10 = vmul.f32 %v4531_v63, %v2059_v29  ;;  %v2023_v22 = vmul.f32 %v5098_v35, %v7025_v44  ;;  %v2038_v11 = vsub.f32 2.0, %v2022_v24  ;;  %v4527_v1 = vadd.f32 -1.0, %v7019_v30 }
 0x2b2   :  { %v2106_v26 = vmul.f32 %v2090_v59, %v6881_v13  ;;  %v2092_v21 = vmul.f32 %v4532_v53, %v2060_v58  ;;  %2146 = vmatpush.msra.mxu2 %v2105_v42  ;;  %v2053_v29 = vmul.f32 %v5094_v51, %v2037_v36  ;;  %v2024_v14 = vmul.f32 %v5100_v9, %v7030_v37  ;;  %v1729_v51 = vld [vmem:[%s9348_s2] sm:$0xff]  ;;  %v1730_v53 = vld [vmem:[%s9348_s2 + $0x8] sm:$0xff] }
 0x2b3   :  { %v5102_v54 = vpop.eup %5101  ;;  %v2107_v6 = vmul.f32 %v2091_v10, %v6886_v55  ;;  %v2039_v62 = vsub.f32 2.0, %v2023_v22  ;;  %v2054_v61 = vmul.f32 %v5096_v49, %v2038_v11  ;;  %v4528_v39 = vadd.f32 -1.0, %v7022_v5 }
 0x2b4   :  { %v5104_v38 = vpop.eup %5103  ;;  %2187 = vmatpush.msra.mxu3 %v2106_v26  ;;  %v2108_v63 = vmul.f32 %v2092_v21, %v6896_v48  ;;  %v2085_v13 = vmul.f32 %v4525_v32, %v2053_v29  ;;  %v2040_v27 = vsub.f32 2.0, %v2024_v14  ;;  %v4521_v30 = vadd.f32 -1.0, %v7027_v2  ;;  %v1731_v26 = vld [vmem:[%s9348_s2 + $0x10] sm:$0xff]  ;;  %v10107_v14 = vld [vmem:[#allocation24_spill] sm:$0xff] }
 0x2b5   :  { %v5106_v57 = vpop.eup %5105  ;;  %2228 = vmatpush.msrb.mxu0 %v2107_v6  ;;  %v2055_v28 = vmul.f32 %v5098_v35, %v2039_v62  ;;  %v2086_v55 = vmul.f32 %v4526_v60, %v2054_v61  ;;  %v2018_v48 = vmul.f32 %v5104_v38, %v7046_v41  ;;  %v4522_v37 = vadd.f32 -1.0, %v7032_v33 }
 0x2b6   :  { %4458 = vmatmul.msk.f32.gmra.mxu2 %vm9736_vm9, %v6986_v40  ;;  %4464 = vmatmul.msk.f32.gmra.mxu3 %vm9736_vm9, %v6986_v40  ;;  %v2101_v5 = vmul.f32 %v2085_v13, %v6904_v3  ;;  %v2056_v43 = vmul.f32 %v5100_v9, %v2040_v27  ;;  %v2019_v35 = vmul.f32 %v5106_v57, %v7056_v12  ;;  %v4523_v47 = vadd.f32 -1.0, %v7038_v7 }
 0x2b7   :  { %4470 = vmatmul.msk.f32.gmra.mxu0 %vm9736_vm9, %v6986_v40  ;;  %4476 = vmatmul.msk.f32.gmra.mxu1 %vm9736_vm9, %v6986_v40  ;;  %v2017_v40 = vmul.f32 %v5102_v54, %v7036_v45  ;;  %v2087_v45 = vmul.f32 %v4527_v1, %v2055_v28  ;;  %v2102_v32 = vmul.f32 %v2086_v55, %v6909_v15  ;;  %v2034_v49 = vsub.f32 2.0, %v2018_v48 }
 0x2b8   :  { %2269 = vmatpush.msrb.mxu1 %v2108_v63  ;;  %v2088_v50 = vmul.f32 %v4528_v39, %v2056_v43  ;;  %v2035_v33 = vsub.f32 2.0, %v2019_v35  ;;  %5107 = vrcp.f32 %v7062_v56  ;;  %2147 = vmatpush.msra.mxu2 %v2101_v5  ;;  %v4524_v24 = vadd.f32 -1.0, %v7048_v8  ;;  %v1732_v63 = vld [vmem:[%s9348_s2 + $0x18] sm:$0xff]  ;;  %v1877_v35 = vld [vmem:[%s9352_s6] sm:$0xff] }
 0x2b9   :  { %v2033_v44 = vsub.f32 2.0, %v2017_v40  ;;  %v2103_v41 = vmul.f32 %v2087_v45, %v6917_v25  ;;  %v2050_v15 = vmul.f32 %v5104_v38, %v2034_v49  ;;  %5109 = vrcp.f32 %v7066_v0  ;;  %2188 = vmatpush.msra.mxu3 %v2102_v32  ;;  %v10109_v32 = vld [vmem:[#allocation121_spill] sm:$0xff] }
 0x2ba   :  { %v2051_v7 = vmul.f32 %v5106_v57, %v2035_v33  ;;  %5111 = vpow2.f32 %v6992_v46 }
 0x2bb   :  { %v2049_v2 = vmul.f32 %v5102_v54, %v2033_v44  ;;  %v2104_v54 = vmul.f32 %v2088_v50, %v6922_v34  ;;  %2229 = vmatpush.msrb.mxu0 %v2103_v41  ;;  %v2082_v12 = vmul.f32 %v4522_v37, %v2050_v15  ;;  %5113 = vpow2.f32 %v6996_v31  ;;  %v10111_v50 = vld [vmem:[#allocation123_spill] sm:$0xff]  ;;  %v10114_v15 = vld [vmem:[#allocation22_spill] sm:$0xff] }
 0x2bc   :  { %v2083_v18 = vmul.f32 %v4523_v47, %v2051_v7  ;;  %5115 = vpow2.f32 %v7000_v19  ;;  %v10110_v47 = vld [vmem:[#allocation122_spill] sm:$0xff]  ;;  %v1878_v7 = vld [vmem:[%s9352_s6 + $0x8] sm:$0xff] }
 0x2bd   :  { %v2081_v3 = vmul.f32 %v4521_v30, %v2049_v2  ;;  %2270 = vmatpush.msrb.mxu1 %v2104_v54  ;;  %v2098_v34 = vmul.f32 %v2082_v12, %v6935_v16  ;;  %v10115_v54 = vld [vmem:[#allocation23_spill] sm:$0xff] }
 0x2be   :  { %4495 = vmatmul.msk.f32.vlgmr.msrb.gmra.mxu2 %vm9736_vm9, %v1729_v51  ;;  %4501 = vmatmul.msk.f32.vlgmr.msrb.gmra.mxu3 %vm9736_vm9, %v1729_v51  ;;  %v5108_v9 = vpop.eup %5107  ;;  %v2099_v46 = vmul.f32 %v2083_v18, %v6940_v4  ;;  %v1880_v12 = vld [vmem:[%s9352_s6 + $0x18] sm:$0xff]  ;;  %v1881_v18 = vld [vmem:[%s9352_s6 + $0x20] sm:$0xff] }
 0x2bf   :  { %4507 = vmatmul.msk.f32.vlgmr.msra.gmra.mxu0 %vm9736_vm9, %v1729_v51  ;;  %4513 = vmatmul.msk.f32.vlgmr.msra.gmra.mxu1 %vm9736_vm9, %v1729_v51  ;;  %v2097_v25 = vmul.f32 %v2081_v3, %v6930_v52  ;;  %v5110_v59 = vpop.eup %5109  ;;  %v2020_v52 = vmul.f32 %v5108_v9, %v7062_v56  ;;  %v4517_v56 = vadd.f32 -1.0, %v7058_v23  ;;  %v10112_v3 = vld [vmem:[#allocation21_spill] sm:$0xff] }
 0x2c0   :  { %2189 = vmatpush.msra.mxu3 %v2098_v34  ;;  %v5112_v58 = vpop.eup %5111  ;;  %v2013_v31 = vmul.f32 %v5110_v59, %v7066_v0  ;;  %2230 = vmatpush.msrb.mxu0 %v2099_v46 }
 0x2c1   :  { %2148 = vmatpush.msra.mxu2 %v2097_v25  ;;  %v5114_v19 = vpop.eup %5113  ;;  %v2036_v16 = vsub.f32 2.0, %v2020_v52  ;;  %v1950_v4 = vadd.f32 1.0, %v5112_v58  ;;  %v1879_v25 = vld [vmem:[%s9352_s6 + $0x10] sm:$0xff] }
 0x2c2   :  { %v5116_v60 = vpop.eup %5115  ;;  %v2029_v38 = vsub.f32 2.0, %v2013_v31  ;;  %v1951_v42 = vadd.f32 1.0, %v5114_v19 }
 0x2c3   :  { %v2052_v10 = vmul.f32 %v5108_v9, %v2036_v16  ;;  %v1966_v36 = vmul.f32 %v1950_v4, %v1950_v4  ;;  %v1952_v22 = vadd.f32 1.0, %v5116_v60  ;;  %v1883_v16 = vld [vmem:[%s9352_s6 + $0x30] sm:$0xff] }
 0x2c4   :  { %v2045_v57 = vmul.f32 %v5110_v59, %v2029_v38  ;;  %v1967_v0 = vmul.f32 %v1951_v42, %v1951_v42  ;;  %v1882_v59 = vld [vmem:[%s9352_s6 + $0x28] sm:$0xff] }
 0x2c5   :  { %v2084_v21 = vmul.f32 %v4524_v24, %v2052_v10  ;;  %v1982_v11 = vadd.f32 1.0, %v1966_v36  ;;  %v1968_v1 = vmul.f32 %v1952_v22, %v1952_v22  ;;  %v4518_v28 = vadd.f32 -1.0, %v1966_v36 }
 0x2c6   :  { %4496 = vmatmul.msk.f32.gmra.mxu2 %vm9736_vm9, %v1730_v53  ;;  %4502 = vmatmul.msk.f32.gmra.mxu3 %vm9736_vm9, %v1730_v53  ;;  %v2077_v8 = vmul.f32 %v4517_v56, %v2045_v57  ;;  %v1983_v6 = vadd.f32 1.0, %v1967_v0  ;;  %v4519_v51 = vadd.f32 -1.0, %v1967_v0  ;;  %v1884_v56 = vld [vmem:[%s9352_s6 + $0x38] sm:$0xff]  ;;  %s5514_s6 = smov 32  }
 0x2c7   :  { %4508 = vmatmul.msk.f32.gmra.mxu0 %vm9736_vm9, %v1730_v53  ;;  %4514 = vmatmul.msk.f32.gmra.mxu1 %vm9736_vm9, %v1730_v53  ;;  %v2100_v29 = vmul.f32 %v2084_v21, %v6946_v17  ;;  %5117 = vrcp.f32 %v1982_v11  ;;  %v1984_v62 = vadd.f32 1.0, %v1968_v1  ;;  %v4520_v48 = vadd.f32 -1.0, %v1968_v1 }
 0x2c8   :  { %v2093_v23 = vmul.f32 %v2077_v8, %v6953_v20  ;;  %5119 = vrcp.f32 %v1983_v6 }
 0x2c9   :  { %5121 = vrcp.f32 %v1984_v62  ;;  %2271 = vmatpush.msrb.mxu1 %v2100_v29 }
 0x2ca   :  { %2149 = vmatpush.msra.mxu2 %v2093_v23 }
 0x2cc   :  { %4601 = vmatpush.msk.msrb.mxu2 %vm10108_vm1, %v10107_v14  ;;  %vm10270_vm1 = vmmov %vm10102_vm0 }
 0x2cd   :  { %v5118_v17 = vpop.eup %5117 }
 0x2ce   :  { %4497 = vmatmul.msk.f32.gmra.mxu2 %vm9736_vm9, %v1731_v26  ;;  %4503 = vmatmul.msk.f32.gmra.mxu3 %vm9736_vm9, %v1731_v26  ;;  %v5120_v61 = vpop.eup %5119  ;;  %v2014_v39 = vmul.f32 %v5118_v17, %v1982_v11 }
 0x2cf   :  { %4509 = vmatmul.msk.f32.gmra.mxu0 %vm9736_vm9, %v1731_v26  ;;  %4515 = vmatmul.msk.f32.gmra.mxu1 %vm9736_vm9, %v1731_v26  ;;  %v5122_v40 = vpop.eup %5121  ;;  %v2015_v20 = vmul.f32 %v5120_v61, %v1983_v6 }
 0x2d0   :  { %v2030_v13 = vsub.f32 2.0, %v2014_v39  ;;  %v2016_v27 = vmul.f32 %v5122_v40, %v1984_v62 }
 0x2d1   :  { %v2031_v30 = vsub.f32 2.0, %v2015_v20 }
 0x2d2   :  { %v2046_v55 = vmul.f32 %v5118_v17, %v2030_v13  ;;  %v2032_v44 = vsub.f32 2.0, %v2016_v27 }
 0x2d3   :  { %v2047_v37 = vmul.f32 %v5120_v61, %v2031_v30 }
 0x2d4   :  { %v2078_v5 = vmul.f32 %v4518_v28, %v2046_v55  ;;  %v2048_v45 = vmul.f32 %v5122_v40, %v2032_v44 }
 0x2d5   :  { %v2079_v43 = vmul.f32 %v4519_v51, %v2047_v37 }
 0x2d6   :  { %4498 = vmatmul.msk.f32.gmra.mxu2 %vm9736_vm9, %v1732_v63  ;;  %4504 = vmatmul.msk.f32.gmra.mxu3 %vm9736_vm9, %v1732_v63  ;;  %v2094_v2 = vmul.f32 %v2078_v5, %v10109_v32  ;;  %v2080_v49 = vmul.f32 %v4520_v48, %v2048_v45 }
 0x2d7   :  { %4510 = vmatmul.msk.f32.gmra.mxu0 %vm9736_vm9, %v1732_v63  ;;  %4516 = vmatmul.msk.f32.gmra.mxu1 %vm9736_vm9, %v1732_v63  ;;  %v2095_v41 = vmul.f32 %v2079_v43, %v10110_v47 }
 0x2d8   :  { %2190 = vmatpush.msra.mxu3 %v2094_v2  ;;  %v2096_v33 = vmul.f32 %v2080_v49, %v10111_v50 }
 0x2d9   :  { %2231 = vmatpush.msrb.mxu0 %v2095_v41 }
 0x2da   :  { %2272 = vmatpush.msrb.mxu1 %v2096_v33  ;;  %4606 = vmatpush.msk.msrb.mxu3 %vm10113_vm3, %v10112_v3  ;;  %vm10272_vm3 = vmmov %vm10102_vm0 }
 0x2db   :  { %4611 = vmatpush.msk.msra.mxu0 %vm10102_vm0, %v10114_v15 }
 0x2dc   :  { %4616 = vmatpush.msk.msra.mxu1 %vm10116_vm2, %v10115_v54 }
 0x2de   :  { %4534 = vmatmul.msk.f32.vlgmr.msra.gmra.mxu2 %vm9737_vm10, %v1877_v35  ;;  %4543 = vmatmul.msk.f32.vlgmr.msra.gmra.mxu3 %vm9737_vm10, %v1877_v35 }
 0x2df   :  { %4552 = vmatmul.msk.f32.vlgmr.msrb.gmra.mxu0 %vm9737_vm10, %v1877_v35  ;;  %4561 = vmatmul.msk.f32.vlgmr.msrb.gmra.mxu1 %vm9737_vm10, %v1877_v35 }
 0x2e6   :  { %4535 = vmatmul.msk.f32.gmra.mxu2 %vm9737_vm10, %v1878_v7  ;;  %4544 = vmatmul.msk.f32.gmra.mxu3 %vm9737_vm10, %v1878_v7 }
 0x2e7   :  { %4553 = vmatmul.msk.f32.gmra.mxu0 %vm9737_vm10, %v1878_v7  ;;  %4562 = vmatmul.msk.f32.gmra.mxu1 %vm9737_vm10, %v1878_v7 }
 0x2ee   :  { %4536 = vmatmul.msk.f32.gmra.mxu2 %vm9737_vm10, %v1879_v25  ;;  %4545 = vmatmul.msk.f32.gmra.mxu3 %vm9737_vm10, %v1879_v25 }
 0x2ef   :  { %4554 = vmatmul.msk.f32.gmra.mxu0 %vm9737_vm10, %v1879_v25  ;;  %4563 = vmatmul.msk.f32.gmra.mxu1 %vm9737_vm10, %v1879_v25 }
 0x2f6   :  { %4537 = vmatmul.msk.f32.gmra.mxu2 %vm9737_vm10, %v1880_v12  ;;  %4546 = vmatmul.msk.f32.gmra.mxu3 %vm9737_vm10, %v1880_v12 }
 0x2f7   :  { %4555 = vmatmul.msk.f32.gmra.mxu0 %vm9737_vm10, %v1880_v12  ;;  %4564 = vmatmul.msk.f32.gmra.mxu1 %vm9737_vm10, %v1880_v12 }
 0x2fc   :  { %v7184_v53 = vpop.f32.mrf.mxu0  ;;  %v7186_v34 = vpop.f32.mrf.mxu1 }
 0x2fd   :  { %10117 = vst [vmem:[#allocation121_spill] sm:$0xff] %v7184_v53 }
 0x2fe   :  { %10118 = vst [vmem:[#allocation122_spill] sm:$0xff] %v7186_v34  ;;  %4538 = vmatmul.msk.f32.gmra.mxu2 %vm9737_vm10, %v1881_v18  ;;  %4547 = vmatmul.msk.f32.gmra.mxu3 %vm9737_vm10, %v1881_v18 }
 0x2ff   :  { %4556 = vmatmul.msk.f32.gmra.mxu0 %vm9737_vm10, %v1881_v18  ;;  %4565 = vmatmul.msk.f32.gmra.mxu1 %vm9737_vm10, %v1881_v18 }
 0x301   :  { %v7192_v9 = vpop.f32.mrf.mxu2  ;;  %v7194_v46 = vpop.f32.mrf.mxu3 }
 0x302   :  { %10119 = vst [vmem:[#allocation123_spill] sm:$0xff] %v7192_v9 }
 0x303   :  { %10120 = vst [vmem:[#allocation124_spill] sm:$0xff] %v7194_v46 }
 0x304   :  { %v7199_v52 = vpop.f32.mrf.mxu0  ;;  %v7201_v58 = vpop.f32.mrf.mxu1 }
 0x305   :  { %10121 = vst [vmem:[#allocation125_spill] sm:$0xff] %v7199_v52 }
 0x306   :  { %10122 = vst [vmem:[#allocation126_spill] sm:$0xff] %v7201_v58  ;;  %4539 = vmatmul.msk.f32.gmra.mxu2 %vm9737_vm10, %v1882_v59  ;;  %4548 = vmatmul.msk.f32.gmra.mxu3 %vm9737_vm10, %v1882_v59 }
 0x307   :  { %4557 = vmatmul.msk.f32.gmra.mxu0 %vm9737_vm10, %v1882_v59  ;;  %4566 = vmatmul.msk.f32.gmra.mxu1 %vm9737_vm10, %v1882_v59 }
 0x309   :  { %v7207_v31 = vpop.f32.mrf.mxu2  ;;  %v7209_v19 = vpop.f32.mrf.mxu3 }
 0x30a   :  { %10123 = vst [vmem:[#allocation127_spill] sm:$0xff] %v7207_v31 }
 0x30b   :  { %10124 = vst [vmem:[#allocation128_spill] sm:$0xff] %v7209_v19 }
 0x30c   :  { %v7214_v24 = vpop.f32.mrf.mxu0  ;;  %v7216_v4 = vpop.f32.mrf.mxu1 }
 0x30d   :  { %10125 = vst [vmem:[#allocation129_spill] sm:$0xff] %v7214_v24 }
 0x30e   :  { %10126 = vst [vmem:[#allocation130_spill] sm:$0xff] %v7216_v4  ;;  %4540 = vmatmul.msk.f32.gmra.mxu2 %vm9737_vm10, %v1883_v16  ;;  %4549 = vmatmul.msk.f32.gmra.mxu3 %vm9737_vm10, %v1883_v16 }
 0x30f   :  { %4558 = vmatmul.msk.f32.gmra.mxu0 %vm9737_vm10, %v1883_v16  ;;  %4567 = vmatmul.msk.f32.gmra.mxu1 %vm9737_vm10, %v1883_v16 }
 0x311   :  { %v7222_v60 = vpop.f32.mrf.mxu2  ;;  %v7224_v38 = vpop.f32.mrf.mxu3 }
 0x312   :  { %10127 = vst [vmem:[#allocation131_spill] sm:$0xff] %v7222_v60 }
 0x313   :  { %10128 = vst [vmem:[#allocation132_spill] sm:$0xff] %v7224_v38 }
 0x314   :  { %v7229_v42 = vpop.f32.mrf.mxu0  ;;  %v7231_v10 = vpop.f32.mrf.mxu1 }
 0x315   :  { %10129 = vst [vmem:[#allocation133_spill] sm:$0xff] %v7229_v42 }
 0x316   :  { %10130 = vst [vmem:[#allocation134_spill] sm:$0xff] %v7231_v10  ;;  %4541 = vmatmul.msk.f32.gmra.mxu2 %vm9737_vm10, %v1884_v56  ;;  %4550 = vmatmul.msk.f32.gmra.mxu3 %vm9737_vm10, %v1884_v56 }
 0x317   :  { %4559 = vmatmul.msk.f32.gmra.mxu0 %vm9737_vm10, %v1884_v56  ;;  %4568 = vmatmul.msk.f32.gmra.mxu1 %vm9737_vm10, %v1884_v56 }
 0x319   :  { %v7237_v36 = vpop.f32.mrf.mxu2  ;;  %v7239_v22 = vpop.f32.mrf.mxu3 }
 0x31a   :  { %10131 = vst [vmem:[#allocation135_spill] sm:$0xff] %v7237_v36 }
 0x31b   :  { %10132 = vst [vmem:[#allocation136_spill] sm:$0xff] %v7239_v22 }
 0x31c   :  { %v7241_v57 = vpop.f32.mrf.mxu0  ;;  %v7243_v0 = vpop.f32.mrf.mxu1 }
 0x31d   :  { %10133 = vst [vmem:[#allocation137_spill] sm:$0xff] %v7241_v57 }
 0x31e   :  { %10134 = vst [vmem:[#allocation138_spill] sm:$0xff] %v7243_v0 }
 0x321   :  { %v7245_v26 = vpop.f32.mrf.mxu2  ;;  %v7247_v21 = vpop.f32.mrf.mxu3 }
 0x322   :  { %10135 = vst [vmem:[#allocation139_spill] sm:$0xff] %v7245_v26 }
 0x323   :  { %10136 = vst [vmem:[#allocation140_spill] sm:$0xff] %v7247_v21 }
 0x324   :  { %v7249_v11 = vpop.f32.mrf.mxu0  ;;  %v7251_v1 = vpop.f32.mrf.mxu1 }
 0x325   :  { %10137 = vst [vmem:[#allocation141_spill] sm:$0xff] %v7249_v11 }
 0x326   :  { %10138 = vst [vmem:[#allocation142_spill] sm:$0xff] %v7251_v1 }
 0x329   :  { %v7253_v8 = vpop.f32.mrf.mxu2  ;;  %v7255_v6 = vpop.f32.mrf.mxu3 }
 0x32a   :  { %10139 = vst [vmem:[#allocation143_spill] sm:$0xff] %v7253_v8 }
 0x32b   :  { %10140 = vst [vmem:[#allocation144_spill] sm:$0xff] %v7255_v6 }
 0x32c   :  { %v7257_v29 = vpop.f32.mrf.mxu0  ;;  %v7259_v62 = vpop.f32.mrf.mxu1 }
 0x32d   :  { %10141 = vst [vmem:[#allocation145_spill] sm:$0xff] %v7257_v29 }
 0x32e   :  { %10142 = vst [vmem:[#allocation146_spill] sm:$0xff] %v7259_v62 }
 0x331   :  { %v7261_v23 = vpop.f32.mrf.mxu2  ;;  %v7263_v17 = vpop.f32.mrf.mxu3 }
 0x332   :  { %10143 = vst [vmem:[#allocation147_spill] sm:$0xff] %v7261_v23 }
 0x333   :  { %10144 = vst [vmem:[#allocation148_spill] sm:$0xff] %v7263_v17 }
 0x334   :  { %v7265_v63 = vpop.f32.mrf.mxu0  ;;  %v7267_v61 = vpop.f32.mrf.mxu1 }
 0x335   :  { %10145 = vst [vmem:[#allocation149_spill] sm:$0xff] %v7265_v63 }
 0x336   :  { %10146 = vst [vmem:[#allocation150_spill] sm:$0xff] %v7267_v61 }
 0x339   :  { %v7269_v39 = vpop.f32.mrf.mxu2  ;;  %v7271_v40 = vpop.f32.mrf.mxu3 }
 0x33a   :  { %10147 = vst [vmem:[#allocation151_spill] sm:$0xff] %v7269_v39 }
 0x33b   :  { %10148 = vst [vmem:[#allocation152_spill] sm:$0xff] %v7271_v40 }
 0x33c   :  { %v7273_v20 = vpop.f32.mrf.mxu0  ;;  %v7275_v13 = vpop.f32.mrf.mxu1 }
 0x33d   :  { %10149 = vst [vmem:[#allocation153_spill] sm:$0xff] %v7273_v20 }
 0x33e   :  { %10150 = vst [vmem:[#allocation154_spill] sm:$0xff] %v7275_v13 }
 0x341   :  { %v7277_v28 = vpop.f32.mrf.mxu2  ;;  %v7279_v27 = vpop.f32.mrf.mxu3 }
 0x342   :  { %10151 = vst [vmem:[#allocation155_spill] sm:$0xff] %v7277_v28 }
 0x343   :  { %10152 = vst [vmem:[#allocation156_spill] sm:$0xff] %v7279_v27 }
 0x344   :  { %v7281_v30 = vpop.f32.mrf.mxu0  ;;  %v7283_v51 = vpop.f32.mrf.mxu1 }
 0x345   :  { %10153 = vst [vmem:[#allocation157_spill] sm:$0xff] %v7281_v30 }
 0x346   :  { %10154 = vst [vmem:[#allocation158_spill] sm:$0xff] %v7283_v51 }
 0x349   :  { %v7285_v55 = vpop.f32.mrf.mxu2  ;;  %v7287_v44 = vpop.f32.mrf.mxu3 }
 0x34a   :  { %10155 = vst [vmem:[#allocation159_spill] sm:$0xff] %v7285_v55 }
 0x34b   :  { %10156 = vst [vmem:[#allocation160_spill] sm:$0xff] %v7287_v44 }
 0x34c   :  { %v7289_v48 = vpop.f32.mrf.mxu0  ;;  %v7291_v37 = vpop.f32.mrf.mxu1 }
 0x34d   :  { %10157 = vst [vmem:[#allocation161_spill] sm:$0xff] %v7289_v48 }
 0x34e   :  { %10158 = vst [vmem:[#allocation162_spill] sm:$0xff] %v7291_v37 }
 0x351   :  { %v7293_v5 = vpop.f32.mrf.mxu2  ;;  %v7295_v45 = vpop.f32.mrf.mxu3 }
 0x352   :  { %10159 = vst [vmem:[#allocation163_spill] sm:$0xff] %v7293_v5 }
 0x353   :  { %10160 = vst [vmem:[#allocation164_spill] sm:$0xff] %v7295_v45 }
 0x354   :  { %v7297_v43 = vpop.f32.mrf.mxu0  ;;  %v7299_v35 = vpop.f32.mrf.mxu1 }
 0x355   :  { %10161 = vst [vmem:[#allocation165_spill] sm:$0xff] %v7297_v43 }
 0x356   :  { %10162 = vst [vmem:[#allocation166_spill] sm:$0xff] %v7299_v35 }
 0x359   :  { %v7301_v32 = vpop.f32.mrf.mxu2  ;;  %v7303_v2 = vpop.f32.mrf.mxu3 }
 0x35a   :  { %10163 = vst [vmem:[#allocation167_spill] sm:$0xff] %v7301_v32 }
 0x35b   :  { %10164 = vst [vmem:[#allocation168_spill] sm:$0xff] %v7303_v2 }
 0x35c   :  { %v7305_v49 = vpop.f32.mrf.mxu0  ;;  %v7307_v47 = vpop.f32.mrf.mxu1 }
 0x35d   :  { %10165 = vst [vmem:[#allocation169_spill] sm:$0xff] %v7305_v49  ;;  %v2304_v41 = vmin.f32 %v7305_v49, 20.0  ;;  %v2305_v7 = vmin.f32 %v7307_v47, 20.0 }
 0x35e   :  { %10166 = vst [vmem:[#allocation170_spill] sm:$0xff] %v7307_v47 }
 0x35f   :  { %v2338_v33 = vmul.f32 1.442695, %v2304_v41  ;;  %v2340_v18 = vmul.f32 1.442695, %v2305_v7 }
 0x361   :  { %v7310_v50 = vpop.f32.mrf.mxu2  ;;  %v7313_v25 = vpop.f32.mrf.mxu3  ;;  %5123 = vpow2.f32 %v2338_v33 }
 0x362   :  { %10167 = vst [vmem:[#allocation171_spill] sm:$0xff] %v7310_v50  ;;  %v2302_v59 = vmin.f32 %v7310_v50, 20.0  ;;  %v2303_v16 = vmin.f32 %v7313_v25, 20.0  ;;  %5125 = vpow2.f32 %v2340_v18 }
 0x363   :  { %10168 = vst [vmem:[#allocation172_spill] sm:$0xff] %v7313_v25 }
 0x364   :  { %v7315_v12 = vpop.f32.mrf.mxu0  ;;  %v7319_v56 = vpop.f32.mrf.mxu1  ;;  %v2334_v15 = vmul.f32 1.442695, %v2302_v59  ;;  %v2336_v35 = vmul.f32 1.442695, %v2303_v16 }
 0x365   :  { %10169 = vst [vmem:[#allocation173_spill] sm:$0xff] %v7315_v12  ;;  %v2308_v54 = vmin.f32 %v7315_v12, 20.0  ;;  %v2309_v41 = vmin.f32 %v7319_v56, 20.0 }
 0x366   :  { %10170 = vst [vmem:[#allocation174_spill] sm:$0xff] %v7319_v56  ;;  %5127 = vpow2.f32 %v2334_v15 }
 0x367   :  { %v5124_v2 = vpop.eup %5123  ;;  %v2346_v32 = vmul.f32 1.442695, %v2308_v54  ;;  %5129 = vpow2.f32 %v2336_v35  ;;  %v2348_v5 = vmul.f32 1.442695, %v2309_v41 }
 0x368   :  { %v2400_v7 = vadd.f32 1.0, %v5124_v2  ;;  %v5126_v48 = vpop.eup %5125 }
 0x369   :  { %v7323_v37 = vpop.f32.mrf.mxu2  ;;  %v7325_v45 = vpop.f32.mrf.mxu3  ;;  %5131 = vpow2.f32 %v2346_v32  ;;  %v2401_v54 = vadd.f32 1.0, %v5126_v48 }
 0x36a   :  { %10171 = vst [vmem:[#allocation175_spill] sm:$0xff] %v7323_v37  ;;  %v2306_v18 = vmin.f32 %v7323_v37, 20.0  ;;  %v2307_v59 = vmin.f32 %v7325_v45, 20.0  ;;  %v7334_v43 = vmul.f32 %v2400_v7, %v2400_v7  ;;  %5133 = vpow2.f32 %v2348_v5 }
 0x36b   :  { %10172 = vst [vmem:[#allocation176_spill] sm:$0xff] %v7325_v45  ;;  %v2433_v28 = vmul.f32 %v2401_v54, %v2401_v54 }
 0x36c   :  { %v7327_v33 = vpop.f32.mrf.mxu0  ;;  %v7331_v16 = vpop.f32.mrf.mxu1  ;;  %v2342_v44 = vmul.f32 1.442695, %v2306_v18  ;;  %v2344_v2 = vmul.f32 1.442695, %v2307_v59  ;;  %v2464_v27 = vadd.f32 1.0, %v7334_v43 }
 0x36d   :  { %10173 = vst [vmem:[#allocation177_spill] sm:$0xff] %v7327_v33  ;;  %v2312_v51 = vmin.f32 %v7327_v33, 20.0  ;;  %v5128_v15 = vpop.eup %5127  ;;  %v2313_v18 = vmin.f32 %v7331_v16, 20.0  ;;  %v2465_v59 = vadd.f32 1.0, %v2433_v28 }
 0x36e   :  { %10174 = vst [vmem:[#allocation178_spill] sm:$0xff] %v7331_v16  ;;  %v5130_v13 = vpop.eup %5129  ;;  %v2398_v30 = vadd.f32 1.0, %v5128_v15  ;;  %5135 = vpow2.f32 %v2342_v44 }
 0x36f   :  { %v5132_v41 = vpop.eup %5131  ;;  %v2354_v32 = vmul.f32 1.442695, %v2312_v51  ;;  %v2399_v20 = vadd.f32 1.0, %v5130_v13  ;;  %5137 = vpow2.f32 %v2344_v2  ;;  %v2356_v13 = vmul.f32 1.442695, %v2313_v18 }
 0x370   :  { %v5134_v48 = vpop.eup %5133  ;;  %v2404_v5 = vadd.f32 1.0, %v5132_v41  ;;  %v7344_v61 = vmul.f32 %v2398_v30, %v2398_v30 }
 0x371   :  { %v7336_v35 = vpop.f32.mrf.mxu2  ;;  %v7338_v55 = vpop.f32.mrf.mxu3  ;;  %5139 = vpow2.f32 %v2354_v32  ;;  %v7348_v10 = vmul.f32 %v2399_v20, %v2399_v20  ;;  %v2405_v54 = vadd.f32 1.0, %v5134_v48 }
 0x372   :  { %10175 = vst [vmem:[#allocation179_spill] sm:$0xff] %v7336_v35  ;;  %5141 = vrcp.f32 %v2464_v27  ;;  %v2436_v15 = vmul.f32 %v2404_v5, %v2404_v5  ;;  %v2310_v40 = vmin.f32 %v7336_v35, 20.0  ;;  %v2462_v2 = vadd.f32 1.0, %v7344_v61 }
 0x373   :  { %10176 = vst [vmem:[#allocation180_spill] sm:$0xff] %v7338_v55  ;;  %5143 = vrcp.f32 %v2465_v59  ;;  %v2311_v41 = vmin.f32 %v7338_v55, 20.0  ;;  %v7356_v17 = vadd.f32 1.0, %v7348_v10  ;;  %v2437_v20 = vmul.f32 %v2405_v54, %v2405_v54 }
 0x374   :  { %v7341_v7 = vpop.f32.mrf.mxu0  ;;  %10178 = vst [vmem:[#allocation182_spill] sm:$0xff] %v7344_v61  ;;  %v7346_v51 = vpop.f32.mrf.mxu1  ;;  %v7360_v5 = vadd.f32 1.0, %v2436_v15  ;;  %5145 = vpow2.f32 %v2356_v13  ;;  %v2350_v62 = vmul.f32 1.442695, %v2310_v40 }
 0x375   :  { %10177 = vst [vmem:[#allocation181_spill] sm:$0xff] %v7341_v7  ;;  %v5136_v44 = vpop.eup %5135  ;;  %v2316_v23 = vmin.f32 %v7341_v7, 20.0  ;;  %5147 = vrcp.f32 %v2462_v2  ;;  %v2352_v4 = vmul.f32 1.442695, %v2311_v41  ;;  %v2317_v29 = vmin.f32 %v7346_v51, 20.0 }
 0x376   :  { %10179 = vst [vmem:[#allocation183_spill] sm:$0xff] %v7346_v51  ;;  %v5138_v39 = vpop.eup %5137  ;;  %v2402_v18 = vadd.f32 1.0, %v5136_v44  ;;  %5149 = vrcp.f32 %v7356_v17  ;;  %v2469_v54 = vadd.f32 1.0, %v2437_v20  ;;  %v7377_v41 = vadd.f32 -1.0, %v7334_v43 }
 0x377   :  { %10180 = vst [vmem:[#allocation184_spill] sm:$0xff] %v7348_v10  ;;  %v5140_v30 = vpop.eup %5139  ;;  %v2403_v36 = vadd.f32 1.0, %v5138_v39  ;;  %5151 = vrcp.f32 %v7360_v5  ;;  %v2362_v44 = vmul.f32 1.442695, %v2316_v23  ;;  %v2364_v1 = vmul.f32 1.442695, %v2317_v29 }
 0x378   :  { %v5142_v48 = vpop.eup %5141  ;;  %v2408_v60 = vadd.f32 1.0, %v5140_v30  ;;  %v7370_v13 = vmul.f32 %v2402_v18, %v2402_v18  ;;  %5153 = vpow2.f32 %v2350_v62  ;;  %v7397_v29 = vadd.f32 -1.0, %v2436_v15 }
 0x379   :  { %v7353_v32 = vpop.f32.mrf.mxu2  ;;  %v7358_v22 = vpop.f32.mrf.mxu3  ;;  %v2528_v63 = vmul.f32 %v5142_v48, %v2464_v27  ;;  %v7374_v40 = vmul.f32 %v2403_v36, %v2403_v36  ;;  %5155 = vpow2.f32 %v2352_v4  ;;  %v7387_v36 = vadd.f32 -1.0, %v2433_v28 }
 0x37a   :  { %10181 = vst [vmem:[#allocation185_spill] sm:$0xff] %v7353_v32  ;;  %v7367_v24 = vpop.eup %5143  ;;  %v7379_v27 = vmul.f32 %v2408_v60, %v2408_v60  ;;  %5157 = vrcp.f32 %v2469_v54  ;;  %v2314_v23 = vmin.f32 %v7353_v32, 20.0  ;;  %v7390_v62 = vadd.f32 1.0, %v7370_v13 }
 0x37b   :  { %10182 = vst [vmem:[#allocation186_spill] sm:$0xff] %v7358_v22  ;;  %v5146_v30 = vpop.eup %5145  ;;  %v2560_v42 = vsub.f32 2.0, %v2528_v63  ;;  %v7382_v58 = vmul.f32 %v7367_v24, %v2465_v59  ;;  %5159 = vpow2.f32 %v2362_v44  ;;  %v2315_v60 = vmin.f32 %v7358_v22, 20.0 }
 0x37c   :  { %v7363_v38 = vpop.f32.mrf.mxu0  ;;  %10184 = vst [vmem:[#allocation188_spill] sm:$0xff] %v7370_v13  ;;  %v7372_v39 = vpop.f32.mrf.mxu1  ;;  %v7400_v63 = vadd.f32 1.0, %v7374_v40  ;;  %v2409_v59 = vadd.f32 1.0, %v5146_v30  ;;  %v7407_v19 = vadd.f32 -1.0, %v2437_v20  ;;  %v7410_v44 = vadd.f32 1.0, %v7379_v27 }
 0x37d   :  { %10183 = vst [vmem:[#allocation187_spill] sm:$0xff] %v7363_v38  ;;  %v7385_v18 = vpop.eup %5147  ;;  %v2320_v6 = vmin.f32 %v7363_v38, 20.0  ;;  %5161 = vpow2.f32 %v2364_v1  ;;  %v2321_v31 = vmin.f32 %v7372_v39, 20.0  ;;  %v2592_v11 = vmul.f32 %v5142_v48, %v2560_v42 }
 0x37e   :  { %10185 = vst [vmem:[#allocation189_spill] sm:$0xff] %v7372_v39  ;;  %v7395_v4 = vpop.eup %5149  ;;  %v2561_v21 = vsub.f32 2.0, %v7382_v58  ;;  %v2358_v26 = vmul.f32 1.442695, %v2314_v23  ;;  %v2526_v46 = vmul.f32 %v7385_v18, %v2462_v2  ;;  %5163 = vrcp.f32 %v7390_v62 }
 0x37f   :  { %10186 = vst [vmem:[#allocation190_spill] sm:$0xff] %v7374_v40  ;;  %v7405_v8 = vpop.eup %5151  ;;  %v2360_v20 = vmul.f32 1.442695, %v2315_v60  ;;  %v2527_v34 = vmul.f32 %v7395_v4, %v7356_v17  ;;  %5165 = vrcp.f32 %v7400_v63  ;;  %v7423_v58 = vmul.f32 %v2409_v59, %v2409_v59 }
 0x380   :  { %10187 = vst [vmem:[#allocation191_spill] sm:$0xff] %v7387_v36  ;;  %v5154_v15 = vpop.eup %5153  ;;  %v2370_v42 = vmul.f32 1.442695, %v2320_v6  ;;  %5167 = vrcp.f32 %v7410_v44  ;;  %v2372_v57 = vmul.f32 1.442695, %v2321_v31  ;;  %v2532_v60 = vmul.f32 %v7405_v8, %v7360_v5 }
 0x381   :  { %v7393_v43 = vpop.f32.mrf.mxu2  ;;  %v7403_v28 = vpop.f32.mrf.mxu3  ;;  %v2406_v23 = vadd.f32 1.0, %v5154_v15  ;;  %5169 = vpow2.f32 %v2358_v26  ;;  %v2558_v25 = vsub.f32 2.0, %v2526_v46  ;;  %v7432_v50 = vadd.f32 1.0, %v7423_v58 }
 0x382   :  { %10188 = vst [vmem:[#allocation192_spill] sm:$0xff] %v7393_v43  ;;  %v2318_v30 = vmin.f32 %v7393_v43, 20.0  ;;  %v5156_v0 = vpop.eup %5155  ;;  %v2319_v9 = vmin.f32 %v7403_v28, 20.0  ;;  %5171 = vpow2.f32 %v2360_v20  ;;  %v2559_v47 = vsub.f32 2.0, %v2527_v34 }
 0x383   :  { %10189 = vst [vmem:[#allocation193_spill] sm:$0xff] %v7403_v28  ;;  %v5158_v1 = vpop.eup %5157  ;;  %v2407_v14 = vadd.f32 1.0, %v5156_v0  ;;  %5173 = vpow2.f32 %v2370_v42  ;;  %v7437_v37 = vmul.f32 %v2406_v23, %v2406_v23  ;;  %v2564_v46 = vsub.f32 2.0, %v2532_v60 }
 0x384   :  { %v7415_v52 = vpop.f32.mrf.mxu0  ;;  %v5160_v48 = vpop.eup %5159  ;;  %v2366_v17 = vmul.f32 1.442695, %v2318_v30  ;;  %v2533_v59 = vmul.f32 %v5158_v1, %v2469_v54  ;;  %v2368_v6 = vmul.f32 1.442695, %v2319_v9  ;;  %5175 = vpow2.f32 %v2372_v57 }
 0x385   :  { %10190 = vst [vmem:[#allocation194_spill] sm:$0xff] %v7415_v52  ;;  %v2324_v2 = vmin.f32 %v7415_v52, 20.0  ;;  %v7427_v53 = vpop.f32.mrf.mxu1  ;;  %v5162_v3 = vpop.eup %5161  ;;  %v2412_v15 = vadd.f32 1.0, %v5160_v48  ;;  %v7441_v5 = vmul.f32 %v2407_v14, %v2407_v14  ;;  %v7448_v20 = vmul.f32 %v7377_v41, %v2592_v11 }
 0x386   :  { %10191 = vst [vmem:[#allocation195_spill] sm:$0xff] %v7427_v53  ;;  %v2325_v31 = vmin.f32 %v7427_v53, 20.0  ;;  %v7435_v45 = vpop.eup %5163  ;;  %v2413_v9 = vadd.f32 1.0, %v5162_v3  ;;  %5177 = vpow2.f32 %v2366_v17  ;;  %v7451_v34 = vmul.f32 %v7367_v24, %v2561_v21 }
 0x387   :  { %10192 = vst [vmem:[#allocation196_spill] sm:$0xff] %v7437_v37  ;;  %v2378_v0 = vmul.f32 1.442695, %v2324_v2  ;;  %v7439_v26 = vpop.eup %5165  ;;  %v2565_v42 = vsub.f32 2.0, %v2533_v59  ;;  %5179 = vpow2.f32 %v2368_v6  ;;  %v7454_v48 = vmul.f32 %v7385_v18, %v2558_v25 }
 0x388   :  { %10193 = vst [vmem:[#allocation197_spill] sm:$0xff] %v7441_v5  ;;  %v7445_v30 = vpop.eup %5167  ;;  %5181 = vrcp.f32 %v7432_v50  ;;  %v7457_v14 = vmul.f32 %v2412_v15, %v2412_v15  ;;  %v2380_v3 = vmul.f32 1.442695, %v2325_v31  ;;  %v7462_v11 = vmul.f32 %v7395_v4, %v2559_v47 }
 0x389   :  { %v7443_v54 = vpop.f32.mrf.mxu2  ;;  %10195 = vst [vmem:[#allocation199_spill] sm:$0xff] %v7448_v20  ;;  %v5170_v57 = vpop.eup %5169  ;;  %v7465_v24 = vadd.f32 1.0, %v7437_v37  ;;  %5183 = vpow2.f32 %v2378_v0  ;;  %v2596_v18 = vmul.f32 %v7405_v8, %v2564_v46  ;;  %v7472_v60 = vadd.f32 -1.0, %v7379_v27 }
 0x38a   :  { %10194 = vst [vmem:[#allocation198_spill] sm:$0xff] %v7443_v54  ;;  %v5172_v2 = vpop.eup %5171  ;;  %v2322_v21 = vmin.f32 %v7443_v54, 20.0  ;;  %v7468_v41 = vpop.f32.mrf.mxu3  ;;  %v7475_v17 = vadd.f32 1.0, %v7441_v5  ;;  %v7477_v59 = vmul.f32 %v2413_v9, %v2413_v9  ;;  %v2597_v4 = vmul.f32 %v5158_v1, %v2565_v42 }
 0x38b   :  { %10196 = vst [vmem:[#allocation200_spill] sm:$0xff] %v7451_v34  ;;  %v5174_v25 = vpop.eup %5173  ;;  %v7481_v6 = vmul.f32 %v7435_v45, %v7390_v62  ;;  %v2410_v15 = vadd.f32 1.0, %v5170_v57  ;;  %v7485_v8 = vadd.f32 1.0, %v7457_v14  ;;  %v2411_v27 = vadd.f32 1.0, %v5172_v2 }
 0x38c   :  { %10197 = vst [vmem:[#allocation201_spill] sm:$0xff] %v7454_v48  ;;  %v7459_v23 = vpop.f32.mrf.mxu0  ;;  %v5176_v47 = vpop.eup %5175  ;;  %5185 = vpow2.f32 %v2380_v3  ;;  %v2323_v46 = vmin.f32 %v7468_v41, 20.0  ;;  %v2536_v9 = vmul.f32 %v7445_v30, %v7410_v44  ;;  %v2416_v1 = vadd.f32 1.0, %v5174_v25 }
 0x38d   :  { %10198 = vst [vmem:[#allocation202_spill] sm:$0xff] %v7462_v11  ;;  %v2328_v31 = vmin.f32 %v7459_v23, 20.0  ;;  %v5178_v0 = vpop.eup %5177  ;;  %5187 = vrcp.f32 %v7465_v24  ;;  %v2374_v62 = vmul.f32 1.442695, %v2322_v21  ;;  %v7492_v57 = vadd.f32 -1.0, %v7423_v58 }
 0x38e   :  { %10199 = vst [vmem:[#allocation203_spill] sm:$0xff] %v7468_v41  ;;  %v5180_v11 = vpop.eup %5179  ;;  %5189 = vrcp.f32 %v7475_v17  ;;  %v7496_v20 = vadd.f32 1.0, %v7477_v59  ;;  %v2417_v3 = vadd.f32 1.0, %v5176_v47  ;;  %v2531_v49 = vmul.f32 %v7439_v26, %v7400_v63  ;;  %v7508_v47 = vpop.f32.mrf.mxu1 }
 0x38f   :  { %v5182_v42 = vpop.eup %5181  ;;  %v7500_v55 = vmul.f32 %v2410_v15, %v2410_v15  ;;  %v2414_v44 = vadd.f32 1.0, %v5178_v0  ;;  %v2386_v56 = vmul.f32 1.442695, %v2328_v31  ;;  %5191 = vrcp.f32 %v7485_v8 }
 0x390   :  { %v5184_v2 = vpop.eup %5183  ;;  %v7503_v21 = vmul.f32 %v2411_v27, %v2411_v27  ;;  %v2415_v58 = vadd.f32 1.0, %v5180_v11  ;;  %v2376_v25 = vmul.f32 1.442695, %v2323_v46  ;;  %v2568_v48 = vsub.f32 2.0, %v2536_v9 }
 0x391   :  { %v2537_v35 = vmul.f32 %v5182_v42, %v7432_v50  ;;  %v7506_v12 = vmul.f32 %v2416_v1, %v2416_v1  ;;  %5193 = vpow2.f32 %v2374_v62  ;;  %v7510_v10 = vpop.f32.mrf.mxu2  ;;  %v7513_v15 = vmul.f32 %v7397_v29, %v2596_v18 }
 0x392   :  { %10200 = vst [vmem:[#allocation204_spill] sm:$0xff] %v7503_v21  ;;  %v5186_v63 = vpop.eup %5185  ;;  %5195 = vrcp.f32 %v7496_v20  ;;  %v7516_v31 = vmul.f32 %v2417_v3, %v2417_v3  ;;  %v2420_v11 = vadd.f32 1.0, %v5184_v2  ;;  %v2562_v50 = vsub.f32 2.0, %v7481_v6  ;;  %v7526_v9 = vpop.f32.mrf.mxu3 }
 0x393   :  { %10201 = vst [vmem:[#allocation205_spill] sm:$0xff] %v7510_v10  ;;  %v7518_v0 = vpop.eup %5187  ;;  %v7522_v27 = vadd.f32 1.0, %v7500_v55  ;;  %v7524_v46 = vmul.f32 %v2414_v44, %v2414_v44  ;;  %5197 = vpow2.f32 %v2386_v56  ;;  %v7531_v29 = vadd.f32 1.0, %v7503_v21 }
 0x394   :  { %10202 = vst [vmem:[#allocation206_spill] sm:$0xff] %v7513_v15  ;;  %v7528_v1 = vpop.eup %5189  ;;  %v7533_v18 = vmul.f32 %v2415_v58, %v2415_v58  ;;  %v2421_v62 = vadd.f32 1.0, %v5186_v63  ;;  %5199 = vpow2.f32 %v2376_v25  ;;  %v2563_v3 = vsub.f32 2.0, %v2531_v49  ;;  %v7585_v36 = vpop.f32.mrf.mxu0 }
 0x395   :  { %10203 = vst [vmem:[#allocation207_spill] sm:$0xff] %v7526_v9  ;;  %v2600_v6 = vmul.f32 %v7445_v30, %v2568_v48  ;;  %v2569_v2 = vsub.f32 2.0, %v2537_v35  ;;  %v7537_v15 = vadd.f32 1.0, %v7506_v12  ;;  %v7539_v44 = vpop.eup %5191  ;;  %v7542_v56 = vmul.f32 %v7407_v19, %v2597_v4 }
 0x396   :  { %v7546_v22 = vmul.f32 %v7518_v0, %v7465_v24  ;;  %v7549_v58 = vadd.f32 1.0, %v7516_v31  ;;  %v7551_v25 = vmul.f32 %v2420_v11, %v2420_v11  ;;  %v7555_v35 = vmul.f32 %v7528_v1, %v7475_v17 }
 0x397   :  { %10204 = vst [vmem:[#allocation208_spill] sm:$0xff] %v7542_v56  ;;  %v5194_v49 = vpop.eup %5193  ;;  %5201 = vrcp.f32 %v7522_v27  ;;  %v7559_v30 = vadd.f32 1.0, %v7524_v46  ;;  %v2329_v19 = vmin.f32 %v7508_v47, 20.0  ;;  %v7565_v24 = vmul.f32 %v7435_v45, %v2562_v50 }
 0x398   :  { %v7562_v48 = vpop.eup %5195  ;;  %5203 = vrcp.f32 %v7531_v29  ;;  %v7569_v4 = vadd.f32 1.0, %v7533_v18  ;;  %v7571_v63 = vmul.f32 %v2421_v62, %v2421_v62  ;;  %v7574_v11 = vmul.f32 %v7439_v26, %v2563_v3  ;;  %v7591_v3 = vpop.f32.mrf.mxu1 }
 0x399   :  { %10205 = vst [vmem:[#allocation209_spill] sm:$0xff] %v7565_v24  ;;  %v5198_v17 = vpop.eup %5197  ;;  %v7577_v56 = vmul.f32 %v7472_v60, %v2600_v6  ;;  %v2601_v16 = vmul.f32 %v5182_v42, %v2569_v2  ;;  %5205 = vrcp.f32 %v7537_v15  ;;  %v2566_v45 = vsub.f32 2.0, %v7546_v22  ;;  %v7593_v6 = vpop.f32.mrf.mxu2 }
 0x39a   :  { %10206 = vst [vmem:[#allocation210_spill] sm:$0xff] %v7574_v11  ;;  %v5200_v61 = vpop.eup %5199  ;;  %5207 = vrcp.f32 %v7549_v58  ;;  %v7583_v50 = vadd.f32 1.0, %v7551_v25  ;;  %v2418_v62 = vadd.f32 1.0, %v5194_v49  ;;  %v2567_v26 = vsub.f32 2.0, %v7555_v35  ;;  %v7606_v32 = vpop.f32.mrf.mxu3 }
 0x39b   :  { %10207 = vst [vmem:[#allocation211_spill] sm:$0xff] %v7577_v56  ;;  %v2540_v60 = vmul.f32 %v7539_v44, %v7485_v8  ;;  %5209 = vrcp.f32 %v7559_v30  ;;  %v2388_v42 = vmul.f32 1.442695, %v2329_v19  ;;  %v2541_v22 = vmul.f32 %v7562_v48, %v7496_v20 }
 0x39c   :  { %5211 = vrcp.f32 %v7569_v4  ;;  %v7599_v2 = vadd.f32 1.0, %v7571_v63  ;;  %v2424_v49 = vadd.f32 1.0, %v5198_v17  ;;  %v2419_v11 = vadd.f32 1.0, %v5200_v61 }
 0x39d   :  { %v7601_v35 = vpop.eup %5201  ;;  %v2326_v8 = vmin.f32 %v7510_v10, 20.0  ;;  %v2327_v19 = vmin.f32 %v7526_v9, 20.0  ;;  %v2332_v34 = vmin.f32 %v7585_v36, 20.0  ;;  %5213 = vrcp.f32 %v7583_v50 }
 0x39e   :  { %v7608_v56 = vpop.eup %5203  ;;  %v7611_v20 = vmul.f32 %v2418_v62, %v2418_v62  ;;  %v2333_v33 = vmin.f32 %v7591_v3, 20.0  ;;  %v2330_v17 = vmin.f32 %v7593_v6, 20.0  ;;  %5215 = vpow2.f32 %v2388_v42 }
 0x39f   :  { %v7615_v40 = vpop.eup %5205  ;;  %v2382_v61 = vmul.f32 1.442695, %v2326_v8  ;;  %v2384_v24 = vmul.f32 1.442695, %v2327_v19  ;;  %v2394_v28 = vmul.f32 1.442695, %v2332_v34  ;;  %5217 = vrcp.f32 %v7599_v2 }
 0x3a0   :  { %v7617_v51 = vpop.eup %5207  ;;  %v7620_v43 = vmul.f32 %v2424_v49, %v2424_v49  ;;  %v2396_v7 = vmul.f32 1.442695, %v2333_v33  ;;  %v2331_v62 = vmin.f32 %v7606_v32, 20.0  ;;  %v7626_v41 = vmul.f32 %v7492_v57, %v2601_v16 }
 0x3a1   :  { %v7623_v13 = vpop.eup %5209  ;;  %v7628_v39 = vmul.f32 %v2419_v11, %v2419_v11  ;;  %5219 = vpow2.f32 %v2382_v61  ;;  %v2390_v42 = vmul.f32 1.442695, %v2330_v17  ;;  %v2572_v34 = vsub.f32 2.0, %v2540_v60 }
 0x3a2   :  { %10208 = vst [vmem:[#allocation212_spill] sm:$0xff] %v7626_v41  ;;  %v7630_v8 = vpop.eup %5211  ;;  %v2538_v19 = vmul.f32 %v7601_v35, %v7522_v27  ;;  %5221 = vpow2.f32 %v2384_v24  ;;  %v2392_v49 = vmul.f32 1.442695, %v2331_v62  ;;  %v7635_v33 = vmul.f32 %v7518_v0, %v2566_v45 }
 0x3a3   :  { %v4583_v5 = vadd.f32 -1.0, %v7457_v14  ;;  %v7639_v16 = vadd.f32 1.0, %v7611_v20  ;;  %5223 = vpow2.f32 %v2394_v28  ;;  %v7641_v57 = vpop.eup %5213  ;;  %v7644_v11 = vmul.f32 %v7528_v1, %v2567_v26 }
 0x3a4   :  { %10209 = vst [vmem:[#allocation213_spill] sm:$0xff] %v7635_v33  ;;  %v2573_v60 = vsub.f32 2.0, %v2541_v22  ;;  %v2488_v17 = vadd.f32 1.0, %v7620_v43  ;;  %5225 = vpow2.f32 %v2396_v7  ;;  %v5216_v27 = vpop.eup %5215  ;;  %v4584_v24 = vadd.f32 -1.0, %v7477_v59 }
 0x3a5   :  { %10210 = vst [vmem:[#allocation214_spill] sm:$0xff] %v7644_v11  ;;  %v2539_v0 = vmul.f32 %v7608_v56, %v7531_v29  ;;  %v7651_v14 = vadd.f32 1.0, %v7628_v39  ;;  %5227 = vpow2.f32 %v2390_v42  ;;  %v7653_v28 = vpop.eup %5217  ;;  %v2604_v45 = vmul.f32 %v7539_v44, %v2572_v34 }
 0x3a6   :  { %v2570_v1 = vsub.f32 2.0, %v2538_v19  ;;  %v2425_v26 = vadd.f32 1.0, %v5216_v27  ;;  %5229 = vpow2.f32 %v2392_v49  ;;  %v7657_v7 = vadd.f32 -1.0, %v7506_v12 }
 0x3a7   :  { %v5220_v22 = vpop.eup %5219  ;;  %v7660_v59 = vadd.f32 -1.0, %v7516_v31  ;;  %v7663_v29 = vadd.f32 -1.0, %v7524_v46  ;;  %5231 = vrcp.f32 %v7639_v16  ;;  %v2605_v62 = vmul.f32 %v7562_v48, %v2573_v60 }
 0x3a8   :  { %v5222_v61 = vpop.eup %5221  ;;  %5233 = vrcp.f32 %v2488_v17  ;;  %v7667_v44 = vmul.f32 %v2425_v26, %v2425_v26  ;;  %v2422_v42 = vadd.f32 1.0, %v5220_v22  ;;  %v2571_v19 = vsub.f32 2.0, %v2539_v0 }
 0x3a9   :  { %v5224_v34 = vpop.eup %5223  ;;  %v2544_v12 = vmul.f32 %v7615_v40, %v7537_v15  ;;  %5235 = vrcp.f32 %v7651_v14  ;;  %v2423_v31 = vadd.f32 1.0, %v5222_v61  ;;  %v7672_v46 = vmul.f32 %v4583_v5, %v2604_v45 }
 0x3aa   :  { %v5226_v49 = vpop.eup %5225  ;;  %v7675_v27 = vmul.f32 %v7601_v35, %v2570_v1  ;;  %v7678_v48 = vadd.f32 -1.0, %v7533_v18  ;;  %v2489_v60 = vadd.f32 1.0, %v7667_v44  ;;  %v2545_v0 = vmul.f32 %v7617_v51, %v7549_v58 }
 0x3ab   :  { %10211 = vst [vmem:[#allocation215_spill] sm:$0xff] %v7672_v46  ;;  %v5228_v26 = vpop.eup %5227  ;;  %v7683_v22 = vmul.f32 %v2422_v42, %v2422_v42  ;;  %v7685_v15 = vmul.f32 %v2423_v31, %v2423_v31  ;;  %v2428_v61 = vadd.f32 1.0, %v5224_v34  ;;  %v7687_v5 = vmul.f32 %v4584_v24, %v2605_v62 }
 0x3ac   :  { %10212 = vst [vmem:[#allocation216_spill] sm:$0xff] %v7675_v27  ;;  %v5230_v41 = vpop.eup %5229  ;;  %5237 = vrcp.f32 %v2489_v60  ;;  %v2429_v35 = vadd.f32 1.0, %v5226_v49  ;;  %v2426_v45 = vadd.f32 1.0, %v5228_v26  ;;  %v7690_v18 = vmul.f32 %v7608_v56, %v2571_v19 }
 0x3ad   :  { %10213 = vst [vmem:[#allocation217_spill] sm:$0xff] %v7678_v48  ;;  %v5232_v1 = vpop.eup %5231  ;;  %v2576_v11 = vsub.f32 2.0, %v2544_v12  ;;  %v2486_v46 = vadd.f32 1.0, %v7683_v22  ;;  %v2487_v58 = vadd.f32 1.0, %v7685_v15  ;;  %v2542_v31 = vmul.f32 %v7623_v13, %v7559_v30 }
 0x3ae   :  { %10214 = vst [vmem:[#allocation218_spill] sm:$0xff] %v7687_v5  ;;  %v5234_v42 = vpop.eup %5233  ;;  %v2460_v34 = vmul.f32 %v2428_v61, %v2428_v61  ;;  %v7696_v33 = vmul.f32 %v2429_v35, %v2429_v35  ;;  %v7698_v24 = vmul.f32 %v2426_v45, %v2426_v45  ;;  %v2577_v49 = vsub.f32 2.0, %v2545_v0 }
 0x3af   :  { %10215 = vst [vmem:[#allocation219_spill] sm:$0xff] %v7690_v18  ;;  %v5236_v62 = vpop.eup %5235  ;;  %v2543_v56 = vmul.f32 %v7630_v8, %v7569_v4  ;;  %5239 = vrcp.f32 %v2486_v46  ;;  %v2427_v19 = vadd.f32 1.0, %v5230_v41  ;;  %v2548_v12 = vmul.f32 %v7641_v57, %v7583_v50 }
 0x3b0   :  { %5241 = vrcp.f32 %v2487_v58  ;;  %v2492_v26 = vadd.f32 1.0, %v2460_v34  ;;  %v2493_v5 = vadd.f32 1.0, %v7696_v33  ;;  %v2549_v30 = vmul.f32 %v7653_v28, %v7599_v2 }
 0x3b1   :  { %v2552_v61 = vmul.f32 %v5234_v42, %v2488_v17  ;;  %v2490_v35 = vadd.f32 1.0, %v7698_v24  ;;  %v7708_v45 = vmul.f32 %v2427_v19, %v2427_v19  ;;  %v2574_v18 = vsub.f32 2.0, %v2542_v31 }
 0x3b2   :  { %v5238_v0 = vpop.eup %5237  ;;  %v2546_v4 = vmul.f32 %v5232_v1, %v7639_v16  ;;  %v2547_v41 = vmul.f32 %v5236_v62, %v7651_v14  ;;  %5243 = vrcp.f32 %v2492_v26  ;;  %v2575_v50 = vsub.f32 2.0, %v2543_v56 }
 0x3b3   :  { %v4591_v54 = vadd.f32 -1.0, %v7551_v25  ;;  %5245 = vrcp.f32 %v2493_v5  ;;  %v2491_v38 = vadd.f32 1.0, %v7708_v45  ;;  %v7715_v2 = vmul.f32 %v7615_v40, %v2576_v11 }
 0x3b4   :  { %v2580_v17 = vsub.f32 2.0, %v2548_v12  ;;  %v2553_v27 = vmul.f32 %v5238_v0, %v2489_v60  ;;  %5247 = vrcp.f32 %v2490_v35  ;;  %v7718_v31 = vmul.f32 %v7617_v51, %v2577_v49 }
 0x3b5   :  { %v5240_v19 = vpop.eup %5239  ;;  %v2581_v16 = vsub.f32 2.0, %v2549_v30  ;;  %v2584_v37 = vsub.f32 2.0, %v2552_v61  ;;  %5249 = vrcp.f32 %v2491_v38  ;;  %v7721_v56 = vmul.f32 %v7623_v13, %v2574_v18 }
 0x3b6   :  { %v5242_v14 = vpop.eup %5241  ;;  %v2578_v25 = vsub.f32 2.0, %v2546_v4  ;;  %v2579_v9 = vsub.f32 2.0, %v2547_v41  ;;  %v2550_v53 = vmul.f32 %v5240_v19, %v2486_v46  ;;  %v7724_v40 = vmul.f32 %v7630_v8, %v2575_v50 }
 0x3b7   :  { %v4592_v11 = vadd.f32 -1.0, %v7571_v63  ;;  %v4589_v60 = vadd.f32 -1.0, %v7611_v20  ;;  %v2551_v12 = vmul.f32 %v5242_v14, %v2487_v58  ;;  %v2612_v49 = vmul.f32 %v7641_v57, %v2580_v17 }
 0x3b8   :  { %10216 = vst [vmem:[#allocation220_spill] sm:$0xff] %v7724_v40  ;;  %v5244_v51 = vpop.eup %5243  ;;  %v4590_v30 = vadd.f32 -1.0, %v7628_v39  ;;  %v4595_v61 = vadd.f32 -1.0, %v7620_v43  ;;  %v2585_v13 = vsub.f32 2.0, %v2553_v27  ;;  %v2613_v4 = vmul.f32 %v7653_v28, %v2581_v16 }
 0x3b9   :  { %v5246_v18 = vpop.eup %5245  ;;  %v2616_v46 = vmul.f32 %v5234_v42, %v2584_v37  ;;  %v2582_v41 = vsub.f32 2.0, %v2550_v53  ;;  %v2556_v8 = vmul.f32 %v5244_v51, %v2492_v26  ;;  %v2610_v48 = vmul.f32 %v5232_v1, %v2578_v25 }
 0x3ba   :  { %v5248_v50 = vpop.eup %5247  ;;  %v2611_v63 = vmul.f32 %v5236_v62, %v2579_v9  ;;  %v2583_v40 = vsub.f32 2.0, %v2551_v12  ;;  %v2557_v20 = vmul.f32 %v5246_v18, %v2493_v5  ;;  %v4596_v21 = vadd.f32 -1.0, %v7667_v44 }
 0x3bb   :  { %v5250_v58 = vpop.eup %5249  ;;  %v2588_v57 = vsub.f32 2.0, %v2556_v8  ;;  %v4599_v17 = vadd.f32 -1.0, %v2460_v34  ;;  %v2554_v39 = vmul.f32 %v5248_v50, %v2490_v35  ;;  %v2617_v10 = vmul.f32 %v5238_v0, %v2585_v13 }
 0x3bc   :  { %v2589_v43 = vsub.f32 2.0, %v2557_v20  ;;  %v4600_v27 = vadd.f32 -1.0, %v7696_v33  ;;  %v2555_v52 = vmul.f32 %v5250_v58, %v2491_v38  ;;  %v2680_v28 = vmul.f32 %v4595_v61, %v2616_v46  ;;  %v10229_v20 = vld [vmem:[#allocation219_spill] sm:$0xff] }
 0x3bd   :  { %v2614_v37 = vmul.f32 %v5240_v19, %v2582_v41  ;;  %v2620_v53 = vmul.f32 %v5244_v51, %v2588_v57  ;;  %v2586_v42 = vsub.f32 2.0, %v2554_v39  ;;  %v4593_v1 = vadd.f32 -1.0, %v7683_v22  ;;  %v10227_v41 = vld [vmem:[#allocation198_spill] sm:$0xff]  ;;  %v10230_v57 = vld [vmem:[#allocation189_spill] sm:$0xff]  ;;  %v10231_v39 = vld [vmem:[#allocation203_spill] sm:$0xff] }
 0x3be   :  { %v2615_v9 = vmul.f32 %v5242_v14, %v2583_v40  ;;  %v2621_v62 = vmul.f32 %v5246_v18, %v2589_v43  ;;  %v2587_v5 = vsub.f32 2.0, %v2555_v52  ;;  %v4594_v26 = vadd.f32 -1.0, %v7685_v15 }
 0x3bf   :  { %v2684_v44 = vmul.f32 %v4599_v17, %v2620_v53  ;;  %v2618_v16 = vmul.f32 %v5248_v50, %v2586_v42  ;;  %v4597_v34 = vadd.f32 -1.0, %v7698_v24  ;;  %v2681_v35 = vmul.f32 %v4596_v21, %v2617_v10  ;;  %v10228_v50 = vld [vmem:[#allocation197_spill] sm:$0xff] }
 0x3c0   :  { %v2685_v0 = vmul.f32 %v4600_v27, %v2621_v62  ;;  %v2619_v25 = vmul.f32 %v5250_v58, %v2587_v5  ;;  %v4598_v38 = vadd.f32 -1.0, %v7708_v45  ;;  %v2676_v33 = vmul.f32 %v4591_v54, %v2612_v49  ;;  %v10232_v27 = vld [vmem:[#allocation188_spill] sm:$0xff]  ;;  %v10234_v42 = vld [vmem:[#allocation181_spill] sm:$0xff] }
 0x3c1   :  { %v2678_v19 = vmul.f32 %v4593_v1, %v2614_v37  ;;  %v2716_v12 = vmul.f32 %v2684_v44, %v7585_v36  ;;  %v2682_v51 = vmul.f32 %v4597_v34, %v2618_v16  ;;  %v2677_v22 = vmul.f32 %v4592_v11, %v2613_v4  ;;  %v10226_v4 = vld [vmem:[#allocation187_spill] sm:$0xff]  ;;  %v10233_v37 = vld [vmem:[#allocation213_spill] sm:$0xff]  ;;  %v10236_v62 = vld [vmem:[#allocation192_spill] sm:$0xff] }
 0x3c2   :  { %v2679_v14 = vmul.f32 %v4594_v26, %v2615_v9  ;;  %v2717_v52 = vmul.f32 %v2685_v0, %v7591_v3  ;;  %v2683_v40 = vmul.f32 %v4598_v38, %v2619_v25  ;;  %v2672_v15 = vmul.f32 %v7657_v7, %v7715_v2  ;;  %v10235_v1 = vld [vmem:[#allocation215_spill] sm:$0xff]  ;;  %v10237_v26 = vld [vmem:[#allocation214_spill] sm:$0xff]  ;;  %v10240_v0 = vld [vmem:[#allocation193_spill] sm:$0xff] }
 0x3c3   :  { %v2674_v61 = vmul.f32 %v4589_v60, %v2610_v48  ;;  %v2712_v10 = vmul.f32 %v2680_v28, %v7459_v23  ;;  %v2714_v21 = vmul.f32 %v2682_v51, %v7593_v6  ;;  %2797 = vmatpush.msra.mxu0 %v2716_v12  ;;  %v2673_v54 = vmul.f32 %v7660_v59, %v7718_v31  ;;  %v10217_v48 = vld [vmem:[#allocation194_spill] sm:$0xff]  ;;  %v10218_v23 = vld [vmem:[#allocation205_spill] sm:$0xff]  ;;  %v10219_v6 = vld [vmem:[#allocation204_spill] sm:$0xff] }
 0x3c4   :  { %v2675_v24 = vmul.f32 %v4590_v30, %v2611_v63  ;;  %v2713_v36 = vmul.f32 %v2681_v35, %v7508_v47  ;;  %v2715_v45 = vmul.f32 %v2683_v40, %v7606_v32  ;;  %2826 = vmatpush.msra.mxu1 %v2717_v52  ;;  %v4581_v3 = vadd.f32 -1.0, %v7500_v55  ;;  %v10220_v59 = vld [vmem:[#allocation220_spill] sm:$0xff]  ;;  %v10221_v31 = vld [vmem:[#allocation217_spill] sm:$0xff]  ;;  %v10222_v47 = vld [vmem:[#allocation195_spill] sm:$0xff] }
 0x3c5   :  { %v2670_v7 = vmul.f32 %v7663_v29, %v7721_v56  ;;  %v2708_v2 = vmul.f32 %v2676_v33, %v10217_v48  ;;  %v2710_v11 = vmul.f32 %v2678_v19, %v10218_v23  ;;  %2798 = vmatpush.msra.mxu0 %v2712_v10  ;;  %2739 = vmatpush.msrb.mxu2 %v2714_v21  ;;  %v4582_v60 = vadd.f32 -1.0, %v10219_v6  ;;  %v10223_v32 = vld [vmem:[#allocation207_spill] sm:$0xff]  ;;  %v10224_v55 = vld [vmem:[#allocation196_spill] sm:$0xff]  ;;  %v10239_v34 = vld [vmem:[#allocation218_spill] sm:$0xff] }
 0x3c6   :  { %v2671_v49 = vmul.f32 %v10221_v31, %v10220_v59  ;;  %v2709_v30 = vmul.f32 %v2677_v22, %v10222_v47  ;;  %v2711_v13 = vmul.f32 %v2679_v14, %v10223_v32  ;;  %2827 = vmatpush.msra.mxu1 %v2713_v36  ;;  %2768 = vmatpush.msrb.mxu3 %v2715_v45  ;;  %v4577_v18 = vadd.f32 -1.0, %v10224_v55  ;;  %v10225_v29 = vld [vmem:[#allocation216_spill] sm:$0xff]  ;;  %v10238_v16 = vld [vmem:[#allocation183_spill] sm:$0xff]  ;;  %v10241_v38 = vld [vmem:[#allocation209_spill] sm:$0xff] }
 0x3c7   :  { %v2666_v56 = vmul.f32 %v4581_v3, %v10225_v29  ;;  %v2704_v46 = vmul.f32 %v2672_v15, %v10226_v4  ;;  %v2706_v8 = vmul.f32 %v2674_v61, %v10227_v41  ;;  %2799 = vmatpush.msra.mxu0 %v2708_v2  ;;  %2740 = vmatpush.msrb.mxu2 %v2710_v11  ;;  %v4578_v63 = vadd.f32 -1.0, %v10228_v50  ;;  %v10242_v19 = vld [vmem:[#allocation190_spill] sm:$0xff]  ;;  %v10243_v51 = vld [vmem:[#allocation177_spill] sm:$0xff]  ;;  %v10244_v22 = vld [vmem:[#allocation211_spill] sm:$0xff] }
 0x3c8   :  { %v2667_v58 = vmul.f32 %v4582_v60, %v10229_v20  ;;  %v2705_v17 = vmul.f32 %v2673_v54, %v10230_v57  ;;  %v2707_v43 = vmul.f32 %v2675_v24, %v10231_v39  ;;  %2828 = vmatpush.msra.mxu1 %v2709_v30  ;;  %2769 = vmatpush.msrb.mxu3 %v2711_v13  ;;  %v4573_v28 = vadd.f32 -1.0, %v10232_v27  ;;  %v10245_v52 = vld [vmem:[#allocation185_spill] sm:$0xff]  ;;  %v10246_v15 = vld [vmem:[#allocation200_spill] sm:$0xff]  ;;  %v10247_v61 = vld [vmem:[#allocation191_spill] sm:$0xff] }
 0x3c9   :  { %v2662_v53 = vmul.f32 %v4577_v18, %v10233_v37  ;;  %v2700_v9 = vmul.f32 %v10235_v1, %v10234_v42  ;;  %v2702_v5 = vmul.f32 %v2670_v7, %v10236_v62  ;;  %2800 = vmatpush.msra.mxu0 %v2704_v46  ;;  %2741 = vmatpush.msrb.mxu2 %v2706_v8  ;;  %v4574_v12 = vadd.f32 -1.0, %v10242_v19  ;;  %v10248_v21 = vld [vmem:[#allocation182_spill] sm:$0xff]  ;;  %v10250_v36 = vld [vmem:[#allocation212_spill] sm:$0xff]  ;;  %v10253_v23 = vld [vmem:[#allocation173_spill] sm:$0xff] }
 0x3ca   :  { %v2663_v44 = vmul.f32 %v4578_v63, %v10237_v26  ;;  %v2701_v35 = vmul.f32 %v10239_v34, %v10238_v16  ;;  %v2703_v25 = vmul.f32 %v2671_v49, %v10240_v0  ;;  %2829 = vmatpush.msra.mxu1 %v2705_v17  ;;  %2770 = vmatpush.msrb.mxu3 %v2707_v43  ;;  %v4569_v54 = vadd.f32 -1.0, %v10248_v21  ;;  %v10249_v24 = vld [vmem:[#allocation178_spill] sm:$0xff]  ;;  %v10252_v48 = vld [vmem:[#allocation184_spill] sm:$0xff]  ;;  %v10256_v31 = vld [vmem:[#allocation179_spill] sm:$0xff] }
 0x3cb   :  { %v2658_v33 = vmul.f32 %v4573_v28, %v10241_v38  ;;  %v2696_v14 = vmul.f32 %v10244_v22, %v10243_v51  ;;  %v2698_v40 = vmul.f32 %v2666_v56, %v10245_v52  ;;  %2801 = vmatpush.msra.mxu0 %v2700_v9  ;;  %2742 = vmatpush.msrb.mxu2 %v2702_v5  ;;  %v10251_v3 = vld [vmem:[#allocation186_spill] sm:$0xff]  ;;  %v4570_v2 = vadd.f32 -1.0, %v10252_v48  ;;  %v10257_v47 = vld [vmem:[#allocation201_spill] sm:$0xff]  ;;  %v10259_v13 = vld [vmem:[#allocation208_spill] sm:$0xff] }
 0x3cc   :  { %v2657_v10 = vmul.f32 %v10247_v61, %v10246_v15  ;;  %v2697_v45 = vmul.f32 %v10250_v36, %v10249_v24  ;;  %v2699_v7 = vmul.f32 %v2667_v58, %v10251_v3  ;;  %2830 = vmatpush.msra.mxu1 %v2701_v35  ;;  %2771 = vmatpush.msrb.mxu3 %v2703_v25  ;;  %v10254_v11 = vld [vmem:[#allocation206_spill] sm:$0xff]  ;;  %v10260_v18 = vld [vmem:[#allocation180_spill] sm:$0xff]  ;;  %v10261_v56 = vld [vmem:[#allocation169_spill] sm:$0xff] }
 0x3cd   :  { %v2692_v6 = vmul.f32 %v10254_v11, %v10253_v23  ;;  %v10255_v60 = vld [vmem:[#allocation210_spill] sm:$0xff]  ;;  %v2694_v49 = vmul.f32 %v2662_v53, %v10256_v31  ;;  %2802 = vmatpush.msra.mxu0 %v2696_v14  ;;  %2743 = vmatpush.msrb.mxu2 %v2698_v40  ;;  %v2654_v30 = vmul.f32 %v4569_v54, %v10257_v47  ;;  %v10262_v4 = vld [vmem:[#allocation199_spill] sm:$0xff]  ;;  %v2298_v20 = vld [vmem:[#allocation7] sm:$0xff] }
 0x3ce   :  { %v2659_v59 = vmul.f32 %v4574_v12, %v10255_v60  ;;  %v10258_v32 = vld [vmem:[#allocation174_spill] sm:$0xff]  ;;  %v2695_v29 = vmul.f32 %v2663_v44, %v10260_v18  ;;  %2831 = vmatpush.msra.mxu1 %v2697_v45  ;;  %2772 = vmatpush.msrb.mxu3 %v2699_v7  ;;  %v2688_v46 = vmul.f32 %v10262_v4, %v10261_v56  ;;  %v10264_v50 = vld [vmem:[#allocation175_spill] sm:$0xff]  ;;  %v10266_v17 = vld [vmem:[#allocation176_spill] sm:$0xff] }
 0x3cf   :  { %v2693_v55 = vmul.f32 %v10259_v13, %v10258_v32  ;;  %v10263_v41 = vld [vmem:[#allocation202_spill] sm:$0xff]  ;;  %v2690_v63 = vmul.f32 %v2658_v33, %v10264_v50  ;;  %2803 = vmatpush.msra.mxu0 %v2692_v6  ;;  %2744 = vmatpush.msrb.mxu2 %v2694_v49  ;;  %v10267_v43 = vld [vmem:[#allocation171_spill] sm:$0xff]  ;;  %v10268_v28 = vld [vmem:[#allocation172_spill] sm:$0xff] }
 0x3d0   :  { %v2655_v8 = vmul.f32 %v4570_v2, %v10263_v41  ;;  %v10265_v58 = vld [vmem:[#allocation170_spill] sm:$0xff]  ;;  %2773 = vmatpush.msrb.mxu3 %v2695_v29  ;;  %v2691_v39 = vmul.f32 %v2659_v59, %v10266_v17  ;;  %v2686_v27 = vmul.f32 %v2654_v30, %v10267_v43  ;;  %v10269_v53 = vld [vmem:[#allocation21_spill] sm:$0xff]  ;;  %v10271_v1 = vld [vmem:[#allocation24_spill] sm:$0xff] }
 0x3d1   :  { %v2689_v57 = vmul.f32 %v2657_v10, %v10265_v58  ;;  %2832 = vmatpush.msra.mxu1 %v2693_v55  ;;  %2804 = vmatpush.msra.mxu0 %v2688_v46  ;;  %v2299_v42 = vld [vmem:[#allocation7 + $0x8] sm:$0xff]  ;;  %v2300_v9 = vld [vmem:[#allocation7 + $0x10] sm:$0xff]  ;;  %v2301_v62 = vld [vmem:[#allocation7 + $0x18] sm:$0xff] }
 0x3d2   :  { %2745 = vmatpush.msrb.mxu2 %v2690_v63  ;;  %4612 = vmatmul.msk.f32.vlgmr.msra.gmra.mxu0 %vm2718_vm15, %v2298_v20  ;;  %v2687_v37 = vmul.f32 %v2655_v8, %v10268_v28  ;;  %v10273_v5 = vld [vmem:[#allocation89_spill] sm:$0xff]  ;;  %v10276_v35 = vld [vmem:[#allocation90_spill] sm:$0xff]  ;;  %v10278_v38 = vld [vmem:[#allocation91_spill] sm:$0xff] }
 0x3d3   :  { %2833 = vmatpush.msra.mxu1 %v2689_v57  ;;  %2774 = vmatpush.msrb.mxu3 %v2691_v39  ;;  %v10274_v26 = vld [vmem:[#allocation121_spill] sm:$0xff]  ;;  %v10277_v0 = vld [vmem:[#allocation122_spill] sm:$0xff]  ;;  %v10279_v33 = vld [vmem:[#allocation123_spill] sm:$0xff] }
 0x3d4   :  { %4617 = vmatmul.msk.f32.vlgmr.msra.gmra.mxu1 %vm2718_vm15, %v2298_v20  ;;  %2746 = vmatpush.msrb.mxu2 %v2686_v27  ;;  %v1363_v44 = vmul.f32 %v10274_v26, %v10273_v5  ;;  %v10275_v16 = vld [vmem:[#allocation137_spill] sm:$0xff]  ;;  %v1364_v25 = vmul.f32 %v10277_v0, %v10276_v35  ;;  %v1361_v19 = vmul.f32 %v10279_v33, %v10278_v38  ;;  %v10280_v12 = vld [vmem:[#allocation92_spill] sm:$0xff]  ;;  %v10282_v14 = vld [vmem:[#allocation138_spill] sm:$0xff] }
 0x3d5   :  { %4626 = vmatpush.msk.msrb.mxu1 %vm10270_vm1, %v10269_v53  ;;  %2775 = vmatpush.msrb.mxu3 %v2687_v37  ;;  %v10281_v51 = vld [vmem:[#allocation124_spill] sm:$0xff]  ;;  %v10283_v40 = vld [vmem:[#allocation93_spill] sm:$0xff]  ;;  %v10285_v21 = vld [vmem:[#allocation139_spill] sm:$0xff] }
 0x3d6   :  { %4602 = vmatmul.msk.f32.vlgmr.msrb.gmra.mxu2 %vm2718_vm15, %v2298_v20  ;;  %4607 = vmatmul.msk.f32.vlgmr.msrb.gmra.mxu3 %vm2718_vm15, %v2298_v20  ;;  %v7826_v34 = vadd.f32 %v10275_v16, %v1363_v44  ;;  %v1362_v22 = vmul.f32 %v10281_v51, %v10280_v12  ;;  %v7835_v52 = vadd.f32 %v10282_v14, %v1364_v25  ;;  %v10284_v15 = vld [vmem:[#allocation125_spill] sm:$0xff]  ;;  %v10286_v24 = vld [vmem:[#allocation140_spill] sm:$0xff]  ;;  %v10288_v59 = vld [vmem:[#allocation95_spill] sm:$0xff] }
 0x3d7   :  { %4621 = vmatpush.msk.msra.mxu3 %vm10272_vm3, %v10271_v1  ;;  %v1367_v61 = vmul.f32 %v10284_v15, %v10283_v40  ;;  %v7841_v54 = vadd.f32 %v10285_v21, %v1361_v19  ;;  %v10287_v45 = vld [vmem:[#allocation141_spill] sm:$0xff]  ;;  %v10289_v31 = vld [vmem:[#allocation127_spill] sm:$0xff]  ;;  %v10290_v30 = vld [vmem:[#allocation96_spill] sm:$0xff] }
 0x3d8   :  { %v1523_v10 = vmin.f32 %v7826_v34, 20.0  ;;  %v7844_v36 = vadd.f32 %v10286_v24, %v1362_v22  ;;  %v1524_v7 = vmin.f32 %v7835_v52, 20.0  ;;  %v1365_v49 = vmul.f32 %v10289_v31, %v10288_v59  ;;  %v10291_v32 = vld [vmem:[#allocation128_spill] sm:$0xff]  ;;  %v10292_v18 = vld [vmem:[#allocation143_spill] sm:$0xff]  ;;  %v10294_v41 = vld [vmem:[#allocation94_spill] sm:$0xff] }
 0x3d9   :  { %v7847_v3 = vadd.f32 %v10287_v45, %v1367_v61  ;;  %v1521_v2 = vmin.f32 %v7841_v54, 20.0  ;;  %v1366_v13 = vmul.f32 %v10291_v32, %v10290_v30  ;;  %v10293_v56 = vld [vmem:[#allocation144_spill] sm:$0xff]  ;;  %v10295_v8 = vld [vmem:[#allocation126_spill] sm:$0xff]  ;;  %v10296_v20 = vld [vmem:[#allocation101_spill] sm:$0xff] }
 0x3da   :  { %4613 = vmatmul.msk.f32.gmra.mxu0 %vm2718_vm15, %v2299_v42  ;;  %v1541_v48 = vmul.f32 1.442695, %v1523_v10  ;;  %v1522_v23 = vmin.f32 %v7844_v36, 20.0  ;;  %v1543_v6 = vmul.f32 1.442695, %v1524_v7  ;;  %v7858_v29 = vadd.f32 %v10292_v18, %v1365_v49  ;;  %v10297_v58 = vld [vmem:[#allocation133_spill] sm:$0xff] }
 0x3db   :  { %v1527_v11 = vmin.f32 %v7847_v3, 20.0  ;;  %v1537_v60 = vmul.f32 1.442695, %v1521_v2  ;;  %v7861_v4 = vadd.f32 %v10293_v56, %v1366_v13  ;;  %v1368_v50 = vmul.f32 %v10295_v8, %v10294_v41  ;;  %v10298_v17 = vld [vmem:[#allocation142_spill] sm:$0xff]  ;;  %v10299_v28 = vld [vmem:[#allocation97_spill] sm:$0xff]  ;;  %v10305_v14 = vld [vmem:[#allocation99_spill] sm:$0xff] }
 0x3dc   :  { %4618 = vmatmul.msk.f32.gmra.mxu1 %vm2718_vm15, %v2299_v42  ;;  %5251 = vpow2.f32 %v1541_v48  ;;  %v1539_v47 = vmul.f32 1.442695, %v1522_v23  ;;  %v1525_v63 = vmin.f32 %v7858_v29, 20.0  ;;  %v1375_v57 = vmul.f32 %v10297_v58, %v10296_v20  ;;  %v10300_v37 = vld [vmem:[#allocation129_spill] sm:$0xff]  ;;  %v10303_v12 = vld [vmem:[#allocation98_spill] sm:$0xff]  ;;  %v10306_v40 = vld [vmem:[#allocation131_spill] sm:$0xff] }
 0x3dd   :  { %v1549_v55 = vmul.f32 1.442695, %v1527_v11  ;;  %5253 = vpow2.f32 %v1543_v6  ;;  %v7869_v39 = vadd.f32 %v10298_v17, %v1368_v50  ;;  %v1526_v43 = vmin.f32 %v7861_v4, 20.0  ;;  %v10302_v44 = vld [vmem:[#allocation145_spill] sm:$0xff]  ;;  %v10304_v51 = vld [vmem:[#allocation130_spill] sm:$0xff]  ;;  %v10307_v21 = vld [vmem:[#allocation100_spill] sm:$0xff] }
 0x3de   :  { %4603 = vmatmul.msk.f32.gmra.mxu2 %vm2718_vm15, %v2299_v42  ;;  %4608 = vmatmul.msk.f32.gmra.mxu3 %vm2718_vm15, %v2299_v42  ;;  %5255 = vpow2.f32 %v1537_v60  ;;  %v1371_v53 = vmul.f32 %v10300_v37, %v10299_v28  ;;  %v1545_v26 = vmul.f32 1.442695, %v1525_v63  ;;  %v1372_v22 = vmul.f32 %v10304_v51, %v10303_v12  ;;  %v10308_v24 = vld [vmem:[#allocation132_spill] sm:$0xff]  ;;  %v10309_v11 = vld [vmem:[#allocation146_spill] sm:$0xff]  ;;  %v10310_v60 = vld [vmem:[#allocation103_spill] sm:$0xff] }
 0x3df   :  { %5257 = vpow2.f32 %v1539_v47  ;;  %v1528_v25 = vmin.f32 %v7869_v39, 20.0  ;;  %v1547_v38 = vmul.f32 1.442695, %v1526_v43  ;;  %v1369_v15 = vmul.f32 %v10306_v40, %v10305_v14  ;;  %v10311_v59 = vld [vmem:[#allocation135_spill] sm:$0xff]  ;;  %v10313_v13 = vld [vmem:[#allocation104_spill] sm:$0xff]  ;;  %v10318_v40 = vld [vmem:[#allocation102_spill] sm:$0xff] }
 0x3e0   :  { %5259 = vpow2.f32 %v1549_v55  ;;  %v7878_v16 = vadd.f32 %v10302_v44, %v1371_v53  ;;  %v1370_v45 = vmul.f32 %v10308_v24, %v10307_v21  ;;  %v7894_v6 = vadd.f32 %v10309_v11, %v1372_v22  ;;  %v10312_v30 = vld [vmem:[#allocation147_spill] sm:$0xff]  ;;  %v10314_v55 = vld [vmem:[#allocation136_spill] sm:$0xff] }
 0x3e1   :  { %5261 = vpow2.f32 %v1545_v26  ;;  %v1551_v23 = vmul.f32 1.442695, %v1528_v25  ;;  %v1373_v31 = vmul.f32 %v10311_v59, %v10310_v60  ;;  %v7904_v32 = vadd.f32 %v10312_v30, %v1369_v15  ;;  %v10316_v20 = vld [vmem:[#allocation151_spill] sm:$0xff]  ;;  %v10317_v43 = vld [vmem:[#allocation152_spill] sm:$0xff]  ;;  %v10319_v15 = vld [vmem:[#allocation134_spill] sm:$0xff] }
 0x3e2   :  { %4614 = vmatmul.msk.f32.gmra.mxu0 %vm2718_vm15, %v2300_v9  ;;  %v5252_v46 = vpop.eup %5251  ;;  %v1531_v48 = vmin.f32 %v7878_v16, 20.0  ;;  %5263 = vpow2.f32 %v1547_v38  ;;  %v1374_v18 = vmul.f32 %v10314_v55, %v10313_v13  ;;  %v1532_v17 = vmin.f32 %v7894_v6, 20.0 }
 0x3e3   :  { %v5254_v27 = vpop.eup %5253  ;;  %v1571_v42 = vadd.f32 1.0, %v5252_v46  ;;  %v10315_v46 = vld [vmem:[#allocation148_spill] sm:$0xff]  ;;  %v7916_v58 = vadd.f32 %v10316_v20, %v1373_v31  ;;  %5265 = vpow2.f32 %v1551_v23  ;;  %v1529_v53 = vmin.f32 %v7904_v32, 20.0  ;;  %v10320_v23 = vld [vmem:[#allocation150_spill] sm:$0xff] }
 0x3e4   :  { %4619 = vmatmul.msk.f32.gmra.mxu1 %vm2718_vm15, %v2300_v9  ;;  %v5256_v1 = vpop.eup %5255  ;;  %v1572_v0 = vadd.f32 1.0, %v5254_v27  ;;  %v7911_v41 = vadd.f32 %v10315_v46, %v1370_v45  ;;  %v1557_v63 = vmul.f32 1.442695, %v1531_v48  ;;  %v7923_v27 = vadd.f32 %v10317_v43, %v1374_v18 }
 0x3e5   :  { %v5258_v5 = vpop.eup %5257  ;;  %v7881_v33 = vmul.f32 %v1571_v42, %v1571_v42  ;;  %v1569_v19 = vadd.f32 1.0, %v5256_v1  ;;  %v1533_v26 = vmin.f32 %v7916_v58, 20.0  ;;  %v1553_v38 = vmul.f32 1.442695, %v1529_v53 }
 0x3e6   :  { %4604 = vmatmul.msk.f32.gmra.mxu2 %vm2718_vm15, %v2300_v9  ;;  %4609 = vmatmul.msk.f32.gmra.mxu3 %vm2718_vm15, %v2300_v9  ;;  %v10301_v9 = vld [vmem:[#allocation149_spill] sm:$0xff]  ;;  %v5260_v35 = vpop.eup %5259  ;;  %v1570_v61 = vadd.f32 1.0, %v5258_v5  ;;  %v7891_v2 = vmul.f32 %v1572_v0, %v1572_v0  ;;  %v1534_v0 = vmin.f32 %v7923_v27, 20.0 }
 0x3e7   :  { %v1575_v7 = vadd.f32 1.0, %v5260_v35  ;;  %v7899_v49 = vadd.f32 1.0, %v7881_v33  ;;  %v7901_v47 = vmul.f32 %v1569_v19, %v1569_v19  ;;  %v5262_v28 = vpop.eup %5261  ;;  %v1559_v35 = vmul.f32 1.442695, %v1532_v17 }
 0x3e8   :  { %v7908_v56 = vmul.f32 %v1570_v61, %v1570_v61  ;;  %v5264_v42 = vpop.eup %5263  ;;  %v1573_v44 = vadd.f32 1.0, %v5262_v28  ;;  %v1561_v22 = vmul.f32 1.442695, %v1533_v26  ;;  %v1376_v61 = vmul.f32 %v10319_v15, %v10318_v40 }
 0x3e9   :  { %v7913_v50 = vmul.f32 %v1575_v7, %v1575_v7  ;;  %5267 = vrcp.f32 %v7899_v49  ;;  %v1601_v37 = vadd.f32 1.0, %v7901_v47  ;;  %v1574_v25 = vadd.f32 1.0, %v5264_v42  ;;  %v5266_v19 = vpop.eup %5265 }
 0x3ea   :  { %4615 = vmatmul.msk.f32.gmra.mxu0 %vm2718_vm15, %v2301_v62  ;;  %v1602_v1 = vadd.f32 1.0, %v7908_v56  ;;  %v1563_v21 = vmul.f32 1.442695, %v1534_v0  ;;  %v1576_v45 = vadd.f32 1.0, %v5266_v19  ;;  %v7943_v11 = vadd.f32 %v10320_v23, %v1376_v61 }
 0x3eb   :  { %v1607_v5 = vadd.f32 1.0, %v7913_v50  ;;  %v7938_v7 = vmul.f32 %v1574_v25, %v1574_v25 }
 0x3ec   :  { %4620 = vmatmul.msk.f32.gmra.mxu1 %vm2718_vm15, %v2301_v62  ;;  %v7946_v18 = vmul.f32 %v1576_v45, %v1576_v45 }
 0x3ed   :  { %v1606_v46 = vadd.f32 1.0, %v7938_v7 }
 0x3ee   :  { %4605 = vmatmul.msk.f32.gmra.mxu2 %vm2718_vm15, %v2301_v62  ;;  %4610 = vmatmul.msk.f32.gmra.mxu3 %vm2718_vm15, %v2301_v62  ;;  %v7875_v62 = vadd.f32 %v10301_v9, %v1375_v57  ;;  %v7919_v57 = vadd.f32 1.0, %v7891_v2  ;;  %v1530_v9 = vmin.f32 %v7911_v41, 20.0  ;;  %v1608_v26 = vadd.f32 1.0, %v7946_v18 }
 0x3ef   :  { %v5268_v51 = vpop.eup %5267 }
 0x3f0   :  { %v1535_v10 = vmin.f32 %v7875_v62, 20.0  ;;  %v1555_v12 = vmul.f32 1.442695, %v1530_v9  ;;  %v1635_v43 = vmul.f32 %v5268_v51, %v7899_v49 }
 0x3f2   :  { %v1565_v8 = vmul.f32 1.442695, %v1535_v10  ;;  %v7936_v10 = vmul.f32 %v1573_v44, %v1573_v44 }
 0x3f4   :  { %5269 = vpow2.f32 %v1565_v8  ;;  %v1605_v30 = vadd.f32 1.0, %v7936_v10 }
 0x3f5   :  { %5271 = vpow2.f32 %v1557_v63  ;;  %v1536_v63 = vmin.f32 %v7943_v11, 20.0 }
 0x3f6   :  { %5273 = vrcp.f32 %v7919_v57 }
 0x3f7   :  { %5275 = vrcp.f32 %v1601_v37  ;;  %v1567_v25 = vmul.f32 1.442695, %v1536_v63 }
 0x3f8   :  { %5277 = vrcp.f32 %v1602_v1 }
 0x3f9   :  { %5279 = vrcp.f32 %v1607_v5 }
 0x3fa   :  { %v5270_v14 = vpop.eup %5269  ;;  %5281 = vpow2.f32 %v1559_v35 }
 0x3fb   :  { %v5272_v24 = vpop.eup %5271  ;;  %5283 = vpow2.f32 %v1553_v38  ;;  %v1583_v59 = vadd.f32 1.0, %v5270_v14 }
 0x3fc   :  { %v7940_v48 = vpop.eup %5273  ;;  %5285 = vpow2.f32 %v1555_v12  ;;  %v1579_v13 = vadd.f32 1.0, %v5272_v24 }
 0x3fd   :  { %v5276_v60 = vpop.eup %5275  ;;  %5287 = vpow2.f32 %v1561_v22  ;;  %v7950_v17 = vmul.f32 %v1583_v59, %v1583_v59  ;;  %v1651_v22 = vsub.f32 2.0, %v1635_v43  ;;  %v1636_v40 = vmul.f32 %v7940_v48, %v7919_v57 }
 0x3fe   :  { %v5278_v31 = vpop.eup %5277  ;;  %5289 = vpow2.f32 %v1563_v21  ;;  %v7953_v53 = vmul.f32 %v1579_v13, %v1579_v13  ;;  %v1633_v44 = vmul.f32 %v5276_v60, %v1601_v37  ;;  %v4479_v13 = vadd.f32 -1.0, %v7881_v33 }
 0x3ff   :  { %v5280_v55 = vpop.eup %5279  ;;  %5291 = vrcp.f32 %v1605_v30  ;;  %v1634_v38 = vmul.f32 %v5278_v31, %v1602_v1  ;;  %v1615_v12 = vadd.f32 1.0, %v7950_v17  ;;  %v1667_v59 = vmul.f32 %v5268_v51, %v1651_v22 }
 0x400   :  { %v5282_v8 = vpop.eup %5281  ;;  %v1639_v42 = vmul.f32 %v5280_v55, %v1607_v5  ;;  %5293 = vrcp.f32 %v1606_v46  ;;  %v1611_v49 = vadd.f32 1.0, %v7953_v53  ;;  %v1649_v21 = vsub.f32 2.0, %v1633_v44 }
 0x401   :  { %v5284_v20 = vpop.eup %5283  ;;  %5295 = vrcp.f32 %v1608_v26  ;;  %v1580_v15 = vadd.f32 1.0, %v5282_v8  ;;  %v1650_v1 = vsub.f32 2.0, %v1634_v38  ;;  %v1652_v57 = vsub.f32 2.0, %v1636_v40 }
 0x402   :  { %v5286_v28 = vpop.eup %5285  ;;  %v1577_v0 = vadd.f32 1.0, %v5284_v20  ;;  %v1655_v5 = vsub.f32 2.0, %v1639_v42  ;;  %5297 = vpow2.f32 %v1567_v25  ;;  %v1699_v25 = vmul.f32 %v4479_v13, %v1667_v59 }
 0x403   :  { %v5288_v9 = vpop.eup %5287  ;;  %v1578_v19 = vadd.f32 1.0, %v5286_v28  ;;  %5299 = vrcp.f32 %v1615_v12  ;;  %v7967_v8 = vmul.f32 %v1580_v15, %v1580_v15  ;;  %v1665_v28 = vmul.f32 %v5276_v60, %v1649_v21 }
 0x404   :  { %v5290_v35 = vpop.eup %5289  ;;  %v1581_v14 = vadd.f32 1.0, %v5288_v9  ;;  %v7960_v24 = vmul.f32 %v1577_v0, %v1577_v0  ;;  %5301 = vrcp.f32 %v1611_v49  ;;  %v1671_v20 = vmul.f32 %v5280_v55, %v1655_v5 }
 0x405   :  { %v1582_v61 = vadd.f32 1.0, %v5290_v35  ;;  %v5292_v37 = vpop.eup %5291  ;;  %v7962_v23 = vmul.f32 %v1578_v19, %v1578_v19  ;;  %v1666_v44 = vmul.f32 %v5278_v31, %v1650_v1  ;;  %v4483_v35 = vadd.f32 -1.0, %v7913_v50 }
 0x406   :  { %v5294_v45 = vpop.eup %5293  ;;  %v7965_v63 = vmul.f32 %v1581_v14, %v1581_v14  ;;  %v1637_v42 = vmul.f32 %v5292_v37, %v1605_v30  ;;  %v1609_v9 = vadd.f32 1.0, %v7960_v24  ;;  %v4477_v38 = vadd.f32 -1.0, %v7901_v47 }
 0x407   :  { %v7969_v43 = vmul.f32 %v1582_v61, %v1582_v61  ;;  %v1638_v0 = vmul.f32 %v5294_v45, %v1606_v46  ;;  %v5296_v51 = vpop.eup %5295  ;;  %v1610_v33 = vadd.f32 1.0, %v7962_v23  ;;  %v1668_v22 = vmul.f32 %v7940_v48, %v1652_v57 }
 0x408   :  { %v5298_v19 = vpop.eup %5297  ;;  %v7976_v55 = vadd.f32 1.0, %v7965_v63  ;;  %v4478_v60 = vadd.f32 -1.0, %v7908_v56  ;;  %v1703_v30 = vmul.f32 %v4483_v35, %v1671_v20  ;;  %v4480_v50 = vadd.f32 -1.0, %v7891_v2 }
 0x409   :  { %v5300_v14 = vpop.eup %5299  ;;  %v1614_v31 = vadd.f32 1.0, %v7969_v43  ;;  %v1697_v46 = vmul.f32 %v4477_v38, %v1665_v28  ;;  %v1653_v40 = vsub.f32 2.0, %v1637_v42  ;;  %v7983_v47 = vadd.f32 1.0, %v7967_v8 }
 0x40a   :  { %v5302_v15 = vpop.eup %5301  ;;  %5303 = vrcp.f32 %v1609_v9  ;;  %v1698_v61 = vmul.f32 %v4478_v60, %v1666_v44  ;;  %v1654_v21 = vsub.f32 2.0, %v1638_v0  ;;  %v1584_v48 = vadd.f32 1.0, %v5298_v19 }
 0x40b   :  { %5305 = vrcp.f32 %v1610_v33  ;;  %v1715_v56 = vmul.f32 %v1699_v25, %v7826_v34  ;;  %v1640_v1 = vmul.f32 %v5296_v51, %v1608_v26  ;;  %v1700_v59 = vmul.f32 %v4480_v50, %v1668_v22  ;;  %v10321_v25 = vld [vmem:[#allocation153_spill] sm:$0xff] }
 0x40c   :  { %5307 = vrcp.f32 %v7976_v55  ;;  %v1719_v2 = vmul.f32 %v1703_v30, %v7847_v3  ;;  %v1647_v13 = vmul.f32 %v5300_v14, %v1615_v12  ;;  %v1713_v57 = vmul.f32 %v1697_v46, %v7841_v54  ;;  %v10322_v3 = vld [vmem:[#allocation157_spill] sm:$0xff]  ;;  %v10324_v46 = vld [vmem:[#allocation156_spill] sm:$0xff] }
 0x40d   :  { %5309 = vrcp.f32 %v1614_v31  ;;  %v1669_v20 = vmul.f32 %v5292_v37, %v1653_v40  ;;  %v1643_v28 = vmul.f32 %v5302_v15, %v1611_v49  ;;  %v1714_v42 = vmul.f32 %v1698_v61, %v7844_v36  ;;  %v10323_v36 = vld [vmem:[#allocation155_spill] sm:$0xff] }
 0x40e   :  { %v1670_v44 = vmul.f32 %v5294_v45, %v1654_v21  ;;  %5311 = vrcp.f32 %v7983_v47  ;;  %v7991_v35 = vmul.f32 %v1584_v48, %v1584_v48  ;;  %v1656_v34 = vsub.f32 2.0, %v1640_v1 }
 0x40f   :  { %v4481_v26 = vadd.f32 -1.0, %v7936_v10  ;;  %v1863_v38 = vadd.f32 %v10321_v25, %v1715_v56  ;;  %v1867_v12 = vadd.f32 %v10322_v3, %v1719_v2  ;;  %v4482_v19 = vadd.f32 -1.0, %v7938_v7 }
 0x410   :  { %v5304_v0 = vpop.eup %5303  ;;  %v1663_v54 = vsub.f32 2.0, %v1647_v13  ;;  %v1716_v49 = vmul.f32 %v1700_v59, %v7835_v52  ;;  %v1861_v45 = vadd.f32 %v10323_v36, %v1713_v57  ;;  %v1659_v60 = vsub.f32 2.0, %v1643_v28  ;;  %v10327_v36 = vld [vmem:[#allocation160_spill] sm:$0xff] }
 0x411   :  { %v5306_v37 = vpop.eup %5305  ;;  %v1701_v22 = vmul.f32 %v4481_v26, %v1669_v20  ;;  %v1862_v40 = vadd.f32 %v10324_v46, %v1714_v42  ;;  %v1702_v10 = vmul.f32 %v4482_v19, %v1670_v44  ;;  %v8005_v7 = vadd.f32 1.0, %v7991_v35  ;;  %v10326_v19 = vld [vmem:[#allocation154_spill] sm:$0xff] }
 0x412   :  { %v5308_v50 = vpop.eup %5307  ;;  %v1672_v1 = vmul.f32 %v5296_v51, %v1656_v34  ;;  %v1641_v52 = vmul.f32 %v5304_v0, %v1609_v9  ;;  %v1642_v13 = vmul.f32 %v5306_v37, %v1610_v33  ;;  %v1679_v57 = vmul.f32 %v5300_v14, %v1663_v54 }
 0x413   :  { %v5310_v56 = vpop.eup %5309  ;;  %v4484_v42 = vadd.f32 -1.0, %v7946_v18  ;;  %v1717_v44 = vmul.f32 %v1701_v22, %v7858_v29  ;;  %v1675_v26 = vmul.f32 %v5302_v15, %v1659_v60  ;;  %v1645_v9 = vmul.f32 %v5308_v50, %v7976_v55 }
 0x414   :  { %v8015_v28 = vpop.eup %5311  ;;  %v1718_v51 = vmul.f32 %v1702_v10, %v7861_v4  ;;  %v4491_v33 = vadd.f32 -1.0, %v7950_v17  ;;  %v1646_v14 = vmul.f32 %v5310_v56, %v1614_v31  ;;  %v4487_v18 = vadd.f32 -1.0, %v7953_v53  ;;  %v10325_v4 = vld [vmem:[#allocation159_spill] sm:$0xff] }
 0x415   :  { %v1704_v25 = vmul.f32 %v4484_v42, %v1672_v1  ;;  %v1658_v15 = vsub.f32 2.0, %v1642_v13  ;;  %v1865_v17 = vadd.f32 %v10325_v4, %v1717_v44  ;;  %v1661_v31 = vsub.f32 2.0, %v1645_v9 }
 0x416   :  { %v1711_v3 = vmul.f32 %v4491_v33, %v1679_v57  ;;  %v1707_v55 = vmul.f32 %v4487_v18, %v1675_v26  ;;  %5313 = vrcp.f32 %v8005_v7  ;;  %v1864_v54 = vadd.f32 %v10326_v19, %v1716_v49 }
 0x417   :  { %v1662_v22 = vsub.f32 2.0, %v1646_v14  ;;  %v1720_v60 = vmul.f32 %v1704_v25, %v7869_v39  ;;  %v4485_v13 = vadd.f32 -1.0, %v7960_v24  ;;  %v4486_v39 = vadd.f32 -1.0, %v7962_v23  ;;  %v10328_v24 = vld [vmem:[#allocation165_spill] sm:$0xff]  ;;  %v10329_v14 = vld [vmem:[#allocation158_spill] sm:$0xff] }
 0x418   :  { %v1727_v1 = vmul.f32 %v1711_v3, %v7875_v62  ;;  %v1723_v49 = vmul.f32 %v1707_v55, %v7878_v16  ;;  %v1677_v57 = vmul.f32 %v5308_v50, %v1661_v31  ;;  %v4490_v23 = vadd.f32 -1.0, %v7969_v43  ;;  %v10330_v25 = vld [vmem:[#allocation161_spill] sm:$0xff] }
 0x419   :  { %v1678_v42 = vmul.f32 %v5310_v56, %v1662_v22  ;;  %v10331_v22 = vld [vmem:[#allocation163_spill] sm:$0xff] }
 0x41a   :  { %v1875_v9 = vadd.f32 %v10328_v24, %v1727_v1  ;;  %v1871_v18 = vadd.f32 %v10330_v25, %v1723_v49  ;;  %v10335_v24 = vld [vmem:[#allocation162_spill] sm:$0xff] }
 0x41c   :  { %v5314_v44 = vpop.eup %5313 }
 0x44f   :  { %v2806_v5 = vpop.f32.mrf.mxu0 }
 0x450   :  { %v8000_v61 = vadd.f32 %v2806_v5, %v1863_v38  ;;  %v1657_v38 = vsub.f32 2.0, %v1641_v52 }
 0x451   :  { %v2835_v29 = vpop.f32.mrf.mxu1 }
 0x452   :  { %v1673_v46 = vmul.f32 %v5304_v0, %v1657_v38  ;;  %v8041_v52 = vadd.f32 %v2835_v29, %v1864_v54  ;;  %v1710_v38 = vmul.f32 %v4490_v23, %v1678_v42  ;;  %v1648_v54 = vmul.f32 %v5314_v44, %v8005_v7  ;;  %v10333_v7 = vld [vmem:[#allocation167_spill] sm:$0xff] }
 0x454   :  { %v1705_v16 = vmul.f32 %v4485_v13, %v1673_v46 }
 0x456   :  { %v1721_v3 = vmul.f32 %v1705_v16, %v7904_v32 }
 0x457   :  { %v2809_v30 = vpop.f32.mrf.mxu0 }
 0x458   :  { %v8002_v21 = vadd.f32 %v2809_v30, %v1867_v12  ;;  %v1644_v30 = vmul.f32 %v8015_v28, %v7983_v47 }
 0x459   :  { %v2748_v48 = vpop.f32.mrf.mxu2  ;;  %v2777_v2 = vpop.f32.mrf.mxu3 }
 0x45a   :  { %v8007_v59 = vadd.f32 %v2748_v48, %v1861_v45  ;;  %v8009_v20 = vadd.f32 %v2777_v2, %v1862_v40  ;;  %v8013_v5 = vpack.i.bf16 %v8000_v61, %v8002_v21  ;;  %v1866_v45 = vadd.f32 %v10327_v36, %v1718_v51  ;;  %v2838_v51 = vpop.f32.mrf.mxu1 }
 0x45b   :  { %v1674_v48 = vmul.f32 %v5306_v37, %v1658_v15  ;;  %v4489_v37 = vadd.f32 -1.0, %v7965_v63  ;;  %v1660_v50 = vsub.f32 2.0, %v1644_v30  ;;  %v1868_v63 = vadd.f32 %v10329_v14, %v1720_v60  ;;  %v10334_v30 = vld [vmem:[#allocation168_spill] sm:$0xff] }
 0x45c   :  { %4886 = vrot.lane.b32.xlu0 %v8013_v5, %s5504_s25  ;;  %v8026_v34 = vpack.i.bf16 %v8009_v20, %v8007_v59  ;;  %v4895_v0 = vpack.i.bf16 %v8041_v52, %v8007_v59  ;;  %v1726_v36 = vmul.f32 %v1710_v38, %v7923_v27  ;;  %v1664_v27 = vsub.f32 2.0, %v1648_v54 }
 0x45d   :  { %v1706_v26 = vmul.f32 %v4486_v39, %v1674_v48  ;;  %v1709_v56 = vmul.f32 %v4489_v37, %v1677_v57  ;;  %v1676_v31 = vmul.f32 %v8015_v28, %v1660_v50 }
 0x45e   :  { %4891 = vrot.lane.b32.xlu1 %v8026_v34, %s5504_s25  ;;  %v1874_v46 = vadd.f32 %v10334_v30, %v1726_v36  ;;  %v1680_v57 = vmul.f32 %v5314_v44, %v1664_v27 }
 0x45f   :  { %v2812_v12 = vpop.f32.mrf.mxu0  ;;  %v1722_v4 = vmul.f32 %v1706_v26, %v7911_v41  ;;  %v1725_v19 = vmul.f32 %v1709_v56, %v7916_v58  ;;  %v4488_v41 = vadd.f32 -1.0, %v7967_v8  ;;  %v4492_v26 = vadd.f32 -1.0, %v7991_v35  ;;  %v10336_v56 = vld [vmem:[#allocation166_spill] sm:$0xff] }
 0x460   :  { %v8071_v55 = vadd.f32 %v2812_v12, %v1871_v18  ;;  %v10332_v12 = vld [vmem:[#allocation164_spill] sm:$0xff] }
 0x461   :  { %v2751_v53 = vpop.f32.mrf.mxu2  ;;  %v2780_v10 = vpop.f32.mrf.mxu3  ;;  %v1870_v60 = vadd.f32 %v10332_v12, %v1722_v4  ;;  %v1708_v58 = vmul.f32 %v4488_v41, %v1676_v31  ;;  %v1873_v28 = vadd.f32 %v10333_v7, %v1725_v19  ;;  %v1712_v23 = vmul.f32 %v4492_v26, %v1680_v57 }
 0x462   :  { %v8038_v40 = vadd.f32 %v2751_v53, %v1865_v17  ;;  %v8043_v2 = vadd.f32 %v2780_v10, %v1866_v45  ;;  %v8069_v17 = vadd.f32 %v2838_v51, %v1868_v63  ;;  %v1869_v53 = vadd.f32 %v10331_v22, %v1721_v3  ;;  %v2841_v16 = vpop.f32.mrf.mxu1 }
 0x463   :  { %v1724_v39 = vmul.f32 %v1708_v58, %v7894_v6  ;;  %v1728_v44 = vmul.f32 %v1712_v23, %v7943_v11  ;;  %v10337_v58 = vld [vmem:[#allocation12_spill] sm:$0xff] }
 0x464   :  { %v8050_v47 = vpack.i.bf16 %v8009_v20, %v8043_v2  ;;  %v4900_v62 = vpack.i.bf16 %v8043_v2, %v8038_v40  ;;  %v4910_v32 = vpack.i.bf16 %v8069_v17, %v8038_v40  ;;  %v5005_v14 = vpack.i.bf16 %v8041_v52, %v8069_v17 }
 0x465   :  { %v1876_v51 = vadd.f32 %v10336_v56, %v1728_v44  ;;  %vm10338_vm0 = vcmp.lt.s32.totalorder %v10337_v58, 127 }
 0x466   :  { %4916 = vrot.lane.b32.xlu2 %v8050_v47, %s5503_s7  ;;  %4896 = vrot.lane.b32.xlu1 %v4895_v0, %s5503_s7  ;;  %vm10339_vm2 = vmmov %vm10338_vm0 }
 0x467   :  { %v2815_v33 = vpop.f32.mrf.mxu0  ;;  %4901 = vrot.lane.b32.xlu0 %v4900_v62, %s5504_s25  ;;  %vm10340_vm15 = vmmov %vm10338_vm0 }
 0x468   :  { %v8065_v29 = vadd.f32 %v2815_v33, %v1875_v9  ;;  %v1872_v9 = vadd.f32 %v10335_v24, %v1724_v39  ;;  %vm10341_vm1 = vmmov %vm10338_vm0 }
 0x469   :  { %v2754_v15 = vpop.f32.mrf.mxu2  ;;  %v2783_v43 = vpop.f32.mrf.mxu3  ;;  %vm10342_vm3 = vmmov %vm10338_vm0 }
 0x46a   :  { %v4925_v45 = vpack.i.bf16 %v8071_v55, %v8065_v29  ;;  %v8089_v10 = vadd.f32 %v2754_v15, %v1869_v53  ;;  %v8091_v48 = vadd.f32 %v2783_v43, %v1870_v60  ;;  %v8107_v6 = vadd.f32 %v2841_v16, %v1872_v9  ;;  %v2844_v35 = vpop.f32.mrf.mxu1 }
 0x46c   :  { %v4930_v42 = vpack.i.bf16 %v8091_v48, %v8089_v10  ;;  %v4935_v50 = vpack.i.bf16 %v8107_v6, %v8089_v10 }
 0x46e   :  { %4926 = vrot.lane.b32.xlu2 %v4925_v45, %s5504_s25  ;;  %4911 = vrot.lane.b32.xlu1 %v4910_v32, %s5505_s26 }
 0x46f   :  { %4906 = vrot.lane.b32.xlu0 %v4910_v32, %s5503_s7 }
 0x471   :  { %v2757_v8 = vpop.f32.mrf.mxu2  ;;  %v2786_v49 = vpop.f32.mrf.mxu3 }
 0x472   :  { %v8093_v1 = vadd.f32 %v2757_v8, %v1873_v28  ;;  %v8095_v13 = vadd.f32 %v2786_v49, %v1874_v46 }
 0x474   :  { %v4950_v37 = vpack.i.bf16 %v8095_v13, %v8093_v1  ;;  %v4975_v11 = vpack.i.bf16 %v8091_v48, %v8095_v13 }
 0x476   :  { %4931 = vrot.lane.b32.xlu2 %v4930_v42, %s5504_s25  ;;  %4951 = vrot.lane.b32.xlu1 %v4950_v37, %s5504_s25 }
 0x477   :  { %4921 = vrot.lane.b32.xlu0 %v4900_v62, %s5502_s0  ;;  %v8116_v62 = vadd.f32 %v2844_v35, %v1876_v51 }
 0x479   :  { %v4965_v33 = vpack.i.bf16 %v8116_v62, %v8093_v1 }
 0x47e   :  { %4936 = vrot.lane.b32.xlu2 %v4935_v50, %s5503_s7  ;;  %4956 = vrot.lane.b32.xlu1 %v4895_v0, %s5505_s26  ;;  %v4985_v0 = vpack.i.bf16 %v8107_v6, %v8116_v62 }
 0x47f   :  { %4946 = vrot.lane.b32.xlu0 %v4930_v42, %s5502_s0 }
 0x486   :  { %4941 = vrot.lane.b32.xlu2 %v4935_v50, %s5505_s26  ;;  %4966 = vrot.lane.b32.xlu1 %v4965_v33, %s5503_s7 }
 0x487   :  { %4976 = vrot.lane.b32.xlu0 %v4975_v11, %s5503_s7 }
 0x48e   :  { %4961 = vrot.lane.b32.xlu2 %v8026_v34, %s5502_s0  ;;  %4981 = vrot.lane.b32.xlu1 %v4950_v37, %s5502_s0 }
 0x48f   :  { %4996 = vrot.lane.b32.xlu0 %v4975_v11, %s5505_s26 }
 0x496   :  { %4971 = vrot.lane.b32.xlu2 %v4965_v33, %s5505_s26  ;;  %4986 = vrot.lane.b32.xlu1 %v4985_v0, %s5504_s25 }
 0x497   :  { %5001 = vrot.lane.b32.xlu0 %v8050_v47, %s5505_s26 }
 0x49e   :  { %4991 = vrot.lane.b32.xlu2 %v4925_v45, %s5502_s0  ;;  %5006 = vrot.lane.b32.xlu1 %v5005_v14, %s5504_s25 }
 0x49f   :  { %5016 = vrot.lane.b32.xlu0 %v4925_v45, %s5503_s7 }
 0x4a6   :  { %5011 = vrot.lane.b32.xlu2 %v8013_v5, %s5502_s0  ;;  %5021 = vrot.lane.b32.xlu1 %v8013_v5, %s5503_s7 }
 0x4a7   :  { %5031 = vrot.lane.b32.xlu0 %v4985_v0, %s5502_s0 }
 0x4ae   :  { %5026 = vrot.lane.b32.xlu2 %v4925_v45, %s5505_s26  ;;  %5036 = vrot.lane.b32.xlu1 %v8013_v5, %s5505_s26 }
 0x4b6   :  { %5041 = vrot.lane.b32.xlu2 %v5005_v14, %s5502_s0 }
 0x4c0   :  { %v8149_v34 = vpop.permute.xlu2 %4916 }
 0x4c1   :  { %v9725_v0 = vunpack.i.h.bf16 %v8149_v34 }
 0x4c8   :  { %v8151_v47 = vpop.permute.xlu2 %4926 }
 0x4c9   :  { %v4928_v31 = vunpack.i.l.bf16 %v8151_v47  ;;  %v4929_v53 = vunpack.i.h.bf16 %v8151_v47 }
 0x4ce   :  { %v8157_v18 = vpop.permute.xlu0 %4886 }
 0x4cf   :  { %v4888_v27 = vunpack.i.l.bf16 %v8157_v18  ;;  %v4889_v39 = vunpack.i.h.bf16 %v8157_v18  ;;  %v8461_v18 = vld [vmem:[%s9351_s5 + $0x20] sm:$0xff] }
 0x4d0   :  { %v8153_v63 = vpop.permute.xlu1 %4891  ;;  %v8155_v25 = vpop.permute.xlu2 %4931 }
 0x4d1   :  { %v4934_v36 = vunpack.i.h.bf16 %v8155_v25  ;;  %v4933_v45 = vunpack.i.l.bf16 %v8155_v25  ;;  %v4894_v30 = vunpack.i.h.bf16 %v8153_v63  ;;  %v4893_v46 = vunpack.i.l.bf16 %v8153_v63  ;;  %v8467_v63 = vld [vmem:[%s9351_s5 + $0x28] sm:$0xff] }
 0x4d3   :  { %v3009_v8 = vsel %vm10340_vm15, %v4933_v45, %v4934_v36  ;;  %v3005_v49 = vsel %vm10341_vm1, %v4934_v36, %v4929_v53  ;;  %vm10344_vm15 = vmmov %vm10338_vm0  ;;  %vm10345_vm1 = vcmp.lt.s32.totalorder %v10337_v58, 1 }
 0x4d4   :  { %v3003_v9 = vsel %vm10344_vm15, %v4894_v30, %v4889_v39 }
 0x4d8   :  { %v8159_v38 = vpop.permute.xlu1 %4896  ;;  %v8161_v15 = vpop.permute.xlu2 %4936 }
 0x4d9   :  { %v8163_v43 = vpop.permute.xlu0 %4901  ;;  %v9728_v50 = vunpack.i.h.bf16 %v8161_v15  ;;  %v4938_v35 = vunpack.i.l.bf16 %v8161_v15 }
 0x4da   :  { %v4904_v12 = vunpack.i.h.bf16 %v8163_v43  ;;  %v4903_v60 = vunpack.i.l.bf16 %v8163_v43 }
 0x4dc   :  { %v3008_v57 = vsel %vm10342_vm3, %v4903_v60, %v4904_v12  ;;  %v3004_v42 = vsel %vm10338_vm0, %v4904_v12, %v4888_v27  ;;  %vm10346_vm3 = vmmov %vm10345_vm1 }
 0x4e0   :  { %v8165_v3 = vpop.permute.xlu1 %4911  ;;  %v8167_v5 = vpop.permute.xlu2 %4941 }
 0x4e1   :  { %v8169_v4 = vpop.permute.xlu0 %4906  ;;  %v9733_v36 = vunpack.i.h.bf16 %v8165_v3 }
 0x4e2   :  { %v4908_v33 = vunpack.i.l.bf16 %v8169_v4 }
 0x4e8   :  { %v8172_v19 = vpop.permute.xlu2 %4961  ;;  %v8174_v54 = vpop.permute.xlu1 %4951 }
 0x4e9   :  { %v8178_v32 = vpop.permute.xlu0 %4921  ;;  %v4954_v41 = vunpack.i.h.bf16 %v8174_v54  ;;  %v4953_v22 = vunpack.i.l.bf16 %v8174_v54 }
 0x4eb   :  { %v3010_v7 = vsel %vm10338_vm0, %v4953_v22, %v4954_v41  ;;  %v3006_v28 = vsel %vm10339_vm2, %v4954_v41, %v4928_v31  ;;  %vm10343_vm2 = vmmov %vm10338_vm0 }
 0x4ec   :  { %3075 = vmatpush.msra.mxu2 %v3010_v7  ;;  %3133 = vmatpush.msrb.mxu0 %v3006_v28  ;;  %v3007_v24 = vsel %vm10343_vm2, %v4893_v46, %v4894_v30  ;;  %vm10347_vm0 = vmmov %vm10345_vm1  ;;  %v4913_v28 = vunpack.i.l.bf16 %v8165_v3 }
 0x4ed   :  { %vm10348_vm2 = vmmov %vm10347_vm0 }
 0x4ee   :  { %3076 = vmatpush.msra.mxu2 %v3009_v8  ;;  %3134 = vmatpush.msrb.mxu0 %v3005_v49  ;;  %vm10349_vm15 = vmmov %vm10347_vm0 }
 0x4f0   :  { %v8213_v37 = vpop.permute.xlu2 %4971  ;;  %v8215_v16 = vpop.permute.xlu1 %4956  ;;  %3077 = vmatpush.msra.mxu2 %v3008_v57  ;;  %3135 = vmatpush.msrb.mxu0 %v3004_v42  ;;  %v9734_v57 = vunpack.i.h.bf16 %v8167_v5  ;;  %v4943_v42 = vunpack.i.l.bf16 %v8167_v5 }
 0x4f1   :  { %v8217_v26 = vpop.permute.xlu0 %4946  ;;  %v9730_v30 = vunpack.i.h.bf16 %v8213_v37  ;;  %v4973_v8 = vunpack.i.l.bf16 %v8213_v37 }
 0x4f2   :  { %3078 = vmatpush.msra.mxu2 %v3007_v24  ;;  %3136 = vmatpush.msrb.mxu0 %v3003_v9  ;;  %v4949_v24 = vunpack.i.h.bf16 %v8217_v26 }
 0x4f4   :  { %3079 = vmatpush.msra.mxu2 %v8093_v1  ;;  %3137 = vmatpush.msrb.mxu0 %v8095_v13  ;;  %v4898_v13 = vunpack.i.l.bf16 %v8159_v38 }
 0x4f6   :  { %3080 = vmatpush.msra.mxu2 %v8089_v10  ;;  %3138 = vmatpush.msrb.mxu0 %v8091_v48  ;;  %v9724_v48 = vunpack.i.h.bf16 %v8159_v38 }
 0x4f8   :  { %v8231_v23 = vpop.permute.xlu2 %4991  ;;  %v8233_v44 = vpop.permute.xlu1 %4966  ;;  %3081 = vmatpush.msra.mxu2 %v8038_v40  ;;  %3139 = vmatpush.msrb.mxu0 %v8043_v2  ;;  %v9726_v2 = vunpack.i.h.bf16 %v8169_v4  ;;  %v2963_v12 = vsel %vm10349_vm15, %v9724_v48, %v4898_v13  ;;  %vm10353_vm15 = vcmp.lt.s32.totalorder %v10337_v58, 126 }
 0x4f9   :  { %v8239_v56 = vpop.permute.xlu0 %4976  ;;  %v9731_v1 = vunpack.i.h.bf16 %v8233_v44  ;;  %v4968_v10 = vunpack.i.l.bf16 %v8233_v44  ;;  %v4994_v48 = vunpack.i.h.bf16 %v8231_v23 }
 0x4fa   :  { %v9729_v51 = vunpack.i.h.bf16 %v8239_v56  ;;  %v9732_v40 = vunpack.i.l.bf16 %v8239_v56  ;;  %3082 = vmatpush.msra.mxu2 %v8007_v59  ;;  %3140 = vmatpush.msrb.mxu0 %v8009_v20  ;;  %v9727_v59 = vunpack.i.l.bf16 %v8149_v34  ;;  %v2965_v20 = vsel %vm10347_vm0, %v9728_v50, %v4938_v35 }
 0x4fb   :  { %v2966_v11 = vsel %vm10345_vm1, %v9731_v1, %v4968_v10  ;;  %vm10350_vm1 = vmmov %vm10347_vm0  ;;  %v4963_v1 = vunpack.i.l.bf16 %v8172_v19 }
 0x4fc   :  { %3083 = vmatpush.msra.mxu2 %v2966_v11  ;;  %v2962_v14 = vsel %vm10346_vm3, %v4968_v10, %v9732_v40  ;;  %v2961_v41 = vsel %vm10348_vm2, %v4938_v35, %v9729_v51  ;;  %v2959_v7 = vsel %vm10350_vm1, %v4898_v13, %v9725_v0  ;;  %vm10351_vm3 = vmmov %vm10347_vm0  ;;  %v2960_v35 = vsel %vm10347_vm0, %v4908_v33, %v9727_v59 }
 0x4fd   :  { %3141 = vmatpush.msrb.mxu0 %v2962_v14  ;;  %v2964_v49 = vsel %vm10351_vm3, %v9726_v2, %v4908_v33  ;;  %v4948_v10 = vunpack.i.l.bf16 %v8217_v26  ;;  %v4993_v13 = vunpack.i.l.bf16 %v8231_v23  ;;  %v4923_v2 = vunpack.i.l.bf16 %v8178_v32  ;;  %vm10354_vm1 = vmmov %vm10353_vm15 }
 0x4fe   :  { %3084 = vmatpush.msra.mxu2 %v2965_v20  ;;  %vm10352_vm2 = vcmp.lt.s32.totalorder %v10337_v58, 2  ;;  %v4958_v40 = vunpack.i.l.bf16 %v8215_v16  ;;  %v10386_v26 = vunpack.i.h.bf16 %v8233_v44 }
 0x4ff   :  { %3142 = vmatpush.msrb.mxu0 %v2961_v41  ;;  %v2918_v59 = vsel %vm10352_vm2, %v9730_v30, %v4973_v8  ;;  %vm10355_vm3 = vmmov %vm10352_vm2 }
 0x500   :  { %v8288_v9 = vpop.permute.xlu1 %4981  ;;  %3085 = vmatpush.msra.mxu2 %v2964_v49  ;;  %v8298_v14 = vpop.permute.xlu2 %5011  ;;  %v4924_v49 = vunpack.i.h.bf16 %v8178_v32  ;;  %vm10356_vm0 = vmmov %vm10352_vm2 }
 0x501   :  { %v8296_v11 = vpop.permute.xlu0 %4996  ;;  %v4984_v20 = vunpack.i.h.bf16 %v8288_v9  ;;  %v4983_v41 = vunpack.i.l.bf16 %v8288_v9  ;;  %3143 = vmatpush.msrb.mxu0 %v2960_v35  ;;  %v5013_v51 = vunpack.i.l.bf16 %v8298_v14  ;;  %v2917_v30 = vsel %vm10356_vm0, %v9734_v57, %v4943_v42  ;;  %vm10357_vm2 = vmmov %vm10354_vm1 }
 0x502   :  { %v4999_v0 = vunpack.i.h.bf16 %v8296_v11  ;;  %v4998_v33 = vunpack.i.l.bf16 %v8296_v11  ;;  %3086 = vmatpush.msra.mxu2 %v2963_v12  ;;  %v4964_v12 = vunpack.i.h.bf16 %v8172_v19  ;;  %v10397_v19 = vunpack.i.h.bf16 %v8169_v4  ;;  %v10416_v11 = vld [vmem:[#allocation29_spill] sm:$0xff] }
 0x503   :  { %3144 = vmatpush.msrb.mxu0 %v2959_v7  ;;  %v3058_v35 = vsel %vm10353_vm15, %v4983_v41, %v4984_v20  ;;  %v3054_v50 = vsel %vm10354_vm1, %v4984_v20, %v4993_v13  ;;  %v9735_v20 = vunpack.i.h.bf16 %v8215_v16  ;;  %vm10358_vm15 = vmmov %vm10356_vm0 }
 0x504   :  { %3087 = vmatpush.msra.mxu2 %v2918_v59  ;;  %3116 = vmatpush.msra.mxu3 %v3058_v35  ;;  %v2914_v7 = vsel %vm10355_vm3, %v4973_v8, %v4998_v33  ;;  %v3057_v59 = vsel %vm10357_vm2, %v4948_v10, %v4949_v24  ;;  %v5014_v8 = vunpack.i.h.bf16 %v8298_v14  ;;  %v2913_v35 = vsel %vm10358_vm15, %v4943_v42, %v4999_v0  ;;  %vm10359_vm3 = vmmov %vm10356_vm0 }
 0x505   :  { %3145 = vmatpush.msrb.mxu0 %v2914_v7  ;;  %3174 = vmatpush.msrb.mxu1 %v3054_v50  ;;  %v3053_v7 = vsel %vm10354_vm1, %v4949_v24, %v4994_v48  ;;  %v2916_v50 = vsel %vm10359_vm3, %v9733_v36, %v4913_v28  ;;  %vm10360_vm0 = vmmov %vm10354_vm1 }
 0x506   :  { %3088 = vmatpush.msra.mxu2 %v2917_v30  ;;  %3117 = vmatpush.msra.mxu3 %v3057_v59  ;;  %v3056_v30 = vsel %vm10360_vm0, %v4923_v2, %v4924_v49  ;;  %vm10361_vm2 = vmmov %vm10360_vm0  ;;  %v8362_v59 = vld [vmem:[%s9351_s5] sm:$0xff] }
 0x507   :  { %3146 = vmatpush.msrb.mxu0 %v2913_v35  ;;  %3175 = vmatpush.msrb.mxu1 %v3053_v7  ;;  %v3052_v24 = vsel %vm10361_vm2, %v4924_v49, %v5013_v51  ;;  %vm10362_vm15 = vmmov %vm10359_vm3 }
 0x508   :  { %v4987_v42 = vpop.permute.xlu1 %4986  ;;  %3089 = vmatpush.msra.mxu2 %v2916_v50  ;;  %3118 = vmatpush.msra.mxu3 %v3056_v30  ;;  %v2915_v50 = vsel %vm10362_vm15, %v9735_v20, %v4958_v40  ;;  %vm10363_vm1 = vmmov %vm10360_vm0  ;;  %v8377_v30 = vld [vmem:[%s9351_s5 + $0x8] sm:$0xff]  ;;  %v8412_v47 = vpop.permute.xlu2 %5026 }
 0x509   :  { %v8364_v35 = vpop.permute.xlu0 %5001  ;;  %v4989_v7 = vunpack.i.h.bf16 %v4987_v42  ;;  %v4988_v36 = vunpack.i.l.bf16 %v4987_v42  ;;  %3176 = vmatpush.msrb.mxu1 %v3052_v24  ;;  %v3055_v49 = vsel %vm10363_vm1, %v4963_v1, %v4964_v12  ;;  %vm10364_vm3 = vmmov %vm10360_vm0  ;;  %vm10365_vm0 = vcmp.lt.s32.totalorder %v10337_v58, 127 }
 0x50a   :  { %v5004_v57 = vunpack.i.h.bf16 %v8364_v35  ;;  %v5003_v42 = vunpack.i.l.bf16 %v8364_v35  ;;  %3090 = vmatpush.msra.mxu2 %v2915_v50  ;;  %3119 = vmatpush.msra.mxu3 %v3055_v49  ;;  %v3051_v24 = vsel %vm10364_vm3, %v4964_v12, %v5014_v8  ;;  %vm10366_vm2 = vmmov %vm10362_vm15  ;;  %v10369_v49 = vld [vmem:[#allocation22_spill] sm:$0xff]  ;;  %vm10370_vm3 = vcmask 1040384   ;;  %v10435_v35 = vld [vmem:[#allocation35_spill] sm:$0xff] }
 0x50b   :  { %3177 = vmatpush.msrb.mxu1 %v3051_v24  ;;  %3091 = vmatmul.f32.vlgmr.msra.gmra.mxu2 %v8362_v59  ;;  %v3002_v20 = vsel %vm10365_vm0, %v4928_v31, %v4988_v36  ;;  %vm10367_vm15 = vmmov %vm10365_vm0  ;;  %vm10436_vm4 = vnez %v10435_v35 }
 0x50c   :  { %4622 = vmatmul.msk.f32.vlgmr.msra.gmra.mxu3 %vm9737_vm10, %v8377_v30  ;;  %v2912_v50 = vsel %vm10366_vm2, %v4913_v28, %v5003_v42  ;;  %3191 = vmatpush.msrb.mxu2 %v3002_v20  ;;  %v3001_v12 = vsel %vm10367_vm15, %v4929_v53, %v4989_v7  ;;  %vm10368_vm1 = vmmov %vm10366_vm2  ;;  %v10371_v28 = vld [vmem:[#allocation23_spill] sm:$0xff] }
 0x50d   :  { %3147 = vmatpush.msrb.mxu0 %v2912_v50  ;;  %4627 = vmatmul.msk.f32.vlgmr.msrb.gmra.mxu1 %vm9737_vm10, %v8377_v30  ;;  %v2911_v31 = vsel %vm10368_vm1, %v4958_v40, %v5004_v57  ;;  %vm10372_vm0 = vmmov %vm10370_vm3  ;;  %v8422_v40 = vld [vmem:[%s9351_s5 + $0x10] sm:$0xff] }
 0x50e   :  { %3192 = vmatpush.msrb.mxu2 %v3001_v12  ;;  %4631 = vmatpush.msk.msrb.mxu3 %vm10370_vm3, %v10369_v49  ;;  %vm10373_vm2 = vmmov %vm10367_vm15 }
 0x50f   :  { %3148 = vmatpush.msrb.mxu0 %v2911_v31  ;;  %4636 = vmatpush.msk.msra.mxu1 %vm10372_vm0, %v10371_v28  ;;  %v3014_v53 = vsel %vm10373_vm2, %v4988_v36, %v4953_v22  ;;  %v8429_v31 = vld [vmem:[%s9351_s5 + $0x18] sm:$0xff]  ;;  %vm10374_vm15 = vmmov %vm10373_vm2 }
 0x510   :  { %3149 = vmatmul.f32.vlgmr.msrb.gmra.mxu0 %v8362_v59  ;;  %v5007_v20 = vpop.permute.xlu1 %5006  ;;  %v3013_v54 = vsel %vm10374_vm15, %v4989_v7, %v4933_v45  ;;  %vm10375_vm1 = vmmov %vm10373_vm2  ;;  %vm10379_vm15 = vcmp.lt.s32.totalorder %v10337_v58, 126  ;;  %v8535_v28 = vld [vmem:[%s9351_s5 + $0x38] sm:$0xff] }
 0x511   :  { %3249 = vmatpush.msra.mxu0 %v3014_v53  ;;  %v8424_v24 = vpop.permute.xlu0 %5016  ;;  %v5009_v50 = vunpack.i.h.bf16 %v5007_v20  ;;  %v5008_v12 = vunpack.i.l.bf16 %v5007_v20  ;;  %vm10376_vm3 = vmmov %vm10375_vm1  ;;  %v5028_v53 = vunpack.i.l.bf16 %v8412_v47 }
 0x512   :  { %vm10377_vm0 = vmmov %vm10375_vm1  ;;  %v5019_v7 = vunpack.i.h.bf16 %v8424_v24 }
 0x513   :  { %3250 = vmatpush.msra.mxu0 %v3013_v54  ;;  %3094 = vmatmul.f32.gmra.mxu2 %v8422_v40  ;;  %v3000_v22 = vsel %vm10375_vm1, %v4888_v27, %v5008_v12  ;;  %v3012_v36 = vsel %vm10376_vm3, %v5008_v12, %v4903_v60  ;;  %v2999_v25 = vsel %vm10377_vm0, %v4889_v39, %v5009_v50  ;;  %vm10378_vm2 = vmmov %vm10377_vm0  ;;  %v5042_v60 = vpop.permute.xlu2 %5041  ;;  %v10400_v54 = vmov 1.0  }
 0x514   :  { %4623 = vmatmul.msk.f32.gmra.mxu3 %vm9737_vm10, %v8429_v31  ;;  %3193 = vmatpush.msrb.mxu2 %v3000_v22  ;;  %v3011_v43 = vsel %vm10378_vm2, %v5009_v50, %v4893_v46  ;;  %vm10380_vm1 = vmmov %vm10379_vm15  ;;  %vm10384_vm2 = vcmp.lt.s32.totalorder %v10337_v58, 1  ;;  %v10398_v50 = vunpack.i.h.bf16 %v8149_v34  ;;  %v10514_v22 = vld [vmem:[#allocation54_spill] sm:$0xff] }
 0x515   :  { %3251 = vmatpush.msra.mxu0 %v3012_v36  ;;  %4628 = vmatmul.msk.f32.gmra.mxu1 %vm9737_vm10, %v8429_v31  ;;  %vm10381_vm3 = vmmov %vm10380_vm1  ;;  %v10402_v36 = vunpack.i.h.bf16 %v8159_v38 }
 0x516   :  { %3194 = vmatpush.msrb.mxu2 %v2999_v25  ;;  %vm10382_vm0 = vmmov %vm10380_vm1 }
 0x517   :  { %3252 = vmatpush.msra.mxu0 %v3011_v43  ;;  %v10407_v43 = vld [vmem:[#allocation37_spill] sm:$0xff] }
 0x518   :  { %3152 = vmatmul.f32.gmra.mxu0 %v8422_v40  ;;  %3195 = vmatpush.msrb.mxu2 %v8065_v29  ;;  %v5018_v29 = vunpack.i.l.bf16 %v8424_v24  ;;  %v5022_v39 = vpop.permute.xlu1 %5021  ;;  %v5029_v24 = vunpack.i.h.bf16 %v8412_v47  ;;  %v10405_v47 = vunpack.i.h.bf16 %v8213_v37  ;;  %v10412_v37 = vunpack.i.h.bf16 %v8167_v5 }
 0x519   :  { %v5032_v45 = vpop.permute.xlu0 %5031  ;;  %3253 = vmatpush.msra.mxu0 %v8116_v62  ;;  %v5023_v23 = vunpack.i.l.bf16 %v5022_v39  ;;  %v5024_v44 = vunpack.i.h.bf16 %v5022_v39  ;;  %v10418_v5 = vunpack.i.h.bf16 %v8165_v3 }
 0x51a   :  { %v5034_v27 = vunpack.i.h.bf16 %v5032_v45  ;;  %v5033_v46 = vunpack.i.l.bf16 %v5032_v45  ;;  %3196 = vmatpush.msrb.mxu2 %v8071_v55 }
 0x51b   :  { %3254 = vmatpush.msra.mxu0 %v8107_v6  ;;  %3097 = vmatmul.f32.gmra.mxu2 %v8461_v18  ;;  %v5043_v6 = vunpack.i.l.bf16 %v5042_v60 }
 0x51c   :  { %4624 = vmatmul.msk.f32.gmra.mxu3 %vm9737_vm10, %v8467_v63  ;;  %3197 = vmatpush.msrb.mxu2 %v8002_v21  ;;  %v3050_v62 = vsel %vm10379_vm15, %v4993_v13, %v5033_v46  ;;  %v3062_v55 = vsel %vm10380_vm1, %v5033_v46, %v4983_v41  ;;  %v3049_v21 = vsel %vm10381_vm3, %v4994_v48, %v5034_v27  ;;  %v5044_v13 = vunpack.i.h.bf16 %v5042_v60  ;;  %vm10385_vm15 = vmmov %vm10382_vm0  ;;  %v10413_v46 = vld [vmem:[#allocation41_spill] sm:$0xff] }
 0x51d   :  { %3232 = vmatpush.msrb.mxu3 %v3050_v62  ;;  %3255 = vmatpush.msra.mxu0 %v8069_v17  ;;  %v3061_v9 = vsel %vm10382_vm0, %v5034_v27, %v4948_v10  ;;  %v10383_v17 = vunpack.i.l.bf16 %v8239_v56  ;;  %vm10387_vm1 = vmmov %vm10384_vm2  ;;  %v10389_v41 = vunpack.i.h.bf16 %v8239_v56  ;;  %v10410_v27 = vld [vmem:[#allocation27_spill] sm:$0xff]  ;;  %v10424_v62 = vunpack.i.h.bf16 %v8215_v16  ;;  %v10431_v16 = vld [vmem:[#allocation49_spill] sm:$0xff] }
 0x51e   :  { %3290 = vmatpush.msra.mxu1 %v3062_v55  ;;  %3198 = vmatpush.msrb.mxu2 %v8000_v61  ;;  %v2954_v48 = vsel %vm10387_vm1, %v5018_v29, %v10386_v26  ;;  %vm10388_vm3 = vmmov %vm10382_vm0  ;;  %v10426_v55 = vld [vmem:[#allocation31_spill] sm:$0xff]  ;;  %vm10432_vm11 = vnez %v10431_v16  ;;  %v10458_v26 = vld [vmem:[#allocation30_spill] sm:$0xff] }
 0x51f   :  { %3233 = vmatpush.msrb.mxu3 %v3049_v21  ;;  %3256 = vmatpush.msra.mxu0 %v8041_v52  ;;  %v2958_v61 = vsel %vm10384_vm2, %v10383_v17, %v5018_v29  ;;  %v3048_v52 = vsel %vm10385_vm15, %v5013_v51, %v5043_v6  ;;  %v3060_v10 = vsel %vm10388_vm3, %v5043_v6, %v4923_v2  ;;  %vm10390_vm0 = vmmov %vm10387_vm1  ;;  %v8522_v51 = vld [vmem:[%s9351_s5 + $0x30] sm:$0xff]  ;;  %v10392_v2 = vunpack.i.h.bf16 %v8161_v15  ;;  %v10446_v21 = vld [vmem:[#allocation57_spill] sm:$0xff] }
 0x520   :  { %3291 = vmatpush.msra.mxu1 %v3061_v9  ;;  %3155 = vmatmul.f32.gmra.mxu0 %v8461_v18  ;;  %v2957_v49 = vsel %vm10390_vm0, %v10389_v41, %v5019_v7  ;;  %vm10391_vm2 = vmmov %vm10388_vm3  ;;  %v10395_v15 = vunpack.i.l.bf16 %v8149_v34  ;;  %v5037_v20 = vpop.permute.xlu1 %5036  ;;  %v10442_v6 = vld [vmem:[#allocation26_spill] sm:$0xff]  ;;  %v10450_v9 = vld [vmem:[#allocation28_spill] sm:$0xff] }
 0x521   :  { %4629 = vmatmul.msk.f32.gmra.mxu1 %vm9737_vm10, %v8467_v63  ;;  %3199 = vmatpush.msrb.mxu2 %v2958_v61  ;;  %v3047_v32 = vsel %vm10391_vm2, %v5014_v8, %v5044_v13  ;;  %vm10393_vm15 = vmmov %vm10390_vm0  ;;  %v5038_v25 = vunpack.i.l.bf16 %v5037_v20  ;;  %v5039_v45 = vunpack.i.h.bf16 %v5037_v20  ;;  %v10453_v61 = vld [vmem:[#allocation44_spill] sm:$0xff]  ;;  %v10469_v41 = vld [vmem:[#allocation73_spill] sm:$0xff] }
 0x522   :  { %3234 = vmatpush.msrb.mxu3 %v3048_v52  ;;  %3257 = vmatpush.msra.mxu0 %v2954_v48  ;;  %v2953_v56 = vsel %vm10393_vm15, %v5019_v7, %v10392_v2  ;;  %vm10394_vm1 = vmmov %vm10391_vm2  ;;  %v10444_v7 = vld [vmem:[#allocation40_spill] sm:$0xff]  ;;  %v10456_v52 = vld [vmem:[#allocation43_spill] sm:$0xff] }
 0x523   :  { %3292 = vmatpush.msra.mxu1 %v3060_v10  ;;  %3200 = vmatpush.msrb.mxu2 %v2957_v49  ;;  %v3059_v14 = vsel %vm10394_vm1, %v5044_v13, %v4963_v1  ;;  %vm10396_vm3 = vmmov %vm10390_vm0  ;;  %v2952_v1 = vsel %vm10390_vm0, %v5023_v23, %v10397_v19  ;;  %vm10404_vm1 = vcmp.lt.s32.totalorder %v10337_v58, 2  ;;  %v10433_v58 = vld [vmem:[#allocation25_spill] sm:$0xff]  ;;  %v10448_v13 = vld [vmem:[#allocation39_spill] sm:$0xff] }
 0x524   :  { %3235 = vmatpush.msrb.mxu3 %v3047_v32  ;;  %3258 = vmatpush.msra.mxu0 %v2953_v56  ;;  %v2956_v8 = vsel %vm10396_vm3, %v10395_v15, %v5023_v23  ;;  %vm10399_vm2 = vmmov %vm10390_vm0  ;;  %v2910_v34 = vsel %vm10404_vm1, %v4998_v33, %v5028_v53  ;;  %v2905_v33 = vsel %vm10404_vm1, %v5029_v24, %v10412_v37  ;;  %v10455_v23 = vld [vmem:[#allocation65_spill] sm:$0xff]  ;;  %v10465_v48 = vld [vmem:[#allocation47_spill] sm:$0xff] }
 0x525   :  { %3293 = vmatpush.msra.mxu1 %v3059_v14  ;;  %3100 = vmatmul.f32.gmra.mxu2 %v8522_v51  ;;  %v2955_v12 = vsel %vm10399_vm2, %v10398_v50, %v5024_v44  ;;  %vm10403_vm15 = vmmov %vm10390_vm0  ;;  %vm10408_vm0 = vnez %v10407_v43  ;;  %v10467_v10 = vld [vmem:[#allocation52_spill] sm:$0xff]  ;;  %v10471_v49 = vld [vmem:[#allocation34_spill] sm:$0xff] }
 0x526   :  { %4625 = vmatmul.msk.f32.gmra.mxu3 %vm9737_vm10, %v8535_v28  ;;  %3201 = vmatpush.msrb.mxu2 %v2956_v8  ;;  %v2951_v4 = vsel %vm10403_vm15, %v5024_v44, %v10402_v36  ;;  %vm10406_vm3 = vmmov %vm10404_vm1  ;;  %vm10411_vm15 = vnez %v10410_v27  ;;  %v10473_v44 = vld [vmem:[#allocation51_spill] sm:$0xff]  ;;  %v10475_v32 = vld [vmem:[#allocation77_spill] sm:$0xff] }
 0x527   :  { %3259 = vmatpush.msra.mxu0 %v2952_v1  ;;  %4657 = vmatpush.msk.msra.mxu3 %vm9997_vm12, %v10400_v54  ;;  %v2906_v38 = vsel %vm10406_vm3, %v5028_v53, %v10405_v47  ;;  %vm10409_vm2 = vmmov %vm10404_vm1  ;;  %vm10414_vm3 = vnez %v10413_v46  ;;  %v10478_v2 = vld [vmem:[#allocation56_spill] sm:$0xff]  ;;  %v10480_v56 = vld [vmem:[#allocation81_spill] sm:$0xff] }
 0x528   :  { %3202 = vmatpush.msrb.mxu2 %v2955_v12  ;;  %3158 = vmatmul.f32.gmra.mxu0 %v8522_v51  ;;  %v2909_v60 = vsel %vm10409_vm2, %v4999_v0, %v5029_v24  ;;  %vm10415_vm9 = vmmov %vm10404_vm1  ;;  %vm10417_vm2 = vnez %v10416_v11  ;;  %v10482_v14 = vld [vmem:[#allocation38_spill] sm:$0xff]  ;;  %v10484_v53 = vld [vmem:[#allocation55_spill] sm:$0xff] }
 0x529   :  { %3260 = vmatpush.msra.mxu0 %v2951_v4  ;;  %4630 = vmatmul.msk.f32.gmra.mxu1 %vm9737_vm10, %v8535_v28  ;;  %v2908_v0 = vsel %vm10415_vm9, %v5003_v42, %v5038_v25  ;;  %vm10419_vm10 = vmmov %vm10404_vm1  ;;  %vm10420_vm1 = vcmask 269312   ;;  %v10422_v42 = vld [vmem:[#allocation45_spill] sm:$0xff]  ;;  %v10491_v15 = vld [vmem:[#allocation42_spill] sm:$0xff] }
 0x52a   :  { %3203 = vmatpush.msrb.mxu2 %v2910_v34  ;;  %4658 = vmatpush.msk.msra.mxu3 %vm10408_vm0, %v10400_v54  ;;  %v2904_v29 = vsel %vm10419_vm10, %v5038_v25, %v10418_v5  ;;  %vm10421_vm6 = vmmov %vm10415_vm9  ;;  %vm10423_vm9 = vnez %v10422_v42  ;;  %vm10427_vm10 = vnez %v10426_v55  ;;  %v10493_v8 = vld [vmem:[#allocation64_spill] sm:$0xff]  ;;  %v10495_v20 = vld [vmem:[#allocation86_spill] sm:$0xff] }
 0x52b   :  { %3261 = vmatpush.msra.mxu0 %v2906_v38  ;;  %4689 = vmatpush.msk.msrb.mxu1 %vm10411_vm15, %v10400_v54  ;;  %v2907_v39 = vsel %vm10421_vm6, %v5004_v57, %v5039_v45  ;;  %vm10425_vm14 = vmmov %vm10421_vm6  ;;  %v10429_v57 = vld [vmem:[#allocation32_spill] sm:$0xff]  ;;  %v10497_v19 = vld [vmem:[#allocation59_spill] sm:$0xff] }
 0x52c   :  { %3204 = vmatpush.msrb.mxu2 %v2909_v60  ;;  %4659 = vmatpush.msk.msra.mxu3 %vm10414_vm3, %v10400_v54  ;;  %v2903_v3 = vsel %vm10425_vm14, %v5039_v45, %v10424_v62  ;;  %vm10428_vm6 = vmmov %vm10420_vm1  ;;  %vm10434_vm14 = vnez %v10433_v58  ;;  %v10499_v1 = vld [vmem:[#allocation46_spill] sm:$0xff]  ;;  %v10501_v24 = vld [vmem:[#allocation88_spill] sm:$0xff] }
 0x52d   :  { %3262 = vmatpush.msra.mxu0 %v2905_v33  ;;  %4690 = vmatpush.msk.msrb.mxu1 %vm10417_vm2, %v10400_v54  ;;  %vm10449_vm2 = vnez %v10448_v13  ;;  %v10504_v50 = vld [vmem:[#allocation68_spill] sm:$0xff]  ;;  %v10506_v12 = vld [vmem:[#allocation63_spill] sm:$0xff]  ;;  %v10508_v36 = vld [vmem:[#allocation50_spill] sm:$0xff] }
 0x52e   :  { %3205 = vmatpush.msrb.mxu2 %v2908_v0  ;;  %4632 = vmatmul.msk.f32.vlgmr.msrb.gmra.mxu3 %vm10420_vm1, %v8377_v30  ;;  %vm10430_vm1 = vnez %v10429_v57  ;;  %v10516_v4 = vld [vmem:[#allocation76_spill] sm:$0xff]  ;;  %v10518_v25 = vld [vmem:[#allocation71_spill] sm:$0xff]  ;;  %v10520_v34 = vld [vmem:[#allocation58_spill] sm:$0xff] }
 0x52f   :  { %3263 = vmatpush.msra.mxu0 %v2904_v29  ;;  %4660 = vmatpush.msk.msra.mxu3 %vm10423_vm9, %v10400_v54  ;;  %v10522_v47 = vld [vmem:[#allocation80_spill] sm:$0xff]  ;;  %v10524_v38 = vld [vmem:[#allocation75_spill] sm:$0xff]  ;;  %v10526_v43 = vld [vmem:[#allocation62_spill] sm:$0xff] }
 0x530   :  { %3206 = vmatpush.msrb.mxu2 %v2907_v39  ;;  %4691 = vmatpush.msk.msrb.mxu1 %vm10427_vm10, %v10400_v54  ;;  %vm10443_vm10 = vnez %v10442_v6  ;;  %v10528_v45 = vld [vmem:[#allocation83_spill] sm:$0xff]  ;;  %v10532_v37 = vld [vmem:[#allocation66_spill] sm:$0xff]  ;;  %v10534_v33 = vld [vmem:[#allocation85_spill] sm:$0xff] }
 0x531   :  { %3264 = vmatpush.msra.mxu0 %v2903_v3  ;;  %3207 = vmatmul.f32.vlgmr.msrb.gmra.mxu2 %v8362_v59  ;;  %v10530_v60 = vld [vmem:[#allocation79_spill] sm:$0xff]  ;;  %v10536_v46 = vld [vmem:[#allocation82_spill] sm:$0xff] }
 0x532   :  { %3265 = vmatmul.f32.vlgmr.msra.gmra.mxu0 %v8362_v59  ;;  %4637 = vmatmul.msk.f32.vlgmr.msra.gmra.mxu1 %vm10428_vm6, %v8377_v30  ;;  %v10437_v59 = vld [vmem:[#allocation36_spill] sm:$0xff]  ;;  %v10439_v30 = vld [vmem:[#allocation53_spill] sm:$0xff]  ;;  %v10538_v0 = vld [vmem:[#allocation70_spill] sm:$0xff] }
 0x533   :  { %4641 = vmatpush.msk.msra.mxu2 %vm10430_vm1, %v10400_v54  ;;  %4661 = vmatpush.msk.msra.mxu3 %vm10432_vm11, %v10400_v54  ;;  %vm10438_vm13 = vnez %v10437_v59  ;;  %vm10440_vm6 = vnez %v10439_v30  ;;  %v10540_v5 = vld [vmem:[#allocation87_spill] sm:$0xff]  ;;  %v10542_v29 = vld [vmem:[#allocation74_spill] sm:$0xff] }
 0x534   :  { %4673 = vmatpush.msk.msrb.mxu0 %vm10434_vm14, %v10400_v54  ;;  %4692 = vmatpush.msk.msrb.mxu1 %vm10436_vm4, %v10400_v54  ;;  %vm10445_vm14 = vnez %v10444_v7  ;;  %vm10447_vm4 = vnez %v10446_v21  ;;  %v10547_v27 = vld [vmem:[#allocation78_spill] sm:$0xff] }
 0x535   :  { %4642 = vmatpush.msk.msra.mxu2 %vm10438_vm13, %v10400_v54  ;;  %4662 = vmatpush.msk.msra.mxu3 %vm10440_vm6, %v10400_v54  ;;  %vm10451_vm13 = vnez %v10450_v9 }
 0x536   :  { %4633 = vmatmul.msk.f32.gmra.mxu3 %vm10441_vm5, %v8429_v31  ;;  %4674 = vmatpush.msk.msrb.mxu0 %vm10443_vm10, %v10400_v54  ;;  %vm10454_vm10 = vnez %v10453_v61 }
 0x537   :  { %4643 = vmatpush.msk.msra.mxu2 %vm10445_vm14, %v10400_v54  ;;  %4663 = vmatpush.msk.msra.mxu3 %vm10447_vm4, %v10400_v54 }
 0x538   :  { %4693 = vmatpush.msk.msrb.mxu1 %vm10449_vm2, %v10400_v54  ;;  %4675 = vmatpush.msk.msrb.mxu0 %vm10451_vm13, %v10400_v54  ;;  %vm10457_vm13 = vnez %v10456_v52  ;;  %vm10459_vm2 = vnez %v10458_v26 }
 0x539   :  { %3210 = vmatmul.f32.gmra.mxu2 %v8422_v40  ;;  %4664 = vmatpush.msk.msra.mxu3 %vm10025_vm7, %v10400_v54 }
 0x53a   :  { %3268 = vmatmul.f32.gmra.mxu0 %v8422_v40  ;;  %4638 = vmatmul.msk.f32.gmra.mxu1 %vm10441_vm5, %v8429_v31  ;;  %v10460_v40 = vld [vmem:[#allocation48_spill] sm:$0xff]  ;;  %v10462_v31 = vld [vmem:[#allocation69_spill] sm:$0xff] }
 0x53b   :  { %4644 = vmatpush.msk.msra.mxu2 %vm10454_vm10, %v10400_v54  ;;  %4665 = vmatpush.msk.msra.mxu3 %vm6223_vm8, %v10400_v54  ;;  %vm10461_vm14 = vnez %v10460_v40  ;;  %vm10463_vm5 = vnez %v10462_v31  ;;  %vm10464_vm10 = vcmask 269312   ;;  %vm10466_vm8 = vnez %v10465_v48 }
 0x53c   :  { %4694 = vmatpush.msk.msrb.mxu1 %vm10457_vm13, %v10400_v54  ;;  %4676 = vmatpush.msk.msrb.mxu0 %vm10459_vm2, %v10400_v54  ;;  %vm10468_vm13 = vnez %v10467_v10  ;;  %vm10470_vm2 = vnez %v10469_v41 }
 0x53d   :  { %4645 = vmatpush.msk.msra.mxu2 %vm10461_vm14, %v10400_v54  ;;  %4666 = vmatpush.msk.msra.mxu3 %vm10463_vm5, %v10400_v54  ;;  %vm10472_vm14 = vnez %v10471_v49  ;;  %vm10474_vm5 = vnez %v10473_v44 }
 0x53e   :  { %4634 = vmatmul.msk.f32.gmra.mxu3 %vm10464_vm10, %v8467_v63  ;;  %4695 = vmatpush.msk.msrb.mxu1 %vm10466_vm8, %v10400_v54  ;;  %vm10476_vm10 = vnez %v10475_v32  ;;  %vm10477_vm8 = vcmask 269312  }
 0x53f   :  { %4646 = vmatpush.msk.msra.mxu2 %vm10468_vm13, %v10400_v54  ;;  %4667 = vmatpush.msk.msra.mxu3 %vm10470_vm2, %v10400_v54  ;;  %vm10479_vm13 = vnez %v10478_v2 }
 0x540   :  { %4677 = vmatpush.msk.msrb.mxu0 %vm10472_vm14, %v10400_v54  ;;  %4696 = vmatpush.msk.msrb.mxu1 %vm10474_vm5, %v10400_v54  ;;  %vm10481_vm14 = vnez %v10480_v56  ;;  %vm10483_vm5 = vnez %v10482_v14 }
 0x541   :  { %3213 = vmatmul.f32.gmra.mxu2 %v8461_v18  ;;  %4668 = vmatpush.msk.msra.mxu3 %vm10476_vm10, %v10400_v54  ;;  %vm10485_vm10 = vnez %v10484_v53 }
 0x542   :  { %3271 = vmatmul.f32.gmra.mxu0 %v8461_v18  ;;  %4639 = vmatmul.msk.f32.gmra.mxu1 %vm10477_vm8, %v8467_v63  ;;  %v10486_v18 = vld [vmem:[#allocation60_spill] sm:$0xff] }
 0x543   :  { %4647 = vmatpush.msk.msra.mxu2 %vm10479_vm13, %v10400_v54  ;;  %4669 = vmatpush.msk.msra.mxu3 %vm10481_vm14, %v10400_v54  ;;  %vm10487_vm2 = vnez %v10486_v18  ;;  %v10488_v63 = vld [vmem:[#allocation84_spill] sm:$0xff]  ;;  %vm10490_vm13 = vcmask 269312   ;;  %vm10492_vm14 = vnez %v10491_v15 }
 0x544   :  { %4678 = vmatpush.msk.msrb.mxu0 %vm10483_vm5, %v10400_v54  ;;  %4697 = vmatpush.msk.msrb.mxu1 %vm10485_vm10, %v10400_v54  ;;  %vm10489_vm8 = vnez %v10488_v63  ;;  %vm10494_vm5 = vnez %v10493_v8  ;;  %vm10496_vm10 = vnez %v10495_v20  ;;  %v10594_v20 = vld [vmem:[#allocation20_spill] sm:$0xff] }
 0x545   :  { %4648 = vmatpush.msk.msra.mxu2 %vm10487_vm2, %v10400_v54  ;;  %4670 = vmatpush.msk.msra.mxu3 %vm10489_vm8, %v10400_v54  ;;  %vm10498_vm2 = vnez %v10497_v19  ;;  %vm10500_vm8 = vnez %v10499_v1 }
 0x546   :  { %4635 = vmatmul.msk.f32.gmra.mxu3 %vm10490_vm13, %v8535_v28  ;;  %4679 = vmatpush.msk.msrb.mxu0 %vm10492_vm14, %v10400_v54  ;;  %vm10502_vm13 = vnez %v10501_v24  ;;  %vm10503_vm14 = vcmask 269312  }
 0x547   :  { %4649 = vmatpush.msk.msra.mxu2 %vm10494_vm5, %v10400_v54  ;;  %4671 = vmatpush.msk.msra.mxu3 %vm10496_vm10, %v10400_v54  ;;  %vm10505_vm5 = vnez %v10504_v50 }
 0x548   :  { %4698 = vmatpush.msk.msrb.mxu1 %vm10498_vm2, %v10400_v54  ;;  %4680 = vmatpush.msk.msrb.mxu0 %vm10500_vm8, %v10400_v54  ;;  %vm10507_vm8 = vnez %v10506_v12  ;;  %vm10509_vm2 = vnez %v10508_v36 }
 0x549   :  { %3216 = vmatmul.f32.gmra.mxu2 %v8522_v51  ;;  %4672 = vmatpush.msk.msra.mxu3 %vm10502_vm13, %v10400_v54 }
 0x54a   :  { %3274 = vmatmul.f32.gmra.mxu0 %v8522_v51  ;;  %4640 = vmatmul.msk.f32.gmra.mxu1 %vm10503_vm14, %v8535_v28  ;;  %v10510_v51 = vld [vmem:[#allocation72_spill] sm:$0xff]  ;;  %v10512_v28 = vld [vmem:[#allocation67_spill] sm:$0xff] }
 0x54b   :  { %4650 = vmatpush.msk.msra.mxu2 %vm10505_vm5, %v10400_v54  ;;  %4721 = vmatpush.msk.msrb.mxu3 %vm9997_vm12, %v10400_v54  ;;  %vm10511_vm13 = vnez %v10510_v51  ;;  %vm10513_vm14 = vnez %v10512_v28  ;;  %vm10515_vm12 = vnez %v10514_v22 }
 0x54c   :  { %4699 = vmatpush.msk.msrb.mxu1 %vm10507_vm8, %v10400_v54  ;;  %4681 = vmatpush.msk.msrb.mxu0 %vm10509_vm2, %v10400_v54  ;;  %vm10517_vm8 = vnez %v10516_v4  ;;  %vm10519_vm2 = vnez %v10518_v25 }
 0x54d   :  { %4651 = vmatpush.msk.msra.mxu2 %vm10511_vm13, %v10400_v54  ;;  %4722 = vmatpush.msk.msrb.mxu3 %vm10408_vm0, %v10400_v54  ;;  %vm10521_vm0 = vnez %v10520_v34 }
 0x54e   :  { %4700 = vmatpush.msk.msrb.mxu1 %vm10513_vm14, %v10400_v54  ;;  %4682 = vmatpush.msk.msrb.mxu0 %vm10515_vm12, %v10400_v54  ;;  %vm10523_vm14 = vnez %v10522_v47  ;;  %vm10525_vm12 = vnez %v10524_v38 }
 0x54f   :  { %4652 = vmatpush.msk.msra.mxu2 %vm10517_vm8, %v10400_v54  ;;  %4723 = vmatpush.msk.msrb.mxu3 %vm10414_vm3, %v10400_v54  ;;  %vm10527_vm3 = vnez %v10526_v43 }
 0x550   :  { %4701 = vmatpush.msk.msrb.mxu1 %vm10519_vm2, %v10400_v54  ;;  %4683 = vmatpush.msk.msrb.mxu0 %vm10521_vm0, %v10400_v54  ;;  %vm10529_vm2 = vnez %v10528_v45  ;;  %vm10531_vm0 = vnez %v10530_v60 }
 0x551   :  { %4653 = vmatpush.msk.msra.mxu2 %vm10523_vm14, %v10400_v54  ;;  %4724 = vmatpush.msk.msrb.mxu3 %vm10423_vm9, %v10400_v54  ;;  %vm10533_vm9 = vnez %v10532_v37 }
 0x552   :  { %4702 = vmatpush.msk.msrb.mxu1 %vm10525_vm12, %v10400_v54  ;;  %4684 = vmatpush.msk.msrb.mxu0 %vm10527_vm3, %v10400_v54  ;;  %vm10535_vm12 = vnez %v10534_v33  ;;  %vm10537_vm3 = vnez %v10536_v46 }
 0x553   :  { %4654 = vmatpush.msk.msra.mxu2 %vm10529_vm2, %v10400_v54  ;;  %4725 = vmatpush.msk.msrb.mxu3 %vm10432_vm11, %v10400_v54  ;;  %vm10539_vm11 = vnez %v10538_v0 }
 0x554   :  { %4703 = vmatpush.msk.msrb.mxu1 %vm10531_vm0, %v10400_v54  ;;  %4685 = vmatpush.msk.msrb.mxu0 %vm10533_vm9, %v10400_v54  ;;  %vm10541_vm0 = vnez %v10540_v5 }
 0x555   :  { %4655 = vmatpush.msk.msra.mxu2 %vm10535_vm12, %v10400_v54  ;;  %4726 = vmatpush.msk.msrb.mxu3 %vm10440_vm6, %v10400_v54  ;;  %vm10543_vm6 = vnez %v10542_v29 }
 0x556   :  { %4704 = vmatpush.msk.msrb.mxu1 %vm10537_vm3, %v10400_v54  ;;  %4686 = vmatpush.msk.msrb.mxu0 %vm10539_vm11, %v10400_v54  ;;  %vm10544_vm11 = vnez %v10437_v59 }
 0x557   :  { %4656 = vmatpush.msk.msra.mxu2 %vm10541_vm0, %v10400_v54  ;;  %4727 = vmatpush.msk.msrb.mxu3 %vm10447_vm4, %v10400_v54  ;;  %vm10545_vm4 = vnez %v10416_v11 }
 0x558   :  { %4753 = vmatpush.msk.msra.mxu1 %vm10411_vm15, %v10400_v54  ;;  %4687 = vmatpush.msk.msrb.mxu0 %vm10543_vm6, %v10400_v54  ;;  %vm10548_vm15 = vnez %v10547_v27  ;;  %vm10550_vm6 = vnez %v10426_v55 }
 0x559   :  { %4705 = vmatpush.msk.msrb.mxu2 %vm10430_vm1, %v10400_v54  ;;  %4728 = vmatpush.msk.msrb.mxu3 %vm10025_vm7, %v10400_v54  ;;  %vm10546_vm1 = vnez %v10455_v23  ;;  %vm10549_vm7 = vnez %v10444_v7 }
 0x55a   :  { %4754 = vmatpush.msk.msra.mxu1 %vm10545_vm4, %v10400_v54  ;;  %4688 = vmatpush.msk.msrb.mxu0 %vm10548_vm15, %v10400_v54  ;;  %vm10552_vm4 = vnez %v10433_v58  ;;  %vm10554_vm15 = vnez %v10435_v35 }
 0x55b   :  { %4706 = vmatpush.msk.msrb.mxu2 %vm10544_vm11, %v10400_v54  ;;  %4729 = vmatpush.msk.msrb.mxu3 %vm10546_vm1, %v10400_v54  ;;  %vm10551_vm11 = vnez %v10462_v31  ;;  %vm10553_vm1 = vnez %v10453_v61 }
 0x55c   :  { %4755 = vmatpush.msk.msra.mxu1 %vm10550_vm6, %v10400_v54  ;;  %4737 = vmatpush.msk.msra.mxu0 %vm10552_vm4, %v10400_v54  ;;  %vm10556_vm6 = vnez %v10442_v6  ;;  %vm10558_vm4 = vnez %v10448_v13 }
 0x55d   :  { %4707 = vmatpush.msk.msrb.mxu2 %vm10549_vm7, %v10400_v54  ;;  %4730 = vmatpush.msk.msrb.mxu3 %vm10551_vm11, %v10400_v54  ;;  %vm10555_vm7 = vnez %v10469_v41  ;;  %vm10557_vm11 = vnez %v10460_v40 }
 0x55e   :  { %4756 = vmatpush.msk.msra.mxu1 %vm10554_vm15, %v10400_v54  ;;  %4738 = vmatpush.msk.msra.mxu0 %vm10556_vm6, %v10400_v54  ;;  %vm10560_vm15 = vnez %v10450_v9  ;;  %vm10562_vm6 = vnez %v10456_v52 }
 0x55f   :  { %4708 = vmatpush.msk.msrb.mxu2 %vm10553_vm1, %v10400_v54  ;;  %4731 = vmatpush.msk.msrb.mxu3 %vm10555_vm7, %v10400_v54  ;;  %vm10559_vm1 = vnez %v10475_v32  ;;  %vm10561_vm7 = vnez %v10467_v10 }
 0x560   :  { %4757 = vmatpush.msk.msra.mxu1 %vm10558_vm4, %v10400_v54  ;;  %4739 = vmatpush.msk.msra.mxu0 %vm10560_vm15, %v10400_v54  ;;  %vm10564_vm4 = vnez %v10458_v26  ;;  %vm10566_vm15 = vnez %v10465_v48 }
 0x561   :  { %4709 = vmatpush.msk.msrb.mxu2 %vm10557_vm11, %v10400_v54  ;;  %4732 = vmatpush.msk.msrb.mxu3 %vm10559_vm1, %v10400_v54  ;;  %vm10563_vm11 = vnez %v10480_v56  ;;  %vm10565_vm1 = vnez %v10478_v2  ;;  %v10590_v2 = vld [vmem:[#allocation14_spill] sm:$0xff] }
 0x562   :  { %4758 = vmatpush.msk.msra.mxu1 %vm10562_vm6, %v10400_v54  ;;  %4740 = vmatpush.msk.msra.mxu0 %vm10564_vm4, %v10400_v54  ;;  %vm10568_vm6 = vnez %v10471_v49  ;;  %vm10570_vm4 = vnez %v10473_v44 }
 0x563   :  { %4710 = vmatpush.msk.msrb.mxu2 %vm10561_vm7, %v10400_v54  ;;  %4733 = vmatpush.msk.msrb.mxu3 %vm10563_vm11, %v10400_v54  ;;  %vm10567_vm7 = vnez %v10488_v63  ;;  %vm10569_vm11 = vnez %v10486_v18 }
 0x564   :  { %4759 = vmatpush.msk.msra.mxu1 %vm10566_vm15, %v10400_v54  ;;  %4741 = vmatpush.msk.msra.mxu0 %vm10568_vm6, %v10400_v54  ;;  %vm10572_vm15 = vnez %v10493_v8  ;;  %vm10574_vm6 = vnez %v10501_v24  ;;  %v10596_v24 = vld [vmem:[#allocation19_spill] sm:$0xff] }
 0x565   :  { %4711 = vmatpush.msk.msrb.mxu2 %vm10565_vm1, %v10400_v54  ;;  %4734 = vmatpush.msk.msrb.mxu3 %vm10567_vm7, %v10400_v54  ;;  %vm10571_vm1 = vnez %v10482_v14  ;;  %vm10573_vm7 = vnez %v10484_v53  ;;  %v10592_v53 = vld [vmem:[#allocation13_spill] sm:$0xff] }
 0x566   :  { %4760 = vmatpush.msk.msra.mxu1 %vm10570_vm4, %v10400_v54  ;;  %4742 = vmatpush.msk.msra.mxu0 %vm10571_vm1, %v10400_v54  ;;  %vm10577_vm4 = vnez %v10499_v1  ;;  %vm10578_vm1 = vnez %v10506_v12 }
 0x567   :  { %4712 = vmatpush.msk.msrb.mxu2 %vm10569_vm11, %v10400_v54  ;;  %4735 = vmatpush.msk.msrb.mxu3 %vm10496_vm10, %v10400_v54  ;;  %vm10575_vm11 = vnez %v10491_v15  ;;  %vm10576_vm10 = vnez %v10497_v19 }
 0x568   :  { %4761 = vmatpush.msk.msra.mxu1 %vm10573_vm7, %v10400_v54  ;;  %4743 = vmatpush.msk.msra.mxu0 %vm10575_vm11, %v10400_v54  ;;  %vm10581_vm7 = vnez %v10514_v22  ;;  %vm10585_vm11 = vnez %v10526_v43 }
 0x569   :  { %4713 = vmatpush.msk.msrb.mxu2 %vm10572_vm15, %v10400_v54  ;;  %4736 = vmatpush.msk.msrb.mxu3 %vm10574_vm6, %v10400_v54  ;;  %vm10579_vm15 = vnez %v10508_v36  ;;  %vm10583_vm6 = vnez %v10520_v34 }
 0x56a   :  { %4762 = vmatpush.msk.msra.mxu1 %vm10576_vm10, %v10400_v54  ;;  %4744 = vmatpush.msk.msra.mxu0 %vm10577_vm4, %v10400_v54  ;;  %vm10589_vm10 = vnez %v10547_v27  ;;  %vm10597_vm4 = vnez %v10596_v24 }
 0x56b   :  { %4714 = vmatpush.msk.msrb.mxu2 %vm10505_vm5, %v10400_v54  ;;  %vm10580_vm5 = vnez %v10512_v28 }
 0x56c   :  { %4763 = vmatpush.msk.msra.mxu1 %vm10578_vm1, %v10400_v54  ;;  %4745 = vmatpush.msk.msra.mxu0 %vm10579_vm15, %v10400_v54  ;;  %vm10598_vm1 = vcmask 261120  }
 0x56d   :  { %4715 = vmatpush.msk.msrb.mxu2 %vm10511_vm13, %v10400_v54  ;;  %vm10582_vm13 = vnez %v10518_v25 }
 0x56e   :  { %4764 = vmatpush.msk.msra.mxu1 %vm10580_vm5, %v10400_v54  ;;  %4746 = vmatpush.msk.msra.mxu0 %vm10581_vm7, %v10400_v54  ;;  %vm10603_vm7 = vmmov %vm10598_vm1 }
 0x56f   :  { %4716 = vmatpush.msk.msrb.mxu2 %vm10517_vm8, %v10400_v54  ;;  %vm10584_vm8 = vnez %v10524_v38 }
 0x570   :  { %4765 = vmatpush.msk.msra.mxu1 %vm10582_vm13, %v10400_v54  ;;  %4747 = vmatpush.msk.msra.mxu0 %vm10583_vm6, %v10400_v54  ;;  %vm10604_vm13 = vmmov %vm10598_vm1 }
 0x571   :  { %4717 = vmatpush.msk.msrb.mxu2 %vm10523_vm14, %v10400_v54  ;;  %vm10586_vm14 = vnez %v10530_v60  ;;  %vm10605_vm6 = vmmov %vm10598_vm1 }
 0x572   :  { %4766 = vmatpush.msk.msra.mxu1 %vm10584_vm8, %v10400_v54  ;;  %4748 = vmatpush.msk.msra.mxu0 %vm10585_vm11, %v10400_v54  ;;  %vm10606_vm8 = vmmov %vm10598_vm1 }
 0x573   :  { %4718 = vmatpush.msk.msrb.mxu2 %vm10529_vm2, %v10400_v54  ;;  %vm10587_vm2 = vnez %v10538_v0 }
 0x574   :  { %4767 = vmatpush.msk.msra.mxu1 %vm10586_vm14, %v10400_v54  ;;  %4749 = vmatpush.msk.msra.mxu0 %vm10533_vm9, %v10400_v54  ;;  %vm10595_vm9 = vnez %v10594_v20 }
 0x575   :  { %4719 = vmatpush.msk.msrb.mxu2 %vm10535_vm12, %v10400_v54  ;;  %vm10588_vm12 = vnez %v10542_v29 }
 0x576   :  { %4768 = vmatpush.msk.msra.mxu1 %vm10537_vm3, %v10400_v54  ;;  %4750 = vmatpush.msk.msra.mxu0 %vm10587_vm2, %v10400_v54  ;;  %vm10593_vm3 = vnez %v10592_v53  ;;  %vm10611_vm2 = vmmov %vm10598_vm1 }
 0x577   :  { %4720 = vmatpush.msk.msrb.mxu2 %vm10541_vm0, %v10400_v54  ;;  %vm10591_vm0 = vnez %v10590_v2 }
 0x578   :  { %4751 = vmatpush.msk.msra.mxu0 %vm10588_vm12, %v10400_v54  ;;  %vm10612_vm12 = vmmov %vm10598_vm1 }
 0x57a   :  { %4752 = vmatpush.msk.msra.mxu0 %vm10589_vm10, %v10400_v54  ;;  %vm10613_vm10 = vmmov %vm10598_vm1 }
 0x58a   :  { %v3179_v11 = vpop.f32.mrf.mxu1 }
 0x58d   :  { %v3150_v39 = vpop.f32.mrf.mxu0 }
 0x58e   :  { %v9005_v42 = vadd.f32 %v3179_v11, %v3150_v39  ;;  %v3092_v62 = vpop.f32.mrf.mxu2 }
 0x58f   :  { %v3121_v3 = vpop.f32.mrf.mxu3 }
 0x590   :  { %v9007_v55 = vadd.f32 %v3121_v3, %v3092_v62  ;;  %3352 = vmatmul.f32.vlgmr.msra.gmra.mxu3 %v9005_v42  ;;  %v3424_v48 = vmul.f32 %v9005_v42, %v9005_v42 }
 0x592   :  { %3323 = vmatmul.f32.vlgmr.msra.gmra.mxu2 %v9007_v55  ;;  %v3182_v57 = vpop.f32.mrf.mxu1  ;;  %v3423_v32 = vmul.f32 %v9007_v55, %v9007_v55 }
 0x595   :  { %v3153_v16 = vpop.f32.mrf.mxu0 }
 0x596   :  { %v9011_v58 = vadd.f32 %v3182_v57, %v3153_v16  ;;  %v3095_v35 = vpop.f32.mrf.mxu2 }
 0x597   :  { %v3124_v59 = vpop.f32.mrf.mxu3 }
 0x598   :  { %v9013_v30 = vadd.f32 %v3124_v59, %v3095_v35  ;;  %3355 = vmatmul.f32.gmra.mxu3 %v9011_v58  ;;  %v3428_v15 = vmul.f32 %v9011_v58, %v9011_v58 }
 0x59a   :  { %3326 = vmatmul.f32.gmra.mxu2 %v9013_v30  ;;  %v3427_v1 = vmul.f32 %v9013_v30, %v9013_v30 }
 0x59d   :  { %v3156_v6 = vpop.f32.mrf.mxu0 }
 0x59e   :  { %v3185_v7 = vpop.f32.mrf.mxu1  ;;  %v3098_v21 = vpop.f32.mrf.mxu2 }
 0x59f   :  { %v9017_v13 = vadd.f32 %v3185_v7, %v3156_v6  ;;  %v3127_v9 = vpop.f32.mrf.mxu3 }
 0x5a0   :  { %v9019_v17 = vadd.f32 %v3127_v9, %v3098_v21 }
 0x5a1   :  { %3358 = vmatmul.f32.gmra.mxu3 %v9017_v13  ;;  %v3432_v28 = vmul.f32 %v9017_v13, %v9017_v13 }
 0x5a2   :  { %3329 = vmatmul.f32.gmra.mxu2 %v9019_v17  ;;  %v3431_v25 = vmul.f32 %v9019_v17, %v9019_v17 }
 0x5a5   :  { %v3159_v61 = vpop.f32.mrf.mxu0 }
 0x5a6   :  { %v3188_v23 = vpop.f32.mrf.mxu1 }
 0x5a7   :  { %v9023_v52 = vadd.f32 %v3188_v23, %v3159_v61 }
 0x5a8   :  { %v3101_v26 = vpop.f32.mrf.mxu2 }
 0x5a9   :  { %v3130_v40 = vpop.f32.mrf.mxu3  ;;  %3361 = vmatmul.f32.gmra.mxu3 %v9023_v52  ;;  %v3436_v45 = vmul.f32 %v9023_v52, %v9023_v52 }
 0x5aa   :  { %v9026_v31 = vadd.f32 %v3130_v40, %v3101_v26 }
 0x5ac   :  { %3332 = vmatmul.f32.gmra.mxu2 %v9026_v31  ;;  %v3435_v37 = vmul.f32 %v9026_v31, %v9026_v31 }
 0x5af   :  { %v3266_v10 = vpop.f32.mrf.mxu0  ;;  %v3295_v41 = vpop.f32.mrf.mxu1 }
 0x5b0   :  { %v9031_v49 = vadd.f32 %v3295_v41, %v3266_v10 }
 0x5b1   :  { %3484 = vmatmul.f32.vlgmr.msrb.gmra.mxu3 %v3424_v48  ;;  %v3237_v44 = vpop.f32.mrf.mxu3 }
 0x5b2   :  { %3410 = vmatmul.f32.vlgmr.msrb.gmra.mxu1 %v9031_v49  ;;  %v3426_v5 = vmul.f32 %v9031_v49, %v9031_v49 }
 0x5b3   :  { %4783 = vmatpush.msk.msrb.mxu1 %vm10591_vm0, %v10400_v54 }
 0x5b4   :  { %3455 = vmatmul.f32.vlgmr.msrb.gmra.mxu2 %v3423_v32  ;;  %v3208_v56 = vpop.f32.mrf.mxu2 }
 0x5b5   :  { %v9039_v14 = vadd.f32 %v3237_v44, %v3208_v56  ;;  %4784 = vmatpush.msk.msrb.mxu1 %vm10593_vm3, %v10400_v54 }
 0x5b7   :  { %v3269_v18 = vpop.f32.mrf.mxu0  ;;  %v3298_v63 = vpop.f32.mrf.mxu1  ;;  %3381 = vmatmul.f32.vlgmr.msrb.gmra.mxu0 %v9039_v14  ;;  %v3425_v29 = vmul.f32 %v9039_v14, %v9039_v14 }
 0x5b8   :  { %v9047_v8 = vadd.f32 %v3298_v63, %v3269_v18  ;;  %4777 = vmatpush.msk.msrb.mxu0 %vm10595_vm9, %v10400_v54 }
 0x5b9   :  { %3487 = vmatmul.f32.gmra.mxu3 %v3428_v15  ;;  %v3240_v19 = vpop.f32.mrf.mxu3 }
 0x5ba   :  { %3413 = vmatmul.f32.gmra.mxu1 %v9047_v8  ;;  %4778 = vmatpush.msk.msrb.mxu0 %vm10597_vm4, %v10400_v54  ;;  %v3430_v27 = vmul.f32 %v9047_v8, %v9047_v8 }
 0x5bc   :  { %3458 = vmatmul.f32.gmra.mxu2 %v3427_v1  ;;  %v3211_v50 = vpop.f32.mrf.mxu2 }
 0x5bd   :  { %v9058_v12 = vadd.f32 %v3240_v19, %v3211_v50 }
 0x5bf   :  { %v3272_v36 = vpop.f32.mrf.mxu0  ;;  %v3301_v51 = vpop.f32.mrf.mxu1  ;;  %3384 = vmatmul.f32.gmra.mxu0 %v9058_v12  ;;  %v3429_v11 = vmul.f32 %v9058_v12, %v9058_v12 }
 0x5c0   :  { %v9063_v22 = vadd.f32 %v3301_v51, %v3272_v36 }
 0x5c1   :  { %3490 = vmatmul.f32.gmra.mxu3 %v3432_v28  ;;  %v3243_v4 = vpop.f32.mrf.mxu3 }
 0x5c2   :  { %3416 = vmatmul.f32.gmra.mxu1 %v9063_v22  ;;  %v3434_v39 = vmul.f32 %v9063_v22, %v9063_v22 }
 0x5c4   :  { %3461 = vmatmul.f32.gmra.mxu2 %v3431_v25  ;;  %v3214_v34 = vpop.f32.mrf.mxu2 }
 0x5c5   :  { %v9068_v47 = vadd.f32 %v3243_v4, %v3214_v34 }
 0x5c7   :  { %v3275_v38 = vpop.f32.mrf.mxu0  ;;  %v3304_v43 = vpop.f32.mrf.mxu1  ;;  %3387 = vmatmul.f32.gmra.mxu0 %v9068_v47  ;;  %v3433_v62 = vmul.f32 %v9068_v47, %v9068_v47 }
 0x5c8   :  { %v9073_v60 = vadd.f32 %v3304_v43, %v3275_v38  ;;  %v5387_v43 = vld [vmem:[#allocation5] sm:$0xff] }
 0x5c9   :  { %3493 = vmatmul.f32.gmra.mxu3 %v3436_v45  ;;  %v3246_v33 = vpop.f32.mrf.mxu3  ;;  %v10599_v45 = vld [vmem:[#allocation16_spill] sm:$0xff] }
 0x5ca   :  { %3419 = vmatmul.f32.gmra.mxu1 %v9073_v60  ;;  %v3438_v3 = vmul.f32 %v9073_v60, %v9073_v60  ;;  %vm10600_vm15 = vnez %v10599_v45 }
 0x5cc   :  { %3464 = vmatmul.f32.gmra.mxu2 %v3435_v37  ;;  %v3217_v46 = vpop.f32.mrf.mxu2 }
 0x5cd   :  { %v9078_v0 = vadd.f32 %v3246_v33, %v3217_v46  ;;  %v10601_v33 = vld [vmem:[#allocation15_spill] sm:$0xff] }
 0x5ce   :  { %vm10602_vm5 = vnez %v10601_v33 }
 0x5cf   :  { %3390 = vmatmul.f32.gmra.mxu0 %v9078_v0  ;;  %v3437_v57 = vmul.f32 %v9078_v0, %v9078_v0 }
 0x5d2   :  { %3542 = vmatmul.f32.vlgmr.msra.gmra.mxu1 %v3426_v5 }
 0x5d3   :  { %4807 = vmatpush.msk.msra.mxu1 %vm10591_vm0, %v10400_v54 }
 0x5d5   :  { %4808 = vmatpush.msk.msra.mxu1 %vm10593_vm3, %v10400_v54 }
 0x5d7   :  { %3513 = vmatmul.f32.vlgmr.msra.gmra.mxu0 %v3425_v29 }
 0x5d8   :  { %4801 = vmatpush.msk.msra.mxu0 %vm10595_vm9, %v10400_v54 }
 0x5da   :  { %3545 = vmatmul.f32.gmra.mxu1 %v3430_v27  ;;  %4802 = vmatpush.msk.msra.mxu0 %vm10597_vm4, %v10400_v54  ;;  %v5388_v27 = vld [vmem:[#allocation5 + $0x8] sm:$0xff]  ;;  %vm10614_vm4 = vcmask 130048  }
 0x5df   :  { %3516 = vmatmul.f32.gmra.mxu0 %v3429_v11 }
 0x5e2   :  { %3548 = vmatmul.f32.gmra.mxu1 %v3434_v39 }
 0x5e7   :  { %3519 = vmatmul.f32.gmra.mxu0 %v3433_v62 }
 0x5ea   :  { %3551 = vmatmul.f32.gmra.mxu1 %v3438_v3  ;;  %v5389_v3 = vld [vmem:[#allocation5 + $0x10] sm:$0xff] }
 0x5ef   :  { %3522 = vmatmul.f32.gmra.mxu0 %v3437_v57 }
 0x613   :  { %v3353_v35 = vpop.f32.mrf.mxu3 }
 0x615   :  { %v3324_v16 = vpop.f32.mrf.mxu2 }
 0x616   :  { %v3354_v19 = vadd.f32 %v3353_v35, %v3324_v16 }
 0x61b   :  { %v3356_v6 = vpop.f32.mrf.mxu3 }
 0x61d   :  { %v3327_v59 = vpop.f32.mrf.mxu2 }
 0x61e   :  { %v3357_v63 = vadd.f32 %v3356_v6, %v3327_v59 }
 0x624   :  { %v3359_v23 = vpop.f32.mrf.mxu3 }
 0x625   :  { %v3330_v9 = vpop.f32.mrf.mxu2 }
 0x626   :  { %v3360_v2 = vadd.f32 %v3359_v23, %v3330_v9 }
 0x62c   :  { %v3362_v10 = vpop.f32.mrf.mxu3 }
 0x62f   :  { %v3411_v7 = vpop.f32.mrf.mxu1  ;;  %v3333_v48 = vpop.f32.mrf.mxu2 }
 0x630   :  { %v3363_v56 = vadd.f32 %v3362_v10, %v3333_v48 }
 0x634   :  { %v3382_v21 = vpop.f32.mrf.mxu0  ;;  %v3485_v53 = vpop.f32.mrf.mxu3 }
 0x635   :  { %v3383_v36 = vadd.f32 %v3382_v21, %v3354_v19 }
 0x637   :  { %v3414_v61 = vpop.f32.mrf.mxu1  ;;  %v3456_v32 = vpop.f32.mrf.mxu2  ;;  %v3412_v34 = vadd.f32 %v3411_v7, %v3383_v36 }
 0x63c   :  { %v3385_v26 = vpop.f32.mrf.mxu0  ;;  %v3488_v38 = vpop.f32.mrf.mxu3 }
 0x63d   :  { %v3386_v1 = vadd.f32 %v3385_v26, %v3357_v63  ;;  %v5511_v63 = vmov 3  }
 0x63f   :  { %v3417_v40 = vpop.f32.mrf.mxu1  ;;  %v3415_v28 = vadd.f32 %v3414_v61, %v3386_v1  ;;  %v3459_v4 = vpop.f32.mrf.mxu2  ;;  %v3486_v61 = vadd.f32 %v3485_v53, %v3456_v32  ;;  %v5392_v32 = vld [vmem:[%s9354_s8 + $0x8] sm:$0xff]  ;;  %v5393_v53 = vld [vmem:[%s9354_s8 + $0x10] sm:$0xff] }
 0x640   :  { %v3489_v6 = vadd.f32 %v3488_v38, %v3459_v4 }
 0x644   :  { %v3388_v41 = vpop.f32.mrf.mxu0  ;;  %v3491_v29 = vpop.f32.mrf.mxu3 }
 0x645   :  { %v3389_v15 = vadd.f32 %v3388_v41, %v3360_v2  ;;  %v5510_v41 = vmov 2  }
 0x646   :  { %5045 = vset.pattern.permute.xlu0 %v5510_v41  ;;  %5046 = vset.pattern.permute.xlu1 %v5510_v41 }
 0x647   :  { %v3420_v44 = vpop.f32.mrf.mxu1  ;;  %v3418_v51 = vadd.f32 %v3417_v40, %v3389_v15  ;;  %v3462_v5 = vpop.f32.mrf.mxu2  ;;  %v5390_v40 = vld [vmem:[#allocation5 + $0x18] sm:$0xff]  ;;  %3670 = vperm.xlu1 %5046, %v5392_v32   ;;  %5047 = vset.pattern.permute.xlu2 %v5510_v41 }
 0x648   :  { %v3492_v16 = vadd.f32 %v3491_v29, %v3462_v5  ;;  %3674 = vperm.xlu2 %5047, %v5393_v53   ;;  %v5394_v15 = vld [vmem:[%s9354_s8 + $0x18] sm:$0xff] }
 0x64c   :  { %v3391_v18 = vpop.f32.mrf.mxu0  ;;  %v3494_v57 = vpop.f32.mrf.mxu3 }
 0x64d   :  { %v3392_v20 = vadd.f32 %v3391_v18, %v3363_v56  ;;  %v10607_v18 = vld [vmem:[#allocation18_spill] sm:$0xff] }
 0x64e   :  { %vm10608_vm11 = vnez %v10607_v18 }
 0x64f   :  { %v3421_v24 = vadd.f32 %v3420_v44, %v3392_v20  ;;  %v3543_v50 = vpop.f32.mrf.mxu1  ;;  %v3465_v62 = vpop.f32.mrf.mxu2  ;;  %v5391_v44 = vld [vmem:[%s9354_s8] sm:$0xff]  ;;  %3678 = vperm.xlu1 %5046, %v5394_v15   ;;  %v10609_v20 = vld [vmem:[#allocation17_spill] sm:$0xff]  ;;  %s5512_s8 = smov [#allocation8]  }
 0x650   :  { %v3495_v35 = vadd.f32 %v3494_v57, %v3465_v62  ;;  %3666 = vperm.xlu0 %5045, %v5391_v44   ;;  %vm10610_vm14 = vnez %v10609_v20  ;;  %5048 = vset.pattern.permute.xlu2 %v5511_v63  ;;  %s4241_s16 = sshll.u32 %s5512_s8, 4  ;;  %s4242_s16 = int_to_ptr.vmem [resolvable:$true] %s4241_s16 }
 0x651   :  { %3567 = vmatpush.msra.mxu2 %v3421_v24  ;;  %3690 = vperm.xlu2 %5048, %v5391_v44  }
 0x653   :  { %3568 = vmatpush.msra.mxu2 %v3418_v51 }
 0x654   :  { %v3514_v25 = vpop.f32.mrf.mxu0 }
 0x655   :  { %3569 = vmatpush.msra.mxu2 %v3415_v28  ;;  %v3515_v48 = vadd.f32 %v3514_v25, %v3486_v61 }
 0x657   :  { %3570 = vmatpush.msra.mxu2 %v3412_v34  ;;  %v3546_v37 = vpop.f32.mrf.mxu1  ;;  %v3544_v56 = vadd.f32 %v3543_v50, %v3515_v48  ;;  %5050 = vset.pattern.permute.xlu1 %v5511_v63 }
 0x658   :  { %4769 = vmatmul.msk.f32.vlgmr.msra.gmra.mxu2 %vm10598_vm1, %v5387_v43  ;;  %5049 = vset.pattern.permute.xlu0 %v5511_v63  ;;  %vm10615_vm1 = vmmov %vm10614_vm4 }
 0x659   :  { %4789 = vmatpush.msk.msrb.mxu2 %vm10600_vm15, %v10400_v54  ;;  %3694 = vperm.xlu0 %5049, %v5392_v32  }
 0x65a   :  { %3698 = vperm.xlu1 %5050, %v5393_v53   ;;  %3702 = vperm.xlu2 %5048, %v5394_v15  }
 0x65b   :  { %4790 = vmatpush.msk.msrb.mxu2 %vm10602_vm5, %v10400_v54 }
 0x65c   :  { %v3517_v46 = vpop.f32.mrf.mxu0 }
 0x65d   :  { %4813 = vmatpush.msk.msra.mxu2 %vm10600_vm15, %v10400_v54  ;;  %v3518_v23 = vadd.f32 %v3517_v46, %v3489_v6  ;;  %vm10616_vm15 = vmmov %vm10615_vm1 }
 0x65f   :  { %4814 = vmatpush.msk.msra.mxu2 %vm10602_vm5, %v10400_v54  ;;  %v3549_v11 = vpop.f32.mrf.mxu1  ;;  %v3547_v2 = vadd.f32 %v3546_v37, %v3518_v23  ;;  %vm10617_vm5 = vmmov %vm10615_vm1 }
 0x660   :  { %4770 = vmatmul.msk.f32.gmra.mxu2 %vm10603_vm7, %v5388_v27 }
 0x664   :  { %v3520_v39 = vpop.f32.mrf.mxu0 }
 0x665   :  { %v3521_v7 = vadd.f32 %v3520_v39, %v3492_v16 }
 0x667   :  { %v3552_v9 = vpop.f32.mrf.mxu1  ;;  %v3550_v10 = vadd.f32 %v3549_v11, %v3521_v7 }
 0x668   :  { %4771 = vmatmul.msk.f32.gmra.mxu2 %vm10604_vm13, %v5389_v3 }
 0x66c   :  { %v3523_v59 = vpop.f32.mrf.mxu0 }
 0x66d   :  { %v3524_v21 = vadd.f32 %v3523_v59, %v3495_v35 }
 0x66f   :  { %v3553_v26 = vadd.f32 %v3552_v9, %v3524_v21 }
 0x670   :  { %4772 = vmatmul.msk.f32.gmra.mxu2 %vm10605_vm6, %v5390_v40 }
 0x671   :  { %3596 = vmatpush.msra.mxu3 %v3553_v26 }
 0x673   :  { %3597 = vmatpush.msra.mxu3 %v3550_v10 }
 0x675   :  { %3598 = vmatpush.msra.mxu3 %v3547_v2 }
 0x677   :  { %3599 = vmatpush.msra.mxu3 %v3544_v56 }
 0x678   :  { %4773 = vmatmul.msk.f32.vlgmr.msra.gmra.mxu3 %vm10606_vm8, %v5387_v43  ;;  %vm10618_vm8 = vmmov %vm10615_vm1 }
 0x679   :  { %4795 = vmatpush.msk.msrb.mxu3 %vm10608_vm11, %v10400_v54 }
 0x67b   :  { %4796 = vmatpush.msk.msrb.mxu3 %vm10610_vm14, %v10400_v54 }
 0x67d   :  { %4819 = vmatpush.msk.msra.mxu3 %vm10608_vm11, %v10400_v54  ;;  %vm10619_vm11 = vmmov %vm10615_vm1 }
 0x67f   :  { %4820 = vmatpush.msk.msra.mxu3 %vm10610_vm14, %v10400_v54 }
 0x680   :  { %4774 = vmatmul.msk.f32.gmra.mxu3 %vm10611_vm2, %v5388_v27  ;;  %vm10620_vm2 = vmmov %vm10615_vm1 }
 0x688   :  { %4775 = vmatmul.msk.f32.gmra.mxu3 %vm10612_vm12, %v5389_v3  ;;  %vm10621_vm12 = vmmov %vm10615_vm1 }
 0x690   :  { %4776 = vmatmul.msk.f32.gmra.mxu3 %vm10613_vm10, %v5390_v40 }
 0x6a2   :  { %v3675_v20 = vpop.permute.xlu2 %3674 }
 0x6b9   :  { %v3671_v41 = vpop.permute.xlu1 %3670 }
 0x6c2   :  { %v3667_v3 = vpop.permute.xlu0 %3666 }
 0x6db   :  { %v9153_v19 = vpop.f32.mrf.mxu2 }
 0x6dc   :  { %v3613_v1 = vmul.f32 %v9153_v19, %v9153_v19 }
 0x6e3   :  { %v9157_v24 = vpop.f32.mrf.mxu2 }
 0x6e4   :  { %v3614_v54 = vmul.f32 %v9157_v24, %v9157_v24 }
 0x6eb   :  { %v9161_v4 = vpop.f32.mrf.mxu2 }
 0x6ec   :  { %v3615_v45 = vmul.f32 %v9161_v4, %v9161_v4 }
 0x6f3   :  { %v9165_v27 = vpop.f32.mrf.mxu2 }
 0x6f4   :  { %v3616_v16 = vmul.f32 %v9165_v27, %v9165_v27 }
 0x6fb   :  { %v3601_v50 = vpop.f32.mrf.mxu3 }
 0x6fc   :  { %v3617_v36 = vsub.f32 %v3601_v50, %v3613_v1 }
 0x6fe   :  { %v3621_v51 = vadd.f32 1e-05, %v3617_v36 }
 0x700   :  { %5315 = vrsqrt.f32 %v3621_v51  ;;  %vm3631_vm3 = vweird.f32 %v3621_v51 }
 0x703   :  { %v3604_v28 = vpop.f32.mrf.mxu3 }
 0x704   :  { %v3618_v25 = vsub.f32 %v3604_v28, %v3614_v54  ;;  %v3679_v28 = vpop.permute.xlu1 %3678 }
 0x706   :  { %v5316_v34 = vpop.eup %5315  ;;  %v3622_v38 = vadd.f32 1e-05, %v3618_v25 }
 0x707   :  { %v3626_v43 = vmul.f32 %v5316_v34, %v3621_v51  ;;  %vm3632_vm0 = vweird.f32 %v5316_v34 }
 0x708   :  { %5317 = vrsqrt.f32 %v3622_v38  ;;  %vm3633_vm9 = vmor %vm3631_vm3, %vm3632_vm0  ;;  %vm3641_vm13 = vweird.f32 %v3622_v38 }
 0x709   :  { %v3627_v37 = vmul.f32 %v5316_v34, %v3626_v43  ;;  %vm10622_vm3 = vmmov %vm10615_vm1  ;;  %v3691_v43 = vpop.permute.xlu2 %3690 }
 0x70b   :  { %v3628_v33 = vmul.f32 0.5, %v3627_v37  ;;  %v3607_v46 = vpop.f32.mrf.mxu3 }
 0x70c   :  { %v3619_v5 = vsub.f32 %v3607_v46, %v3615_v45 }
 0x70d   :  { %v3629_v29 = vsub.f32 1.5, %v3628_v33  ;;  %v3695_v33 = vpop.permute.xlu0 %3694 }
 0x70e   :  { %v5318_v11 = vpop.eup %5317  ;;  %v3623_v39 = vadd.f32 1e-05, %v3619_v5  ;;  %v3699_v5 = vpop.permute.xlu1 %3698 }
 0x70f   :  { %v3636_v62 = vmul.f32 %v5318_v11, %v3622_v38  ;;  %v3630_v57 = vmul.f32 %v5316_v34, %v3629_v29  ;;  %vm3642_vm7 = vweird.f32 %v5318_v11 }
 0x710   :  { %5319 = vrsqrt.f32 %v3623_v39  ;;  %vm3643_vm6 = vmor %vm3641_vm13, %vm3642_vm7  ;;  %vm3651_vm10 = vweird.f32 %v3623_v39 }
 0x711   :  { %v3637_v35 = vmul.f32 %v5318_v11, %v3636_v62  ;;  %v3634_v59 = vsel %vm3633_vm9, %v5316_v34, %v3630_v57  ;;  %vm10623_vm9 = vmmov %vm10615_vm1 }
 0x712   :  { %v3681_v6 = vmul.f32 %v3667_v3, %v3634_v59  ;;  %vm10625_vm13 = vmmov %vm10615_vm1 }
 0x713   :  { %v3638_v7 = vmul.f32 0.5, %v3637_v35  ;;  %v3610_v21 = vpop.f32.mrf.mxu3 }
 0x714   :  { %v3620_v9 = vsub.f32 %v3610_v21, %v3616_v16  ;;  %4779 = vmatmul.msk.f32.vlgmr.msrb.gmra.mxu0 %vm10614_vm4, %v3681_v6  ;;  %4785 = vmatmul.msk.f32.vlgmr.msrb.gmra.mxu1 %vm10615_vm1, %v3681_v6  ;;  %vm10624_vm4 = vmmov %vm10615_vm1  ;;  %v3685_v38 = vmul.f32 %v3681_v6, %v9153_v19 }
 0x715   :  { %4791 = vmatmul.msk.f32.vlgmr.msrb.gmra.mxu2 %vm10616_vm15, %v3681_v6  ;;  %4797 = vmatmul.msk.f32.vlgmr.msrb.gmra.mxu3 %vm10617_vm5, %v3681_v6  ;;  %v3639_v61 = vsub.f32 1.5, %v3638_v7 }
 0x716   :  { %v5320_v23 = vpop.eup %5319  ;;  %v3624_v26 = vadd.f32 1e-05, %v3620_v9  ;;  %v3705_v45 = vsub.f32 %v3691_v43, %v3685_v38 }
 0x717   :  { %v3646_v40 = vmul.f32 %v5320_v23, %v3623_v39  ;;  %v3640_v48 = vmul.f32 %v5318_v11, %v3639_v61  ;;  %vm3652_vm14 = vweird.f32 %v5320_v23 }
 0x718   :  { %5321 = vrsqrt.f32 %v3624_v26  ;;  %vm3653_vm0 = vmor %vm3651_vm10, %vm3652_vm14  ;;  %vm3661_vm5 = vweird.f32 %v3624_v26 }
 0x719   :  { %v3647_v10 = vmul.f32 %v5320_v23, %v3646_v40  ;;  %v3644_v44 = vsel %vm3643_vm6, %v5318_v11, %v3640_v48  ;;  %vm10626_vm6 = vmmov %vm10615_vm1  ;;  %v3703_v11 = vpop.permute.xlu2 %3702 }
 0x71a   :  { %v3682_v2 = vmul.f32 %v3671_v41, %v3644_v44  ;;  %vm10629_vm14 = vmmov %vm10615_vm1 }
 0x71b   :  { %v3648_v32 = vmul.f32 0.5, %v3647_v10  ;;  %vm10632_vm10 = vmmov %vm10615_vm1 }
 0x71c   :  { %4780 = vmatmul.msk.f32.gmra.mxu0 %vm10618_vm8, %v3682_v2  ;;  %4786 = vmatmul.msk.f32.gmra.mxu1 %vm10619_vm11, %v3682_v2  ;;  %vm10627_vm8 = vmmov %vm10615_vm1  ;;  %v3686_v37 = vmul.f32 %v3682_v2, %v9157_v24 }
 0x71d   :  { %v3649_v56 = vsub.f32 1.5, %v3648_v32  ;;  %4792 = vmatmul.msk.f32.gmra.mxu2 %vm10620_vm2, %v3682_v2  ;;  %4798 = vmatmul.msk.f32.gmra.mxu3 %vm10621_vm12, %v3682_v2  ;;  %vm10628_vm11 = vmmov %vm10615_vm1 }
 0x71e   :  { %v5322_v53 = vpop.eup %5321  ;;  %vm10630_vm2 = vmmov %vm10615_vm1  ;;  %v3706_v46 = vsub.f32 %v3695_v33, %v3686_v37 }
 0x71f   :  { %v3656_v18 = vmul.f32 %v5322_v53, %v3624_v26  ;;  %v3650_v63 = vmul.f32 %v5320_v23, %v3649_v56  ;;  %vm3662_vm15 = vweird.f32 %v5322_v53  ;;  %vm10631_vm12 = vmmov %vm10615_vm1 }
 0x720   :  { %vm3663_vm7 = vmor %vm3661_vm5, %vm3662_vm15 }
 0x721   :  { %v3657_v15 = vmul.f32 %v5322_v53, %v3656_v18  ;;  %v3654_v1 = vsel %vm3653_vm0, %v5320_v23, %v3650_v63  ;;  %vm10633_vm0 = vmmov %vm10615_vm1 }
 0x722   :  { %v3683_v50 = vmul.f32 %v3675_v20, %v3654_v1  ;;  %vm10638_vm15 = vmmov %vm10633_vm0 }
 0x723   :  { %v3658_v36 = vmul.f32 0.5, %v3657_v15  ;;  %vm10639_vm5 = vmmov %vm10633_vm0 }
 0x724   :  { %4781 = vmatmul.msk.f32.gmra.mxu0 %vm10622_vm3, %v3683_v50  ;;  %4787 = vmatmul.msk.f32.gmra.mxu1 %vm10623_vm9, %v3683_v50  ;;  %vm10634_vm3 = vmmov %vm10633_vm0  ;;  %v3687_v19 = vmul.f32 %v3683_v50, %v9161_v4 }
 0x725   :  { %4793 = vmatmul.msk.f32.gmra.mxu2 %vm10624_vm4, %v3683_v50  ;;  %4799 = vmatmul.msk.f32.gmra.mxu3 %vm10615_vm1, %v3683_v50  ;;  %v3659_v51 = vsub.f32 1.5, %v3658_v36  ;;  %vm10635_vm9 = vmmov %vm10633_vm0 }
 0x726   :  { %vm10636_vm4 = vmmov %vm10633_vm0  ;;  %v3707_v29 = vsub.f32 %v3699_v5, %v3687_v19 }
 0x727   :  { %v3660_v54 = vmul.f32 %v5322_v53, %v3659_v51  ;;  %vm10637_vm1 = vmmov %vm10633_vm0 }
 0x729   :  { %v3664_v25 = vsel %vm3663_vm7, %v5322_v53, %v3660_v54  ;;  %vm10640_vm7 = vmmov %vm10633_vm0 }
 0x72a   :  { %v3684_v34 = vmul.f32 %v3679_v28, %v3664_v25 }
 0x72c   :  { %4782 = vmatmul.msk.f32.gmra.mxu0 %vm10625_vm13, %v3684_v34  ;;  %4788 = vmatmul.msk.f32.gmra.mxu1 %vm10626_vm6, %v3684_v34  ;;  %v3688_v24 = vmul.f32 %v3684_v34, %v9165_v27  ;;  %vm10641_vm13 = vmmov %vm10633_vm0 }
 0x72d   :  { %4794 = vmatmul.msk.f32.gmra.mxu2 %vm10627_vm8, %v3684_v34  ;;  %4800 = vmatmul.msk.f32.gmra.mxu3 %vm10628_vm11, %v3684_v34  ;;  %vm10642_vm6 = vmmov %vm10633_vm0 }
 0x72e   :  { %v3708_v39 = vsub.f32 %v3703_v11, %v3688_v24  ;;  %vm10643_vm8 = vmmov %vm10633_vm0 }
 0x72f   :  { %vm10644_vm11 = vmmov %vm10633_vm0 }
 0x734   :  { %4803 = vmatmul.msk.f32.vlgmr.msra.gmra.mxu0 %vm10629_vm14, %v3705_v45  ;;  %4809 = vmatmul.msk.f32.vlgmr.msra.gmra.mxu1 %vm10630_vm2, %v3705_v45 }
 0x735   :  { %4815 = vmatmul.msk.f32.vlgmr.msra.gmra.mxu2 %vm10631_vm12, %v3705_v45  ;;  %4821 = vmatmul.msk.f32.vlgmr.msra.gmra.mxu3 %vm10632_vm10, %v3705_v45 }
 0x73c   :  { %4804 = vmatmul.msk.f32.gmra.mxu0 %vm10633_vm0, %v3706_v46  ;;  %4810 = vmatmul.msk.f32.gmra.mxu1 %vm10634_vm3, %v3706_v46 }
 0x73d   :  { %4816 = vmatmul.msk.f32.gmra.mxu2 %vm10635_vm9, %v3706_v46  ;;  %4822 = vmatmul.msk.f32.gmra.mxu3 %vm10636_vm4, %v3706_v46 }
 0x744   :  { %4805 = vmatmul.msk.f32.gmra.mxu0 %vm10637_vm1, %v3707_v29  ;;  %4811 = vmatmul.msk.f32.gmra.mxu1 %vm10638_vm15, %v3707_v29 }
 0x745   :  { %4817 = vmatmul.msk.f32.gmra.mxu2 %vm10639_vm5, %v3707_v29  ;;  %4823 = vmatmul.msk.f32.gmra.mxu3 %vm10640_vm7, %v3707_v29 }
 0x74c   :  { %4806 = vmatmul.msk.f32.gmra.mxu0 %vm10641_vm13, %v3708_v39  ;;  %4812 = vmatmul.msk.f32.gmra.mxu1 %vm10642_vm6, %v3708_v39 }
 0x74d   :  { %4818 = vmatmul.msk.f32.gmra.mxu2 %vm10643_vm8, %v3708_v39  ;;  %4824 = vmatmul.msk.f32.gmra.mxu3 %vm10644_vm11, %v3708_v39 }
 0x791   :  { %v3738_v4 = vpop.f32.mrf.mxu0  ;;  %v3767_v62 = vpop.f32.mrf.mxu1 }
 0x792   :  { %v3837_v26 = vmul.f32 %v3738_v4, %v9007_v55  ;;  %v3838_v40 = vmul.f32 %v3767_v62, %v9005_v42 }
 0x798   :  { %v3796_v3 = vpop.f32.mrf.mxu2  ;;  %v3825_v57 = vpop.f32.mrf.mxu3 }
 0x799   :  { %v3741_v16 = vpop.f32.mrf.mxu0  ;;  %v3770_v35 = vpop.f32.mrf.mxu1  ;;  %v3839_v55 = vmul.f32 %v3796_v3, %v9039_v14  ;;  %v3840_v42 = vmul.f32 %v3825_v57, %v9031_v49 }
 0x79a   :  { %v3841_v15 = vmul.f32 %v3741_v16, %v9013_v30  ;;  %v3842_v20 = vmul.f32 %v3770_v35, %v9011_v58 }
 0x7a0   :  { %v3799_v59 = vpop.f32.mrf.mxu2  ;;  %v3828_v6 = vpop.f32.mrf.mxu3 }
 0x7a1   :  { %v3744_v7 = vpop.f32.mrf.mxu0  ;;  %v3773_v27 = vpop.f32.mrf.mxu1  ;;  %v3843_v19 = vmul.f32 %v3799_v59, %v9058_v12  ;;  %v3844_v5 = vmul.f32 %v3828_v6, %v9047_v8 }
 0x7a2   :  { %v3845_v24 = vmul.f32 %v3744_v7, %v9019_v17  ;;  %v3846_v11 = vmul.f32 %v3773_v27, %v9017_v13 }
 0x7a8   :  { %v3802_v21 = vpop.f32.mrf.mxu2  ;;  %v9205_v9 = vpop.f32.mrf.mxu3 }
 0x7a9   :  { %v9207_v61 = vpop.f32.mrf.mxu0  ;;  %v9209_v23 = vpop.f32.mrf.mxu1  ;;  %v3847_v13 = vmul.f32 %v3802_v21, %v9068_v47 }
 0x7b0   :  { %v9213_v48 = vpop.f32.mrf.mxu2  ;;  %v9215_v10 = vpop.f32.mrf.mxu3 }
 0x7b1   :  { %v3882_v41 = vpop.f32.mrf.mxu0  ;;  %v3911_v44 = vpop.f32.mrf.mxu1 }
 0x7b2   :  { %v9217_v2 = vadd.f32 %v3882_v41, %v3837_v26  ;;  %v9219_v32 = vadd.f32 %v3911_v44, %v3838_v40  ;;  %v3848_v26 = vmul.f32 %v9205_v9, %v9063_v22  ;;  %v9264_v22 = vmul.f32 %v9209_v23, %v9023_v52 }
 0x7b3   :  { %v9268_v9 = vmul.f32 %v9213_v48, %v9078_v0 }
 0x7b4   :  { %v3997_v56 = vmin.f32 %v9217_v2, 20.0  ;;  %v3998_v53 = vmin.f32 %v9219_v32, 20.0 }
 0x7b6   :  { %v4013_v18 = vmul.f32 1.442695, %v3997_v56  ;;  %v4015_v63 = vmul.f32 1.442695, %v3998_v53  ;;  %v9260_v53 = vmul.f32 %v9207_v61, %v9026_v31  ;;  %v9272_v61 = vmul.f32 %v9215_v10, %v9073_v60 }
 0x7b8   :  { %5323 = vpow2.f32 %v4013_v18  ;;  %v3940_v1 = vpop.f32.mrf.mxu2  ;;  %v3969_v50 = vpop.f32.mrf.mxu3 }
 0x7b9   :  { %5325 = vpow2.f32 %v4015_v63  ;;  %v9227_v36 = vadd.f32 %v3940_v1, %v3839_v55  ;;  %v9229_v51 = vadd.f32 %v3969_v50, %v3840_v42  ;;  %v3885_v54 = vpop.f32.mrf.mxu0  ;;  %v3914_v28 = vpop.f32.mrf.mxu1 }
 0x7ba   :  { %v9231_v25 = vadd.f32 %v3885_v54, %v3841_v15  ;;  %v9233_v34 = vadd.f32 %v3914_v28, %v3842_v20 }
 0x7bb   :  { %v3999_v49 = vmin.f32 %v9227_v36, 20.0  ;;  %v4000_v30 = vmin.f32 %v9229_v51, 20.0 }
 0x7bc   :  { %v4001_v58 = vmin.f32 %v9231_v25, 20.0  ;;  %v4002_v14 = vmin.f32 %v9233_v34, 20.0 }
 0x7bd   :  { %v4017_v38 = vmul.f32 1.442695, %v3999_v49  ;;  %v4019_v43 = vmul.f32 1.442695, %v4000_v30 }
 0x7be   :  { %v5324_v45 = vpop.eup %5323  ;;  %v4021_v37 = vmul.f32 1.442695, %v4001_v58  ;;  %v4023_v33 = vmul.f32 1.442695, %v4002_v14 }
 0x7bf   :  { %v5326_v46 = vpop.eup %5325  ;;  %v4045_v29 = vadd.f32 1.0, %v5324_v45  ;;  %5327 = vpow2.f32 %v4017_v38 }
 0x7c0   :  { %v4046_v39 = vadd.f32 1.0, %v5326_v46  ;;  %5329 = vpow2.f32 %v4019_v43  ;;  %v3943_v4 = vpop.f32.mrf.mxu2  ;;  %v3972_v62 = vpop.f32.mrf.mxu3 }
 0x7c1   :  { %v4061_v3 = vmul.f32 %v4045_v29, %v4045_v29  ;;  %5331 = vpow2.f32 %v4021_v37  ;;  %v9243_v57 = vadd.f32 %v3943_v4, %v3843_v19  ;;  %v9245_v16 = vadd.f32 %v3972_v62, %v3844_v5  ;;  %v3888_v35 = vpop.f32.mrf.mxu0  ;;  %v3917_v12 = vpop.f32.mrf.mxu1 }
 0x7c2   :  { %v4062_v59 = vmul.f32 %v4046_v39, %v4046_v39  ;;  %5333 = vpow2.f32 %v4023_v33  ;;  %v9247_v8 = vadd.f32 %v3888_v35, %v3845_v24  ;;  %v9249_v6 = vadd.f32 %v3917_v12, %v3846_v11 }
 0x7c3   :  { %v4077_v17 = vadd.f32 1.0, %v4061_v3  ;;  %v4003_v7 = vmin.f32 %v9243_v57, 20.0  ;;  %v4004_v27 = vmin.f32 %v9245_v16, 20.0  ;;  %v4825_v23 = vadd.f32 -1.0, %v4061_v3 }
 0x7c4   :  { %v4078_v40 = vadd.f32 1.0, %v4062_v59  ;;  %v4005_v41 = vmin.f32 %v9247_v8, 20.0  ;;  %v4006_v44 = vmin.f32 %v9249_v6, 20.0  ;;  %v4826_v58 = vadd.f32 -1.0, %v4062_v59 }
 0x7c5   :  { %v5328_v56 = vpop.eup %5327  ;;  %5335 = vrcp.f32 %v4077_v17  ;;  %v4025_v47 = vmul.f32 1.442695, %v4003_v7  ;;  %v4027_v21 = vmul.f32 1.442695, %v4004_v27 }
 0x7c6   :  { %v5330_v18 = vpop.eup %5329  ;;  %5337 = vrcp.f32 %v4078_v40  ;;  %v4047_v63 = vadd.f32 1.0, %v5328_v56  ;;  %v4029_v55 = vmul.f32 1.442695, %v4005_v41  ;;  %v4031_v42 = vmul.f32 1.442695, %v4006_v44 }
 0x7c7   :  { %v5332_v15 = vpop.eup %5331  ;;  %v4048_v20 = vadd.f32 1.0, %v5330_v18  ;;  %5339 = vpow2.f32 %v4025_v47 }
 0x7c8   :  { %v5334_v31 = vpop.eup %5333  ;;  %v4063_v1 = vmul.f32 %v4047_v63, %v4047_v63  ;;  %v4049_v50 = vadd.f32 1.0, %v5332_v15  ;;  %5341 = vpow2.f32 %v4027_v21  ;;  %v3946_v54 = vpop.f32.mrf.mxu2 }
 0x7c9   :  { %v4064_v28 = vmul.f32 %v4048_v20, %v4048_v20  ;;  %v4050_v49 = vadd.f32 1.0, %v5334_v31  ;;  %5343 = vpow2.f32 %v4029_v55  ;;  %v9274_v52 = vadd.f32 %v3946_v54, %v3847_v13  ;;  %v3975_v33 = vpop.f32.mrf.mxu3 }
 0x7ca   :  { %v4079_v30 = vadd.f32 1.0, %v4063_v1  ;;  %v4065_v0 = vmul.f32 %v4049_v50, %v4049_v50  ;;  %5345 = vpow2.f32 %v4031_v42  ;;  %v9277_v45 = vadd.f32 -1.0, %v4063_v1 }
 0x7cb   :  { %v5336_v48 = vpop.eup %5335  ;;  %v4080_v14 = vadd.f32 1.0, %v4064_v28  ;;  %v4066_v38 = vmul.f32 %v4050_v49, %v4050_v49  ;;  %v4007_v60 = vmin.f32 %v9274_v52, 20.0  ;;  %v4828_v5 = vadd.f32 -1.0, %v4064_v28 }
 0x7cc   :  { %v5338_v10 = vpop.eup %5337  ;;  %v4109_v43 = vmul.f32 %v5336_v48, %v4077_v17  ;;  %5347 = vrcp.f32 %v4079_v30  ;;  %v4081_v37 = vadd.f32 1.0, %v4065_v0  ;;  %v9279_v12 = vadd.f32 %v3975_v33, %v3848_v26 }
 0x7cd   :  { %v5340_v46 = vpop.eup %5339  ;;  %v4110_v19 = vmul.f32 %v5338_v10, %v4078_v40  ;;  %5349 = vrcp.f32 %v4080_v14  ;;  %v4082_v29 = vadd.f32 1.0, %v4066_v38  ;;  %v4033_v4 = vmul.f32 1.442695, %v4007_v60 }
 0x7ce   :  { %v5342_v24 = vpop.eup %5341  ;;  %v4125_v11 = vsub.f32 2.0, %v4109_v43  ;;  %5351 = vrcp.f32 %v4081_v37  ;;  %v4051_v39 = vadd.f32 1.0, %v5340_v46  ;;  %v4829_v40 = vadd.f32 -1.0, %v4065_v0  ;;  %v3891_v46 = vpop.f32.mrf.mxu0 }
 0x7cf   :  { %v5344_v62 = vpop.eup %5343  ;;  %v4126_v3 = vsub.f32 2.0, %v4110_v19  ;;  %5353 = vrcp.f32 %v4082_v29  ;;  %v4052_v35 = vadd.f32 1.0, %v5342_v24  ;;  %v4830_v41 = vadd.f32 -1.0, %v4066_v38  ;;  %v10645_v38 = vld [vmem:[#allocation106_spill] sm:$0xff] }
 0x7d0   :  { %v5346_v59 = vpop.eup %5345  ;;  %v4141_v13 = vmul.f32 %v5336_v48, %v4125_v11  ;;  %v4067_v17 = vmul.f32 %v4051_v39, %v4051_v39  ;;  %v4053_v7 = vadd.f32 1.0, %v5344_v62  ;;  %5355 = vpow2.f32 %v4033_v4 }
 0x7d1   :  { %v4142_v27 = vmul.f32 %v5338_v10, %v4126_v3  ;;  %v4068_v44 = vmul.f32 %v4052_v35, %v4052_v35  ;;  %v4054_v63 = vadd.f32 1.0, %v5346_v59  ;;  %v4008_v20 = vmin.f32 %v9279_v12, 20.0  ;;  %v10646_v10 = vld [vmem:[#allocation107_spill] sm:$0xff] }
 0x7d2   :  { %v5348_v56 = vpop.eup %5347  ;;  %v4173_v47 = vmul.f32 %v4825_v23, %v4141_v13  ;;  %v4083_v21 = vadd.f32 1.0, %v4067_v17  ;;  %v9281_v18 = vmul.f32 %v4053_v7, %v4053_v7  ;;  %v9294_v13 = vadd.f32 %v3891_v46, %v9260_v53 }
 0x7d3   :  { %v5350_v55 = vpop.eup %5349  ;;  %v4174_v42 = vmul.f32 %v4826_v58, %v4142_v27  ;;  %v4111_v15 = vmul.f32 %v5348_v56, %v4079_v30  ;;  %v4084_v26 = vadd.f32 1.0, %v4068_v44  ;;  %v9289_v11 = vmul.f32 %v4054_v63, %v4054_v63 }
 0x7d4   :  { %v5352_v31 = vpop.eup %5351  ;;  %v4189_v1 = vmul.f32 %v4173_v47, %v9217_v2  ;;  %v4112_v50 = vmul.f32 %v5350_v55, %v4080_v14  ;;  %5357 = vrcp.f32 %v4083_v21  ;;  %v4085_v54 = vadd.f32 1.0, %v9281_v18 }
 0x7d5   :  { %v5354_v28 = vpop.eup %5353  ;;  %v4190_v49 = vmul.f32 %v4174_v42, %v9219_v32  ;;  %v4127_v23 = vsub.f32 2.0, %v4111_v15  ;;  %v4113_v0 = vmul.f32 %v5352_v31, %v4081_v37  ;;  %5359 = vrcp.f32 %v4084_v26 }
 0x7d6   :  { %v5356_v48 = vpop.eup %5355  ;;  %v4205_v58 = vadd.f32 %v4189_v1, %v10645_v38  ;;  %v4128_v30 = vsub.f32 2.0, %v4112_v50  ;;  %v4114_v60 = vmul.f32 %v5354_v28, %v4082_v29  ;;  %5361 = vrcp.f32 %v4085_v54  ;;  %v3920_v50 = vpop.f32.mrf.mxu1 }
 0x7d7   :  { %v4206_v43 = vadd.f32 %v4190_v49, %v10646_v10  ;;  %v4143_v33 = vmul.f32 %v5348_v56, %v4127_v23  ;;  %v4129_v2 = vsub.f32 2.0, %v4113_v0  ;;  %v4831_v14 = vadd.f32 -1.0, %v4067_v17  ;;  %v3949_v23 = vpop.f32.mrf.mxu2  ;;  %v3978_v0 = vpop.f32.mrf.mxu3 }
 0x7d8   :  { %4221 = vst [vmem:[#allocation8] sm:$0xff] %v4205_v58  ;;  %v4144_v19 = vmul.f32 %v5350_v55, %v4128_v30  ;;  %v4130_v24 = vsub.f32 2.0, %v4114_v60  ;;  %v4055_v32 = vadd.f32 1.0, %v5356_v48  ;;  %v4832_v4 = vadd.f32 -1.0, %v4068_v44 }
 0x7d9   :  { %4222 = vst [vmem:[#allocation8 + $0x8] sm:$0xff] %v4206_v43  ;;  %v4175_v37 = vmul.f32 %v9277_v45, %v4143_v33  ;;  %v4145_v39 = vmul.f32 %v5352_v31, %v4129_v2  ;;  %v4035_v62 = vmul.f32 1.442695, %v4008_v20  ;;  %v4086_v59 = vadd.f32 1.0, %v9289_v11  ;;  %v10648_v31 = vld [vmem:[#allocation108_spill] sm:$0xff] }
 0x7da   :  { %v5358_v29 = vpop.eup %5357  ;;  %v4176_v3 = vmul.f32 %v4828_v5, %v4144_v19  ;;  %v4146_v35 = vmul.f32 %v5354_v28, %v4130_v24  ;;  %v9297_v47 = vmul.f32 %v4055_v32, %v4055_v32  ;;  %v10647_v5 = vld [vmem:[#allocation105_spill] sm:$0xff]  ;;  %v10649_v28 = vld [vmem:[#allocation110_spill] sm:$0xff]  ;;  %v4833_v49 = vadd.f32 -1.0, %v9281_v18 }
 0x7db   :  { %v5360_v17 = vpop.eup %5359  ;;  %v4191_v7 = vmul.f32 %v4175_v37, %v9227_v36  ;;  %v4177_v27 = vmul.f32 %v4829_v40, %v4145_v39  ;;  %v4115_v56 = vmul.f32 %v5358_v29, %v4083_v21  ;;  %5363 = vrcp.f32 %v4086_v59  ;;  %v10651_v37 = vld [vmem:[#allocation109_spill] sm:$0xff] }
 0x7dc   :  { %v5362_v63 = vpop.eup %5361  ;;  %v4192_v45 = vmul.f32 %v4176_v3, %v9229_v51  ;;  %v4178_v44 = vmul.f32 %v4830_v41, %v4146_v35  ;;  %v4116_v55 = vmul.f32 %v5360_v17, %v4084_v26  ;;  %v4087_v21 = vadd.f32 1.0, %v9297_v47 }
 0x7dd   :  { %v4207_v42 = vadd.f32 %v4191_v7, %v10647_v5  ;;  %v4193_v15 = vmul.f32 %v4177_v27, %v9231_v25  ;;  %v4131_v20 = vsub.f32 2.0, %v4115_v56  ;;  %v4117_v53 = vmul.f32 %v5362_v63, %v4085_v54  ;;  %v10650_v25 = vld [vmem:[#allocation111_spill] sm:$0xff] }
 0x7de   :  { %v4208_v1 = vadd.f32 %v4192_v45, %v10648_v31  ;;  %v4194_v36 = vmul.f32 %v4178_v44, %v9233_v34  ;;  %v4132_v40 = vsub.f32 2.0, %v4116_v55  ;;  %5365 = vrcp.f32 %v4087_v21  ;;  %v10654_v31 = vld [vmem:[#allocation115_spill] sm:$0xff] }
 0x7df   :  { %4223 = vst [vmem:[#allocation8 + $0x10] sm:$0xff] %v4207_v42  ;;  %v4209_v51 = vadd.f32 %v4193_v15, %v10649_v28  ;;  %v4147_v41 = vmul.f32 %v5358_v29, %v4131_v20  ;;  %v4133_v26 = vsub.f32 2.0, %v4117_v53  ;;  %v4009_v34 = vmin.f32 %v9294_v13, 20.0  ;;  %v10652_v29 = vld [vmem:[#allocation112_spill] sm:$0xff] }
 0x7e0   :  { %4224 = vst [vmem:[#allocation8 + $0x18] sm:$0xff] %v4208_v1  ;;  %v4210_v54 = vadd.f32 %v4194_v36, %v10650_v25  ;;  %v4148_v48 = vmul.f32 %v5360_v17, %v4132_v40  ;;  %5367 = vpow2.f32 %v4035_v62  ;;  %v9310_v30 = vadd.f32 %v3920_v50, %v9264_v22 }
 0x7e1   :  { %4225 = vst [vmem:[#allocation8 + $0x20] sm:$0xff] %v4209_v51  ;;  %v4179_v38 = vmul.f32 %v4831_v14, %v4147_v41  ;;  %v4149_v58 = vmul.f32 %v5362_v63, %v4133_v26  ;;  %v5364_v60 = vpop.eup %5363  ;;  %v4037_v18 = vmul.f32 1.442695, %v4009_v34  ;;  %v9313_v43 = vadd.f32 %v3949_v23, %v9268_v9  ;;  %v10655_v23 = vld [vmem:[#allocation113_spill] sm:$0xff] }
 0x7e2   :  { %4226 = vst [vmem:[#allocation8 + $0x28] sm:$0xff] %v4210_v54  ;;  %v4180_v10 = vmul.f32 %v4832_v4, %v4148_v48  ;;  %v9316_v33 = vadd.f32 %v3978_v0, %v9272_v61  ;;  %v4118_v19 = vmul.f32 %v5364_v60, %v4086_v59  ;;  %v4010_v14 = vmin.f32 %v9310_v30, 20.0 }
 0x7e3   :  { %v4195_v2 = vmul.f32 %v4179_v38, %v9243_v57  ;;  %v4181_v46 = vmul.f32 %v4833_v49, %v4149_v58  ;;  %5369 = vpow2.f32 %v4037_v18  ;;  %v4011_v22 = vmin.f32 %v9313_v43, 20.0 }
 0x7e4   :  { %v4196_v24 = vmul.f32 %v4180_v10, %v9245_v16  ;;  %v4012_v32 = vmin.f32 %v9316_v33, 20.0  ;;  %v4134_v4 = vsub.f32 2.0, %v4118_v19  ;;  %v4039_v61 = vmul.f32 1.442695, %v4010_v14  ;;  %v5366_v62 = vpop.eup %5365  ;;  %v10653_v16 = vld [vmem:[#allocation114_spill] sm:$0xff] }
 0x7e5   :  { %v4211_v39 = vadd.f32 %v4195_v2, %v10651_v37  ;;  %v4197_v9 = vmul.f32 %v4181_v46, %v9247_v8  ;;  %v4834_v3 = vadd.f32 -1.0, %v9289_v11  ;;  %v4041_v35 = vmul.f32 1.442695, %v4011_v22 }
 0x7e6   :  { %v4212_v57 = vadd.f32 %v4196_v24, %v10652_v29  ;;  %v4043_v59 = vmul.f32 1.442695, %v4012_v32  ;;  %v5368_v17 = vpop.eup %5367  ;;  %v4150_v27 = vmul.f32 %v5364_v60, %v4134_v4  ;;  %v4119_v56 = vmul.f32 %v5366_v62, %v4087_v21 }
 0x7e7   :  { %4227 = vst [vmem:[#allocation8 + $0x30] sm:$0xff] %v4211_v39  ;;  %v4213_v7 = vadd.f32 %v4197_v9, %v10653_v16  ;;  %5371 = vpow2.f32 %v4039_v61  ;;  %v4056_v63 = vadd.f32 1.0, %v5368_v17  ;;  %v4835_v42 = vadd.f32 -1.0, %v9297_v47 }
 0x7e8   :  { %4228 = vst [vmem:[#allocation8 + $0x38] sm:$0xff] %v4212_v57  ;;  %5373 = vpow2.f32 %v4041_v35  ;;  %v4182_v8 = vmul.f32 %v4834_v3, %v4150_v27  ;;  %v4135_v45 = vsub.f32 2.0, %v4119_v56  ;;  %v10656_v3 = vld [vmem:[#allocation116_spill] sm:$0xff] }
 0x7e9   :  { %4229 = vst [vmem:[#allocation8 + $0x40] sm:$0xff] %v4213_v7  ;;  %5375 = vpow2.f32 %v4043_v59  ;;  %v5370_v44 = vpop.eup %5369  ;;  %v4072_v55 = vmul.f32 %v4056_v63, %v4056_v63 }
 0x7ea   :  { %v4198_v11 = vmul.f32 %v4182_v8, %v9249_v6  ;;  %v4151_v5 = vmul.f32 %v5366_v62, %v4135_v45  ;;  %v4057_v15 = vadd.f32 1.0, %v5370_v44  ;;  %v10657_v44 = vld [vmem:[#allocation118_spill] sm:$0xff] }
 0x7eb   :  { %v4088_v20 = vadd.f32 1.0, %v4072_v55  ;;  %v4836_v2 = vadd.f32 -1.0, %v4072_v55 }
 0x7ec   :  { %v4214_v1 = vadd.f32 %v4198_v11, %v10654_v31  ;;  %v4183_v36 = vmul.f32 %v4835_v42, %v4151_v5  ;;  %v4073_v40 = vmul.f32 %v4057_v15, %v4057_v15  ;;  %v10658_v42 = vld [vmem:[#allocation119_spill] sm:$0xff] }
 0x7ed   :  { %v5372_v53 = vpop.eup %5371  ;;  %5377 = vrcp.f32 %v4088_v20 }
 0x7ee   :  { %v5374_v21 = vpop.eup %5373  ;;  %v4058_v50 = vadd.f32 1.0, %v5372_v53  ;;  %4230 = vst [vmem:[#allocation8 + $0x48] sm:$0xff] %v4214_v1  ;;  %v4199_v51 = vmul.f32 %v4183_v36, %v9274_v52  ;;  %v4089_v41 = vadd.f32 1.0, %v4073_v40  ;;  %v4837_v39 = vadd.f32 -1.0, %v4073_v40  ;;  %v10659_v53 = vld [vmem:[#allocation117_spill] sm:$0xff] }
 0x7ef   :  { %v5376_v28 = vpop.eup %5375  ;;  %v4059_v26 = vadd.f32 1.0, %v5374_v21 }
 0x7f0   :  { %v4074_v6 = vmul.f32 %v4058_v50, %v4058_v50  ;;  %v4060_v49 = vadd.f32 1.0, %v5376_v28  ;;  %v4215_v47 = vadd.f32 %v4199_v51, %v10655_v23  ;;  %5379 = vrcp.f32 %v4089_v41 }
 0x7f1   :  { %v4075_v0 = vmul.f32 %v4059_v26, %v4059_v26 }
 0x7f2   :  { %v4090_v25 = vadd.f32 1.0, %v4074_v6  ;;  %v4076_v54 = vmul.f32 %v4060_v49, %v4060_v49  ;;  %4231 = vst [vmem:[#allocation8 + $0x50] sm:$0xff] %v4215_v47  ;;  %v4838_v17 = vadd.f32 -1.0, %v4074_v6 }
 0x7f3   :  { %v4091_v48 = vadd.f32 1.0, %v4075_v0  ;;  %v5378_v34 = vpop.eup %5377  ;;  %v4839_v56 = vadd.f32 -1.0, %v4075_v0 }
 0x7f4   :  { %5381 = vrcp.f32 %v4090_v25  ;;  %v4092_v38 = vadd.f32 1.0, %v4076_v54  ;;  %v4120_v58 = vmul.f32 %v5378_v34, %v4088_v20  ;;  %v4840_v45 = vadd.f32 -1.0, %v4076_v54 }
 0x7f5   :  { %5383 = vrcp.f32 %v4091_v48 }
 0x7f6   :  { %5385 = vrcp.f32 %v4092_v38  ;;  %v5380_v60 = vpop.eup %5379  ;;  %v4136_v52 = vsub.f32 2.0, %v4120_v58 }
 0x7f7   :  { %v4121_v10 = vmul.f32 %v5380_v60, %v4089_v41 }
 0x7f8   :  { %v4152_v18 = vmul.f32 %v5378_v34, %v4136_v52 }
 0x7f9   :  { %v4137_v19 = vsub.f32 2.0, %v4121_v10 }
 0x7fa   :  { %v5382_v46 = vpop.eup %5381  ;;  %v4184_v24 = vmul.f32 %v4836_v2, %v4152_v18 }
 0x7fb   :  { %v5384_v14 = vpop.eup %5383  ;;  %v4122_v22 = vmul.f32 %v5382_v46, %v4090_v25  ;;  %v4153_v37 = vmul.f32 %v5380_v60, %v4137_v19 }
 0x7fc   :  { %v5386_v32 = vpop.eup %5385  ;;  %v4123_v9 = vmul.f32 %v5384_v14, %v4091_v48  ;;  %v4200_v4 = vmul.f32 %v4184_v24, %v9279_v12 }
 0x7fd   :  { %v4138_v61 = vsub.f32 2.0, %v4122_v22  ;;  %v4124_v62 = vmul.f32 %v5386_v32, %v4092_v38  ;;  %v4185_v29 = vmul.f32 %v4837_v39, %v4153_v37 }
 0x7fe   :  { %v4139_v57 = vsub.f32 2.0, %v4123_v9  ;;  %v4216_v35 = vadd.f32 %v4200_v4, %v10656_v3 }
 0x7ff   :  { %v4154_v59 = vmul.f32 %v5382_v46, %v4138_v61  ;;  %v4140_v16 = vsub.f32 2.0, %v4124_v62  ;;  %v4201_v7 = vmul.f32 %v4185_v29, %v9294_v13 }
 0x800   :  { %v4155_v27 = vmul.f32 %v5384_v14, %v4139_v57  ;;  %4232 = vst [vmem:[#allocation8 + $0x58] sm:$0xff] %v4216_v35 }
 0x801   :  { %v4186_v63 = vmul.f32 %v4838_v17, %v4154_v59  ;;  %v4156_v8 = vmul.f32 %v5386_v32, %v4140_v16  ;;  %v4217_v55 = vadd.f32 %v4201_v7, %v10657_v44 }
 0x802   :  { %v4187_v12 = vmul.f32 %v4839_v56, %v4155_v27 }
 0x803   :  { %v4202_v11 = vmul.f32 %v4186_v63, %v9310_v30  ;;  %v4188_v5 = vmul.f32 %v4840_v45, %v4156_v8  ;;  %4233 = vst [vmem:[#allocation8 + $0x60] sm:$0xff] %v4217_v55  ;;  %v10660_v30 = vld [vmem:[#allocation120_spill] sm:$0xff] }
 0x804   :  { %v4203_v13 = vmul.f32 %v4187_v12, %v9313_v43 }
 0x805   :  { %v4218_v15 = vadd.f32 %v4202_v11, %v10658_v42  ;;  %v4204_v20 = vmul.f32 %v4188_v5, %v9316_v33 }
 0x806   :  { %v4219_v31 = vadd.f32 %v4203_v13, %v10659_v53 }
 0x807   :  { %4234 = vst [vmem:[#allocation8 + $0x68] sm:$0xff] %v4218_v15  ;;  %v4220_v1 = vadd.f32 %v4204_v20, %v10660_v30 }
 0x808   :  { %4235 = vst [vmem:[#allocation8 + $0x70] sm:$0xff] %v4219_v31 }
 0x809   :  { %4236 = vst [vmem:[#allocation8 + $0x78] sm:$0xff] %v4220_v1 }
 0x80a   :  { %4249 = dma.vmem_to_hbm [thread:$0]  %s4242_s16, 2048, %s4244_s19, [#allocation4], %s5513_s1, %s5513_s1, %s5514_s6  }
 0x80b   :  { %5495 = dma.done.wait [#allocation4], 2048  }
 0x80c   :  { %5496 = vsyncadd [#allocation4], 4294965248 }
 0x80d   :  { %4254 = vsyncpa [#allocation3], 1 }
 0x80e   :  { %4255 = vsyncpa [#allocation6], 1 }
 0x80f   :  { %4256 = vsyncpa [#allocation4], 1 }

</bundles_post_ra>
